<compile_context>
chip_gen: v5e
topology: v5e:2x2
jax: 0.10.0
libtpu: 0.0.40
codegen_flags: <defaults>
</compile_context>

<pallas_src>
import numpy as np
import jax
import jax.numpy as jnp
from jax.experimental import pallas as pl
from jax.experimental.pallas import tpu as pltpu

# ---- synthetic CLIP-ViT config (sized so matmul M >= 128, lane-dense D) ----
B = 8                          # frames per call
C = 3                          # image channels
IMG = 64                       # image height/width
PATCH = 16                     # patch size
GRID = IMG // PATCH            # 4
N_PATCH = GRID * GRID          # 16 patches per frame
N_TOK = N_PATCH + 1            # 17 tokens per frame (CLS + patches)
D = 128                        # transformer width (lane-dense)
H = 2                          # attention heads
HD = D // H                    # 64
MLP = 4 * D                    # 512
LAYERS = 2
OUT_DIM = 64                   # output embedding dim (projection)
OUT_PAD = 128                  # lane-dense padded output width
EPS = 1e-5
PATCH_DIM = C * PATCH * PATCH  # 768

BNP = B * N_PATCH              # 128 patch-token rows
N_REAL = BNP + B               # 136 real rows (patches then CLS tokens)
T_PAD = ((N_REAL + 7) // 8) * 8  # 136 (already sublane aligned)


def _layernorm(x, g, b):
    mu = jnp.mean(x, axis=-1, keepdims=True)
    var = jnp.mean((x - mu) ** 2, axis=-1, keepdims=True)
    return (x - mu) * jax.lax.rsqrt(var + EPS) * g + b


# ---------------------------------------------------------------------------
# One grid step = one transformer layer.  The (T_PAD, D) f32 residual slab is
# resident in a VMEM scratch across the whole grid; per-layer weights arrive
# via layer-indexed BlockSpecs.  Attention uses a block-diagonal additive mask
# so frames never mix.
# ---------------------------------------------------------------------------
def clip_encoder_kernel(patches_ref, w_patch_ref, bias_ref, amask_ref,
                        ln_pre_g, ln_pre_b,
                        ln1_g, ln1_b, wqkv, bqkv, wo, bo,
                        ln2_g, ln2_b, w1, b1, w2, b2,
                        ln_post_g, ln_post_b, proj_ref,
                        o_ref, x_ref):
    l = pl.program_id(0)

    # --- layer-0 prologue: patch embed + CLS/pos bias + ln_pre into scratch ---
    @pl.when(l == 0)
    def _():
        tok = jnp.dot(patches_ref[...], w_patch_ref[...],
                      preferred_element_type=jnp.float32)      # (BNP, D) f32
        x_ref[...] = bias_ref[...]                             # pos / CLS bias slab
        x_ref[0:BNP, :] = x_ref[0:BNP, :] + tok                # no concat/pad copy
        x_ref[...] = _layernorm(x_ref[...], ln_pre_g[...], ln_pre_b[...])

    x = x_ref[...]                                             # (T_PAD, D) f32
    amask = amask_ref[...]                                     # (T_PAD, T_PAD) f32

    # --- attention: fused QKV (128-lane aligned sections), per-head wo fold ---
    xn = _layernorm(x, ln1_g[0], ln1_b[0]).astype(jnp.bfloat16)
    qkv = jnp.dot(xn, wqkv[0], preferred_element_type=jnp.float32) + bqkv[0]
    wo_l = wo[0]                                               # (H, HD, D) bf16
    delta = jnp.zeros((T_PAD, D), jnp.float32)
    for h in range(H):                                         # static unroll, H=2
        qh = qkv[:, h * HD:(h + 1) * HD].astype(jnp.bfloat16)  # q pre-scaled by 1/sqrt(HD)
        kh = qkv[:, D + h * HD:D + (h + 1) * HD].astype(jnp.bfloat16)
        vh = qkv[:, 2 * D + h * HD:2 * D + (h + 1) * HD].astype(jnp.bfloat16)
        s = jax.lax.dot_general(qh, kh, (((1,), (1,)), ((), ())),
                                preferred_element_type=jnp.float32)
        s = s + amask                                          # mask in f32
        s = s - jnp.max(s, axis=-1, keepdims=True)
        p = jnp.exp(s)
        p = p * pl.reciprocal(jnp.sum(p, axis=-1, keepdims=True), approx=True)
        oh = jnp.dot(p.astype(jnp.bfloat16), vh,
                     preferred_element_type=jnp.float32)       # (T_PAD, HD)
        delta = delta + jnp.dot(oh.astype(jnp.bfloat16), wo_l[h],
                                preferred_element_type=jnp.float32)
    x = x + delta + bo[0]

    # --- MLP (QuickGELU, f32 nonlinearity) ---
    xn2 = _layernorm(x, ln2_g[0], ln2_b[0]).astype(jnp.bfloat16)
    h1 = jnp.dot(xn2, w1[0], preferred_element_type=jnp.float32) + b1[0]
    h1 = h1 * jax.nn.sigmoid(1.702 * h1)
    x = x + jnp.dot(h1.astype(jnp.bfloat16), w2[0],
                    preferred_element_type=jnp.float32) + b2[0]

    x_ref[...] = x

    # --- last-layer epilogue: ln_post + projection on the B CLS rows only ---
    @pl.when(l == LAYERS - 1)
    def _():
        cls = x[BNP:BNP + B, :]                                # (B, D), sublane-aligned
        cls = _layernorm(cls, ln_post_g[...], ln_post_b[...]).astype(jnp.bfloat16)
        o_ref[...] = jnp.dot(cls, proj_ref[...],
                             preferred_element_type=jnp.float32)


def _const_spec(a):
    nz = (0,) * a.ndim
    return pl.BlockSpec(a.shape, lambda l, _z=nz: _z)


def _layer_spec(a):
    rest = a.shape[1:]
    nz = (0,) * (a.ndim - 1)
    return pl.BlockSpec((1,) + rest, lambda l, _z=nz: (l,) + _z)


# ---------------------------------------------------------------------------
# One-time parameter prep (hoisted out of the per-call jitted path):
# fuse per-head QKV into lane-aligned bf16 slabs (fold 1/sqrt(HD) into Q),
# stack over layers, build the pos/CLS bias slab, the block-diagonal attention
# mask, and the lane-padded projection.
# ---------------------------------------------------------------------------
def prepare_params(params):
    scale = HD ** -0.5
    keys = ('ln1_g', 'ln1_b', 'wqkv', 'bqkv', 'wo', 'bo',
            'ln2_g', 'ln2_b', 'w1', 'b1', 'w2', 'b2')
    stacks = {k: [] for k in keys}
    for p in params['layers']:
        wq_f = p['wq'].transpose(1, 0, 2).reshape(D, H * HD) * scale
        wk_f = p['wk'].transpose(1, 0, 2).reshape(D, H * HD)
        wv_f = p['wv'].transpose(1, 0, 2).reshape(D, H * HD)
        bq_f = p['bq'].transpose(1, 0, 2).reshape(1, H * HD) * scale
        bk_f = p['bk'].transpose(1, 0, 2).reshape(1, H * HD)
        bv_f = p['bv'].transpose(1, 0, 2).reshape(1, H * HD)
        stacks['wqkv'].append(jnp.concatenate([wq_f, wk_f, wv_f], axis=1))
        stacks['bqkv'].append(jnp.concatenate([bq_f, bk_f, bv_f], axis=1))
        stacks['wo'].append(p['wo'])                  # (H, HD, D) per-head slabs
        stacks['bo'].append(p['bo'])
        for k in ('ln1_g', 'ln1_b', 'ln2_g', 'ln2_b', 'w1', 'b1', 'w2', 'b2'):
            stacks[k].append(p[k])
    fused = {k: jnp.stack(v, axis=0) for k, v in stacks.items()}
    for k in ('wqkv', 'wo', 'w1', 'w2'):              # MXU operands in bf16
        fused[k] = fused[k].astype(jnp.bfloat16)

    pos = params['pos']                               # (N_TOK, D)
    cls = params['cls']                               # (D,)
    patch_pos = jnp.tile(pos[1:], (B, 1))             # (BNP, D)
    cls_rows = jnp.broadcast_to((cls + pos[0])[None, :], (B, D))
    pad_rows = jnp.zeros((T_PAD - N_REAL, D), jnp.float32)
    bias_slab = jnp.concatenate([patch_pos, cls_rows, pad_rows], axis=0)

    bid = np.full((T_PAD,), -1, dtype=np.int32)       # frame id per row
    for b in range(B):
        bid[b * N_PATCH:(b + 1) * N_PATCH] = b
        bid[BNP + b] = b
    allowed = bid[:, None] == bid[None, :]
    amask = jnp.asarray(np.where(allowed, 0.0, -1e9), dtype=jnp.float32)

    proj_pad = jnp.concatenate(
        [params['proj'], jnp.zeros((D, OUT_PAD - OUT_DIM), jnp.float32)],
        axis=1).astype(jnp.bfloat16)                  # (D, 128)

    fused.update(
        w_patch=params['w_patch'].astype(jnp.bfloat16),
        bias=bias_slab, amask=amask,
        ln_pre_g=params['ln_pre_g'], ln_pre_b=params['ln_pre_b'],
        ln_post_g=params['ln_post_g'], ln_post_b=params['ln_post_b'],
        proj_pad=proj_pad)
    return fused


def nchw_to_patches(x):
    # (B, C, H, W) -> (B*Np, C*P*P), same flattening order as torch conv weight
    b = x.shape[0]
    x = x.reshape(b, C, GRID, PATCH, GRID, PATCH)
    x = x.transpose(0, 2, 4, 1, 3, 5)                 # (B, Gh, Gw, C, P, P)
    return x.reshape(b * N_PATCH, PATCH_DIM)


@jax.jit
def encode_image(x_nchw, fp):
    patches = nchw_to_patches(x_nchw).astype(jnp.bfloat16)      # (BNP, PATCH_DIM)

    args = (patches, fp['w_patch'], fp['bias'], fp['amask'],
            fp['ln_pre_g'], fp['ln_pre_b'],
            fp['ln1_g'], fp['ln1_b'], fp['wqkv'], fp['bqkv'], fp['wo'], fp['bo'],
            fp['ln2_g'], fp['ln2_b'], fp['w1'], fp['b1'], fp['w2'], fp['b2'],
            fp['ln_post_g'], fp['ln_post_b'], fp['proj_pad'])
    in_specs = ([_const_spec(a) for a in args[:6]]
                + [_layer_spec(a) for a in args[6:18]]
                + [_const_spec(a) for a in args[18:]])

    out = pl.pallas_call(
        clip_encoder_kernel,
        out_shape=jax.ShapeDtypeStruct((B, OUT_PAD), jnp.float32),
        grid=(LAYERS,),
        in_specs=in_specs,
        out_specs=pl.BlockSpec((B, OUT_PAD), lambda l: (0, 0)),
        scratch_shapes=[pltpu.VMEM((T_PAD, D), jnp.float32)],
        compiler_params=pltpu.CompilerParams(
            dimension_semantics=("arbitrary",)),
    )(*args)
    return out[:, :OUT_DIM]


# ---------------------------------------------------------------------------
# Parameter init (deterministic, synthetic).
# ---------------------------------------------------------------------------
def init_params(key):
    ks = list(jax.random.split(key, 8 + LAYERS))
    std = 0.02
    params = {
        'w_patch': jax.random.normal(ks[0], (PATCH_DIM, D), jnp.float32) * std,
        'cls': jax.random.normal(ks[1], (D,), jnp.float32) * std,
        'pos': jax.random.normal(ks[2], (N_TOK, D), jnp.float32) * std,
        'ln_pre_g': jnp.ones((1, D), jnp.float32),
        'ln_pre_b': jnp.zeros((1, D), jnp.float32),
        'ln_post_g': jnp.ones((1, D), jnp.float32),
        'ln_post_b': jnp.zeros((1, D), jnp.float32),
        'proj': jax.random.normal(ks[3], (D, OUT_DIM), jnp.float32) * std,
        'layers': [],
    }
    for l in range(LAYERS):
        lk = jax.random.split(ks[8 + l], 12)
        layer = {
            'ln1_g': jnp.ones((1, D), jnp.float32),
            'ln1_b': jnp.zeros((1, D), jnp.float32),
            'wq': jax.random.normal(lk[0], (H, D, HD), jnp.float32) * std,
            'wk': jax.random.normal(lk[1], (H, D, HD), jnp.float32) * std,
            'wv': jax.random.normal(lk[2], (H, D, HD), jnp.float32) * std,
            'bq': jax.random.normal(lk[3], (H, 1, HD), jnp.float32) * std,
            'bk': jax.random.normal(lk[4], (H, 1, HD), jnp.float32) * std,
            'bv': jax.random.normal(lk[5], (H, 1, HD), jnp.float32) * std,
            'wo': jax.random.normal(lk[6], (H, HD, D), jnp.float32) * std,
            'bo': jax.random.normal(lk[7], (1, D), jnp.float32) * std,
            'ln2_g': jnp.ones((1, D), jnp.float32),
            'ln2_b': jnp.zeros((1, D), jnp.float32),
            'w1': jax.random.normal(lk[8], (D, MLP), jnp.float32) * std,
            'b1': jax.random.normal(lk[9], (1, MLP), jnp.float32) * std,
            'w2': jax.random.normal(lk[10], (MLP, D), jnp.float32) * std,
            'b2': jax.random.normal(lk[11], (1, D), jnp.float32) * std,
        }
        params['layers'].append(layer)
    return params


# ---------------------------------------------------------------------------
# Pure-JAX f32 reference (per-head weights) for a correctness check.
# ---------------------------------------------------------------------------
def _ln_ref(x, g, b):
    mu = jnp.mean(x, axis=-1, keepdims=True)
    var = jnp.mean((x - mu) ** 2, axis=-1, keepdims=True)
    return (x - mu) * jax.lax.rsqrt(var + EPS) * g + b


def ref_encode_image(x_nchw, params):
    patches = nchw_to_patches(x_nchw).astype(jnp.float32)
    tok = (patches @ params['w_patch']).reshape(B, N_PATCH, D)
    cls = jnp.broadcast_to(params['cls'][None, None, :], (B, 1, D))
    x = jnp.concatenate([cls, tok], axis=1) + params['pos'][None]
    x = _ln_ref(x, params['ln_pre_g'][0], params['ln_pre_b'][0])
    scale = 1.0 / jnp.sqrt(jnp.float32(HD))
    for l in range(LAYERS):
        p = params['layers'][l]
        xn = _ln_ref(x, p['ln1_g'][0], p['ln1_b'][0])
        acc = jnp.zeros_like(x)
        for h in range(H):
            q = (xn @ p['wq'][h] + p['bq'][h]) * scale
            k = xn @ p['wk'][h] + p['bk'][h]
            v = xn @ p['wv'][h] + p['bv'][h]
            s = jnp.einsum('bqd,bkd->bqk', q, k)
            pw = jax.nn.softmax(s, axis=-1)
            oh = jnp.einsum('bqk,bkd->bqd', pw, v)
            acc = acc + oh @ p['wo'][h]
        x = x + acc + p['bo'][0]
        xn2 = _ln_ref(x, p['ln2_g'][0], p['ln2_b'][0])
        h1 = xn2 @ p['w1'] + p['b1'][0]
        h1 = h1 * jax.nn.sigmoid(1.702 * h1)
        x = x + h1 @ p['w2'] + p['b2'][0]
    cls_tok = _ln_ref(x[:, 0, :], params['ln_post_g'][0], params['ln_post_b'][0])
    return cls_tok @ params['proj']


if __name__ == "__main__":
    key = jax.random.PRNGKey(0)
    k_img, k_par = jax.random.split(key)
    frames = jax.random.normal(k_img, (B, C, IMG, IMG), jnp.float32)   # NCHW
    params = init_params(k_par)
    fused = prepare_params(params)        # one-time weight prep, not per call

    feats = jax.block_until_ready(encode_image(frames, fused))
    ref = jax.block_until_ready(ref_encode_image(frames, params))

    assert feats.shape == (B, OUT_DIM)
    assert bool(jnp.all(jnp.isfinite(feats)))
    # bf16 MXU operands + approximate softmax reciprocal vs a pure-f32 reference.
    assert bool(jnp.allclose(feats, ref, atol=2e-2, rtol=2e-2)), "mismatch vs reference"

    print("KERNEL_OK")
</pallas_src>

<mosaic_0001>
module attributes {stable_mosaic.version = 11 : i64} {
  func.func @clip_encoder_kernel(%arg0: i32, %arg1: memref<128x768xbf16, #tpu.memory_space<vmem>>, %arg2: memref<768x128xbf16, #tpu.memory_space<vmem>>, %arg3: memref<136x128xf32, #tpu.memory_space<vmem>>, %arg4: memref<136x136xf32, #tpu.memory_space<vmem>>, %arg5: memref<1x128xf32, #tpu.memory_space<vmem>>, %arg6: memref<1x128xf32, #tpu.memory_space<vmem>>, %arg7: memref<1x1x128xf32, #tpu.memory_space<vmem>>, %arg8: memref<1x1x128xf32, #tpu.memory_space<vmem>>, %arg9: memref<1x128x384xbf16, #tpu.memory_space<vmem>>, %arg10: memref<1x1x384xf32, #tpu.memory_space<vmem>>, %arg11: memref<1x2x64x128xbf16, #tpu.memory_space<vmem>>, %arg12: memref<1x1x128xf32, #tpu.memory_space<vmem>>, %arg13: memref<1x1x128xf32, #tpu.memory_space<vmem>>, %arg14: memref<1x1x128xf32, #tpu.memory_space<vmem>>, %arg15: memref<1x128x512xbf16, #tpu.memory_space<vmem>>, %arg16: memref<1x1x512xf32, #tpu.memory_space<vmem>>, %arg17: memref<1x512x128xbf16, #tpu.memory_space<vmem>>, %arg18: memref<1x1x128xf32, #tpu.memory_space<vmem>>, %arg19: memref<1x128xf32, #tpu.memory_space<vmem>>, %arg20: memref<1x128xf32, #tpu.memory_space<vmem>>, %arg21: memref<128x128xbf16, #tpu.memory_space<vmem>>, %arg22: memref<8x128xf32, #tpu.memory_space<vmem>>, %arg23: memref<136x128xf32, #tpu.memory_space<vmem>>) attributes {dimension_semantics = [#tpu.dimension_semantics<arbitrary>], iteration_bounds = array<i64: 2>, scalar_prefetch = 0 : i64, scratch_operands = 1 : i64, tpu.core_type = #tpu.core_type<tc>, window_params = [{pipeline_mode = #tpu.pipeline_mode<synchronous>, transform_indices = @transform_0, window_bounds = array<i64: 128, 768>}, {pipeline_mode = #tpu.pipeline_mode<synchronous>, transform_indices = @transform_1, window_bounds = array<i64: 768, 128>}, {pipeline_mode = #tpu.pipeline_mode<synchronous>, transform_indices = @transform_2, window_bounds = array<i64: 136, 128>}, {pipeline_mode = #tpu.pipeline_mode<synchronous>, transform_indices = @transform_3, window_bounds = array<i64: 136, 136>}, {pipeline_mode = #tpu.pipeline_mode<synchronous>, transform_indices = @transform_4, window_bounds = array<i64: 1, 128>}, {pipeline_mode = #tpu.pipeline_mode<synchronous>, transform_indices = @transform_5, window_bounds = array<i64: 1, 128>}, {transform_indices = @transform_6, window_bounds = array<i64: 1, 1, 128>}, {transform_indices = @transform_7, window_bounds = array<i64: 1, 1, 128>}, {transform_indices = @transform_8, window_bounds = array<i64: 1, 128, 384>}, {transform_indices = @transform_9, window_bounds = array<i64: 1, 1, 384>}, {transform_indices = @transform_10, window_bounds = array<i64: 1, 2, 64, 128>}, {transform_indices = @transform_11, window_bounds = array<i64: 1, 1, 128>}, {transform_indices = @transform_12, window_bounds = array<i64: 1, 1, 128>}, {transform_indices = @transform_13, window_bounds = array<i64: 1, 1, 128>}, {transform_indices = @transform_14, window_bounds = array<i64: 1, 128, 512>}, {transform_indices = @transform_15, window_bounds = array<i64: 1, 1, 512>}, {transform_indices = @transform_16, window_bounds = array<i64: 1, 512, 128>}, {transform_indices = @transform_17, window_bounds = array<i64: 1, 1, 128>}, {pipeline_mode = #tpu.pipeline_mode<synchronous>, transform_indices = @transform_18, window_bounds = array<i64: 1, 128>}, {pipeline_mode = #tpu.pipeline_mode<synchronous>, transform_indices = @transform_19, window_bounds = array<i64: 1, 128>}, {pipeline_mode = #tpu.pipeline_mode<synchronous>, transform_indices = @transform_20, window_bounds = array<i64: 128, 128>}, {pipeline_mode = #tpu.pipeline_mode<synchronous>, transform_indices = @transform_21, window_bounds = array<i64: 8, 128>}]} {
    %c0_i32 = arith.constant 0 : i32
    %0 = arith.cmpi eq, %arg0, %c0_i32 : i32
    %1 = arith.extui %0 : i1 to i32
    %c0_i32_0 = arith.constant 0 : i32
    %2 = arith.cmpi ne, %1, %c0_i32_0 : i32
    scf.if %2 {
      %c0_69 = arith.constant 0 : index
      %c0_70 = arith.constant 0 : index
      %152 = vector.load %arg1[%c0_69, %c0_70] : memref<128x768xbf16, #tpu.memory_space<vmem>>, vector<128x768xbf16>
      %c0_71 = arith.constant 0 : index
      %c0_72 = arith.constant 0 : index
      %153 = vector.load %arg2[%c0_71, %c0_72] : memref<768x128xbf16, #tpu.memory_space<vmem>>, vector<768x128xbf16>
      %cst_73 = arith.constant dense<0.000000e+00> : vector<128x128xf32>
      %154 = tpu.matmul %152, %153, %cst_73 {dimension_numbers = #tpu.dot_dimension_numbers<[1], [0], [0], [1], [0, 0, 1, 1], [], []>} : vector<128x768xbf16>, vector<768x128xbf16>, vector<128x128xf32> -> vector<128x128xf32>
      %c0_74 = arith.constant 0 : index
      %c0_75 = arith.constant 0 : index
      %155 = vector.load %arg3[%c0_74, %c0_75] : memref<136x128xf32, #tpu.memory_space<vmem>>, vector<136x128xf32>
      %c0_76 = arith.constant 0 : index
      %c0_77 = arith.constant 0 : index
      %156 = vector.load %arg23[%c0_76, %c0_77] : memref<136x128xf32, #tpu.memory_space<vmem>>, vector<136x128xf32>
      tpu.vector_store %arg23[%c0_76, %c0_77], %155 {strides = array<i32>} : memref<136x128xf32, #tpu.memory_space<vmem>>, vector<136x128xf32>,
      %c0_78 = arith.constant 0 : index
      %c0_79 = arith.constant 0 : index
      %157 = vector.load %arg23[%c0_78, %c0_79] : memref<136x128xf32, #tpu.memory_space<vmem>>, vector<128x128xf32>
      %158 = arith.addf %157, %154 : vector<128x128xf32>
      %c0_80 = arith.constant 0 : index
      %c0_81 = arith.constant 0 : index
      %159 = vector.load %arg23[%c0_80, %c0_81] : memref<136x128xf32, #tpu.memory_space<vmem>>, vector<128x128xf32>
      tpu.vector_store %arg23[%c0_80, %c0_81], %158 {strides = array<i32>} : memref<136x128xf32, #tpu.memory_space<vmem>>, vector<128x128xf32>,
      %c0_82 = arith.constant 0 : index
      %c0_83 = arith.constant 0 : index
      %160 = vector.load %arg23[%c0_82, %c0_83] : memref<136x128xf32, #tpu.memory_space<vmem>>, vector<136x128xf32>
      %c0_84 = arith.constant 0 : index
      %c0_85 = arith.constant 0 : index
      %161 = vector.load %arg5[%c0_84, %c0_85] : memref<1x128xf32, #tpu.memory_space<vmem>>, vector<1x128xf32>
      %c0_86 = arith.constant 0 : index
      %c0_87 = arith.constant 0 : index
      %162 = vector.load %arg6[%c0_86, %c0_87] : memref<1x128xf32, #tpu.memory_space<vmem>>, vector<1x128xf32>
      %cst_88 = arith.constant dense<0.000000e+00> : vector<136xf32>
      %163 = vector.multi_reduction <add>, %160, %cst_88 [1] : vector<136x128xf32> to vector<136xf32>
      %164 = vector.shape_cast %163 : vector<136xf32> to vector<136x1xf32>
      %cst_89 = arith.constant 1.280000e+02 : f32
      %165 = vector.broadcast %cst_89 : f32 to vector<136x1xf32>
      %166 = arith.divf %164, %165 : vector<136x1xf32>
      %167 = vector.broadcast %166 : vector<136x1xf32> to vector<136x128xf32>
      %168 = arith.subf %160, %167 : vector<136x128xf32>
      %169 = arith.mulf %168, %168 : vector<136x128xf32>
      %cst_90 = arith.constant dense<0.000000e+00> : vector<136xf32>
      %170 = vector.multi_reduction <add>, %169, %cst_90 [1] : vector<136x128xf32> to vector<136xf32>
      %171 = vector.shape_cast %170 : vector<136xf32> to vector<136x1xf32>
      %cst_91 = arith.constant 1.280000e+02 : f32
      %172 = vector.broadcast %cst_91 : f32 to vector<136x1xf32>
      %173 = arith.divf %171, %172 : vector<136x1xf32>
      %174 = vector.broadcast %166 : vector<136x1xf32> to vector<136x128xf32>
      %175 = arith.subf %160, %174 : vector<136x128xf32>
      %cst_92 = arith.constant 9.99999974E-6 : f32
      %176 = vector.broadcast %cst_92 : f32 to vector<136x1xf32>
      %177 = arith.addf %173, %176 : vector<136x1xf32>
      %178 = math.rsqrt %177 : vector<136x1xf32>
      %179 = vector.broadcast %178 : vector<136x1xf32> to vector<136x128xf32>
      %180 = arith.mulf %175, %179 : vector<136x128xf32>
      %181 = vector.broadcast %161 : vector<1x128xf32> to vector<136x128xf32>
      %182 = arith.mulf %180, %181 : vector<136x128xf32>
      %183 = vector.broadcast %162 : vector<1x128xf32> to vector<136x128xf32>
      %184 = arith.addf %182, %183 : vector<136x128xf32>
      %c0_93 = arith.constant 0 : index
      %c0_94 = arith.constant 0 : index
      %185 = vector.load %arg23[%c0_93, %c0_94] : memref<136x128xf32, #tpu.memory_space<vmem>>, vector<136x128xf32>
      tpu.vector_store %arg23[%c0_93, %c0_94], %184 {strides = array<i32>} : memref<136x128xf32, #tpu.memory_space<vmem>>, vector<136x128xf32>,
    } else {
    }
    %c0 = arith.constant 0 : index
    %c0_1 = arith.constant 0 : index
    %3 = vector.load %arg23[%c0, %c0_1] : memref<136x128xf32, #tpu.memory_space<vmem>>, vector<136x128xf32>
    %c0_2 = arith.constant 0 : index
    %c0_3 = arith.constant 0 : index
    %4 = vector.load %arg4[%c0_2, %c0_3] : memref<136x136xf32, #tpu.memory_space<vmem>>, vector<136x136xf32>
    %c0_4 = arith.constant 0 : index
    %c0_5 = arith.constant 0 : index
    %c0_6 = arith.constant 0 : index
    %5 = vector.load %arg7[%c0_4, %c0_5, %c0_6] : memref<1x1x128xf32, #tpu.memory_space<vmem>>, vector<1x1x128xf32>
    %6 = vector.shape_cast %5 : vector<1x1x128xf32> to vector<1x128xf32>
    %c0_7 = arith.constant 0 : index
    %c0_8 = arith.constant 0 : index
    %c0_9 = arith.constant 0 : index
    %7 = vector.load %arg8[%c0_7, %c0_8, %c0_9] : memref<1x1x128xf32, #tpu.memory_space<vmem>>, vector<1x1x128xf32>
    %8 = vector.shape_cast %7 : vector<1x1x128xf32> to vector<1x128xf32>
    %cst = arith.constant dense<0.000000e+00> : vector<136xf32>
    %9 = vector.multi_reduction <add>, %3, %cst [1] : vector<136x128xf32> to vector<136xf32>
    %10 = vector.shape_cast %9 : vector<136xf32> to vector<136x1xf32>
    %cst_10 = arith.constant 1.280000e+02 : f32
    %11 = vector.broadcast %cst_10 : f32 to vector<136x1xf32>
    %12 = arith.divf %10, %11 : vector<136x1xf32>
    %13 = vector.broadcast %12 : vector<136x1xf32> to vector<136x128xf32>
    %14 = arith.subf %3, %13 : vector<136x128xf32>
    %15 = arith.mulf %14, %14 : vector<136x128xf32>
    %cst_11 = arith.constant dense<0.000000e+00> : vector<136xf32>
    %16 = vector.multi_reduction <add>, %15, %cst_11 [1] : vector<136x128xf32> to vector<136xf32>
    %17 = vector.shape_cast %16 : vector<136xf32> to vector<136x1xf32>
    %cst_12 = arith.constant 1.280000e+02 : f32
    %18 = vector.broadcast %cst_12 : f32 to vector<136x1xf32>
    %19 = arith.divf %17, %18 : vector<136x1xf32>
    %20 = vector.broadcast %12 : vector<136x1xf32> to vector<136x128xf32>
    %21 = arith.subf %3, %20 : vector<136x128xf32>
    %cst_13 = arith.constant 9.99999974E-6 : f32
    %22 = vector.broadcast %cst_13 : f32 to vector<136x1xf32>
    %23 = arith.addf %19, %22 : vector<136x1xf32>
    %24 = math.rsqrt %23 : vector<136x1xf32>
    %25 = vector.broadcast %24 : vector<136x1xf32> to vector<136x128xf32>
    %26 = arith.mulf %21, %25 : vector<136x128xf32>
    %27 = vector.broadcast %6 : vector<1x128xf32> to vector<136x128xf32>
    %28 = arith.mulf %26, %27 : vector<136x128xf32>
    %29 = vector.broadcast %8 : vector<1x128xf32> to vector<136x128xf32>
    %30 = arith.addf %28, %29 : vector<136x128xf32>
    %31 = arith.truncf %30 : vector<136x128xf32> to vector<136x128xbf16>
    %c0_14 = arith.constant 0 : index
    %c0_15 = arith.constant 0 : index
    %c0_16 = arith.constant 0 : index
    %32 = vector.load %arg9[%c0_14, %c0_15, %c0_16] : memref<1x128x384xbf16, #tpu.memory_space<vmem>>, vector<1x128x384xbf16>
    %33 = vector.shape_cast %32 : vector<1x128x384xbf16> to vector<128x384xbf16>
    %cst_17 = arith.constant dense<0.000000e+00> : vector<136x384xf32>
    %34 = tpu.matmul %31, %33, %cst_17 {dimension_numbers = #tpu.dot_dimension_numbers<[1], [0], [0], [1], [0, 0, 1, 1], [], []>} : vector<136x128xbf16>, vector<128x384xbf16>, vector<136x384xf32> -> vector<136x384xf32>
    %c0_18 = arith.constant 0 : index
    %c0_19 = arith.constant 0 : index
    %c0_20 = arith.constant 0 : index
    %35 = vector.load %arg10[%c0_18, %c0_19, %c0_20] : memref<1x1x384xf32, #tpu.memory_space<vmem>>, vector<1x1x384xf32>
    %36 = vector.shape_cast %35 : vector<1x1x384xf32> to vector<1x384xf32>
    %37 = vector.broadcast %36 : vector<1x384xf32> to vector<136x384xf32>
    %38 = arith.addf %34, %37 : vector<136x384xf32>
    %c0_21 = arith.constant 0 : index
    %c0_22 = arith.constant 0 : index
    %c0_23 = arith.constant 0 : index
    %c0_24 = arith.constant 0 : index
    %39 = vector.load %arg11[%c0_21, %c0_22, %c0_23, %c0_24] : memref<1x2x64x128xbf16, #tpu.memory_space<vmem>>, vector<1x2x64x128xbf16>
    %40 = vector.shape_cast %39 : vector<1x2x64x128xbf16> to vector<2x64x128xbf16>
    %cst_25 = arith.constant 0.000000e+00 : f32
    %41 = vector.broadcast %cst_25 : f32 to vector<136x128xf32>
    %42 = vector.extract_strided_slice %38 {offsets = [0, 0], sizes = [136, 64], strides = [1, 1]} : vector<136x384xf32> to vector<136x64xf32>
    %43 = arith.truncf %42 : vector<136x64xf32> to vector<136x64xbf16>
    %44 = vector.extract_strided_slice %38 {offsets = [0, 128], sizes = [136, 64], strides = [1, 1]} : vector<136x384xf32> to vector<136x64xf32>
    %45 = arith.truncf %44 : vector<136x64xf32> to vector<136x64xbf16>
    %46 = vector.extract_strided_slice %38 {offsets = [0, 256], sizes = [136, 64], strides = [1, 1]} : vector<136x384xf32> to vector<136x64xf32>
    %47 = arith.truncf %46 : vector<136x64xf32> to vector<136x64xbf16>
    %cst_26 = arith.constant dense<0.000000e+00> : vector<136x136xf32>
    %48 = tpu.matmul %43, %45, %cst_26 {dimension_numbers = #tpu.dot_dimension_numbers<[1], [1], [0], [0], [0, 0, 1, 0], [], []>} : vector<136x64xbf16>, vector<136x64xbf16>, vector<136x136xf32> -> vector<136x136xf32>
    %49 = arith.addf %48, %4 : vector<136x136xf32>
    %cst_27 = arith.constant dense<0xFF800000> : vector<136xf32>
    %50 = vector.multi_reduction <maximumf>, %49, %cst_27 [1] : vector<136x136xf32> to vector<136xf32>
    %51 = vector.shape_cast %50 : vector<136xf32> to vector<136x1xf32>
    %52 = vector.broadcast %51 : vector<136x1xf32> to vector<136x136xf32>
    %53 = arith.subf %49, %52 : vector<136x136xf32>
    %54 = math.exp %53 : vector<136x136xf32>
    %cst_28 = arith.constant dense<0.000000e+00> : vector<136xf32>
    %55 = vector.multi_reduction <add>, %54, %cst_28 [1] : vector<136x136xf32> to vector<136xf32>
    %56 = vector.shape_cast %55 : vector<136xf32> to vector<136x1xf32>
    %57 = tpu.reciprocal %56 {approx = true} : vector<136x1xf32> -> vector<136x1xf32>
    %58 = vector.broadcast %57 : vector<136x1xf32> to vector<136x136xf32>
    %59 = arith.mulf %54, %58 : vector<136x136xf32>
    %60 = arith.truncf %59 : vector<136x136xf32> to vector<136x136xbf16>
    %cst_29 = arith.constant dense<0.000000e+00> : vector<136x64xf32>
    %61 = tpu.matmul %60, %47, %cst_29 {dimension_numbers = #tpu.dot_dimension_numbers<[1], [0], [0], [1], [0, 0, 1, 1], [], []>} : vector<136x136xbf16>, vector<136x64xbf16>, vector<136x64xf32> -> vector<136x64xf32>
    %62 = arith.truncf %61 : vector<136x64xf32> to vector<136x64xbf16>
    %63 = vector.extract_strided_slice %40 {offsets = [0, 0, 0], sizes = [1, 64, 128], strides = [1, 1, 1]} : vector<2x64x128xbf16> to vector<1x64x128xbf16>
    %64 = vector.shape_cast %63 : vector<1x64x128xbf16> to vector<64x128xbf16>
    %cst_30 = arith.constant dense<0.000000e+00> : vector<136x128xf32>
    %65 = tpu.matmul %62, %64, %cst_30 {dimension_numbers = #tpu.dot_dimension_numbers<[1], [0], [0], [1], [0, 0, 1, 1], [], []>} : vector<136x64xbf16>, vector<64x128xbf16>, vector<136x128xf32> -> vector<136x128xf32>
    %66 = arith.addf %41, %65 : vector<136x128xf32>
    %67 = vector.extract_strided_slice %38 {offsets = [0, 64], sizes = [136, 64], strides = [1, 1]} : vector<136x384xf32> to vector<136x64xf32>
    %68 = arith.truncf %67 : vector<136x64xf32> to vector<136x64xbf16>
    %69 = vector.extract_strided_slice %38 {offsets = [0, 192], sizes = [136, 64], strides = [1, 1]} : vector<136x384xf32> to vector<136x64xf32>
    %70 = arith.truncf %69 : vector<136x64xf32> to vector<136x64xbf16>
    %71 = vector.extract_strided_slice %38 {offsets = [0, 320], sizes = [136, 64], strides = [1, 1]} : vector<136x384xf32> to vector<136x64xf32>
    %72 = arith.truncf %71 : vector<136x64xf32> to vector<136x64xbf16>
    %cst_31 = arith.constant dense<0.000000e+00> : vector<136x136xf32>
    %73 = tpu.matmul %68, %70, %cst_31 {dimension_numbers = #tpu.dot_dimension_numbers<[1], [1], [0], [0], [0, 0, 1, 0], [], []>} : vector<136x64xbf16>, vector<136x64xbf16>, vector<136x136xf32> -> vector<136x136xf32>
    %74 = arith.addf %73, %4 : vector<136x136xf32>
    %cst_32 = arith.constant dense<0xFF800000> : vector<136xf32>
    %75 = vector.multi_reduction <maximumf>, %74, %cst_32 [1] : vector<136x136xf32> to vector<136xf32>
    %76 = vector.shape_cast %75 : vector<136xf32> to vector<136x1xf32>
    %77 = vector.broadcast %76 : vector<136x1xf32> to vector<136x136xf32>
    %78 = arith.subf %74, %77 : vector<136x136xf32>
    %79 = math.exp %78 : vector<136x136xf32>
    %cst_33 = arith.constant dense<0.000000e+00> : vector<136xf32>
    %80 = vector.multi_reduction <add>, %79, %cst_33 [1] : vector<136x136xf32> to vector<136xf32>
    %81 = vector.shape_cast %80 : vector<136xf32> to vector<136x1xf32>
    %82 = tpu.reciprocal %81 {approx = true} : vector<136x1xf32> -> vector<136x1xf32>
    %83 = vector.broadcast %82 : vector<136x1xf32> to vector<136x136xf32>
    %84 = arith.mulf %79, %83 : vector<136x136xf32>
    %85 = arith.truncf %84 : vector<136x136xf32> to vector<136x136xbf16>
    %cst_34 = arith.constant dense<0.000000e+00> : vector<136x64xf32>
    %86 = tpu.matmul %85, %72, %cst_34 {dimension_numbers = #tpu.dot_dimension_numbers<[1], [0], [0], [1], [0, 0, 1, 1], [], []>} : vector<136x136xbf16>, vector<136x64xbf16>, vector<136x64xf32> -> vector<136x64xf32>
    %87 = arith.truncf %86 : vector<136x64xf32> to vector<136x64xbf16>
    %88 = vector.extract_strided_slice %40 {offsets = [1, 0, 0], sizes = [1, 64, 128], strides = [1, 1, 1]} : vector<2x64x128xbf16> to vector<1x64x128xbf16>
    %89 = vector.shape_cast %88 : vector<1x64x128xbf16> to vector<64x128xbf16>
    %cst_35 = arith.constant dense<0.000000e+00> : vector<136x128xf32>
    %90 = tpu.matmul %87, %89, %cst_35 {dimension_numbers = #tpu.dot_dimension_numbers<[1], [0], [0], [1], [0, 0, 1, 1], [], []>} : vector<136x64xbf16>, vector<64x128xbf16>, vector<136x128xf32> -> vector<136x128xf32>
    %91 = arith.addf %66, %90 : vector<136x128xf32>
    %92 = arith.addf %3, %91 : vector<136x128xf32>
    %c0_36 = arith.constant 0 : index
    %c0_37 = arith.constant 0 : index
    %c0_38 = arith.constant 0 : index
    %93 = vector.load %arg12[%c0_36, %c0_37, %c0_38] : memref<1x1x128xf32, #tpu.memory_space<vmem>>, vector<1x1x128xf32>
    %94 = vector.shape_cast %93 : vector<1x1x128xf32> to vector<1x128xf32>
    %95 = vector.broadcast %94 : vector<1x128xf32> to vector<136x128xf32>
    %96 = arith.addf %92, %95 : vector<136x128xf32>
    %c0_39 = arith.constant 0 : index
    %c0_40 = arith.constant 0 : index
    %c0_41 = arith.constant 0 : index
    %97 = vector.load %arg13[%c0_39, %c0_40, %c0_41] : memref<1x1x128xf32, #tpu.memory_space<vmem>>, vector<1x1x128xf32>
    %98 = vector.shape_cast %97 : vector<1x1x128xf32> to vector<1x128xf32>
    %c0_42 = arith.constant 0 : index
    %c0_43 = arith.constant 0 : index
    %c0_44 = arith.constant 0 : index
    %99 = vector.load %arg14[%c0_42, %c0_43, %c0_44] : memref<1x1x128xf32, #tpu.memory_space<vmem>>, vector<1x1x128xf32>
    %100 = vector.shape_cast %99 : vector<1x1x128xf32> to vector<1x128xf32>
    %cst_45 = arith.constant dense<0.000000e+00> : vector<136xf32>
    %101 = vector.multi_reduction <add>, %96, %cst_45 [1] : vector<136x128xf32> to vector<136xf32>
    %102 = vector.shape_cast %101 : vector<136xf32> to vector<136x1xf32>
    %cst_46 = arith.constant 1.280000e+02 : f32
    %103 = vector.broadcast %cst_46 : f32 to vector<136x1xf32>
    %104 = arith.divf %102, %103 : vector<136x1xf32>
    %105 = vector.broadcast %104 : vector<136x1xf32> to vector<136x128xf32>
    %106 = arith.subf %96, %105 : vector<136x128xf32>
    %107 = arith.mulf %106, %106 : vector<136x128xf32>
    %cst_47 = arith.constant dense<0.000000e+00> : vector<136xf32>
    %108 = vector.multi_reduction <add>, %107, %cst_47 [1] : vector<136x128xf32> to vector<136xf32>
    %109 = vector.shape_cast %108 : vector<136xf32> to vector<136x1xf32>
    %cst_48 = arith.constant 1.280000e+02 : f32
    %110 = vector.broadcast %cst_48 : f32 to vector<136x1xf32>
    %111 = arith.divf %109, %110 : vector<136x1xf32>
    %112 = vector.broadcast %104 : vector<136x1xf32> to vector<136x128xf32>
    %113 = arith.subf %96, %112 : vector<136x128xf32>
    %cst_49 = arith.constant 9.99999974E-6 : f32
    %114 = vector.broadcast %cst_49 : f32 to vector<136x1xf32>
    %115 = arith.addf %111, %114 : vector<136x1xf32>
    %116 = math.rsqrt %115 : vector<136x1xf32>
    %117 = vector.broadcast %116 : vector<136x1xf32> to vector<136x128xf32>
    %118 = arith.mulf %113, %117 : vector<136x128xf32>
    %119 = vector.broadcast %98 : vector<1x128xf32> to vector<136x128xf32>
    %120 = arith.mulf %118, %119 : vector<136x128xf32>
    %121 = vector.broadcast %100 : vector<1x128xf32> to vector<136x128xf32>
    %122 = arith.addf %120, %121 : vector<136x128xf32>
    %123 = arith.truncf %122 : vector<136x128xf32> to vector<136x128xbf16>
    %c0_50 = arith.constant 0 : index
    %c0_51 = arith.constant 0 : index
    %c0_52 = arith.constant 0 : index
    %124 = vector.load %arg15[%c0_50, %c0_51, %c0_52] : memref<1x128x512xbf16, #tpu.memory_space<vmem>>, vector<1x128x512xbf16>
    %125 = vector.shape_cast %124 : vector<1x128x512xbf16> to vector<128x512xbf16>
    %cst_53 = arith.constant dense<0.000000e+00> : vector<136x512xf32>
    %126 = tpu.matmul %123, %125, %cst_53 {dimension_numbers = #tpu.dot_dimension_numbers<[1], [0], [0], [1], [0, 0, 1, 1], [], []>} : vector<136x128xbf16>, vector<128x512xbf16>, vector<136x512xf32> -> vector<136x512xf32>
    %c0_54 = arith.constant 0 : index
    %c0_55 = arith.constant 0 : index
    %c0_56 = arith.constant 0 : index
    %127 = vector.load %arg16[%c0_54, %c0_55, %c0_56] : memref<1x1x512xf32, #tpu.memory_space<vmem>>, vector<1x1x512xf32>
    %128 = vector.shape_cast %127 : vector<1x1x512xf32> to vector<1x512xf32>
    %129 = vector.broadcast %128 : vector<1x512xf32> to vector<136x512xf32>
    %130 = arith.addf %126, %129 : vector<136x512xf32>
    %cst_57 = arith.constant 1.702000e+00 : f32
    %131 = vector.broadcast %cst_57 : f32 to vector<136x512xf32>
    %132 = arith.mulf %131, %130 : vector<136x512xf32>
    %133 = arith.negf %132 : vector<136x512xf32>
    %134 = math.exp %133 : vector<136x512xf32>
    %cst_58 = arith.constant 1.000000e+00 : f32
    %135 = vector.broadcast %cst_58 : f32 to vector<136x512xf32>
    %136 = arith.addf %135, %134 : vector<136x512xf32>
    %137 = arith.divf %135, %136 : vector<136x512xf32>
    %138 = arith.mulf %130, %137 : vector<136x512xf32>
    %139 = arith.truncf %138 : vector<136x512xf32> to vector<136x512xbf16>
    %c0_59 = arith.constant 0 : index
    %c0_60 = arith.constant 0 : index
    %c0_61 = arith.constant 0 : index
    %140 = vector.load %arg17[%c0_59, %c0_60, %c0_61] : memref<1x512x128xbf16, #tpu.memory_space<vmem>>, vector<1x512x128xbf16>
    %141 = vector.shape_cast %140 : vector<1x512x128xbf16> to vector<512x128xbf16>
    %cst_62 = arith.constant dense<0.000000e+00> : vector<136x128xf32>
    %142 = tpu.matmul %139, %141, %cst_62 {dimension_numbers = #tpu.dot_dimension_numbers<[1], [0], [0], [1], [0, 0, 1, 1], [], []>} : vector<136x512xbf16>, vector<512x128xbf16>, vector<136x128xf32> -> vector<136x128xf32>
    %143 = arith.addf %96, %142 : vector<136x128xf32>
    %c0_63 = arith.constant 0 : index
    %c0_64 = arith.constant 0 : index
    %c0_65 = arith.constant 0 : index
    %144 = vector.load %arg18[%c0_63, %c0_64, %c0_65] : memref<1x1x128xf32, #tpu.memory_space<vmem>>, vector<1x1x128xf32>
    %145 = vector.shape_cast %144 : vector<1x1x128xf32> to vector<1x128xf32>
    %146 = vector.broadcast %145 : vector<1x128xf32> to vector<136x128xf32>
    %147 = arith.addf %143, %146 : vector<136x128xf32>
    %c0_66 = arith.constant 0 : index
    %c0_67 = arith.constant 0 : index
    %148 = vector.load %arg23[%c0_66, %c0_67] : memref<136x128xf32, #tpu.memory_space<vmem>>, vector<136x128xf32>
    tpu.vector_store %arg23[%c0_66, %c0_67], %147 {strides = array<i32>} : memref<136x128xf32, #tpu.memory_space<vmem>>, vector<136x128xf32>,
    %c1_i32 = arith.constant 1 : i32
    %149 = arith.cmpi eq, %arg0, %c1_i32 : i32
    %150 = arith.extui %149 : i1 to i32
    %c0_i32_68 = arith.constant 0 : i32
    %151 = arith.cmpi ne, %150, %c0_i32_68 : i32
    scf.if %151 {
      %152 = vector.extract_strided_slice %147 {offsets = [128, 0], sizes = [8, 128], strides = [1, 1]} : vector<136x128xf32> to vector<8x128xf32>
      %c0_69 = arith.constant 0 : index
      %c0_70 = arith.constant 0 : index
      %153 = vector.load %arg19[%c0_69, %c0_70] : memref<1x128xf32, #tpu.memory_space<vmem>>, vector<1x128xf32>
      %c0_71 = arith.constant 0 : index
      %c0_72 = arith.constant 0 : index
      %154 = vector.load %arg20[%c0_71, %c0_72] : memref<1x128xf32, #tpu.memory_space<vmem>>, vector<1x128xf32>
      %cst_73 = arith.constant dense<0.000000e+00> : vector<8xf32>
      %155 = vector.multi_reduction <add>, %152, %cst_73 [1] : vector<8x128xf32> to vector<8xf32>
      %156 = vector.shape_cast %155 : vector<8xf32> to vector<8x1xf32>
      %cst_74 = arith.constant 1.280000e+02 : f32
      %157 = vector.broadcast %cst_74 : f32 to vector<8x1xf32>
      %158 = arith.divf %156, %157 : vector<8x1xf32>
      %159 = vector.broadcast %158 : vector<8x1xf32> to vector<8x128xf32>
      %160 = arith.subf %152, %159 : vector<8x128xf32>
      %161 = arith.mulf %160, %160 : vector<8x128xf32>
      %cst_75 = arith.constant dense<0.000000e+00> : vector<8xf32>
      %162 = vector.multi_reduction <add>, %161, %cst_75 [1] : vector<8x128xf32> to vector<8xf32>
      %163 = vector.shape_cast %162 : vector<8xf32> to vector<8x1xf32>
      %cst_76 = arith.constant 1.280000e+02 : f32
      %164 = vector.broadcast %cst_76 : f32 to vector<8x1xf32>
      %165 = arith.divf %163, %164 : vector<8x1xf32>
      %166 = vector.broadcast %158 : vector<8x1xf32> to vector<8x128xf32>
      %167 = arith.subf %152, %166 : vector<8x128xf32>
      %cst_77 = arith.constant 9.99999974E-6 : f32
      %168 = vector.broadcast %cst_77 : f32 to vector<8x1xf32>
      %169 = arith.addf %165, %168 : vector<8x1xf32>
      %170 = math.rsqrt %169 : vector<8x1xf32>
      %171 = vector.broadcast %170 : vector<8x1xf32> to vector<8x128xf32>
      %172 = arith.mulf %167, %171 : vector<8x128xf32>
      %173 = vector.broadcast %153 : vector<1x128xf32> to vector<8x128xf32>
      %174 = arith.mulf %172, %173 : vector<8x128xf32>
      %175 = vector.broadcast %154 : vector<1x128xf32> to vector<8x128xf32>
      %176 = arith.addf %174, %175 : vector<8x128xf32>
      %177 = arith.truncf %176 : vector<8x128xf32> to vector<8x128xbf16>
      %c0_78 = arith.constant 0 : index
      %c0_79 = arith.constant 0 : index
      %178 = vector.load %arg21[%c0_78, %c0_79] : memref<128x128xbf16, #tpu.memory_space<vmem>>, vector<128x128xbf16>
      %cst_80 = arith.constant dense<0.000000e+00> : vector<8x128xf32>
      %179 = tpu.matmul %177, %178, %cst_80 {dimension_numbers = #tpu.dot_dimension_numbers<[1], [0], [0], [1], [0, 0, 1, 1], [], []>} : vector<8x128xbf16>, vector<128x128xbf16>, vector<8x128xf32> -> vector<8x128xf32>
      %c0_81 = arith.constant 0 : index
      %c0_82 = arith.constant 0 : index
      %180 = vector.load %arg22[%c0_81, %c0_82] : memref<8x128xf32, #tpu.memory_space<vmem>>, vector<8x128xf32>
      tpu.vector_store %arg22[%c0_81, %c0_82], %179 {strides = array<i32>} : memref<8x128xf32, #tpu.memory_space<vmem>>, vector<8x128xf32>,
    } else {
    }
    return
  }
  func.func @transform_0(%arg0: i32) -> (i32, i32) {
    %c0_i32 = arith.constant 0 : i32
    %c0_i32_0 = arith.constant 0 : i32
    %c0_i32_1 = arith.constant 0 : i32
    return %c0_i32, %c0_i32_0 : i32, i32
  }
  func.func @transform_1(%arg0: i32) -> (i32, i32) {
    %c0_i32 = arith.constant 0 : i32
    %c0_i32_0 = arith.constant 0 : i32
    %c0_i32_1 = arith.constant 0 : i32
    return %c0_i32, %c0_i32_0 : i32, i32
  }
  func.func @transform_2(%arg0: i32) -> (i32, i32) {
    %c0_i32 = arith.constant 0 : i32
    %c0_i32_0 = arith.constant 0 : i32
    %c0_i32_1 = arith.constant 0 : i32
    return %c0_i32, %c0_i32_0 : i32, i32
  }
  func.func @transform_3(%arg0: i32) -> (i32, i32) {
    %c0_i32 = arith.constant 0 : i32
    %c0_i32_0 = arith.constant 0 : i32
    %c0_i32_1 = arith.constant 0 : i32
    return %c0_i32, %c0_i32_0 : i32, i32
  }
  func.func @transform_4(%arg0: i32) -> (i32, i32) {
    %c0_i32 = arith.constant 0 : i32
    %c0_i32_0 = arith.constant 0 : i32
    %c0_i32_1 = arith.constant 0 : i32
    return %c0_i32, %c0_i32_0 : i32, i32
  }
  func.func @transform_5(%arg0: i32) -> (i32, i32) {
    %c0_i32 = arith.constant 0 : i32
    %c0_i32_0 = arith.constant 0 : i32
    %c0_i32_1 = arith.constant 0 : i32
    return %c0_i32, %c0_i32_0 : i32, i32
  }
  func.func @transform_6(%arg0: i32) -> (i32, i32, i32) {
    %c0_i32 = arith.constant 0 : i32
    %c0_i32_0 = arith.constant 0 : i32
    %c0_i32_1 = arith.constant 0 : i32
    return %arg0, %c0_i32, %c0_i32_0 : i32, i32, i32
  }
  func.func @transform_7(%arg0: i32) -> (i32, i32, i32) {
    %c0_i32 = arith.constant 0 : i32
    %c0_i32_0 = arith.constant 0 : i32
    %c0_i32_1 = arith.constant 0 : i32
    return %arg0, %c0_i32, %c0_i32_0 : i32, i32, i32
  }
  func.func @transform_8(%arg0: i32) -> (i32, i32, i32) {
    %c0_i32 = arith.constant 0 : i32
    %c0_i32_0 = arith.constant 0 : i32
    %c0_i32_1 = arith.constant 0 : i32
    return %arg0, %c0_i32, %c0_i32_0 : i32, i32, i32
  }
  func.func @transform_9(%arg0: i32) -> (i32, i32, i32) {
    %c0_i32 = arith.constant 0 : i32
    %c0_i32_0 = arith.constant 0 : i32
    %c0_i32_1 = arith.constant 0 : i32
    return %arg0, %c0_i32, %c0_i32_0 : i32, i32, i32
  }
  func.func @transform_10(%arg0: i32) -> (i32, i32, i32, i32) {
    %c0_i32 = arith.constant 0 : i32
    %c0_i32_0 = arith.constant 0 : i32
    %c0_i32_1 = arith.constant 0 : i32
    %c0_i32_2 = arith.constant 0 : i32
    return %arg0, %c0_i32, %c0_i32_0, %c0_i32_1 : i32, i32, i32, i32
  }
  func.func @transform_11(%arg0: i32) -> (i32, i32, i32) {
    %c0_i32 = arith.constant 0 : i32
    %c0_i32_0 = arith.constant 0 : i32
    %c0_i32_1 = arith.constant 0 : i32
    return %arg0, %c0_i32, %c0_i32_0 : i32, i32, i32
  }
  func.func @transform_12(%arg0: i32) -> (i32, i32, i32) {
    %c0_i32 = arith.constant 0 : i32
    %c0_i32_0 = arith.constant 0 : i32
    %c0_i32_1 = arith.constant 0 : i32
    return %arg0, %c0_i32, %c0_i32_0 : i32, i32, i32
  }
  func.func @transform_13(%arg0: i32) -> (i32, i32, i32) {
    %c0_i32 = arith.constant 0 : i32
    %c0_i32_0 = arith.constant 0 : i32
    %c0_i32_1 = arith.constant 0 : i32
    return %arg0, %c0_i32, %c0_i32_0 : i32, i32, i32
  }
  func.func @transform_14(%arg0: i32) -> (i32, i32, i32) {
    %c0_i32 = arith.constant 0 : i32
    %c0_i32_0 = arith.constant 0 : i32
    %c0_i32_1 = arith.constant 0 : i32
    return %arg0, %c0_i32, %c0_i32_0 : i32, i32, i32
  }
  func.func @transform_15(%arg0: i32) -> (i32, i32, i32) {
    %c0_i32 = arith.constant 0 : i32
    %c0_i32_0 = arith.constant 0 : i32
    %c0_i32_1 = arith.constant 0 : i32
    return %arg0, %c0_i32, %c0_i32_0 : i32, i32, i32
  }
  func.func @transform_16(%arg0: i32) -> (i32, i32, i32) {
    %c0_i32 = arith.constant 0 : i32
    %c0_i32_0 = arith.constant 0 : i32
    %c0_i32_1 = arith.constant 0 : i32
    return %arg0, %c0_i32, %c0_i32_0 : i32, i32, i32
  }
  func.func @transform_17(%arg0: i32) -> (i32, i32, i32) {
    %c0_i32 = arith.constant 0 : i32
    %c0_i32_0 = arith.constant 0 : i32
    %c0_i32_1 = arith.constant 0 : i32
    return %arg0, %c0_i32, %c0_i32_0 : i32, i32, i32
  }
  func.func @transform_18(%arg0: i32) -> (i32, i32) {
    %c0_i32 = arith.constant 0 : i32
    %c0_i32_0 = arith.constant 0 : i32
    %c0_i32_1 = arith.constant 0 : i32
    return %c0_i32, %c0_i32_0 : i32, i32
  }
  func.func @transform_19(%arg0: i32) -> (i32, i32) {
    %c0_i32 = arith.constant 0 : i32
    %c0_i32_0 = arith.constant 0 : i32
    %c0_i32_1 = arith.constant 0 : i32
    return %c0_i32, %c0_i32_0 : i32, i32
  }
  func.func @transform_20(%arg0: i32) -> (i32, i32) {
    %c0_i32 = arith.constant 0 : i32
    %c0_i32_0 = arith.constant 0 : i32
    %c0_i32_1 = arith.constant 0 : i32
    return %c0_i32, %c0_i32_0 : i32, i32
  }
  func.func @transform_21(%arg0: i32) -> (i32, i32) {
    %c0_i32 = arith.constant 0 : i32
    %c0_i32_0 = arith.constant 0 : i32
    %c0_i32_1 = arith.constant 0 : i32
    return %c0_i32, %c0_i32_0 : i32, i32
  }
}

</mosaic_0001>

<bundles_post_ra>
// kernel: encode_image.1
= control target key start
LH: loop header
LB: loop body
LE: loop exit
PB: predicated region body
PF: predicated region fallthrough
CT: control target
= control target key end

     0   :  { %s15488_s0 = inlined_call_operand.vmem [shape: bf16[128,768], index: 0, kind: input, shape index: {}]   ;;  %s15489_s1 = inlined_call_operand.vmem [shape: bf16[768,128], index: 1, kind: input, shape index: {}]   ;;  %s15490_s2 = inlined_call_operand.vmem [shape: f32[136,128], index: 2, kind: input, shape index: {}]   ;;  %s15491_s3 = inlined_call_operand.vmem [shape: f32[136,136], index: 3, kind: input, shape index: {}]   ;;  %s15492_s4 = inlined_call_operand.vmem [shape: f32[1,128], index: 4, kind: input, shape index: {}]   ;;  %s15493_s5 = inlined_call_operand.vmem [shape: f32[1,128], index: 5, kind: input, shape index: {}]   ;;  %s15494_s6 = inlined_call_operand.vmem [shape: f32[2,1,128], index: 6, kind: input, shape index: {}]   ;;  %s15495_s7 = inlined_call_operand.vmem [shape: f32[2,1,128], index: 7, kind: input, shape index: {}]   ;;  %s15496_s8 = inlined_call_operand.vmem [shape: bf16[2,128,384], index: 8, kind: input, shape index: {}]   ;;  %s15497_s9 = inlined_call_operand.vmem [shape: f32[2,1,384], index: 9, kind: input, shape index: {}]   ;;  %s15498_s10 = inlined_call_operand.vmem [shape: bf16[2,2,64,128], index: 10, kind: input, shape index: {}]   ;;  %s15499_s11 = inlined_call_operand.vmem [shape: f32[2,1,128], index: 11, kind: input, shape index: {}]   ;;  %s15500_s12 = inlined_call_operand.vmem [shape: f32[2,1,128], index: 12, kind: input, shape index: {}]   ;;  %s15501_s13 = inlined_call_operand.vmem [shape: f32[2,1,128], index: 13, kind: input, shape index: {}]   ;;  %s15502_s14 = inlined_call_operand.vmem [shape: bf16[2,128,512], index: 14, kind: input, shape index: {}]   ;;  %s15503_s15 = inlined_call_operand.vmem [shape: f32[2,1,512], index: 15, kind: input, shape index: {}]   ;;  %s15504_s16 = inlined_call_operand.vmem [shape: bf16[2,512,128], index: 16, kind: input, shape index: {}]   ;;  %s15505_s17 = inlined_call_operand.vmem [shape: f32[2,1,128], index: 17, kind: input, shape index: {}]   ;;  %s15506_s18 = inlined_call_operand.vmem [shape: f32[1,128], index: 18, kind: input, shape index: {}]   ;;  %s15507_s19 = inlined_call_operand.vmem [shape: f32[1,128], index: 19, kind: input, shape index: {}]   ;;  %s15508_s20 = inlined_call_operand.vmem [shape: bf16[128,128], index: 20, kind: input, shape index: {}]   ;;  %s15509_s21 = inlined_call_operand.hbm [shape: f32[8,128], index: 21, kind: output, shape index: {}]  }
   0x1   :  { %15599 = sst [smem:[#allocation49_spill]] %s15488_s0 }
   0x2   :  { %15600 = sst [smem:[#allocation50_spill]] %s15489_s1 }
   0x3   :  { %15601 = sst [smem:[#allocation51_spill]] %s15490_s2 }
   0x4   :  { %15602 = sst [smem:[#allocation52_spill]] %s15491_s3 }
   0x5   :  { %15603 = sst [smem:[#allocation53_spill]] %s15492_s4 }
   0x6   :  { %15604 = sst [smem:[#allocation54_spill]] %s15493_s5 }
   0x7   :  { %15605 = sst [smem:[#allocation55_spill]] %s15496_s8 }
   0x8   :  { %15606 = sst [smem:[#allocation56_spill]] %s15497_s9 }
   0x9   :  { %15607 = sst [smem:[#allocation57_spill]] %s15498_s10 }
   0xa   :  { %15608 = sst [smem:[#allocation58_spill]] %s15500_s12 }
   0xb   :  { %15609 = sst [smem:[#allocation59_spill]] %s15501_s13 }
   0xc   :  { %15610 = sst [smem:[#allocation60_spill]] %s15506_s18 }
   0xd   :  { %15611 = sst [smem:[#allocation61_spill]] %s15507_s19 }
   0xe   :  { %15612 = sst [smem:[#allocation62_spill]] %s15508_s20 }
   0xf   :  { %15613 = sst [smem:[#allocation63_spill]] %s15509_s21 }
  0x10   :  { %26 = vsyncpa [#allocation4], 0  ;;  %s9732_s2 = smov 0  }
  0x11 LB: > { %15614 = sst [smem:[#allocation6_spill]] %s9616_s2  ;;  %s9738_s25 = sadd.s32 4294967295, %s9616_s2   ;;  %s9616_s2 = sphi %s9732_s2, %s32_s2  }
  0x12   : > { %p7748_p0 = scmp.ge.s32.totalorder %s9616_s2, 1  ;;  %p679_p1 = scmp.lt.s32.totalorder %s9616_s2, 3 }
  0x14   : > { %p680_p2 = pnand %p7748_p0, %p679_p1 }
  0x16   : > { %683 = sbr.rel (%p680_p2) target bundleno = 3727 (0xe8f), region = 104 }
  0x1b   : > { %p775_p3 = scmp.lt.s32.totalorder %s9738_s25, 1  ;;  %s15615_s10 = sld [smem:[#allocation57_spill]] }
  0x1c   : > { %s15616_s8 = sld [smem:[#allocation55_spill]]  ;;  %p7757_p4 = scmp.ne.s32.totalorder %s9738_s25, 0 }
  0x1d   : > { %s9744_s26 = scalar_select %p775_p3, %s9738_s25, 1 }
  0x1e   : > { %s15617_s9 = sld [smem:[#allocation56_spill]] }
  0x1f   : > { %s8938_s30 = smul.u32 192, %s9744_s26  ;;  %s8703_s5 = sshll.u32 %s9744_s26, 6 }
  0x20   : > { %s8939_s22 = smul.u32 3, %s9744_s26  ;;  %s15618_s12 = sld [smem:[#allocation58_spill]] }
  0x21   : > { %s9760_s24 = scalar_lea.vmem %s15615_s10, %s8703_s5  ;;  %s15619_s13 = sld [smem:[#allocation59_spill]] }
  0x22   : > { %s9765_s2 = scalar_lea.vmem %s15616_s8, %s8938_s30  ;;  %s8704_s30 = sshll.u32 %s9744_s26, 8 }
  0x23   : > { %s9792_s21 = scalar_lea.vmem %s15502_s14, %s8704_s30  ;;  %s7754_s28 = sshll.u32 %s9744_s26, 2 }
  0x24   : > { %s9774_s4 = scalar_lea.vmem %s15617_s9, %s8939_s22  ;;  %s9798_s0 = scalar_lea.vmem %s15503_s15, %s7754_s28 }
  0x25   : > { %s9803_s19 = scalar_lea.vmem %s15504_s16, %s8704_s30  ;;  %825 = sbr.rel (%p7757_p4) target bundleno = 669 (0x29d), region = 108 }
  0x26   : > { %s9780_s23 = scalar_lea.vmem %s15618_s12, %s9744_s26  ;;  %s15620_s10 = sld [smem:[#allocation50_spill]] (!%p7757_p4) }
  0x27   : > { %s9786_s27 = scalar_lea.vmem %s15619_s13, %s9744_s26  ;;  %s15621_s8 = sld [smem:[#allocation49_spill]] (!%p7757_p4) }
  0x28   : > { %s15622_s3 = sld [smem:[#allocation51_spill]] (!%p7757_p4) }
  0x29   : > { %s15623_s28 = sld [smem:[#allocation53_spill]] (!%p7757_p4) }
  0x2a   : > { %s15624_s18 = sld [smem:[#allocation54_spill]] }
  0x2c   : > { %v8761_v0 = vld [vmem:[%s15620_s10 + $0x38] sm:$0xff]  ;;  %v8760_v2 = vld [vmem:[%s15620_s10 + $0x30] sm:$0xff]  ;;  %v8759_v4 = vld [vmem:[%s15620_s10 + $0x28] sm:$0xff] }
  0x2d   : > { %v8769_v1 = vld [vmem:[%s15620_s10 + $0x78] sm:$0xff]  ;;  %8906 = vmatpush.bf16.msra.mxu2 %v8761_v0  ;;  %v8768_v3 = vld [vmem:[%s15620_s10 + $0x70] sm:$0xff]  ;;  %1498 = vmatpush.bf16.msra.mxu0 %v8761_v0  ;;  %v8767_v5 = vld [vmem:[%s15620_s10 + $0x68] sm:$0xff] }
  0x2e   : > { %8914 = vmatpush.bf16.msra.mxu3 %v8769_v1  ;;  %1547 = vmatpush.bf16.msra.mxu1 %v8769_v1  ;;  %v8758_v6 = vld [vmem:[%s15620_s10 + $0x20] sm:$0xff]  ;;  %v8757_v8 = vld [vmem:[%s15620_s10 + $0x18] sm:$0xff]  ;;  %v8756_v10 = vld [vmem:[%s15620_s10 + $0x10] sm:$0xff] }
  0x2f   : > { %v8766_v7 = vld [vmem:[%s15620_s10 + $0x60] sm:$0xff]  ;;  %v8765_v9 = vld [vmem:[%s15620_s10 + $0x58] sm:$0xff]  ;;  %v8764_v11 = vld [vmem:[%s15620_s10 + $0x50] sm:$0xff] }
  0x30   : > { %v8755_v12 = vld [vmem:[%s15620_s10 + $0x8] sm:$0xff]  ;;  %v8754_v14 = vld [vmem:[%s15620_s10] sm:$0xff]  ;;  %v8733_v17 = vld [vmem:[%s15621_s8 + $0xd4] sm:$0xf0] }
  0x31   : > { %8907 = vmatpush.bf16.msra.mxu2 %v8760_v2  ;;  %1499 = vmatpush.bf16.msra.mxu0 %v8760_v2  ;;  %v8763_v13 = vld [vmem:[%s15620_s10 + $0x48] sm:$0xff]  ;;  %v8762_v15 = vld [vmem:[%s15620_s10 + $0x40] sm:$0xff]  ;;  %v7858_v19 = vld [vmem:[%s15621_s8 + $0xd8] sm:$0xf0] }
  0x32   : > { %8915 = vmatpush.bf16.msra.mxu3 %v8768_v3  ;;  %1548 = vmatpush.bf16.msra.mxu1 %v8768_v3  ;;  %v7856_v16 = vld [vmem:[%s15621_s8 + $0xc0] sm:$0xf]  ;;  %v8730_v18 = vld [vmem:[%s15621_s8 + $0xc4] sm:$0xf]  ;;  %v8709_v21 = vld [vmem:[%s15621_s8 + $0x14] sm:$0xf0] }
  0x33   : > { %v7760_v20 = vld [vmem:[%s15621_s8] sm:$0xf]  ;;  %v8706_v22 = vld [vmem:[%s15621_s8 + $0x4] sm:$0xf]  ;;  %v7762_v23 = vld [vmem:[%s15621_s8 + $0x18] sm:$0xf0]  ;;  %v7857_v26 = vor.u32 %v8733_v17, %v7856_v16  ;;  %v7861_v27 = vor.u32 %v8730_v18, %v7858_v19 }
  0x34   : > { %v8777_v24 = vld [vmem:[%s15620_s10 + $0xb8] sm:$0xff]  ;;  %v7761_v28 = vor.u32 %v8709_v21, %v7760_v20  ;;  %v7765_v29 = vor.u32 %v8706_v22, %v7762_v23  ;;  %v8776_v32 = vld [vmem:[%s15620_s10 + $0xb0] sm:$0xff]  ;;  %v8775_v36 = vld [vmem:[%s15620_s10 + $0xa8] sm:$0xff] }
  0x35   : > { %8908 = vmatpush.bf16.msra.mxu2 %v8759_v4  ;;  %1500 = vmatpush.bf16.msra.mxu0 %v8759_v4  ;;  %v8785_v25 = vld [vmem:[%s15620_s10 + $0xf8] sm:$0xff]  ;;  %v8784_v33 = vld [vmem:[%s15620_s10 + $0xf0] sm:$0xff]  ;;  %v8783_v37 = vld [vmem:[%s15620_s10 + $0xe8] sm:$0xff] }
  0x36   : > { %8916 = vmatpush.bf16.msra.mxu3 %v8767_v5  ;;  %1549 = vmatpush.bf16.msra.mxu1 %v8767_v5  ;;  %v8793_v30 = vld [vmem:[%s15620_s10 + $0x138] sm:$0xff]  ;;  %v8792_v34 = vld [vmem:[%s15620_s10 + $0x130] sm:$0xff]  ;;  %v8791_v38 = vld [vmem:[%s15620_s10 + $0x128] sm:$0xff] }
  0x37   : > { %v8801_v31 = vld [vmem:[%s15620_s10 + $0x178] sm:$0xff]  ;;  %v8800_v35 = vld [vmem:[%s15620_s10 + $0x170] sm:$0xff]  ;;  %v8799_v39 = vld [vmem:[%s15620_s10 + $0x168] sm:$0xff] }
  0x38   : > { %v7880_v40 = vld [vmem:[%s15621_s8 + $0xf0] sm:$0xf]  ;;  %v8774_v41 = vld [vmem:[%s15620_s10 + $0xa0] sm:$0xff]  ;;  %v8739_v43 = vld [vmem:[%s15621_s8 + $0x104] sm:$0xf0] }
  0x39   : > { %8909 = vmatpush.bf16.msra.mxu2 %v8758_v6  ;;  %1501 = vmatpush.bf16.msra.mxu0 %v8758_v6  ;;  %v8782_v42 = vld [vmem:[%s15620_s10 + $0xe0] sm:$0xff]  ;;  %v8736_v44 = vld [vmem:[%s15621_s8 + $0xf4] sm:$0xf]  ;;  %v7882_v45 = vld [vmem:[%s15621_s8 + $0x108] sm:$0xf0]  ;;  %v7881_v54 = vor.u32 %v8739_v43, %v7880_v40 }
  0x3a   : > { %8917 = vmatpush.bf16.msra.mxu3 %v8766_v7  ;;  %1550 = vmatpush.bf16.msra.mxu1 %v8766_v7  ;;  %v7784_v46 = vld [vmem:[%s15621_s8 + $0x30] sm:$0xf]  ;;  %v8715_v47 = vld [vmem:[%s15621_s8 + $0x44] sm:$0xf0]  ;;  %v8712_v48 = vld [vmem:[%s15621_s8 + $0x34] sm:$0xf]  ;;  %v7885_v55 = vor.u32 %v8736_v44, %v7882_v45 }
  0x3b   : > { %v7786_v49 = vld [vmem:[%s15621_s8 + $0x48] sm:$0xf0]  ;;  %v8790_v50 = vld [vmem:[%s15620_s10 + $0x120] sm:$0xff]  ;;  %v8773_v52 = vld [vmem:[%s15620_s10 + $0x98] sm:$0xff]  ;;  %v7785_v56 = vor.u32 %v8715_v47, %v7784_v46 }
  0x3c   : > { %v8798_v51 = vld [vmem:[%s15620_s10 + $0x160] sm:$0xff]  ;;  %v8781_v53 = vld [vmem:[%s15620_s10 + $0xd8] sm:$0xff]  ;;  %v7789_v57 = vor.u32 %v8712_v48, %v7786_v49  ;;  %v8772_v60 = vld [vmem:[%s15620_s10 + $0x90] sm:$0xff] }
  0x3d   : > { %8910 = vmatpush.bf16.msra.mxu2 %v8757_v8  ;;  %1502 = vmatpush.bf16.msra.mxu0 %v8757_v8  ;;  %v8789_v58 = vld [vmem:[%s15620_s10 + $0x118] sm:$0xff]  ;;  %v8780_v61 = vld [vmem:[%s15620_s10 + $0xd0] sm:$0xff]  ;;  %v8771_v0 = vld [vmem:[%s15620_s10 + $0x88] sm:$0xff] }
  0x3e   : > { %8918 = vmatpush.bf16.msra.mxu3 %v8765_v9  ;;  %1551 = vmatpush.bf16.msra.mxu1 %v8765_v9  ;;  %v8797_v59 = vld [vmem:[%s15620_s10 + $0x158] sm:$0xff]  ;;  %v8788_v62 = vld [vmem:[%s15620_s10 + $0x110] sm:$0xff]  ;;  %v8779_v1 = vld [vmem:[%s15620_s10 + $0xc8] sm:$0xff] }
  0x3f   : > { %v8796_v63 = vld [vmem:[%s15620_s10 + $0x150] sm:$0xff]  ;;  %v8787_v2 = vld [vmem:[%s15620_s10 + $0x108] sm:$0xff]  ;;  %v8770_v4 = vld [vmem:[%s15620_s10 + $0x80] sm:$0xff] }
  0x40   : > { %v8795_v3 = vld [vmem:[%s15620_s10 + $0x148] sm:$0xff]  ;;  %v8778_v5 = vld [vmem:[%s15620_s10 + $0xc0] sm:$0xff]  ;;  %v8745_v7 = vld [vmem:[%s15621_s8 + $0x134] sm:$0xf0] }
  0x41   : > { %8911 = vmatpush.bf16.msra.mxu2 %v8756_v10  ;;  %1503 = vmatpush.bf16.msra.mxu0 %v8756_v10  ;;  %v7904_v6 = vld [vmem:[%s15621_s8 + $0x120] sm:$0xf]  ;;  %v8742_v8 = vld [vmem:[%s15621_s8 + $0x124] sm:$0xf]  ;;  %v7906_v9 = vld [vmem:[%s15621_s8 + $0x138] sm:$0xf0] }
  0x42   : > { %8919 = vmatpush.bf16.msra.mxu3 %v8764_v11  ;;  %1552 = vmatpush.bf16.msra.mxu1 %v8764_v11  ;;  %v7808_v10 = vld [vmem:[%s15621_s8 + $0x60] sm:$0xf]  ;;  %v8721_v11 = vld [vmem:[%s15621_s8 + $0x74] sm:$0xf0]  ;;  %v7909_v16 = vor.u32 %v8742_v8, %v7906_v9  ;;  %v7928_v20 = vld [vmem:[%s15621_s8 + $0x150] sm:$0xf] }
  0x43   : > { %v7809_v17 = vor.u32 %v8721_v11, %v7808_v10  ;;  %v8794_v19 = vld [vmem:[%s15620_s10 + $0x140] sm:$0xff]  ;;  %v8751_v21 = vld [vmem:[%s15621_s8 + $0x164] sm:$0xf0]  ;;  %v8748_v22 = vld [vmem:[%s15621_s8 + $0x154] sm:$0xf] }
  0x44   : > { %v7930_v23 = vld [vmem:[%s15621_s8 + $0x168] sm:$0xf0]  ;;  %v7792_v44 = vld [vmem:[%s15621_s8 + $0x38] sm:$0xf]  ;;  %v8716_v45 = vld [vmem:[%s15621_s8 + $0x4c] sm:$0xf0] }
  0x45   : > { %8912 = vmatpush.bf16.msra.mxu2 %v8755_v12  ;;  %1504 = vmatpush.bf16.msra.mxu0 %v8755_v12  ;;  %v8718_v12 = vld [vmem:[%s15621_s8 + $0x64] sm:$0xf]  ;;  %v8713_v46 = vld [vmem:[%s15621_s8 + $0x3c] sm:$0xf]  ;;  %v7794_v47 = vld [vmem:[%s15621_s8 + $0x50] sm:$0xf0] }
  0x46   : > { %8920 = vmatpush.bf16.msra.mxu3 %v8763_v13  ;;  %1553 = vmatpush.bf16.msra.mxu1 %v8763_v13  ;;  %v7810_v13 = vld [vmem:[%s15621_s8 + $0x78] sm:$0xf0]  ;;  %v7800_v48 = vld [vmem:[%s15621_s8 + $0x40] sm:$0xf]  ;;  %v8717_v49 = vld [vmem:[%s15621_s8 + $0x54] sm:$0xf0] }
  0x47   : > { %v7813_v18 = vor.u32 %v8718_v12, %v7810_v13  ;;  %v7848_v8 = vld [vmem:[%s15621_s8 + $0xa0] sm:$0xf]  ;;  %v8729_v9 = vld [vmem:[%s15621_s8 + $0xb4] sm:$0xf0]  ;;  %v8726_v10 = vld [vmem:[%s15621_s8 + $0xa4] sm:$0xf] }
  0x48   : > { %v7850_v11 = vld [vmem:[%s15621_s8 + $0xb8] sm:$0xf0] }
  0x49   : > { %8913 = vmatpush.bf16.msra.mxu2 %v8754_v14  ;;  %1505 = vmatpush.bf16.msra.mxu0 %v8754_v14  ;;  %v8786_v14 = vld [vmem:[%s15620_s10 + $0x100] sm:$0xff] }
  0x4a   : > { %8921 = vmatpush.bf16.msra.mxu3 %v8762_v15  ;;  %1554 = vmatpush.bf16.msra.mxu1 %v8762_v15  ;;  %v7905_v15 = vor.u32 %v8745_v7, %v7904_v6  ;;  %v8725_v6 = vld [vmem:[%s15621_s8 + $0x9c] sm:$0xf]  ;;  %v7842_v7 = vld [vmem:[%s15621_s8 + $0xb0] sm:$0xf0] }
  0x4b   : > { %v7845_v13 = vor.u32 %v8725_v6, %v7842_v7 }
  0x4c   : > { %1526 = vmatmul.bf16.vlgmr.msra.gmra.mxu2 %v7857_v26  ;;  %1506 = vmatmul.bf16.vlgmr.msra.gmra.mxu0 %v7761_v28  ;;  %v8724_v26 = vld [vmem:[%s15621_s8 + $0x94] sm:$0xf]  ;;  %v7929_v28 = vor.u32 %v8751_v21, %v7928_v20  ;;  %v7872_v20 = vld [vmem:[%s15621_s8 + $0xd0] sm:$0xf]  ;;  %v8735_v21 = vld [vmem:[%s15621_s8 + $0xe4] sm:$0xf0] }
  0x4d   : > { %1596 = vmatpush.bf16.msrb.mxu2 %v8777_v24  ;;  %1575 = vmatmul.bf16.vlgmr.msra.gmra.mxu3 %v7861_v27  ;;  %v7832_v24 = vld [vmem:[%s15621_s8 + $0x90] sm:$0xf]  ;;  %v7834_v27 = vld [vmem:[%s15621_s8 + $0xa8] sm:$0xf0] }
  0x4e   : > { %1645 = vmatpush.bf16.msrb.mxu3 %v8785_v25  ;;  %1555 = vmatmul.bf16.vlgmr.msra.gmra.mxu1 %v7765_v29  ;;  %v8727_v25 = vld [vmem:[%s15621_s8 + $0xa4] sm:$0xf0]  ;;  %v7933_v29 = vor.u32 %v8748_v22, %v7930_v23  ;;  %v8732_v22 = vld [vmem:[%s15621_s8 + $0xd4] sm:$0xf]  ;;  %v7874_v23 = vld [vmem:[%s15621_s8 + $0xe8] sm:$0xf0] }
  0x4f   : > { %1694 = vmatpush.bf16.msrb.mxu0 %v8793_v30  ;;  %1743 = vmatpush.bf16.msrb.mxu1 %v8801_v31  ;;  %v7833_v30 = vor.u32 %v8727_v25, %v7832_v24  ;;  %v7837_v31 = vor.u32 %v8724_v26, %v7834_v27  ;;  %v7873_v26 = vor.u32 %v8735_v21, %v7872_v20  ;;  %v8753_v20 = vld [vmem:[%s15621_s8 + $0x174] sm:$0xf0]  ;;  %v8750_v21 = vld [vmem:[%s15621_s8 + $0x164] sm:$0xf] }
  0x50   : > { %v7877_v27 = vor.u32 %v8732_v22, %v7874_v23  ;;  %v7946_v22 = vld [vmem:[%s15621_s8 + $0x178] sm:$0xf0] }
  0x51   : > { %1597 = vmatpush.bf16.msrb.mxu2 %v8776_v32  ;;  %v7768_v32 = vld [vmem:[%s15621_s8 + $0x8] sm:$0xf] }
  0x52   : > { %1646 = vmatpush.bf16.msrb.mxu3 %v8784_v33  ;;  %v8710_v33 = vld [vmem:[%s15621_s8 + $0x1c] sm:$0xf0] }
  0x53   : > { %1695 = vmatpush.bf16.msrb.mxu0 %v8792_v34  ;;  %1744 = vmatpush.bf16.msrb.mxu1 %v8800_v35  ;;  %v8707_v34 = vld [vmem:[%s15621_s8 + $0xc] sm:$0xf]  ;;  %v7770_v35 = vld [vmem:[%s15621_s8 + $0x20] sm:$0xf0]  ;;  %v7769_v40 = vor.u32 %v8710_v33, %v7768_v32 }
  0x55   : > { %1598 = vmatpush.bf16.msrb.mxu2 %v8775_v36  ;;  %v7776_v36 = vld [vmem:[%s15621_s8 + $0x10] sm:$0xf] }
  0x56   : > { %1647 = vmatpush.bf16.msrb.mxu3 %v8783_v37  ;;  %v8711_v37 = vld [vmem:[%s15621_s8 + $0x24] sm:$0xf0] }
  0x57   : > { %1696 = vmatpush.bf16.msrb.mxu0 %v8791_v38  ;;  %1745 = vmatpush.bf16.msrb.mxu1 %v8799_v39  ;;  %v8708_v38 = vld [vmem:[%s15621_s8 + $0x14] sm:$0xf]  ;;  %v7778_v39 = vld [vmem:[%s15621_s8 + $0x28] sm:$0xf0] }
  0x58   : > { %v7781_v43 = vor.u32 %v8708_v38, %v7778_v39  ;;  %v7890_v38 = vld [vmem:[%s15621_s8 + $0x110] sm:$0xf0]  ;;  %v7896_v39 = vld [vmem:[%s15621_s8 + $0x100] sm:$0xf] }
  0x59   : > { %1599 = vmatpush.bf16.msrb.mxu2 %v8774_v41  ;;  %v7773_v41 = vor.u32 %v8707_v34, %v7770_v35  ;;  %v7888_v35 = vld [vmem:[%s15621_s8 + $0xf8] sm:$0xf] }
  0x5a   : > { %1648 = vmatpush.bf16.msrb.mxu3 %v8782_v42  ;;  %v7777_v42 = vor.u32 %v8711_v37, %v7776_v36  ;;  %v8740_v36 = vld [vmem:[%s15621_s8 + $0x10c] sm:$0xf0]  ;;  %v8737_v37 = vld [vmem:[%s15621_s8 + $0xfc] sm:$0xf] }
  0x5b   : > { %1697 = vmatpush.bf16.msrb.mxu0 %v8790_v50  ;;  %1746 = vmatpush.bf16.msrb.mxu1 %v8798_v51  ;;  %v8714_v50 = vld [vmem:[%s15621_s8 + $0x44] sm:$0xf]  ;;  %v7802_v51 = vld [vmem:[%s15621_s8 + $0x58] sm:$0xf0] }
  0x5c   : > { %1531 = vmatmul.bf16.gmra.mxu2 %v7881_v54  ;;  %1511 = vmatmul.bf16.gmra.mxu0 %v7785_v56  ;;  %v7801_v54 = vor.u32 %v8717_v49, %v7800_v48  ;;  %v7816_v56 = vld [vmem:[%s15621_s8 + $0x68] sm:$0xf] }
  0x5d   : > { %1600 = vmatpush.bf16.msrb.mxu2 %v8773_v52  ;;  %1580 = vmatmul.bf16.gmra.mxu3 %v7885_v55  ;;  %v7793_v52 = vor.u32 %v8716_v45, %v7792_v44  ;;  %v7805_v55 = vor.u32 %v8714_v50, %v7802_v51 }
  0x5e   : > { %1649 = vmatpush.bf16.msrb.mxu3 %v8781_v53  ;;  %1560 = vmatmul.bf16.gmra.mxu1 %v7789_v57  ;;  %v7797_v53 = vor.u32 %v8713_v46, %v7794_v47  ;;  %v8722_v57 = vld [vmem:[%s15621_s8 + $0x7c] sm:$0xf0]  ;;  %v7889_v46 = vor.u32 %v8740_v36, %v7888_v35  ;;  %v7893_v47 = vor.u32 %v8737_v37, %v7890_v38 }
  0x5f   : > { %1698 = vmatpush.bf16.msrb.mxu0 %v8789_v58  ;;  %1747 = vmatpush.bf16.msrb.mxu1 %v8797_v59  ;;  %v8719_v58 = vld [vmem:[%s15621_s8 + $0x6c] sm:$0xf]  ;;  %v7818_v59 = vld [vmem:[%s15621_s8 + $0x80] sm:$0xf0] }
  0x61   : > { %1601 = vmatpush.bf16.msrb.mxu2 %v8772_v60  ;;  %v7824_v60 = vld [vmem:[%s15621_s8 + $0x70] sm:$0xf] }
  0x62   : > { %1650 = vmatpush.bf16.msrb.mxu3 %v8780_v61  ;;  %v8723_v61 = vld [vmem:[%s15621_s8 + $0x84] sm:$0xf0] }
  0x63   : > { %1699 = vmatpush.bf16.msrb.mxu0 %v8788_v62  ;;  %1748 = vmatpush.bf16.msrb.mxu1 %v8796_v63  ;;  %v8720_v62 = vld [vmem:[%s15621_s8 + $0x74] sm:$0xf]  ;;  %v7826_v63 = vld [vmem:[%s15621_s8 + $0x88] sm:$0xf0] }
  0x65   : > { %1602 = vmatpush.bf16.msrb.mxu2 %v8771_v0  ;;  %v7817_v0 = vor.u32 %v8722_v57, %v7816_v56  ;;  %v7912_v57 = vld [vmem:[%s15621_s8 + $0x128] sm:$0xf] }
  0x66   : > { %1651 = vmatpush.bf16.msrb.mxu3 %v8779_v1  ;;  %v7821_v1 = vor.u32 %v8719_v58, %v7818_v59  ;;  %v8746_v58 = vld [vmem:[%s15621_s8 + $0x13c] sm:$0xf0]  ;;  %v8743_v59 = vld [vmem:[%s15621_s8 + $0x12c] sm:$0xf] }
  0x67   : > { %1700 = vmatpush.bf16.msrb.mxu0 %v8787_v2  ;;  %1749 = vmatpush.bf16.msrb.mxu1 %v8795_v3  ;;  %v7825_v2 = vor.u32 %v8723_v61, %v7824_v60  ;;  %v7829_v3 = vor.u32 %v8720_v62, %v7826_v63  ;;  %v7914_v60 = vld [vmem:[%s15621_s8 + $0x140] sm:$0xf0]  ;;  %v7920_v61 = vld [vmem:[%s15621_s8 + $0x130] sm:$0xf]  ;;  %v8747_v62 = vld [vmem:[%s15621_s8 + $0x144] sm:$0xf0] }
  0x68   : > { %v8744_v63 = vld [vmem:[%s15621_s8 + $0x134] sm:$0xf]  ;;  %v7921_v6 = vor.u32 %v8747_v62, %v7920_v61  ;;  %v1792_v61 = vld [vmem:[%s15622_s3] sm:$0xff] }
  0x69   : > { %1603 = vmatpush.bf16.msrb.mxu2 %v8770_v4  ;;  %v7840_v4 = vld [vmem:[%s15621_s8 + $0x98] sm:$0xf] }
  0x6a   : > { %1652 = vmatpush.bf16.msrb.mxu3 %v8778_v5  ;;  %v8728_v5 = vld [vmem:[%s15621_s8 + $0xac] sm:$0xf0] }
  0x6b   : > { %1701 = vmatpush.bf16.msrb.mxu0 %v8786_v14  ;;  %1750 = vmatpush.bf16.msrb.mxu1 %v8794_v19  ;;  %v7841_v12 = vor.u32 %v8728_v5, %v7840_v4  ;;  %v7849_v14 = vor.u32 %v8729_v9, %v7848_v8  ;;  %v7866_v19 = vld [vmem:[%s15621_s8 + $0xe0] sm:$0xf0]  ;;  %v7913_v4 = vor.u32 %v8746_v58, %v7912_v57 }
  0x6c   : > { %1536 = vmatmul.bf16.gmra.mxu2 %v7905_v15  ;;  %1516 = vmatmul.bf16.gmra.mxu0 %v7809_v17  ;;  %v7853_v15 = vor.u32 %v8726_v10, %v7850_v11  ;;  %v8734_v17 = vld [vmem:[%s15621_s8 + $0xdc] sm:$0xf0]  ;;  %v7917_v5 = vor.u32 %v8743_v59, %v7914_v60 }
  0x6d   : > { %1585 = vmatmul.bf16.gmra.mxu3 %v7909_v16  ;;  %v7864_v16 = vld [vmem:[%s15621_s8 + $0xc8] sm:$0xf] }
  0x6e   : > { %1565 = vmatmul.bf16.gmra.mxu1 %v7813_v18  ;;  %v8731_v18 = vld [vmem:[%s15621_s8 + $0xcc] sm:$0xf]  ;;  %v7865_v24 = vor.u32 %v8734_v17, %v7864_v16  ;;  %v8752_v16 = vld [vmem:[%s15621_s8 + $0x16c] sm:$0xf0]  ;;  %v8749_v17 = vld [vmem:[%s15621_s8 + $0x15c] sm:$0xf] }
  0x6f   : > { %v7869_v25 = vor.u32 %v8731_v18, %v7866_v19  ;;  %v7938_v18 = vld [vmem:[%s15621_s8 + $0x170] sm:$0xf0]  ;;  %v7944_v19 = vld [vmem:[%s15621_s8 + $0x160] sm:$0xf] }
  0x7c   : > { %1541 = vmatmul.bf16.gmra.mxu2 %v7929_v28  ;;  %1521 = vmatmul.bf16.gmra.mxu0 %v7833_v30 }
  0x7d   : > { %1590 = vmatmul.bf16.gmra.mxu3 %v7933_v29 }
  0x7e   : > { %1570 = vmatmul.bf16.gmra.mxu1 %v7837_v31 }
  0x8c   : > { %1604 = vmatmul.bf16.vlgmr.msrb.gmra.mxu2 %v7769_v40  ;;  %1702 = vmatmul.bf16.vlgmr.msrb.gmra.mxu0 %v7777_v42  ;;  %v8741_v40 = vld [vmem:[%s15621_s8 + $0x114] sm:$0xf0]  ;;  %v7898_v42 = vld [vmem:[%s15621_s8 + $0x118] sm:$0xf0] }
  0x8d   : > { %1653 = vmatmul.bf16.vlgmr.msrb.gmra.mxu3 %v7773_v41  ;;  %v8738_v41 = vld [vmem:[%s15621_s8 + $0x104] sm:$0xf]  ;;  %v7897_v48 = vor.u32 %v8741_v40, %v7896_v39 }
  0x8e   : > { %1751 = vmatmul.bf16.vlgmr.msrb.gmra.mxu1 %v7781_v43  ;;  %v7901_v49 = vor.u32 %v8738_v41, %v7898_v42 }
  0x9c   : > { %1609 = vmatmul.bf16.gmra.mxu2 %v7793_v52  ;;  %1707 = vmatmul.bf16.gmra.mxu0 %v7801_v54 }
  0x9d   : > { %1658 = vmatmul.bf16.gmra.mxu3 %v7797_v53 }
  0x9e   : > { %1756 = vmatmul.bf16.gmra.mxu1 %v7805_v55 }
  0xac   : > { %1614 = vmatmul.bf16.gmra.mxu2 %v7817_v0  ;;  %1712 = vmatmul.bf16.gmra.mxu0 %v7825_v2  ;;  %v7922_v0 = vld [vmem:[%s15621_s8 + $0x148] sm:$0xf0] }
  0xad   : > { %1663 = vmatmul.bf16.gmra.mxu3 %v7821_v1  ;;  %v7925_v7 = vor.u32 %v8744_v63, %v7922_v0 }
  0xae   : > { %1761 = vmatmul.bf16.gmra.mxu1 %v7829_v3 }
  0xbc   : > { %1619 = vmatmul.bf16.gmra.mxu2 %v7841_v12  ;;  %1717 = vmatmul.bf16.gmra.mxu0 %v7849_v14 }
  0xbd   : > { %1668 = vmatmul.bf16.gmra.mxu3 %v7845_v13 }
  0xbe   : > { %1766 = vmatmul.bf16.gmra.mxu1 %v7853_v15  ;;  %v7936_v15 = vld [vmem:[%s15621_s8 + $0x158] sm:$0xf] }
  0xc9   : > { %v10170_v28 = vpop.f32.mrf.mxu0 }
  0xcb   : > { %v10172_v29 = vpop.f32.mrf.mxu1 }
  0xcc   : > { %1624 = vmatmul.bf16.gmra.mxu2 %v7865_v24  ;;  %1722 = vmatmul.bf16.gmra.mxu0 %v7873_v26  ;;  %v7937_v26 = vor.u32 %v8752_v16, %v7936_v15 }
  0xcd   : > { %1673 = vmatmul.bf16.gmra.mxu3 %v7869_v25 }
  0xce   : > { %1771 = vmatmul.bf16.gmra.mxu1 %v7877_v27  ;;  %v7941_v27 = vor.u32 %v8749_v17, %v7938_v18 }
  0xcf   : > { %v1527_v30 = vpop.f32.mrf.mxu2 }
  0xd0   : > { %v1576_v31 = vpop.f32.mrf.mxu3 }
  0xd1   : > { %v10174_v32 = vadd.f32 %v1576_v31, %v1527_v30  ;;  %v10176_v33 = vpop.f32.mrf.mxu0  ;;  %v7945_v30 = vor.u32 %v8753_v20, %v7944_v19  ;;  %v7949_v31 = vor.u32 %v8750_v21, %v7946_v22  ;;  %v1794_v21 = vld [vmem:[%s15622_s3 + $0x10] sm:$0xff] }
  0xd3   : > { %v10178_v34 = vpop.f32.mrf.mxu1 }
  0xd4   : > { %v1559_v62 = vadd.f32 %v10178_v34, %v10176_v33 }
  0xd7   : > { %v1529_v43 = vpop.f32.mrf.mxu2 }
  0xd8   : > { %v1578_v44 = vpop.f32.mrf.mxu3 }
  0xd9   : > { %v10204_v45 = vadd.f32 %v1578_v44, %v1529_v43  ;;  %v10206_v50 = vpop.f32.mrf.mxu0 }
  0xdb   : > { %v10208_v51 = vpop.f32.mrf.mxu1 }
  0xdc   : > { %1629 = vmatmul.bf16.gmra.mxu2 %v7889_v46  ;;  %1727 = vmatmul.bf16.gmra.mxu0 %v7897_v48  ;;  %v1557_v48 = vadd.f32 %v10172_v29, %v10170_v28 }
  0xdd   : > { %1678 = vmatmul.bf16.gmra.mxu3 %v7893_v47 }
  0xde   : > { %1776 = vmatmul.bf16.gmra.mxu1 %v7901_v49 }
  0xdf   : > { %v1532_v52 = vpop.f32.mrf.mxu2 }
  0xe0   : > { %v1581_v53 = vpop.f32.mrf.mxu3 }
  0xe1   : > { %v10210_v54 = vadd.f32 %v1581_v53, %v1532_v52  ;;  %v10212_v55 = vpop.f32.mrf.mxu0 }
  0xe3   : > { %v10214_v56 = vpop.f32.mrf.mxu1 }
  0xe4   : > { %v1564_v22 = vadd.f32 %v10214_v56, %v10212_v55 }
  0xe7   : > { %v1534_v1 = vpop.f32.mrf.mxu2 }
  0xe8   : > { %v1583_v2 = vpop.f32.mrf.mxu3 }
  0xe9   : > { %v10240_v3 = vadd.f32 %v1583_v2, %v1534_v1  ;;  %v10242_v8 = vpop.f32.mrf.mxu0 }
  0xeb   : > { %v10244_v9 = vpop.f32.mrf.mxu1 }
  0xec   : > { %1634 = vmatmul.bf16.gmra.mxu2 %v7913_v4  ;;  %1732 = vmatmul.bf16.gmra.mxu0 %v7921_v6 }
  0xed   : > { %1683 = vmatmul.bf16.gmra.mxu3 %v7917_v5 }
  0xee   : > { %1781 = vmatmul.bf16.gmra.mxu1 %v7925_v7  ;;  %v1793_v7 = vld [vmem:[%s15622_s3 + $0x8] sm:$0xff] }
  0xef   : > { %v1537_v10 = vpop.f32.mrf.mxu2 }
  0xf0   : > { %v1586_v11 = vpop.f32.mrf.mxu3 }
  0xf1   : > { %v10246_v12 = vadd.f32 %v1586_v11, %v1537_v10  ;;  %v10248_v13 = vpop.f32.mrf.mxu0  ;;  %v1562_v10 = vadd.f32 %v10208_v51, %v10206_v50 }
  0xf3   : > { %v10250_v14 = vpop.f32.mrf.mxu1 }
  0xf7   : > { %v1539_v23 = vpop.f32.mrf.mxu2 }
  0xf8   : > { %v1588_v24 = vpop.f32.mrf.mxu3 }
  0xf9   : > { %v10276_v25 = vadd.f32 %v1588_v24, %v1539_v23  ;;  %v10278_v35 = vpop.f32.mrf.mxu0 }
  0xfb   : > { %v10280_v36 = vpop.f32.mrf.mxu1 }
  0xfc   : > { %1639 = vmatmul.bf16.gmra.mxu2 %v7937_v26  ;;  %1737 = vmatmul.bf16.gmra.mxu0 %v7945_v30 }
  0xfd   : > { %1688 = vmatmul.bf16.gmra.mxu3 %v7941_v27 }
  0xfe   : > { %1786 = vmatmul.bf16.gmra.mxu1 %v7949_v31 }
  0xff   : > { %v1542_v37 = vpop.f32.mrf.mxu2 }
 0x100   : > { %v1591_v38 = vpop.f32.mrf.mxu3 }
 0x101   : > { %v10282_v39 = vadd.f32 %v1591_v38, %v1542_v37  ;;  %v10284_v40 = vpop.f32.mrf.mxu0  ;;  %v1795_v38 = vld [vmem:[%s15622_s3 + $0x18] sm:$0xff] }
 0x103   : > { %v10286_v41 = vpop.f32.mrf.mxu1 }
 0x107   : > { %v1544_v42 = vpop.f32.mrf.mxu2 }
 0x108   : > { %v1593_v43 = vpop.f32.mrf.mxu3 }
 0x109   : > { %v10288_v44 = vadd.f32 %v1593_v43, %v1544_v42  ;;  %v1703_v46 = vpop.f32.mrf.mxu0  ;;  %v1567_v42 = vadd.f32 %v10244_v9, %v10242_v8 }
 0x10b   : > { %v1752_v47 = vpop.f32.mrf.mxu1 }
 0x10f   : > { %v1605_v49 = vpop.f32.mrf.mxu2 }
 0x110   : > { %v1654_v52 = vpop.f32.mrf.mxu3  ;;  %v1606_v53 = vadd.f32 %v1605_v49, %v1557_v48 }
 0x111   : > { %v1705_v58 = vpop.f32.mrf.mxu0 }
 0x112   : > { %v1655_v57 = vadd.f32 %v1654_v52, %v1606_v53 }
 0x113   : > { %v1754_v59 = vpop.f32.mrf.mxu1 }
 0x114   : > { %v1704_v60 = vadd.f32 %v1703_v46, %v1655_v57  ;;  %v1796_v57 = vld [vmem:[%s15622_s3 + $0x20] sm:$0xff] }
 0x116   : > { %v1753_v63 = vadd.f32 %v1752_v47, %v1704_v60 }
 0x117   : > { %v1607_v0 = vpop.f32.mrf.mxu2 }
 0x118   : > { %v1656_v1 = vpop.f32.mrf.mxu3  ;;  %v10297_v2 = vadd.f32 %v1792_v61, %v1753_v63  ;;  %v1608_v28 = vadd.f32 %v1607_v0, %v1559_v62 }
 0x119   : > { %v1708_v4 = vpop.f32.mrf.mxu0 }
 0x11a   : > { %v1657_v29 = vadd.f32 %v1656_v1, %v1608_v28  ;;  %1893 = vadd.xlane.f32.xlu0 %v10297_v2  ;;  %v1797_v28 = vld [vmem:[%s15622_s3 + $0x28] sm:$0xff] }
 0x11b   : > { %v1757_v5 = vpop.f32.mrf.mxu1 }
 0x11c   : > { %v1706_v6 = vadd.f32 %v1705_v58, %v1657_v29  ;;  %v1569_v58 = vadd.f32 %v10250_v14, %v10248_v13  ;;  %v1572_v29 = vadd.f32 %v10280_v36, %v10278_v35 }
 0x11e   : > { %v1755_v33 = vadd.f32 %v1754_v59, %v1706_v6 }
 0x11f   : > { %v1610_v34 = vpop.f32.mrf.mxu2 }
 0x120   : > { %v1659_v11 = vpop.f32.mrf.mxu3  ;;  %v10305_v15 = vadd.f32 %v1793_v7, %v1755_v33  ;;  %v1611_v16 = vadd.f32 %v1610_v34, %v1562_v10 }
 0x121   : > { %v1710_v18 = vpop.f32.mrf.mxu0 }
 0x122   : > { %v1660_v17 = vadd.f32 %v1659_v11, %v1611_v16  ;;  %1895 = vadd.xlane.f32.xlu0 %v10305_v15  ;;  %v1798_v11 = vld [vmem:[%s15622_s3 + $0x30] sm:$0xff]  ;;  %v1574_v16 = vadd.f32 %v10286_v41, %v10284_v40 }
 0x123   : > { %v1759_v19 = vpop.f32.mrf.mxu1 }
 0x124   : > { %v1709_v20 = vadd.f32 %v1708_v4, %v1660_v17 }
 0x126   : > { %v1758_v50 = vadd.f32 %v1757_v5, %v1709_v20 }
 0x127   : > { %v1612_v51 = vpop.f32.mrf.mxu2 }
 0x128   : > { %v1661_v23 = vpop.f32.mrf.mxu3  ;;  %v10313_v24 = vadd.f32 %v1794_v21, %v1758_v50  ;;  %v1613_v26 = vadd.f32 %v1612_v51, %v1564_v22  ;;  %v1799_v51 = vld [vmem:[%s15622_s3 + $0x38] sm:$0xff] }
 0x129   : > { %v1713_v30 = vpop.f32.mrf.mxu0 }
 0x12a   : > { %v1662_v27 = vadd.f32 %v1661_v23, %v1613_v26  ;;  %1897 = vadd.xlane.f32.xlu1 %v10313_v24 }
 0x12b   : > { %v1762_v31 = vpop.f32.mrf.mxu1 }
 0x12c   : > { %v1711_v37 = vadd.f32 %v1710_v18, %v1662_v27 }
 0x12e   : > { %v1760_v55 = vadd.f32 %v1759_v19, %v1711_v37 }
 0x12f   : > { %v1615_v56 = vpop.f32.mrf.mxu2 }
 0x130   : > { %v1664_v43 = vpop.f32.mrf.mxu3  ;;  %v10321_v46 = vadd.f32 %v1795_v38, %v1760_v55  ;;  %v1616_v47 = vadd.f32 %v1615_v56, %v1567_v42  ;;  %v1800_v42 = vld [vmem:[%s15622_s3 + $0x40] sm:$0xff] }
 0x131   : > { %v1715_v49 = vpop.f32.mrf.mxu0 }
 0x132   : > { %v1665_v48 = vadd.f32 %v1664_v43, %v1616_v47  ;;  %1899 = vadd.xlane.f32.xlu1 %v10321_v46 }
 0x133   : > { %v1764_v52 = vpop.f32.mrf.mxu1 }
 0x134   : > { %v1714_v53 = vadd.f32 %v1713_v30, %v1665_v48 }
 0x136   : > { %v1763_v8 = vadd.f32 %v1762_v31, %v1714_v53 }
 0x137   : > { %v1617_v9 = vpop.f32.mrf.mxu2 }
 0x138   : > { %v1666_v59 = vpop.f32.mrf.mxu3  ;;  %v10329_v60 = vadd.f32 %v1796_v57, %v1763_v8  ;;  %v1618_v61 = vadd.f32 %v1617_v9, %v1569_v58  ;;  %v1801_v57 = vld [vmem:[%s15622_s3 + $0x48] sm:$0xff] }
 0x139   : > { %v1718_v63 = vpop.f32.mrf.mxu0 }
 0x13a   : > { %v1667_v62 = vadd.f32 %v1666_v59, %v1618_v61  ;;  %1901 = vadd.xlane.f32.xlu2 %v10329_v60 }
 0x13b   : > { %v1767_v0 = vpop.f32.mrf.mxu1 }
 0x13c   : > { %v1716_v1 = vadd.f32 %v1715_v49, %v1667_v62 }
 0x13e   : > { %v1765_v13 = vadd.f32 %v1764_v52, %v1716_v1  ;;  %v1802_v1 = vld [vmem:[%s15622_s3 + $0x50] sm:$0xff] }
 0x13f   : > { %v1620_v14 = vpop.f32.mrf.mxu2 }
 0x140   : > { %v1669_v4 = vpop.f32.mrf.mxu3  ;;  %v10337_v5 = vadd.f32 %v1797_v28, %v1765_v13  ;;  %v1621_v6 = vadd.f32 %v1620_v14, %v1572_v29 }
 0x141   : > { %v1720_v10 = vpop.f32.mrf.mxu0 }
 0x142   : > { %v1670_v7 = vadd.f32 %v1669_v4, %v1621_v6  ;;  %1903 = vadd.xlane.f32.xlu2 %v10337_v5 }
 0x143   : > { %v1769_v33 = vpop.f32.mrf.mxu1 }
 0x144   : > { %v1719_v34 = vadd.f32 %v1718_v63, %v1670_v7 }
 0x146   : > { %v1768_v35 = vadd.f32 %v1767_v0, %v1719_v34 }
 0x147   : > { %v1622_v36 = vpop.f32.mrf.mxu2 }
 0x148   : > { %v1671_v17 = vpop.f32.mrf.mxu3  ;;  %v10345_v18 = vadd.f32 %v1798_v11, %v1768_v35  ;;  %v1623_v19 = vadd.f32 %v1622_v36, %v1574_v16 }
 0x149   : > { %v1723_v21 = vpop.f32.mrf.mxu0 }
 0x14a   : > { %v1672_v20 = vadd.f32 %v1671_v17, %v1623_v19  ;;  %1905 = vadd.xlane.f32.xlu0 %v10345_v18 }
 0x14b   : > { %v1772_v22 = vpop.f32.mrf.mxu1 }
 0x14c   : > { %v1721_v50 = vadd.f32 %v1720_v10, %v1672_v20  ;;  %v1803_v10 = vld [vmem:[%s15622_s3 + $0x58] sm:$0xff]  ;;  %v1804_v20 = vld [vmem:[%s15622_s3 + $0x60] sm:$0xff] }
 0x14e   : > { %v1770_v23 = vadd.f32 %v1769_v33, %v1721_v50 }
 0x14f   : > { %v1625_v26 = vpop.f32.mrf.mxu2 }
 0x150   : > { %v1674_v27 = vpop.f32.mrf.mxu3  ;;  %v10351_v40 = vadd.f32 %v1799_v51, %v1770_v23  ;;  %v1626_v41 = vadd.f32 %v1625_v26, %v10174_v32 }
 0x151   : > { %v1725_v31 = vpop.f32.mrf.mxu0 }
 0x152   : > { %v1675_v30 = vadd.f32 %v1674_v27, %v1626_v41  ;;  %1907 = vadd.xlane.f32.xlu1 %v10351_v40 }
 0x153   : > { %v1774_v37 = vpop.f32.mrf.mxu1 }
 0x154   : > { %v1724_v38 = vadd.f32 %v1723_v21, %v1675_v30 }
 0x156   : > { %v1773_v55 = vadd.f32 %v1772_v22, %v1724_v38 }
 0x157   : > { %v1627_v56 = vpop.f32.mrf.mxu2 }
 0x158   : > { %v1676_v43 = vpop.f32.mrf.mxu3  ;;  %v10358_v47 = vadd.f32 %v1800_v42, %v1773_v55  ;;  %v1628_v48 = vadd.f32 %v1627_v56, %v10204_v45 }
 0x159   : > { %v1728_v52 = vpop.f32.mrf.mxu0 }
 0x15a   : > { %v1677_v49 = vadd.f32 %v1676_v43, %v1628_v48  ;;  %1909 = vadd.xlane.f32.xlu2 %v10358_v47 }
 0x15b   : > { %v1777_v32 = vpop.f32.mrf.mxu1 }
 0x15c   : > { %v1726_v53 = vadd.f32 %v1725_v31, %v1677_v49 }
 0x15e   : > { %v1775_v58 = vadd.f32 %v1774_v37, %v1726_v53  ;;  %v1805_v37 = vld [vmem:[%s15622_s3 + $0x68] sm:$0xff] }
 0x15f   : > { %v1630_v8 = vpop.f32.mrf.mxu2 }
 0x160   : > { %v1679_v9 = vpop.f32.mrf.mxu3  ;;  %v10365_v59 = vadd.f32 %v1801_v57, %v1775_v58  ;;  %v1631_v61 = vadd.f32 %v1630_v8, %v10210_v54  ;;  %v1806_v57 = vld [vmem:[%s15622_s3 + $0x70] sm:$0xff] }
 0x161   : > { %v1730_v63 = vpop.f32.mrf.mxu0 }
 0x162   : > { %v1680_v62 = vadd.f32 %v1679_v9, %v1631_v61  ;;  %1911 = vadd.xlane.f32.xlu0 %v10365_v59  ;;  %v10403_v9 = vld [vmem:[%s15622_s3 + $0x80] sm:$0xff] }
 0x163   : > { %v1779_v0 = vpop.f32.mrf.mxu1 }
 0x164   : > { %v1729_v45 = vadd.f32 %v1728_v52, %v1680_v62 }
 0x166   : > { %v1778_v28 = vadd.f32 %v1777_v32, %v1729_v45 }
 0x167   : > { %v1632_v29 = vpop.f32.mrf.mxu2 }
 0x168   : > { %v1681_v13 = vpop.f32.mrf.mxu3  ;;  %v10372_v14 = vadd.f32 %v1802_v1, %v1778_v28  ;;  %v1633_v4 = vadd.f32 %v1632_v29, %v10240_v3  ;;  %v9618_v3 = vmov 128.0  }
 0x169   : > { %v1733_v7 = vpop.f32.mrf.mxu0  ;;  %8960 = vrcp.f32 %v9618_v3 }
 0x16a   : > { %v1682_v6 = vadd.f32 %v1681_v13, %v1633_v4  ;;  %1913 = vadd.xlane.f32.xlu1 %v10372_v14  ;;  %v1807_v13 = vld [vmem:[%s15622_s3 + $0x78] sm:$0xff] }
 0x16b   : > { %v1782_v34 = vpop.f32.mrf.mxu1 }
 0x16c   : > { %v1731_v54 = vadd.f32 %v1730_v63, %v1682_v6 }
 0x16e   : > { %v1780_v33 = vadd.f32 %v1779_v0, %v1731_v54 }
 0x16f   : > { %v1635_v11 = vpop.f32.mrf.mxu2  ;;  %v8961_v23 = vpop.eup %8960 }
 0x170   : > { %v1684_v16 = vpop.f32.mrf.mxu3  ;;  %v10379_v35 = vadd.f32 %v1803_v10, %v1780_v33  ;;  %v1636_v36 = vadd.f32 %v1635_v11, %v10246_v12  ;;  %v1928_v30 = vmul.f32 128.0, %v8961_v23  ;;  %vm1932_vm0 = vweird.f32 %v8961_v23 }
 0x171   : > { %v1735_v22 = vpop.f32.mrf.mxu0 }
 0x172   : > { %v1685_v17 = vadd.f32 %v1684_v16, %v1636_v36  ;;  %1915 = vadd.xlane.f32.xlu2 %v10379_v35  ;;  %v1929_v56 = vsub.f32 1.0, %v1928_v30 }
 0x173   : > { %v1784_v12 = vpop.f32.mrf.mxu1 }
 0x174   : > { %v1734_v19 = vadd.f32 %v1733_v7, %v1685_v17  ;;  %v1930_v32 = vmul.f32 %v8961_v23, %v1929_v56 }
 0x176   : > { %v1783_v21 = vadd.f32 %v1782_v34, %v1734_v19  ;;  %v1931_v61 = vadd.f32 %v8961_v23, %v1930_v32 }
 0x177   : > { %v1637_v50 = vpop.f32.mrf.mxu2 }
 0x178   : > { %v1686_v51 = vpop.f32.mrf.mxu3  ;;  %v10386_v26 = vadd.f32 %v1804_v20, %v1783_v21  ;;  %v1638_v27 = vadd.f32 %v1637_v50, %v10276_v25  ;;  %v10410_v1 = vsel %vm1932_vm0, %v8961_v23, %v1931_v61 }
 0x179   : > { %v1738_v49 = vpop.f32.mrf.mxu0 }
 0x17a   : > { %v1687_v41 = vadd.f32 %v1686_v51, %v1638_v27  ;;  %1917 = vadd.xlane.f32.xlu0 %v10386_v26 }
 0x17b   : > { %v1787_v52 = vpop.f32.mrf.mxu1 }
 0x17c   : > { %v1736_v31 = vadd.f32 %v1735_v22, %v1687_v41 }
 0x17e   : > { %v1785_v38 = vadd.f32 %v1784_v12, %v1736_v31 }
 0x17f   : > { %v1640_v42 = vpop.f32.mrf.mxu2 }
 0x180   : > { %v1689_v55 = vpop.f32.mrf.mxu3  ;;  %v10393_v43 = vadd.f32 %v1805_v37, %v1785_v38  ;;  %v1641_v48 = vadd.f32 %v1640_v42, %v10282_v39 }
 0x181   : > { %v1740_v0 = vpop.f32.mrf.mxu0 }
 0x182   : > { %v1690_v25 = vadd.f32 %v1689_v55, %v1641_v48  ;;  %1919 = vadd.xlane.f32.xlu1 %v10393_v43 }
 0x183   : > { %v1789_v29 = vpop.f32.mrf.mxu1 }
 0x184   : > { %v1739_v53 = vadd.f32 %v1738_v49, %v1690_v25 }
 0x186   : > { %v1788_v58 = vadd.f32 %v1787_v52, %v1739_v53 }
 0x187   : > { %v1642_v8 = vpop.f32.mrf.mxu2 }
 0x188   : > { %v10405_v39 = vadd.f32 %v1806_v57, %v1788_v58  ;;  %v1643_v62 = vadd.f32 %v1642_v8, %v10288_v44  ;;  %v1691_v63 = vpop.f32.mrf.mxu3 }
 0x18a   : > { %v1692_v45 = vadd.f32 %v1691_v63, %v1643_v62  ;;  %1921 = vadd.xlane.f32.xlu2 %v10405_v39  ;;  %1925 = vadd.xlane.f32.xlu1 %v10403_v9 }
 0x18c   : > { %v1741_v28 = vadd.f32 %v1740_v0, %v1692_v45 }
 0x18d   : > { %v1894_v4 = vpop.xlane.xlu0 %1893 }
 0x18e   : > { %v1790_v6 = vadd.f32 %v1789_v29, %v1741_v28  ;;  %v1934_v44 = vmul.f32 %v10410_v1, %v1894_v4 }
 0x190   : > { %v10416_v54 = vadd.f32 %v1807_v13, %v1790_v6  ;;  %v10419_v7 = vsub.f32 %v10297_v2, %v1934_v44 }
 0x192   : > { %1923 = vadd.xlane.f32.xlu0 %v10416_v54  ;;  %v1968_v10 = vmul.f32 %v10419_v7, %v10419_v7 }
 0x194   : > { %1985 = vadd.xlane.f32.xlu2 %v1968_v10 }
 0x195   : > { %v1896_v33 = vpop.xlane.xlu0 %1895 }
 0x196   : > { %v1935_v34 = vmul.f32 %v10410_v1, %v1896_v33 }
 0x198   : > { %v10426_v11 = vsub.f32 %v10305_v15, %v1935_v34 }
 0x19a   : > { %v1969_v16 = vmul.f32 %v10426_v11, %v10426_v11 }
 0x19c   : > { %1987 = vadd.xlane.f32.xlu0 %v1969_v16 }
 0x19d   : > { %v1898_v36 = vpop.xlane.xlu1 %1897 }
 0x19e   : > { %v1936_v2 = vmul.f32 %v10410_v1, %v1898_v36 }
 0x1a0   : > { %v10432_v17 = vsub.f32 %v10313_v24, %v1936_v2 }
 0x1a2   : > { %v1970_v3 = vmul.f32 %v10432_v17, %v10432_v17 }
 0x1a4   : > { %1989 = vadd.xlane.f32.xlu1 %v1970_v3 }
 0x1a5   : > { %v1900_v19 = vpop.xlane.xlu1 %1899 }
 0x1a6   : > { %v1937_v20 = vmul.f32 %v10410_v1, %v1900_v19 }
 0x1a8   : > { %v10438_v15 = vsub.f32 %v10321_v46, %v1937_v20 }
 0x1aa   : > { %v1971_v21 = vmul.f32 %v10438_v15, %v10438_v15 }
 0x1ac   : > { %1991 = vadd.xlane.f32.xlu2 %v1971_v21 }
 0x1ad   : > { %v1902_v22 = vpop.xlane.xlu2 %1901 }
 0x1ae   : > { %v1938_v50 = vmul.f32 %v10410_v1, %v1902_v22 }
 0x1b0   : > { %v10444_v24 = vsub.f32 %v10329_v60, %v1938_v50 }
 0x1b2   : > { %v1972_v51 = vmul.f32 %v10444_v24, %v10444_v24 }
 0x1b4   : > { %1993 = vadd.xlane.f32.xlu0 %v1972_v51 }
 0x1b5   : > { %v1904_v23 = vpop.xlane.xlu2 %1903 }
 0x1b6   : > { %v1939_v27 = vmul.f32 %v10410_v1, %v1904_v23 }
 0x1b8   : > { %v10450_v46 = vsub.f32 %v10337_v5, %v1939_v27 }
 0x1ba   : > { %v1973_v12 = vmul.f32 %v10450_v46, %v10450_v46 }
 0x1bc   : > { %1995 = vadd.xlane.f32.xlu1 %v1973_v12 }
 0x1bd   : > { %v1906_v41 = vpop.xlane.xlu0 %1905 }
 0x1be   : > { %v1940_v30 = vmul.f32 %v10410_v1, %v1906_v41 }
 0x1c0   : > { %v10456_v60 = vsub.f32 %v10345_v18, %v1940_v30 }
 0x1c2   : > { %v1974_v31 = vmul.f32 %v10456_v60, %v10456_v60 }
 0x1c4   : > { %1997 = vadd.xlane.f32.xlu2 %v1974_v31 }
 0x1c5   : > { %v1908_v37 = vpop.xlane.xlu1 %1907 }
 0x1c6   : > { %v1941_v38 = vmul.f32 %v10410_v1, %v1908_v37 }
 0x1c8   : > { %v10462_v5 = vsub.f32 %v10351_v40, %v1941_v38  ;;  %v10526_v38 = vld [vmem:[%s15623_s28] ss:$0 sm:$0xff] }
 0x1ca   : > { %v1975_v42 = vmul.f32 %v10462_v5, %v10462_v5 }
 0x1cc   : > { %1999 = vadd.xlane.f32.xlu0 %v1975_v42 }
 0x1cd   : > { %v1910_v55 = vpop.xlane.xlu2 %1909 }
 0x1ce   : > { %v1942_v56 = vmul.f32 %v10410_v1, %v1910_v55 }
 0x1d0   : > { %v10468_v18 = vsub.f32 %v10358_v47, %v1942_v56  ;;  %v10531_v56 = vld [vmem:[%s15624_s18] ss:$0 sm:$0xff] }
 0x1d2   : > { %v1976_v48 = vmul.f32 %v10468_v18, %v10468_v18 }
 0x1d4   : > { %2001 = vadd.xlane.f32.xlu1 %v1976_v48 }
 0x1d5   : > { %v1912_v49 = vpop.xlane.xlu0 %1911 }
 0x1d6   : > { %v1943_v25 = vmul.f32 %v10410_v1, %v1912_v49 }
 0x1d8   : > { %v10474_v40 = vsub.f32 %v10365_v59, %v1943_v25 }
 0x1da   : > { %v1977_v52 = vmul.f32 %v10474_v40, %v10474_v40 }
 0x1dc   : > { %2003 = vadd.xlane.f32.xlu2 %v1977_v52 }
 0x1dd   : > { %v1914_v32 = vpop.xlane.xlu1 %1913 }
 0x1de   : > { %v1944_v53 = vmul.f32 %v10410_v1, %v1914_v32 }
 0x1e0   : > { %v10480_v47 = vsub.f32 %v10372_v14, %v1944_v53 }
 0x1e2   : > { %v1978_v57 = vmul.f32 %v10480_v47, %v10480_v47 }
 0x1e4   : > { %2005 = vadd.xlane.f32.xlu0 %v1978_v57 }
 0x1e5   : > { %v1916_v58 = vpop.xlane.xlu2 %1915 }
 0x1e6   : > { %v1945_v8 = vmul.f32 %v10410_v1, %v1916_v58 }
 0x1e8   : > { %v10486_v59 = vsub.f32 %v10379_v35, %v1945_v8 }
 0x1ea   : > { %v1979_v61 = vmul.f32 %v10486_v59, %v10486_v59 }
 0x1ec   : > { %2007 = vadd.xlane.f32.xlu1 %v1979_v61 }
 0x1ed   : > { %v1918_v62 = vpop.xlane.xlu0 %1917 }
 0x1ee   : > { %v1946_v63 = vmul.f32 %v10410_v1, %v1918_v62 }
 0x1f0   : > { %v10492_v14 = vsub.f32 %v10386_v26, %v1946_v63 }
 0x1f2   : > { %v1980_v45 = vmul.f32 %v10492_v14, %v10492_v14 }
 0x1f4   : > { %2009 = vadd.xlane.f32.xlu2 %v1980_v45 }
 0x1f5   : > { %v1920_v0 = vpop.xlane.xlu1 %1919 }
 0x1f6   : > { %v1947_v28 = vmul.f32 %v10410_v1, %v1920_v0 }
 0x1f8   : > { %v10498_v35 = vsub.f32 %v10393_v43, %v1947_v28 }
 0x1fa   : > { %v1981_v29 = vmul.f32 %v10498_v35, %v10498_v35 }
 0x1fc   : > { %2011 = vadd.xlane.f32.xlu0 %v1981_v29 }
 0x1fd   : > { %v1922_v13 = vpop.xlane.xlu2 %1921  ;;  %v1926_v4 = vpop.xlane.xlu1 %1925 }
 0x1fe   : > { %v1948_v6 = vmul.f32 %v10410_v1, %v1922_v13  ;;  %v1950_v26 = vmul.f32 %v10410_v1, %v1926_v4 }
 0x200   : > { %v10505_v44 = vsub.f32 %v10405_v39, %v1948_v6  ;;  %v10508_v10 = vsub.f32 %v10403_v9, %v1950_v26 }
 0x202   : > { %v1982_v43 = vmul.f32 %v10505_v44, %v10505_v44  ;;  %v1984_v33 = vmul.f32 %v10508_v10, %v10508_v10 }
 0x204   : > { %2013 = vadd.xlane.f32.xlu1 %v1982_v43  ;;  %2017 = vadd.xlane.f32.xlu0 %v1984_v33 }
 0x205   : > { %v1924_v34 = vpop.xlane.xlu0 %1923 }
 0x206   : > { %v1949_v16 = vmul.f32 %v10410_v1, %v1924_v34 }
 0x207   : > { %v1986_v36 = vpop.xlane.xlu2 %1985 }
 0x208   : > { %v10516_v2 = vsub.f32 %v10416_v54, %v1949_v16  ;;  %v2019_v39 = vmul.f32 %v1986_v36, %v10410_v1 }
 0x20a   : > { %v2036_v3 = vadd.f32 1e-05, %v2019_v39  ;;  %v1983_v9 = vmul.f32 %v10516_v2, %v10516_v2 }
 0x20c   : > { %8962 = vrsqrt.f32 %v2036_v3  ;;  %2015 = vadd.xlane.f32.xlu2 %v1983_v9  ;;  %vm2059_vm2 = vweird.f32 %v2036_v3 }
 0x20f   : > { %v1988_v19 = vpop.xlane.xlu0 %1987 }
 0x210   : > { %v2020_v20 = vmul.f32 %v1988_v19, %v10410_v1 }
 0x212   : > { %v8963_v21 = vpop.eup %8962  ;;  %v2037_v22 = vadd.f32 1e-05, %v2020_v20 }
 0x213   : > { %v2054_v50 = vmul.f32 %v8963_v21, %v2036_v3  ;;  %vm2060_vm1 = vweird.f32 %v8963_v21 }
 0x214   : > { %8964 = vrsqrt.f32 %v2037_v22  ;;  %vm2061_vm3 = vmor %vm2059_vm2, %vm2060_vm1  ;;  %vm2069_vm5 = vweird.f32 %v2037_v22 }
 0x215   : > { %v2055_v51 = vmul.f32 %v8963_v21, %v2054_v50 }
 0x217   : > { %v2056_v23 = vmul.f32 0.5, %v2055_v51  ;;  %v1990_v27 = vpop.xlane.xlu1 %1989 }
 0x218   : > { %v2021_v54 = vmul.f32 %v1990_v27, %v10410_v1 }
 0x219   : > { %v2057_v12 = vsub.f32 1.5, %v2056_v23 }
 0x21a   : > { %v8965_v41 = vpop.eup %8964  ;;  %v2038_v30 = vadd.f32 1e-05, %v2021_v54 }
 0x21b   : > { %v2058_v31 = vmul.f32 %v8963_v21, %v2057_v12  ;;  %v2064_v37 = vmul.f32 %v8965_v41, %v2037_v22  ;;  %vm2070_vm4 = vweird.f32 %v8965_v41 }
 0x21c   : > { %8966 = vrsqrt.f32 %v2038_v30  ;;  %vm2071_vm6 = vmor %vm2069_vm5, %vm2070_vm4  ;;  %vm2079_vm8 = vweird.f32 %v2038_v30 }
 0x21d   : > { %v2062_v42 = vsel %vm2061_vm3, %v8963_v21, %v2058_v31  ;;  %v2065_v55 = vmul.f32 %v8965_v41, %v2064_v37 }
 0x21e   : > { %v2223_v48 = vmul.f32 %v2062_v42, %v10419_v7 }
 0x21f   : > { %v2066_v49 = vmul.f32 0.5, %v2065_v55  ;;  %v1992_v25 = vpop.xlane.xlu2 %1991 }
 0x220   : > { %v2243_v52 = vmul.f32 %v10526_v38, %v2223_v48  ;;  %v2022_v32 = vmul.f32 %v1992_v25, %v10410_v1 }
 0x221   : > { %v2067_v53 = vsub.f32 1.5, %v2066_v49 }
 0x222   : > { %v8967_v57 = vpop.eup %8966  ;;  %v2263_v58 = vadd.f32 %v10531_v56, %v2243_v52  ;;  %v2039_v8 = vadd.f32 1e-05, %v2022_v32 }
 0x223   : > { %v2068_v61 = vmul.f32 %v8965_v41, %v2067_v53  ;;  %v2074_v62 = vmul.f32 %v8967_v57, %v2038_v30  ;;  %vm2080_vm7 = vweird.f32 %v8967_v57 }
 0x224   : > { %2280 = vst [vmem:[#allocation2] sm:$0xff] %v2263_v58  ;;  %8968 = vrsqrt.f32 %v2039_v8  ;;  %vm2081_vm9 = vmor %vm2079_vm8, %vm2080_vm7  ;;  %vm2089_vm11 = vweird.f32 %v2039_v8 }
 0x225   : > { %v2072_v63 = vsel %vm2071_vm6, %v8965_v41, %v2068_v61  ;;  %v2075_v7 = vmul.f32 %v8967_v57, %v2074_v62 }
 0x226   : > { %v2224_v45 = vmul.f32 %v2072_v63, %v10426_v11 }
 0x227   : > { %v2076_v0 = vmul.f32 0.5, %v2075_v7  ;;  %v1994_v28 = vpop.xlane.xlu0 %1993 }
 0x228   : > { %v2244_v29 = vmul.f32 %v10526_v38, %v2224_v45  ;;  %v2023_v13 = vmul.f32 %v1994_v28, %v10410_v1 }
 0x229   : > { %v2077_v4 = vsub.f32 1.5, %v2076_v0 }
 0x22a   : > { %v8969_v6 = vpop.eup %8968  ;;  %v2264_v26 = vadd.f32 %v10531_v56, %v2244_v29  ;;  %v2040_v43 = vadd.f32 1e-05, %v2023_v13 }
 0x22b   : > { %v2078_v33 = vmul.f32 %v8967_v57, %v2077_v4  ;;  %v2084_v34 = vmul.f32 %v8969_v6, %v2039_v8  ;;  %vm2090_vm10 = vweird.f32 %v8969_v6 }
 0x22c   : > { %2281 = vst [vmem:[#allocation2 + $0x38] sm:$0xff] %v2264_v26  ;;  %8970 = vrsqrt.f32 %v2040_v43  ;;  %vm2091_vm12 = vmor %vm2089_vm11, %vm2090_vm10  ;;  %vm2099_vm14 = vweird.f32 %v2040_v43 }
 0x22d   : > { %v2082_v16 = vsel %vm2081_vm9, %v8967_v57, %v2078_v33  ;;  %v2085_v11 = vmul.f32 %v8969_v6, %v2084_v34 }
 0x22e   : > { %v2225_v36 = vmul.f32 %v2082_v16, %v10432_v17 }
 0x22f   : > { %v2086_v39 = vmul.f32 0.5, %v2085_v11  ;;  %v1996_v3 = vpop.xlane.xlu1 %1995 }
 0x230   : > { %v2245_v9 = vmul.f32 %v10526_v38, %v2225_v36  ;;  %v2024_v19 = vmul.f32 %v1996_v3, %v10410_v1 }
 0x231   : > { %v2087_v20 = vsub.f32 1.5, %v2086_v39 }
 0x232   : > { %v8971_v21 = vpop.eup %8970  ;;  %v2265_v22 = vadd.f32 %v10531_v56, %v2245_v9  ;;  %v2041_v50 = vadd.f32 1e-05, %v2024_v19 }
 0x233   : > { %v2088_v51 = vmul.f32 %v8969_v6, %v2087_v20  ;;  %v2094_v23 = vmul.f32 %v8971_v21, %v2040_v43  ;;  %vm2100_vm13 = vweird.f32 %v8971_v21 }
 0x234   : > { %2282 = vst [vmem:[#allocation2 + $0x78] sm:$0xff] %v2265_v22  ;;  %8972 = vrsqrt.f32 %v2041_v50  ;;  %vm2101_vm15 = vmor %vm2099_vm14, %vm2100_vm13  ;;  %vm2109_vm1 = vweird.f32 %v2041_v50 }
 0x235   : > { %v2092_v27 = vsel %vm2091_vm12, %v8969_v6, %v2088_v51  ;;  %v2095_v17 = vmul.f32 %v8971_v21, %v2094_v23 }
 0x236   : > { %v2226_v54 = vmul.f32 %v2092_v27, %v10438_v15 }
 0x237   : > { %v2096_v12 = vmul.f32 0.5, %v2095_v17  ;;  %v1998_v41 = vpop.xlane.xlu2 %1997 }
 0x238   : > { %v2246_v30 = vmul.f32 %v10526_v38, %v2226_v54  ;;  %v2025_v31 = vmul.f32 %v1998_v41, %v10410_v1 }
 0x239   : > { %v2097_v37 = vsub.f32 1.5, %v2096_v12 }
 0x23a   : > { %v8973_v42 = vpop.eup %8972  ;;  %v2266_v55 = vadd.f32 %v10531_v56, %v2246_v30  ;;  %v2042_v48 = vadd.f32 1e-05, %v2025_v31 }
 0x23b   : > { %v2098_v49 = vmul.f32 %v8971_v21, %v2097_v37  ;;  %v2104_v25 = vmul.f32 %v8973_v42, %v2041_v50  ;;  %vm2110_vm0 = vweird.f32 %v8973_v42 }
 0x23c   : > { %2283 = vst [vmem:[#allocation2 + $0x58] sm:$0xff] %v2266_v55  ;;  %8974 = vrsqrt.f32 %v2042_v48  ;;  %vm2111_vm2 = vmor %vm2109_vm1, %vm2110_vm0  ;;  %vm2119_vm4 = vweird.f32 %v2042_v48 }
 0x23d   : > { %v2102_v52 = vsel %vm2101_vm15, %v8971_v21, %v2098_v49  ;;  %v2105_v15 = vmul.f32 %v8973_v42, %v2104_v25 }
 0x23e   : > { %v2227_v32 = vmul.f32 %v2102_v52, %v10444_v24 }
 0x23f   : > { %v2106_v53 = vmul.f32 0.5, %v2105_v15  ;;  %v2000_v57 = vpop.xlane.xlu0 %1999 }
 0x240   : > { %v2247_v58 = vmul.f32 %v10526_v38, %v2227_v32  ;;  %v2026_v8 = vmul.f32 %v2000_v57, %v10410_v1 }
 0x241   : > { %v2107_v61 = vsub.f32 1.5, %v2106_v53 }
 0x242   : > { %v8975_v62 = vpop.eup %8974  ;;  %v2267_v63 = vadd.f32 %v10531_v56, %v2247_v58  ;;  %v2043_v7 = vadd.f32 1e-05, %v2026_v8 }
 0x243   : > { %v2108_v45 = vmul.f32 %v8973_v42, %v2107_v61  ;;  %v2114_v0 = vmul.f32 %v8975_v62, %v2042_v48  ;;  %vm2120_vm3 = vweird.f32 %v8975_v62 }
 0x244   : > { %2284 = vst [vmem:[#allocation2 + $0x20] sm:$0xff] %v2267_v63  ;;  %8976 = vrsqrt.f32 %v2043_v7  ;;  %vm2121_vm5 = vmor %vm2119_vm4, %vm2120_vm3  ;;  %vm2129_vm7 = vweird.f32 %v2043_v7 }
 0x245   : > { %v2112_v28 = vsel %vm2111_vm2, %v8973_v42, %v2108_v45  ;;  %v2115_v24 = vmul.f32 %v8975_v62, %v2114_v0 }
 0x246   : > { %v2228_v29 = vmul.f32 %v2112_v28, %v10450_v46 }
 0x247   : > { %v2116_v13 = vmul.f32 0.5, %v2115_v24  ;;  %v2002_v4 = vpop.xlane.xlu1 %2001 }
 0x248   : > { %v2248_v6 = vmul.f32 %v10526_v38, %v2228_v29  ;;  %v2027_v26 = vmul.f32 %v2002_v4, %v10410_v1 }
 0x249   : > { %v2117_v43 = vsub.f32 1.5, %v2116_v13 }
 0x24a   : > { %v8977_v33 = vpop.eup %8976  ;;  %v2268_v34 = vadd.f32 %v10531_v56, %v2248_v6  ;;  %v2044_v16 = vadd.f32 1e-05, %v2027_v26 }
 0x24b   : > { %v2118_v11 = vmul.f32 %v8975_v62, %v2117_v43  ;;  %v2124_v36 = vmul.f32 %v8977_v33, %v2043_v7  ;;  %vm2130_vm6 = vweird.f32 %v8977_v33 }
 0x24c   : > { %2285 = vst [vmem:[#allocation2 + $0x8] sm:$0xff] %v2268_v34  ;;  %8978 = vrsqrt.f32 %v2044_v16  ;;  %vm2131_vm8 = vmor %vm2129_vm7, %vm2130_vm6  ;;  %vm2139_vm10 = vweird.f32 %v2044_v16 }
 0x24d   : > { %v2122_v39 = vsel %vm2121_vm5, %v8975_v62, %v2118_v11  ;;  %v2125_v46 = vmul.f32 %v8977_v33, %v2124_v36 }
 0x24e   : > { %v2229_v3 = vmul.f32 %v2122_v39, %v10456_v60 }
 0x24f   : > { %v2126_v9 = vmul.f32 0.5, %v2125_v46  ;;  %v2004_v19 = vpop.xlane.xlu2 %2003 }
 0x250   : > { %v2249_v20 = vmul.f32 %v10526_v38, %v2229_v3  ;;  %v2028_v21 = vmul.f32 %v2004_v19, %v10410_v1 }
 0x251   : > { %v2127_v22 = vsub.f32 1.5, %v2126_v9 }
 0x252   : > { %v8979_v50 = vpop.eup %8978  ;;  %v2269_v51 = vadd.f32 %v10531_v56, %v2249_v20  ;;  %v2045_v23 = vadd.f32 1e-05, %v2028_v21 }
 0x253   : > { %v2128_v27 = vmul.f32 %v8977_v33, %v2127_v22  ;;  %v2134_v17 = vmul.f32 %v8979_v50, %v2044_v16  ;;  %vm2140_vm9 = vweird.f32 %v8979_v50 }
 0x254   : > { %2286 = vst [vmem:[#allocation2 + $0x70] sm:$0xff] %v2269_v51  ;;  %8980 = vrsqrt.f32 %v2045_v23  ;;  %vm2141_vm11 = vmor %vm2139_vm10, %vm2140_vm9  ;;  %vm2149_vm13 = vweird.f32 %v2045_v23 }
 0x255   : > { %v2132_v54 = vsel %vm2131_vm8, %v8977_v33, %v2128_v27  ;;  %v2135_v60 = vmul.f32 %v8979_v50, %v2134_v17 }
 0x256   : > { %v2230_v12 = vmul.f32 %v2132_v54, %v10462_v5 }
 0x257   : > { %v2136_v41 = vmul.f32 0.5, %v2135_v60  ;;  %v2006_v30 = vpop.xlane.xlu0 %2005 }
 0x258   : > { %v2250_v31 = vmul.f32 %v10526_v38, %v2230_v12  ;;  %v2029_v37 = vmul.f32 %v2006_v30, %v10410_v1 }
 0x259   : > { %v2137_v42 = vsub.f32 1.5, %v2136_v41 }
 0x25a   : > { %v8981_v55 = vpop.eup %8980  ;;  %v2270_v48 = vadd.f32 %v10531_v56, %v2250_v31  ;;  %v2046_v49 = vadd.f32 1e-05, %v2029_v37 }
 0x25b   : > { %v2138_v25 = vmul.f32 %v8979_v50, %v2137_v42  ;;  %v2144_v52 = vmul.f32 %v8981_v55, %v2045_v23  ;;  %vm2150_vm12 = vweird.f32 %v8981_v55 }
 0x25c   : > { %2287 = vst [vmem:[#allocation2 + $0x80] sm:$0xff] %v2270_v48  ;;  %8982 = vrsqrt.f32 %v2046_v49  ;;  %vm2151_vm14 = vmor %vm2149_vm13, %vm2150_vm12  ;;  %vm2159_vm0 = vweird.f32 %v2046_v49 }
 0x25d   : > { %v2142_v15 = vsel %vm2141_vm11, %v8979_v50, %v2138_v25  ;;  %v2145_v5 = vmul.f32 %v8981_v55, %v2144_v52 }
 0x25e   : > { %v2231_v32 = vmul.f32 %v2142_v15, %v10468_v18 }
 0x25f   : > { %v2146_v53 = vmul.f32 0.5, %v2145_v5  ;;  %v2008_v57 = vpop.xlane.xlu1 %2007 }
 0x260   : > { %v2251_v58 = vmul.f32 %v10526_v38, %v2231_v32  ;;  %v2030_v8 = vmul.f32 %v2008_v57, %v10410_v1 }
 0x261   : > { %v2147_v61 = vsub.f32 1.5, %v2146_v53 }
 0x262   : > { %v8983_v62 = vpop.eup %8982  ;;  %v2271_v63 = vadd.f32 %v10531_v56, %v2251_v58  ;;  %v2047_v7 = vadd.f32 1e-05, %v2030_v8 }
 0x263   : > { %v2148_v45 = vmul.f32 %v8981_v55, %v2147_v61  ;;  %v2154_v0 = vmul.f32 %v8983_v62, %v2046_v49  ;;  %vm2160_vm15 = vweird.f32 %v8983_v62 }
 0x264   : > { %2288 = vst [vmem:[#allocation2 + $0x28] sm:$0xff] %v2271_v63  ;;  %8984 = vrsqrt.f32 %v2047_v7  ;;  %vm2161_vm1 = vmor %vm2159_vm0, %vm2160_vm15  ;;  %vm2169_vm3 = vweird.f32 %v2047_v7 }
 0x265   : > { %v2152_v28 = vsel %vm2151_vm14, %v8981_v55, %v2148_v45  ;;  %v2155_v18 = vmul.f32 %v8983_v62, %v2154_v0 }
 0x266   : > { %v2232_v24 = vmul.f32 %v2152_v28, %v10474_v40 }
 0x267   : > { %v2156_v29 = vmul.f32 0.5, %v2155_v18  ;;  %v2010_v13 = vpop.xlane.xlu2 %2009 }
 0x268   : > { %v2252_v4 = vmul.f32 %v10526_v38, %v2232_v24  ;;  %v2031_v6 = vmul.f32 %v2010_v13, %v10410_v1 }
 0x269   : > { %v2157_v26 = vsub.f32 1.5, %v2156_v29 }
 0x26a   : > { %v8985_v43 = vpop.eup %8984  ;;  %v2272_v33 = vadd.f32 %v10531_v56, %v2252_v4  ;;  %v2048_v34 = vadd.f32 1e-05, %v2031_v6 }
 0x26b   : > { %v2158_v16 = vmul.f32 %v8983_v62, %v2157_v26  ;;  %v2164_v11 = vmul.f32 %v8985_v43, %v2047_v7  ;;  %vm2170_vm2 = vweird.f32 %v8985_v43 }
 0x26c   : > { %2289 = vst [vmem:[#allocation2 + $0x48] sm:$0xff] %v2272_v33  ;;  %8986 = vrsqrt.f32 %v2048_v34  ;;  %vm2171_vm4 = vmor %vm2169_vm3, %vm2170_vm2  ;;  %vm2179_vm6 = vweird.f32 %v2048_v34 }
 0x26d   : > { %v2162_v36 = vsel %vm2161_vm1, %v8983_v62, %v2158_v16  ;;  %v2165_v40 = vmul.f32 %v8985_v43, %v2164_v11 }
 0x26e   : > { %v2233_v39 = vmul.f32 %v2162_v36, %v10480_v47 }
 0x26f   : > { %v2166_v46 = vmul.f32 0.5, %v2165_v40  ;;  %v2012_v3 = vpop.xlane.xlu0 %2011 }
 0x270   : > { %v2253_v9 = vmul.f32 %v10526_v38, %v2233_v39  ;;  %v2032_v19 = vmul.f32 %v2012_v3, %v10410_v1 }
 0x271   : > { %v2167_v20 = vsub.f32 1.5, %v2166_v46 }
 0x272   : > { %v8987_v21 = vpop.eup %8986  ;;  %v2273_v22 = vadd.f32 %v10531_v56, %v2253_v9  ;;  %v2049_v50 = vadd.f32 1e-05, %v2032_v19 }
 0x273   : > { %v2168_v51 = vmul.f32 %v8985_v43, %v2167_v20  ;;  %v2174_v23 = vmul.f32 %v8987_v21, %v2048_v34  ;;  %vm2180_vm5 = vweird.f32 %v8987_v21 }
 0x274   : > { %2290 = vst [vmem:[#allocation2 + $0x10] sm:$0xff] %v2273_v22  ;;  %8988 = vrsqrt.f32 %v2049_v50  ;;  %vm2181_vm7 = vmor %vm2179_vm6, %vm2180_vm5  ;;  %vm2189_vm9 = vweird.f32 %v2049_v50 }
 0x275   : > { %v2172_v27 = vsel %vm2171_vm4, %v8985_v43, %v2168_v51  ;;  %v2175_v47 = vmul.f32 %v8987_v21, %v2174_v23 }
 0x276   : > { %v2234_v17 = vmul.f32 %v2172_v27, %v10486_v59 }
 0x277   : > { %v2176_v54 = vmul.f32 0.5, %v2175_v47  ;;  %v2014_v60 = vpop.xlane.xlu1 %2013  ;;  %v2018_v12 = vpop.xlane.xlu0 %2017 }
 0x278   : > { %v2254_v41 = vmul.f32 %v10526_v38, %v2234_v17  ;;  %v2033_v30 = vmul.f32 %v2014_v60, %v10410_v1  ;;  %v2035_v31 = vmul.f32 %v2018_v12, %v10410_v1 }
 0x279   : > { %v2177_v37 = vsub.f32 1.5, %v2176_v54 }
 0x27a   : > { %v8989_v42 = vpop.eup %8988  ;;  %v2274_v55 = vadd.f32 %v10531_v56, %v2254_v41  ;;  %v2050_v48 = vadd.f32 1e-05, %v2033_v30  ;;  %v2052_v49 = vadd.f32 1e-05, %v2035_v31 }
 0x27b   : > { %v2178_v25 = vmul.f32 %v8987_v21, %v2177_v37  ;;  %v2184_v52 = vmul.f32 %v8989_v42, %v2049_v50  ;;  %vm2190_vm8 = vweird.f32 %v8989_v42 }
 0x27c   : > { %2291 = vst [vmem:[#allocation2 + $0x30] sm:$0xff] %v2274_v55  ;;  %8990 = vrsqrt.f32 %v2050_v48  ;;  %vm2191_vm10 = vmor %vm2189_vm9, %vm2190_vm8  ;;  %vm2219_vm12 = vweird.f32 %v2052_v49  ;;  %vm2199_vm14 = vweird.f32 %v2050_v48 }
 0x27d   : > { %v2182_v59 = vsel %vm2181_vm7, %v8987_v21, %v2178_v25  ;;  %v2185_v15 = vmul.f32 %v8989_v42, %v2184_v52  ;;  %8992 = vrsqrt.f32 %v2052_v49 }
 0x27e   : > { %v2235_v5 = vmul.f32 %v2182_v59, %v10492_v14 }
 0x27f   : > { %v2186_v32 = vmul.f32 0.5, %v2185_v15  ;;  %v2016_v53 = vpop.xlane.xlu2 %2015 }
 0x280   : > { %v2255_v57 = vmul.f32 %v10526_v38, %v2235_v5  ;;  %v2034_v58 = vmul.f32 %v2016_v53, %v10410_v1 }
 0x281   : > { %v2187_v8 = vsub.f32 1.5, %v2186_v32 }
 0x282   : > { %v8991_v61 = vpop.eup %8990  ;;  %v2275_v62 = vadd.f32 %v10531_v56, %v2255_v57  ;;  %v2051_v63 = vadd.f32 1e-05, %v2034_v58 }
 0x283   : > { %v8993_v7 = vpop.eup %8992  ;;  %v2188_v45 = vmul.f32 %v8989_v42, %v2187_v8  ;;  %v2194_v0 = vmul.f32 %v8991_v61, %v2050_v48  ;;  %vm2200_vm11 = vweird.f32 %v8991_v61 }
 0x284   : > { %2292 = vst [vmem:[#allocation2 + $0x40] sm:$0xff] %v2275_v62  ;;  %v2214_v28 = vmul.f32 %v8993_v7, %v2052_v49  ;;  %8994 = vrsqrt.f32 %v2051_v63  ;;  %vm2220_vm13 = vweird.f32 %v8993_v7  ;;  %vm2201_vm15 = vmor %vm2199_vm14, %vm2200_vm11  ;;  %vm2209_vm2 = vweird.f32 %v2051_v63 }
 0x285   : > { %v2192_v14 = vsel %vm2191_vm10, %v8989_v42, %v2188_v45  ;;  %v2195_v18 = vmul.f32 %v8991_v61, %v2194_v0  ;;  %vm2221_vm0 = vmor %vm2219_vm12, %vm2220_vm13 }
 0x286   : > { %v2236_v24 = vmul.f32 %v2192_v14, %v10498_v35  ;;  %v2215_v29 = vmul.f32 %v8993_v7, %v2214_v28 }
 0x287   : > { %v2196_v1 = vmul.f32 0.5, %v2195_v18 }
 0x288   : > { %v2256_v13 = vmul.f32 %v10526_v38, %v2236_v24  ;;  %v2216_v4 = vmul.f32 0.5, %v2215_v29 }
 0x289   : > { %v2197_v6 = vsub.f32 1.5, %v2196_v1 }
 0x28a   : > { %v8995_v26 = vpop.eup %8994  ;;  %v2276_v43 = vadd.f32 %v10531_v56, %v2256_v13  ;;  %v2217_v33 = vsub.f32 1.5, %v2216_v4 }
 0x28b   : > { %v2198_v34 = vmul.f32 %v8991_v61, %v2197_v6  ;;  %v2204_v16 = vmul.f32 %v8995_v26, %v2051_v63  ;;  %vm2210_vm1 = vweird.f32 %v8995_v26 }
 0x28c   : > { %2293 = vst [vmem:[#allocation2 + $0x68] sm:$0xff] %v2276_v43  ;;  %v2218_v11 = vmul.f32 %v8993_v7, %v2217_v33  ;;  %vm2211_vm3 = vmor %vm2209_vm2, %vm2210_vm1 }
 0x28d   : > { %v2202_v35 = vsel %vm2201_vm15, %v8991_v61, %v2198_v34  ;;  %v2205_v36 = vmul.f32 %v8995_v26, %v2204_v16 }
 0x28e   : > { %v2237_v40 = vmul.f32 %v2202_v35, %v10505_v44  ;;  %v2222_v39 = vsel %vm2221_vm0, %v8993_v7, %v2218_v11 }
 0x28f   : > { %v2239_v46 = vmul.f32 %v2222_v39, %v10508_v10  ;;  %v2206_v3 = vmul.f32 0.5, %v2205_v36 }
 0x290   : > { %v2257_v9 = vmul.f32 %v10526_v38, %v2237_v40 }
 0x291   : > { %v2259_v19 = vmul.f32 %v10526_v38, %v2239_v46  ;;  %v2207_v20 = vsub.f32 1.5, %v2206_v3 }
 0x292   : > { %v2277_v21 = vadd.f32 %v10531_v56, %v2257_v9 }
 0x293   : > { %v2279_v22 = vadd.f32 %v10531_v56, %v2259_v19  ;;  %v2208_v50 = vmul.f32 %v8995_v26, %v2207_v20 }
 0x294   : > { %2294 = vst [vmem:[#allocation2 + $0x50] sm:$0xff] %v2277_v21 }
 0x295   : > { %2296 = vst [vmem:[#allocation2 + $0x18] sm:$0xff] %v2279_v22  ;;  %v2212_v44 = vsel %vm2211_vm3, %v8995_v26, %v2208_v50 }
 0x296   : > { %v2238_v51 = vmul.f32 %v2212_v44, %v10516_v2 }
 0x298   : > { %v2258_v10 = vmul.f32 %v10526_v38, %v2238_v51 }
 0x29a   : > { %v2278_v23 = vadd.f32 %v10531_v56, %v2258_v10 }
 0x29c   : > { %2295 = vst [vmem:[#allocation2 + $0x60] sm:$0xff] %v2278_v23 }
 0x29d PF: > { %v2305_v27 = vld [vmem:[#allocation2 + $0x28] sm:$0xff]  ;;  %v2303_v47 = vld [vmem:[#allocation2 + $0x70] sm:$0xff]  ;;  %v2304_v60 = vld [vmem:[#allocation2 + $0x80] sm:$0xff]  ;;  %v9619_v2 = vmov 128.0   ;;  %s15628_s9 = scalar_lea.vmem %s15494_s6, %s9744_s26  ;;  %s15629_s1 = scalar_lea.vmem %s15495_s7, %s9744_s26 }
 0x29e   : > { %2366 = vadd.xlane.f32.xlu1 %v2305_v27  ;;  %2362 = vadd.xlane.f32.xlu0 %v2303_v47  ;;  %v2307_v17 = vld [vmem:[#allocation2 + $0x10] sm:$0xff]  ;;  %v2306_v54 = vld [vmem:[#allocation2 + $0x48] sm:$0xff]  ;;  %v2297_v41 = vld [vmem:[#allocation2] sm:$0xff]  ;;  %9002 = vrcp.f32 %v9619_v2  ;;  %s9620_s29 = smov 64   ;;  %s15636_s28 = sld [smem:[#allocation52_spill]] }
 0x29f   : > { %2370 = vadd.xlane.f32.xlu2 %v2307_v17  ;;  %v2308_v12 = vld [vmem:[#allocation2 + $0x30] sm:$0xff]  ;;  %v10612_v61 = vld [vmem:[#allocation2 + $0x38] sm:$0xff]  ;;  %v10639_v43 = vld [vmem:[#allocation2 + $0x8] sm:$0xff]  ;;  %s15709_s18 = scalar_lea.vmem %s15499_s11, %s9744_s26  ;;  %p8666_p5 = scmp.ne.s32.totalorder %s9738_s25, 1 }
 0x2a0   : > { %v10627_v24 = vld [vmem:[#allocation2 + $0x78] sm:$0xff]  ;;  %v10647_v16 = vld [vmem:[#allocation2 + $0x20] sm:$0xff]  ;;  %v8228_v11 = vld [vmem:[%s9765_s2 + $0xa8] sm:$0xf]  ;;  %s16086_s5 = sld [smem:[#allocation61_spill]] (!%p8666_p5) }
 0x2a1   : > { %v10637_v26 = vld [vmem:[#allocation2 + $0x58] sm:$0xff]  ;;  %v8824_v35 = vld [vmem:[%s9765_s2 + $0xb0] sm:$0xf0]  ;;  %v8216_v40 = vld [vmem:[%s9765_s2 + $0x90] sm:$0xf] }
 0x2a2   : > { %v8229_v36 = vor.u32 %v8824_v35, %v8228_v11  ;;  %v8821_v39 = vld [vmem:[%s9765_s2 + $0x98] sm:$0xf0]  ;;  %v8204_v3 = vld [vmem:[%s9765_s2 + $0x78] sm:$0xf]  ;;  %v8818_v9 = vld [vmem:[%s9765_s2 + $0x80] sm:$0xf0] }
 0x2a3   : > { %v8217_v46 = vor.u32 %v8821_v39, %v8216_v40  ;;  %v8205_v19 = vor.u32 %v8818_v9, %v8204_v3  ;;  %v8192_v20 = vld [vmem:[%s9765_s2 + $0x60] sm:$0xf]  ;;  %v8815_v21 = vld [vmem:[%s9765_s2 + $0x68] sm:$0xf0]  ;;  %v8180_v50 = vld [vmem:[%s9765_s2 + $0x48] sm:$0xf] }
 0x2a4   : > { %v9003_v38 = vpop.eup %9002  ;;  %8922 = vmatpush.bf16.msra.mxu1 %v8229_v36  ;;  %2914 = vmatpush.bf16.msra.mxu0 %v8229_v36  ;;  %v8193_v22 = vor.u32 %v8815_v21, %v8192_v20  ;;  %v8812_v44 = vld [vmem:[%s9765_s2 + $0x50] sm:$0xf0]  ;;  %v8168_v10 = vld [vmem:[%s9765_s2 + $0x30] sm:$0xf]  ;;  %v8809_v23 = vld [vmem:[%s9765_s2 + $0x38] sm:$0xf0] }
 0x2a5   : > { %v2385_v56 = vmul.f32 128.0, %v9003_v38  ;;  %vm2389_vm4 = vweird.f32 %v9003_v38  ;;  %8923 = vmatpush.bf16.msra.mxu2 %v8229_v36  ;;  %v8181_v51 = vor.u32 %v8812_v44, %v8180_v50  ;;  %v8144_v2 = vld [vmem:[%s9765_s2] sm:$0xf] }
 0x2a6   : > { %2368 = vadd.xlane.f32.xlu1 %v2306_v54  ;;  %2364 = vadd.xlane.f32.xlu0 %v2304_v60 }
 0x2a7   : > { %2372 = vadd.xlane.f32.xlu2 %v2308_v12  ;;  %v2386_v30 = vsub.f32 1.0, %v2385_v56 }
 0x2a8   : > { %8924 = vmatpush.bf16.msra.mxu1 %v8217_v46  ;;  %2915 = vmatpush.bf16.msra.mxu0 %v8217_v46 }
 0x2a9   : > { %v2387_v31 = vmul.f32 %v9003_v38, %v2386_v30  ;;  %8925 = vmatpush.bf16.msra.mxu2 %v8217_v46 }
 0x2ab   : > { %v2388_v37 = vadd.f32 %v9003_v38, %v2387_v31 }
 0x2ac   : > { %8926 = vmatpush.bf16.msra.mxu1 %v8205_v19  ;;  %2916 = vmatpush.bf16.msra.mxu0 %v8205_v19 }
 0x2ad   : > { %v10598_v42 = vsel %vm2389_vm4, %v9003_v38, %v2388_v37  ;;  %8927 = vmatpush.bf16.msra.mxu2 %v8205_v19  ;;  %v8803_v38 = vld [vmem:[%s9765_s2 + $0x8] sm:$0xf0] }
 0x2ae   : > { %15625 = vst [vmem:[#allocation7_spill] sm:$0xff] %v10598_v42  ;;  %v8145_v56 = vor.u32 %v8803_v38, %v8144_v2 }
 0x2af   : > { %2350 = vadd.xlane.f32.xlu2 %v2297_v41 }
 0x2b0   : > { %8928 = vmatpush.bf16.msra.mxu1 %v8193_v22  ;;  %2917 = vmatpush.bf16.msra.mxu0 %v8193_v22 }
 0x2b1   : > { %8929 = vmatpush.bf16.msra.mxu2 %v8193_v22 }
 0x2b4   : > { %8930 = vmatpush.bf16.msra.mxu1 %v8181_v51  ;;  %2918 = vmatpush.bf16.msra.mxu0 %v8181_v51 }
 0x2b5   : > { %8931 = vmatpush.bf16.msra.mxu2 %v8181_v51 }
 0x311   : > { %v2367_v55 = vpop.xlane.xlu1 %2366  ;;  %v2363_v48 = vpop.xlane.xlu0 %2362 }
 0x312   : > { %v2397_v49 = vmul.f32 %v10598_v42, %v2363_v48  ;;  %v2371_v59 = vpop.xlane.xlu2 %2370  ;;  %v2399_v57 = vmul.f32 %v10598_v42, %v2367_v55 }
 0x313   : > { %v2401_v62 = vmul.f32 %v10598_v42, %v2371_v59 }
 0x314   : > { %v10601_v25 = vsub.f32 %v2303_v47, %v2397_v49  ;;  %v10620_v45 = vsub.f32 %v2305_v27, %v2399_v57  ;;  %v8169_v27 = vor.u32 %v8809_v23, %v8168_v10  ;;  %v8156_v47 = vld [vmem:[%s9765_s2 + $0x18] sm:$0xf] }
 0x315   : > { %v10622_v0 = vsub.f32 %v2307_v17, %v2401_v62  ;;  %v8806_v17 = vld [vmem:[%s9765_s2 + $0x20] sm:$0xf0] }
 0x316   : > { %v2431_v52 = vmul.f32 %v10601_v25, %v10601_v25  ;;  %v2433_v14 = vmul.f32 %v10620_v45, %v10620_v45  ;;  %8932 = vmatpush.bf16.msra.mxu1 %v8169_v27  ;;  %2919 = vmatpush.bf16.msra.mxu0 %v8169_v27 }
 0x317   : > { %v2435_v29 = vmul.f32 %v10622_v0, %v10622_v0  ;;  %8933 = vmatpush.bf16.msra.mxu2 %v8169_v27 }
 0x318   : > { %2454 = vadd.xlane.f32.xlu0 %v2431_v52 }
 0x319   : > { %v2369_v15 = vpop.xlane.xlu1 %2368  ;;  %v2365_v5 = vpop.xlane.xlu0 %2364 }
 0x31a   : > { %v2400_v32 = vmul.f32 %v10598_v42, %v2369_v15  ;;  %v2398_v53 = vmul.f32 %v10598_v42, %v2365_v5  ;;  %v2373_v28 = vpop.xlane.xlu2 %2372 }
 0x31b   : > { %v2402_v18 = vmul.f32 %v10598_v42, %v2373_v28 }
 0x31c   : > { %v10608_v58 = vsub.f32 %v2304_v60, %v2398_v53  ;;  %v10610_v8 = vsub.f32 %v2306_v54, %v2400_v32  ;;  %v8157_v60 = vor.u32 %v8806_v17, %v8156_v47 }
 0x31d   : > { %v10632_v1 = vsub.f32 %v2308_v12, %v2402_v18 }
 0x31e   : > { %v2432_v63 = vmul.f32 %v10608_v58, %v10608_v58  ;;  %v2434_v7 = vmul.f32 %v10610_v8, %v10610_v8  ;;  %8934 = vmatpush.bf16.msra.mxu1 %v8157_v60  ;;  %2920 = vmatpush.bf16.msra.mxu0 %v8157_v60 }
 0x31f   : > { %v2436_v4 = vmul.f32 %v10632_v1, %v10632_v1  ;;  %8935 = vmatpush.bf16.msra.mxu2 %v8157_v60 }
 0x320   : > { %2456 = vadd.xlane.f32.xlu1 %v2432_v63  ;;  %2352 = vadd.xlane.f32.xlu0 %v10612_v61 }
 0x321   : > { %2460 = vadd.xlane.f32.xlu2 %v2434_v7 }
 0x322   : > { %v2351_v13 = vpop.xlane.xlu2 %2350  ;;  %8936 = vmatpush.bf16.msra.mxu1 %v8145_v56  ;;  %2921 = vmatpush.bf16.msra.mxu0 %v8145_v56 }
 0x323   : > { %v2391_v6 = vmul.f32 %v10598_v42, %v2351_v13  ;;  %8937 = vmatpush.bf16.msra.mxu2 %v8145_v56 }
 0x325   : > { %v10642_v33 = vsub.f32 %v2297_v41, %v2391_v6 }
 0x327   : > { %v2425_v34 = vmul.f32 %v10642_v33, %v10642_v33 }
 0x328   : > { %2458 = vadd.xlane.f32.xlu1 %v2433_v14  ;;  %2354 = vadd.xlane.f32.xlu0 %v10627_v24 }
 0x329   : > { %2462 = vadd.xlane.f32.xlu2 %v2435_v29 }
 0x330   : > { %2356 = vadd.xlane.f32.xlu1 %v10637_v26  ;;  %2464 = vadd.xlane.f32.xlu0 %v2436_v4 }
 0x331   : > { %2360 = vadd.xlane.f32.xlu2 %v10639_v43 }
 0x338   : > { %2358 = vadd.xlane.f32.xlu1 %v10647_v16  ;;  %2442 = vadd.xlane.f32.xlu0 %v2425_v34 }
 0x38b   : > { %v2455_v54 = vpop.xlane.xlu0 %2454 }
 0x38c   : > { %v2482_v12 = vmul.f32 %v2455_v54, %v10598_v42  ;;  %v10717_v54 = vld [vmem:[%s15628_s9] ss:$0 sm:$0xff] }
 0x38e   : > { %v2499_v41 = vadd.f32 1e-05, %v2482_v12 }
 0x390   : > { %9004 = vrsqrt.f32 %v2499_v41  ;;  %vm2576_vm6 = vweird.f32 %v2499_v41 }
 0x393   : > { %v2457_v30 = vpop.xlane.xlu1 %2456  ;;  %v2353_v31 = vpop.xlane.xlu0 %2352 }
 0x394   : > { %v2483_v37 = vmul.f32 %v2457_v30, %v10598_v42  ;;  %v2392_v55 = vmul.f32 %v10598_v42, %v2353_v31  ;;  %v2461_v48 = vpop.xlane.xlu2 %2460 }
 0x395   : > { %v2485_v49 = vmul.f32 %v2461_v48, %v10598_v42 }
 0x396   : > { %v9005_v52 = vpop.eup %9004  ;;  %v2500_v59 = vadd.f32 1e-05, %v2483_v37  ;;  %v10671_v15 = vsub.f32 %v10612_v61, %v2392_v55 }
 0x397   : > { %v2571_v5 = vmul.f32 %v9005_v52, %v2499_v41  ;;  %v10673_v32 = vadd.f32 1e-05, %v2485_v49  ;;  %vm2577_vm5 = vweird.f32 %v9005_v52 }
 0x398   : > { %9006 = vrsqrt.f32 %v2500_v59  ;;  %v2426_v53 = vmul.f32 %v10671_v15, %v10671_v15  ;;  %vm10691_vm7 = vmor %vm2576_vm6, %vm2577_vm5  ;;  %vm2586_vm8 = vweird.f32 %v2500_v59 }
 0x399   : > { %v2572_v57 = vmul.f32 %v9005_v52, %v2571_v5  ;;  %9008 = vrsqrt.f32 %v10673_v32  ;;  %vm2606_vm11 = vweird.f32 %v10673_v32 }
 0x39a   : > { %2444 = vadd.xlane.f32.xlu1 %v2426_v53 }
 0x39b   : > { %v2573_v62 = vmul.f32 0.5, %v2572_v57  ;;  %v2459_v63 = vpop.xlane.xlu1 %2458  ;;  %v2355_v7 = vpop.xlane.xlu0 %2354 }
 0x39c   : > { %v2484_v28 = vmul.f32 %v2459_v63, %v10598_v42  ;;  %v2393_v14 = vmul.f32 %v10598_v42, %v2355_v7  ;;  %v2463_v61 = vpop.xlane.xlu2 %2462  ;;  %v8170_v63 = vld [vmem:[%s9765_s2 + $0x3c] sm:$0xf0] }
 0x39d   : > { %v2574_v18 = vsub.f32 1.5, %v2573_v62  ;;  %v2486_v4 = vmul.f32 %v2463_v61, %v10598_v42 }
 0x39e   : > { %v9007_v29 = vpop.eup %9006  ;;  %v10680_v13 = vadd.f32 1e-05, %v2484_v28  ;;  %v10684_v6 = vsub.f32 %v10627_v24, %v2393_v14 }
 0x39f   : > { %v10686_v34 = vpop.eup %9008  ;;  %v2575_v11 = vmul.f32 %v9005_v52, %v2574_v18  ;;  %v2581_v35 = vmul.f32 %v9007_v29, %v2500_v59  ;;  %v10695_v46 = vadd.f32 1e-05, %v2486_v4  ;;  %vm2587_vm9 = vweird.f32 %v9007_v29  ;;  %v10761_v18 = vld [vmem:[#allocation2 + $0x40] sm:$0xff]  ;;  %v10763_v4 = vld [vmem:[#allocation2 + $0x50] sm:$0xff] }
 0x3a0   : > { %v2601_v36 = vmul.f32 %v10686_v34, %v10673_v32  ;;  %9010 = vrsqrt.f32 %v10680_v13  ;;  %v2427_v24 = vmul.f32 %v10684_v6, %v10684_v6  ;;  %vm2588_vm10 = vmor %vm2586_vm8, %vm2587_vm9  ;;  %vm2607_vm12 = vweird.f32 %v10686_v34 }
 0x3a1   : > { %v2582_v40 = vmul.f32 %v9007_v29, %v2581_v35  ;;  %v2579_v3 = vsel %vm10691_vm7, %v9005_v52, %v2575_v11  ;;  %9012 = vrsqrt.f32 %v10695_v46  ;;  %vm2596_vm14 = vweird.f32 %v10680_v13  ;;  %vm10750_vm15 = vmor %vm2606_vm11, %vm2607_vm12  ;;  %v8823_v11 = vld [vmem:[%s9765_s2 + $0xac] sm:$0xf]  ;;  %v8230_v35 = vld [vmem:[%s9765_s2 + $0xb4] sm:$0xf0] }
 0x3a2   : > { %v2602_v19 = vmul.f32 %v10686_v34, %v2601_v36  ;;  %2446 = vadd.xlane.f32.xlu2 %v2427_v24  ;;  %v2686_v17 = vmul.f32 %v2579_v3, %v10601_v25  ;;  %v8233_v39 = vor.u32 %v8823_v11, %v8230_v35  ;;  %vm2616_vm3 = vweird.f32 %v10695_v46  ;;  %v8146_v11 = vld [vmem:[%s9765_s2 + $0xc] sm:$0xf0] }
 0x3a3   : > { %v2583_v9 = vmul.f32 0.5, %v2582_v40  ;;  %v2357_v20 = vpop.xlane.xlu1 %2356  ;;  %v2465_v21 = vpop.xlane.xlu0 %2464 }
 0x3a4   : > { %v2394_v22 = vmul.f32 %v10598_v42, %v2357_v20  ;;  %v2487_v50 = vmul.f32 %v2465_v21, %v10598_v42  ;;  %v2361_v44 = vpop.xlane.xlu2 %2360  ;;  %v2603_v12 = vmul.f32 0.5, %v2602_v19  ;;  %v2706_v31 = vmul.f32 %v10717_v54, %v2686_v17  ;;  %2967 = vmatpush.bf16.msrb.mxu1 %v8233_v39  ;;  %v10776_v20 = vld [vmem:[#allocation2 + $0x68] sm:$0xff]  ;;  %v10778_v21 = vld [vmem:[#allocation2 + $0x60] sm:$0xff] }
 0x3a5   : > { %v2584_v51 = vsub.f32 1.5, %v2583_v9  ;;  %v2396_v10 = vmul.f32 %v10598_v42, %v2361_v44 }
 0x3a6   : > { %v9011_v23 = vpop.eup %9010  ;;  %v10707_v27 = vsub.f32 %v10637_v26, %v2394_v22  ;;  %v10709_v47 = vadd.f32 1e-05, %v2487_v50  ;;  %v2604_v37 = vsub.f32 1.5, %v2603_v12 }
 0x3a7   : > { %v2585_v60 = vmul.f32 %v9007_v29, %v2584_v51  ;;  %v2591_v41 = vmul.f32 %v9011_v23, %v10680_v13  ;;  %v10721_v2 = vsub.f32 %v10639_v43, %v2396_v10  ;;  %v10735_v43 = vld [vmem:[%s15629_s1] ss:$0 sm:$0xff]  ;;  %v10737_v49 = vpop.eup %9012  ;;  %vm2597_vm13 = vweird.f32 %v9011_v23 }
 0x3a8   : > { %9014 = vrsqrt.f32 %v10709_v47  ;;  %v2428_v25 = vmul.f32 %v10707_v27, %v10707_v27  ;;  %v2726_v57 = vadd.f32 %v10735_v43, %v2706_v31  ;;  %v2605_v62 = vmul.f32 %v10686_v34, %v2604_v37  ;;  %vm2598_vm0 = vmor %vm2596_vm14, %vm2597_vm13  ;;  %v8206_v31 = vld [vmem:[%s9765_s2 + $0x84] sm:$0xf0] }
 0x3a9   : > { %v2589_v26 = vsel %vm2588_vm10, %v9007_v29, %v2585_v60  ;;  %v2592_v38 = vmul.f32 %v9011_v23, %v2591_v41  ;;  %v2430_v30 = vmul.f32 %v10721_v2, %v10721_v2  ;;  %v2611_v28 = vmul.f32 %v10737_v49, %v10695_v46 }
 0x3aa   : > { %v2687_v56 = vmul.f32 %v2589_v26, %v10608_v58  ;;  %2448 = vadd.xlane.f32.xlu0 %v2428_v25  ;;  %v2609_v36 = vsel %vm10750_vm15, %v10686_v34, %v2605_v62  ;;  %vm2626_vm1 = vweird.f32 %v10709_v47  ;;  %vm2617_vm4 = vweird.f32 %v10737_v49  ;;  %v8808_v62 = vld [vmem:[%s9765_s2 + $0x34] sm:$0xf] }
 0x3ab   : > { %v2593_v55 = vmul.f32 0.5, %v2592_v38  ;;  %v2359_v48 = vpop.xlane.xlu1 %2358  ;;  %2452 = vadd.xlane.f32.xlu2 %v2430_v30  ;;  %v2612_v40 = vmul.f32 %v10737_v49, %v2611_v28  ;;  %v2689_v9 = vmul.f32 %v2609_v36, %v10610_v8  ;;  %vm2618_vm6 = vmor %vm2616_vm3, %vm2617_vm4  ;;  %v8805_v28 = vld [vmem:[%s9765_s2 + $0x1c] sm:$0xf] }
 0x3ac   : > { %v2395_v58 = vmul.f32 %v10598_v42, %v2359_v48  ;;  %v2707_v52 = vmul.f32 %v10717_v54, %v2687_v56  ;;  %v8820_v56 = vld [vmem:[%s9765_s2 + $0x94] sm:$0xf]  ;;  %v8814_v48 = vld [vmem:[%s9765_s2 + $0x64] sm:$0xf] }
 0x3ad   : > { %v2594_v59 = vsub.f32 1.5, %v2593_v55  ;;  %v2613_v19 = vmul.f32 0.5, %v2612_v40  ;;  %v2709_v50 = vmul.f32 %v10717_v54, %v2689_v9  ;;  %v2443_v55 = vpop.xlane.xlu0 %2442 }
 0x3ae   : > { %v9015_v5 = vpop.eup %9014  ;;  %v10745_v53 = vsub.f32 %v10647_v16, %v2395_v58  ;;  %v2727_v32 = vadd.f32 %v10735_v43, %v2707_v52  ;;  %v2476_v52 = vmul.f32 %v2443_v55, %v10598_v42 }
 0x3af   : > { %v2595_v7 = vmul.f32 %v9011_v23, %v2594_v59  ;;  %v2621_v14 = vmul.f32 %v9015_v5, %v10709_v47  ;;  %v2614_v44 = vsub.f32 1.5, %v2613_v19  ;;  %vm2627_vm2 = vweird.f32 %v9015_v5  ;;  %v8811_v59 = vld [vmem:[%s9765_s2 + $0x4c] sm:$0xf] }
 0x3b0   : > { %v10757_v16 = vpack.c.bf16 %v2727_v32, %v2726_v57  ;;  %v2429_v61 = vmul.f32 %v10745_v53, %v10745_v53  ;;  %vm2628_vm5 = vmor %vm2626_vm1, %vm2627_vm2  ;;  %v2729_v51 = vadd.f32 %v10735_v43, %v2709_v50  ;;  %v2493_v32 = vadd.f32 1e-05, %v2476_v52 }
 0x3b1   : > { %v2599_v29 = vsel %vm2598_vm0, %v9011_v23, %v2595_v7  ;;  %v2622_v13 = vmul.f32 %v9015_v5, %v2621_v14  ;;  %v2615_v10 = vmul.f32 %v10737_v49, %v2614_v44  ;;  %v8173_v7 = vor.u32 %v8808_v62, %v8170_v63  ;;  %v8158_v14 = vld [vmem:[%s9765_s2 + $0x24] sm:$0xf0] }
 0x3b2   : > { %2937 = vmatmul.bf16.vlgmr.msra.gmra.mxu1 %v10757_v16  ;;  %2450 = vadd.xlane.f32.xlu1 %v2429_v61  ;;  %v2688_v24 = vmul.f32 %v2599_v29, %v10620_v45  ;;  %9016 = vrsqrt.f32 %v2493_v32  ;;  %v8161_v61 = vor.u32 %v8805_v28, %v8158_v14  ;;  %vm2516_vm7 = vweird.f32 %v2493_v32 }
 0x3b3   : > { %2374 = vadd.xlane.f32.xlu0 %v10761_v18  ;;  %2378 = vadd.xlane.f32.xlu2 %v10763_v4  ;;  %v2623_v3 = vmul.f32 0.5, %v2622_v13  ;;  %v2619_v46 = vsel %vm2618_vm6, %v10737_v49, %v2615_v10  ;;  %v8194_v49 = vld [vmem:[%s9765_s2 + $0x6c] sm:$0xf0]  ;;  %v8802_v13 = vld [vmem:[%s9765_s2 + $0x4] sm:$0xf] }
 0x3b4   : > { %v2708_v34 = vmul.f32 %v10717_v54, %v2688_v24  ;;  %v2690_v60 = vmul.f32 %v2619_v46, %v10622_v0  ;;  %v8817_v0 = vld [vmem:[%s9765_s2 + $0x7c] sm:$0xf]  ;;  %v8197_v58 = vor.u32 %v8814_v48, %v8194_v49  ;;  %v8149_v35 = vor.u32 %v8802_v13, %v8146_v11 }
 0x3b5   : > { %v2624_v22 = vsub.f32 1.5, %v2623_v3  ;;  %v8209_v37 = vor.u32 %v8817_v0, %v8206_v31 }
 0x3b6   : > { %v2728_v8 = vadd.f32 %v10735_v43, %v2708_v34  ;;  %v2710_v41 = vmul.f32 %v10717_v54, %v2690_v60 }
 0x3b7   : > { %v2625_v45 = vmul.f32 %v9015_v5, %v2624_v22 }
 0x3b8   : > { %v10790_v23 = vpack.c.bf16 %v2729_v51, %v2728_v8  ;;  %v2730_v38 = vadd.f32 %v10735_v43, %v2710_v41  ;;  %v9017_v29 = vpop.eup %9016 }
 0x3b9   : > { %v2629_v47 = vsel %vm2628_vm5, %v9015_v5, %v2625_v45  ;;  %v8182_v5 = vld [vmem:[%s9765_s2 + $0x54] sm:$0xf0]  ;;  %v2511_v36 = vmul.f32 %v9017_v29, %v2493_v32  ;;  %vm2517_vm8 = vweird.f32 %v9017_v29 }
 0x3ba   : > { %2376 = vadd.xlane.f32.xlu1 %v10776_v20  ;;  %v2691_v17 = vmul.f32 %v2629_v47, %v10632_v1  ;;  %v8218_v1 = vld [vmem:[%s9765_s2 + $0x9c] sm:$0xf0]  ;;  %v8185_v57 = vor.u32 %v8811_v59, %v8182_v5  ;;  %vm10820_vm9 = vmor %vm2516_vm7, %vm2517_vm8 }
 0x3bb   : > { %2380 = vadd.xlane.f32.xlu0 %v10778_v21  ;;  %v8221_v30 = vor.u32 %v8820_v56, %v8218_v1  ;;  %v2512_v24 = vmul.f32 %v9017_v29, %v2511_v36 }
 0x3bc   : > { %v2711_v12 = vmul.f32 %v10717_v54, %v2691_v17 }
 0x3bd   : > { %2968 = vmatpush.bf16.msrb.mxu1 %v8221_v30  ;;  %v2513_v9 = vmul.f32 0.5, %v2512_v24 }
 0x3be   : > { %v2731_v26 = vadd.f32 %v10735_v43, %v2711_v12 }
 0x3bf   : > { %v2514_v19 = vsub.f32 1.5, %v2513_v9 }
 0x3c0   : > { %v10800_v25 = vpack.c.bf16 %v2731_v26, %v2730_v38 }
 0x3c1   : > { %2969 = vmatpush.bf16.msrb.mxu1 %v8209_v37  ;;  %v2515_v45 = vmul.f32 %v9017_v29, %v2514_v19 }
 0x3c2   : > { %2942 = vmatmul.bf16.gmra.mxu1 %v10790_v23 }
 0x3c3   : > { %v2519_v17 = vsel %vm10820_vm9, %v9017_v29, %v2515_v45 }
 0x3c4   : > { %v2680_v0 = vmul.f32 %v2519_v17, %v10642_v33 }
 0x3c5   : > { %2970 = vmatpush.bf16.msrb.mxu1 %v8197_v58 }
 0x3c6   : > { %v2700_v59 = vmul.f32 %v10717_v54, %v2680_v0 }
 0x3c8   : > { %v2720_v13 = vadd.f32 %v10735_v43, %v2700_v59 }
 0x3c9   : > { %2971 = vmatpush.bf16.msrb.mxu1 %v8185_v57 }
 0x3cd   : > { %2972 = vmatpush.bf16.msrb.mxu1 %v8173_v7 }
 0x3d1   : > { %2973 = vmatpush.bf16.msrb.mxu1 %v8161_v61 }
 0x3d2   : > { %2947 = vmatmul.bf16.gmra.mxu1 %v10800_v25 }
 0x3d5   : > { %2974 = vmatpush.bf16.msrb.mxu1 %v8149_v35 }
 0x40d   : > { %v2445_v40 = vpop.xlane.xlu1 %2444 }
 0x40e   : > { %v2477_v39 = vmul.f32 %v2445_v40, %v10598_v42 }
 0x410   : > { %v2494_v3 = vadd.f32 1e-05, %v2477_v39 }
 0x412   : > { %9018 = vrsqrt.f32 %v2494_v3  ;;  %vm2526_vm10 = vweird.f32 %v2494_v3 }
 0x415   : > { %v2447_v34 = vpop.xlane.xlu2 %2446 }
 0x416   : > { %v2478_v50 = vmul.f32 %v2447_v34, %v10598_v42 }
 0x418   : > { %v9019_v22 = vpop.eup %9018  ;;  %v2495_v8 = vadd.f32 1e-05, %v2478_v50 }
 0x419   : > { %v2521_v44 = vmul.f32 %v9019_v22, %v2494_v3  ;;  %vm2527_vm11 = vweird.f32 %v9019_v22 }
 0x41a   : > { %9020 = vrsqrt.f32 %v2495_v8  ;;  %vm2528_vm12 = vmor %vm2526_vm10, %vm2527_vm11  ;;  %vm2536_vm13 = vweird.f32 %v2495_v8 }
 0x41b   : > { %v2522_v51 = vmul.f32 %v9019_v22, %v2521_v44 }
 0x41d   : > { %v2523_v47 = vmul.f32 0.5, %v2522_v51  ;;  %v2449_v46 = vpop.xlane.xlu0 %2448 }
 0x41e   : > { %v2479_v12 = vmul.f32 %v2449_v46, %v10598_v42  ;;  %v2453_v41 = vpop.xlane.xlu2 %2452 }
 0x41f   : > { %v2524_v60 = vsub.f32 1.5, %v2523_v47  ;;  %v2481_v26 = vmul.f32 %v2453_v41, %v10598_v42 }
 0x420   : > { %v2496_v56 = vadd.f32 1e-05, %v2479_v12  ;;  %v9021_v1 = vpop.eup %9020 }
 0x421   : > { %v2525_v38 = vmul.f32 %v9019_v22, %v2524_v60  ;;  %v10828_v30 = vadd.f32 1e-05, %v2481_v26  ;;  %v2531_v37 = vmul.f32 %v9021_v1, %v2495_v8  ;;  %vm2537_vm14 = vweird.f32 %v9021_v1 }
 0x422   : > { %9022 = vrsqrt.f32 %v2496_v56  ;;  %vm10849_vm15 = vmor %vm2536_vm13, %vm2537_vm14  ;;  %vm2546_vm1 = vweird.f32 %v2496_v56 }
 0x423   : > { %v2529_v31 = vsel %vm2528_vm12, %v9019_v22, %v2525_v38  ;;  %9024 = vrsqrt.f32 %v10828_v30  ;;  %v2532_v48 = vmul.f32 %v9021_v1, %v2531_v37  ;;  %vm2566_vm3 = vweird.f32 %v10828_v30  ;;  %v2313_v37 = vld [vmem:[#allocation2 + $0x18] sm:$0xff] }
 0x424   : > { %v2681_v55 = vmul.f32 %v2529_v31, %v10671_v15 }
 0x425   : > { %v2451_v49 = vpop.xlane.xlu1 %2450  ;;  %v2533_v57 = vmul.f32 0.5, %v2532_v48 }
 0x426   : > { %v2480_v58 = vmul.f32 %v2451_v49, %v10598_v42  ;;  %v2375_v52 = vpop.xlane.xlu0 %2374  ;;  %v2701_v5 = vmul.f32 %v10717_v54, %v2681_v55  ;;  %v2379_v32 = vpop.xlane.xlu2 %2378 }
 0x427   : > { %v2403_v33 = vmul.f32 %v10598_v42, %v2375_v52  ;;  %v2405_v15 = vmul.f32 %v10598_v42, %v2379_v32  ;;  %v2534_v28 = vsub.f32 1.5, %v2533_v57 }
 0x428   : > { %v10837_v62 = vadd.f32 1e-05, %v2480_v58  ;;  %v2721_v63 = vadd.f32 %v10735_v43, %v2701_v5  ;;  %v9023_v7 = vpop.eup %9022 }
 0x429   : > { %v10842_v14 = vsub.f32 %v10761_v18, %v2403_v33  ;;  %v10844_v61 = vpop.eup %9024  ;;  %v2541_v29 = vmul.f32 %v9023_v7, %v2496_v56  ;;  %v2535_v11 = vmul.f32 %v9021_v1, %v2534_v28  ;;  %v10856_v40 = vsub.f32 %v10763_v4, %v2405_v15 }
 0x42a   : > { %9026 = vrsqrt.f32 %v10837_v62  ;;  %v2561_v36 = vmul.f32 %v10844_v61, %v10828_v30  ;;  %v10858_v39 = vpack.c.bf16 %v2721_v63, %v2720_v13  ;;  %vm2547_vm0 = vweird.f32 %v9023_v7 }
 0x42b   : > { %v2542_v18 = vmul.f32 %v9023_v7, %v2541_v29  ;;  %v2437_v24 = vmul.f32 %v10842_v14, %v10842_v14  ;;  %v2439_v3 = vmul.f32 %v10856_v40, %v10856_v40  ;;  %v2539_v19 = vsel %vm10849_vm15, %v9021_v1, %v2535_v11  ;;  %vm2548_vm2 = vmor %vm2546_vm1, %vm2547_vm0 }
 0x42c   : > { %2922 = vmatmul.bf16.vlgmr.msra.gmra.mxu0 %v10858_v39  ;;  %v2562_v50 = vmul.f32 %v10844_v61, %v2561_v36  ;;  %2975 = vmatmul.bf16.vlgmr.msrb.gmra.mxu1 %v10858_v39  ;;  %v2682_v10 = vmul.f32 %v2539_v19, %v10684_v6  ;;  %vm2567_vm4 = vweird.f32 %v10844_v61  ;;  %vm2556_vm7 = vweird.f32 %v10837_v62 }
 0x42d   : > { %v2377_v9 = vpop.xlane.xlu1 %2376  ;;  %v2543_v34 = vmul.f32 0.5, %v2542_v18  ;;  %2466 = vadd.xlane.f32.xlu1 %v2437_v24  ;;  %2470 = vadd.xlane.f32.xlu0 %v2439_v3  ;;  %vm2568_vm6 = vmor %vm2566_vm3, %vm2567_vm4 }
 0x42e   : > { %v2404_v4 = vmul.f32 %v10598_v42, %v2377_v9  ;;  %v2381_v22 = vpop.xlane.xlu0 %2380  ;;  %v2563_v12 = vmul.f32 0.5, %v2562_v50  ;;  %v2702_v1 = vmul.f32 %v10717_v54, %v2682_v10 }
 0x42f   : > { %v2406_v44 = vmul.f32 %v10598_v42, %v2381_v22  ;;  %v2544_v45 = vsub.f32 1.5, %v2543_v34 }
 0x430   : > { %v9027_v8 = vpop.eup %9026  ;;  %v10872_v51 = vsub.f32 %v10776_v20, %v2404_v4  ;;  %v2722_v55 = vadd.f32 %v10735_v43, %v2702_v1 }
 0x431   : > { %v2551_v47 = vmul.f32 %v9027_v8, %v10837_v62  ;;  %v10877_v46 = vsub.f32 %v10778_v21, %v2406_v44  ;;  %v2545_v17 = vmul.f32 %v9023_v7, %v2544_v45  ;;  %v2564_v21 = vsub.f32 1.5, %v2563_v12 }
 0x432   : > { %v2438_v60 = vmul.f32 %v10872_v51, %v10872_v51  ;;  %vm2557_vm5 = vweird.f32 %v9027_v8 }
 0x433   : > { %v2552_v41 = vmul.f32 %v9027_v8, %v2551_v47  ;;  %v2440_v26 = vmul.f32 %v10877_v46, %v10877_v46  ;;  %v2549_v20 = vsel %vm2548_vm2, %v9023_v7, %v2545_v17  ;;  %vm2558_vm8 = vmor %vm2556_vm7, %vm2557_vm5 }
 0x434   : > { %2468 = vadd.xlane.f32.xlu2 %v2438_v60  ;;  %v2683_v6 = vmul.f32 %v2549_v20, %v10707_v27  ;;  %v2565_v27 = vmul.f32 %v10844_v61, %v2564_v21 }
 0x435   : > { %v2553_v38 = vmul.f32 0.5, %v2552_v41  ;;  %2472 = vadd.xlane.f32.xlu1 %v2440_v26 }
 0x436   : > { %v2703_v56 = vmul.f32 %v10717_v54, %v2683_v6  ;;  %v2569_v30 = vsel %vm2568_vm6, %v10844_v61, %v2565_v27 }
 0x437   : > { %v2554_v0 = vsub.f32 1.5, %v2553_v38  ;;  %v2685_v59 = vmul.f32 %v2569_v30, %v10721_v2 }
 0x438   : > { %v2723_v48 = vadd.f32 %v10735_v43, %v2703_v56 }
 0x439   : > { %v2555_v31 = vmul.f32 %v9027_v8, %v2554_v0  ;;  %v2705_v57 = vmul.f32 %v10717_v54, %v2685_v59 }
 0x43a   : > { %v10892_v49 = vpack.c.bf16 %v2723_v48, %v2722_v55 }
 0x43b   : > { %v2559_v58 = vsel %vm2558_vm8, %v9027_v8, %v2555_v31  ;;  %v2725_v32 = vadd.f32 %v10735_v43, %v2705_v57  ;;  %vm3116_vm8 = vcmask 523264  }
 0x43c   : > { %2382 = vadd.xlane.f32.xlu2 %v2313_v37  ;;  %2927 = vmatmul.bf16.gmra.mxu0 %v10892_v49  ;;  %v2684_v52 = vmul.f32 %v2559_v58, %v10745_v53  ;;  %v10909_v53 = vpop.f32.mrf.mxu1 }
 0x43d   : > { %2980 = vmatmul.bf16.gmra.mxu1 %v10892_v49 }
 0x43e   : > { %v2704_v5 = vmul.f32 %v10717_v54, %v2684_v52 }
 0x440   : > { %v2724_v33 = vadd.f32 %v10735_v43, %v2704_v5 }
 0x442   : > { %v10903_v62 = vpack.c.bf16 %v2725_v32, %v2724_v33 }
 0x444   : > { %v10911_v2 = vpop.f32.mrf.mxu1 }
 0x44c   : > { %2932 = vmatmul.bf16.gmra.mxu0 %v10903_v62  ;;  %v10914_v15 = vpop.f32.mrf.mxu1 }
 0x44d   : > { %2985 = vmatmul.bf16.gmra.mxu1 %v10903_v62 }
 0x454   : > { %v10916_v63 = vpop.f32.mrf.mxu1 }
 0x45c   : > { %v10918_v7 = vpop.f32.mrf.mxu1 }
 0x45d   : > { %2990 = vmatmul.bf16.gmra.mxu1 %v10757_v16 }
 0x464   : > { %v10922_v11 = vpop.f32.mrf.mxu1 }
 0x46d   : > { %2995 = vmatmul.bf16.gmra.mxu1 %v10790_v23 }
 0x47d   : > { %3000 = vmatmul.bf16.gmra.mxu1 %v10800_v25 }
 0x4a0   : > { %v2467_v28 = vpop.xlane.xlu1 %2466  ;;  %v2471_v29 = vpop.xlane.xlu0 %2470 }
 0x4a1   : > { %v2488_v61 = vmul.f32 %v2467_v28, %v10598_v42  ;;  %v2490_v13 = vmul.f32 %v2471_v29, %v10598_v42 }
 0x4a3   : > { %v2505_v35 = vadd.f32 1e-05, %v2488_v61  ;;  %v2507_v36 = vadd.f32 1e-05, %v2490_v13 }
 0x4a5   : > { %9028 = vrsqrt.f32 %v2505_v35  ;;  %vm2636_vm9 = vweird.f32 %v2505_v35  ;;  %vm2656_vm1 = vweird.f32 %v2507_v36 }
 0x4a6   : > { %9030 = vrsqrt.f32 %v2507_v36 }
 0x4a7   : > { %v2469_v18 = vpop.xlane.xlu2 %2468 }
 0x4a8   : > { %v2489_v24 = vmul.f32 %v2469_v18, %v10598_v42  ;;  %v2473_v3 = vpop.xlane.xlu1 %2472 }
 0x4a9   : > { %v2491_v9 = vmul.f32 %v2473_v3, %v10598_v42  ;;  %v10926_v22 = vpop.f32.mrf.mxu1 }
 0x4aa   : > { %v2506_v19 = vadd.f32 1e-05, %v2489_v24 }
 0x4ab   : > { %v9029_v34 = vpop.eup %9028  ;;  %v2508_v4 = vadd.f32 1e-05, %v2491_v9 }
 0x4ac   : > { %9032 = vrsqrt.f32 %v2506_v19  ;;  %v2631_v50 = vmul.f32 %v9029_v34, %v2505_v35  ;;  %v9031_v45 = vpop.eup %9030  ;;  %vm2637_vm10 = vweird.f32 %v9029_v34  ;;  %vm2646_vm13 = vweird.f32 %v2506_v19 }
 0x4ad   : > { %9034 = vrsqrt.f32 %v2508_v4  ;;  %v2651_v41 = vmul.f32 %v9031_v45, %v2507_v36  ;;  %vm2638_vm11 = vmor %vm2636_vm9, %vm2637_vm10  ;;  %vm2666_vm15 = vweird.f32 %v2508_v4  ;;  %vm2657_vm2 = vweird.f32 %v9031_v45 }
 0x4ae   : > { %v2632_v44 = vmul.f32 %v9029_v34, %v2631_v50  ;;  %vm2658_vm4 = vmor %vm2656_vm1, %vm2657_vm2  ;;  %vm3277_vm9 = vcmask 64512   ;;  %vm3612_vm10 = vcmask 1043456  }
 0x4af   : > { %v2383_v8 = vpop.xlane.xlu2 %2382  ;;  %v2652_v31 = vmul.f32 %v9031_v45, %v2651_v41 }
 0x4b0   : > { %v2407_v10 = vmul.f32 %v10598_v42, %v2383_v8  ;;  %v2633_v47 = vmul.f32 0.5, %v2632_v44 }
 0x4b1   : > { %v10931_v38 = vpop.f32.mrf.mxu1  ;;  %v2653_v30 = vmul.f32 0.5, %v2652_v31 }
 0x4b2   : > { %v9033_v17 = vpop.eup %9032  ;;  %v10929_v60 = vsub.f32 %v2313_v37, %v2407_v10  ;;  %v2634_v12 = vsub.f32 1.5, %v2633_v47 }
 0x4b3   : > { %v2641_v26 = vmul.f32 %v9033_v17, %v2506_v19  ;;  %v9035_v20 = vpop.eup %9034  ;;  %vm2647_vm12 = vweird.f32 %v9033_v17  ;;  %v2654_v28 = vsub.f32 1.5, %v2653_v30 }
 0x4b4   : > { %v2441_v6 = vmul.f32 %v10929_v60, %v10929_v60  ;;  %v2635_v1 = vmul.f32 %v9029_v34, %v2634_v12  ;;  %v2661_v21 = vmul.f32 %v9035_v20, %v2508_v4  ;;  %vm2648_vm14 = vmor %vm2646_vm13, %vm2647_vm12  ;;  %vm2667_vm0 = vweird.f32 %v9035_v20 }
 0x4b5   : > { %v2642_v0 = vmul.f32 %v9033_v17, %v2641_v26  ;;  %vm2668_vm3 = vmor %vm2666_vm15, %vm2667_vm0  ;;  %v2655_v35 = vmul.f32 %v9031_v45, %v2654_v28 }
 0x4b6   : > { %2474 = vadd.xlane.f32.xlu0 %v2441_v6  ;;  %v2639_v56 = vsel %vm2638_vm11, %v9029_v34, %v2635_v1  ;;  %v2662_v55 = vmul.f32 %v9035_v20, %v2661_v21  ;;  %v10976_v6 = vld [vmem:[%s9774_s4] sm:$0x7] }
 0x4b7   : > { %v2643_v48 = vmul.f32 0.5, %v2642_v0  ;;  %v2692_v58 = vmul.f32 %v2639_v56, %v10842_v14  ;;  %v2659_v3 = vsel %vm2658_vm4, %v9031_v45, %v2655_v35  ;;  %v10979_v1 = vperm.slane %v10976_v6, 1 }
 0x4b8   : > { %v2663_v37 = vmul.f32 0.5, %v2662_v55  ;;  %v2694_v9 = vmul.f32 %v2659_v3, %v10856_v40  ;;  %v10961_v40 = vpop.f32.mrf.mxu0  ;;  %v10992_v30 = vperm.slane %v10976_v6, 0  ;;  %v8212_v3 = vld [vmem:[%s9765_s2 + $0x80] sm:$0xf] }
 0x4b9   : > { %v2644_v27 = vsub.f32 1.5, %v2643_v48  ;;  %v2712_v32 = vmul.f32 %v10717_v54, %v2692_v58 }
 0x4ba   : > { %v10936_v59 = vpop.f32.mrf.mxu1  ;;  %v2664_v5 = vsub.f32 1.5, %v2663_v37  ;;  %v2714_v4 = vmul.f32 %v10717_v54, %v2694_v9  ;;  %v2941_v28 = vadd.f32 %v10911_v2, %v10992_v30  ;;  %v8200_v9 = vld [vmem:[%s9765_s2 + $0x68] sm:$0xf] }
 0x4bb   : > { %v2645_v52 = vmul.f32 %v9033_v17, %v2644_v27  ;;  %v2732_v29 = vadd.f32 %v10735_v43, %v2712_v32  ;;  %v8825_v32 = vld [vmem:[%s9765_s2 + $0xb8] sm:$0xf0] }
 0x4bc   : > { %v2665_v14 = vmul.f32 %v9035_v20, %v2664_v5  ;;  %v2734_v44 = vadd.f32 %v10735_v43, %v2714_v4 }
 0x4bd   : > { %v2649_v57 = vsel %vm2648_vm14, %v9033_v17, %v2645_v52 }
 0x4be   : > { %v2693_v33 = vmul.f32 %v2649_v57, %v10872_v51  ;;  %v2669_v24 = vsel %vm2668_vm3, %v9035_v20, %v2665_v14  ;;  %v2939_v14 = vadd.f32 %v10909_v53, %v10992_v30 }
 0x4bf   : > { %v2695_v36 = vmul.f32 %v2669_v24, %v10877_v46 }
 0x4c0   : > { %v2713_v61 = vmul.f32 %v10717_v54, %v2693_v33  ;;  %v10965_v47 = vpop.f32.mrf.mxu0  ;;  %v8236_v33 = vld [vmem:[%s9765_s2 + $0xb0] sm:$0xf]  ;;  %v11010_v35 = vpack.c.bf16 %v2941_v28, %v2939_v14 }
 0x4c1   : > { %v2715_v34 = vmul.f32 %v10717_v54, %v2695_v36  ;;  %v8819_v36 = vld [vmem:[%s9765_s2 + $0x88] sm:$0xf0] }
 0x4c2   : > { %v2733_v13 = vadd.f32 %v10735_v43, %v2713_v61  ;;  %v10943_v18 = vpop.f32.mrf.mxu1  ;;  %v8237_v61 = vor.u32 %v8825_v32, %v8236_v33  ;;  %v8213_v2 = vor.u32 %v8819_v36, %v8212_v3 }
 0x4c3   : > { %v2735_v50 = vadd.f32 %v10735_v43, %v2715_v34 }
 0x4c4   : > { %v10945_v51 = vpack.c.bf16 %v2733_v13, %v2732_v29  ;;  %3020 = vmatpush.bf16.msrb.mxu2 %v8237_v61  ;;  %v8224_v29 = vld [vmem:[%s9765_s2 + $0x98] sm:$0xf]  ;;  %v8822_v13 = vld [vmem:[%s9765_s2 + $0xa0] sm:$0xf0] }
 0x4c5   : > { %v10955_v10 = vpack.c.bf16 %v2735_v50, %v2734_v44  ;;  %v8225_v24 = vor.u32 %v8822_v13, %v8224_v29  ;;  %v8188_v50 = vld [vmem:[%s9765_s2 + $0x50] sm:$0xf]  ;;  %v8813_v44 = vld [vmem:[%s9765_s2 + $0x58] sm:$0xf0] }
 0x4c6   : > { %2952 = vmatmul.bf16.vlgmr.msra.gmra.mxu2 %v10945_v51  ;;  %3005 = vmatmul.bf16.gmra.mxu1 %v10945_v51 }
 0x4c8   : > { %v10969_v12 = vpop.f32.mrf.mxu0  ;;  %3021 = vmatpush.bf16.msrb.mxu2 %v8225_v24 }
 0x4ca   : > { %v2986_v19 = vpop.f32.mrf.mxu1 }
 0x4cb   : > { %v2987_v37 = vadd.f32 %v2986_v19, %v10979_v1  ;;  %v8816_v19 = vld [vmem:[%s9765_s2 + $0x70] sm:$0xf0] }
 0x4cc   : > { %3022 = vmatpush.bf16.msrb.mxu2 %v8213_v2  ;;  %v8201_v53 = vor.u32 %v8816_v19, %v8200_v9 }
 0x4d0   : > { %v10973_v26 = vpop.f32.mrf.mxu0  ;;  %3023 = vmatpush.bf16.msrb.mxu2 %v8201_v53 }
 0x4d2   : > { %v2988_v8 = vpop.f32.mrf.mxu1 }
 0x4d3   : > { %v2989_v48 = vadd.f32 %v2988_v8, %v10979_v1  ;;  %v8189_v8 = vor.u32 %v8813_v44, %v8188_v50 }
 0x4d5   : > { %v10989_v27 = vpack.c.bf16 %v2989_v48, %v2987_v37  ;;  %3024 = vmatpush.bf16.msrb.mxu2 %v8189_v8  ;;  %v8807_v48 = vld [vmem:[%s9765_s2 + $0x28] sm:$0xf0] }
 0x4d6   : > { %2957 = vmatmul.bf16.gmra.mxu2 %v10955_v10  ;;  %3010 = vmatmul.bf16.gmra.mxu1 %v10955_v10 }
 0x4d8   : > { %v2933_v31 = vpop.f32.mrf.mxu0 }
 0x4d9   : > { %v2934_v5 = vadd.f32 %v2933_v31, %v10992_v30  ;;  %v8164_v31 = vld [vmem:[%s9765_s2 + $0x20] sm:$0xf] }
 0x4da   : > { %v10959_v46 = vpop.f32.mrf.mxu1  ;;  %v8165_v37 = vor.u32 %v8807_v48, %v8164_v31 }
 0x4e0   : > { %v2935_v58 = vpop.f32.mrf.mxu0 }
 0x4e1   : > { %v2936_v52 = vadd.f32 %v2935_v58, %v10992_v30 }
 0x4e2   : > { %v10963_v45 = vpop.f32.mrf.mxu1 }
 0x4e3   : > { %v10998_v57 = vpack.c.bf16 %v2936_v52, %v2934_v5  ;;  %v8152_v52 = vld [vmem:[%s9765_s2 + $0x8] sm:$0xf]  ;;  %v8804_v5 = vld [vmem:[%s9765_s2 + $0x10] sm:$0xf0] }
 0x4e4   : > { %v8153_v32 = vor.u32 %v8804_v5, %v8152_v52  ;;  %v2924_v5 = vadd.f32 %v10961_v40, %v10992_v30  ;;  %v2951_v40 = vadd.f32 %v10922_v11, %v10992_v30  ;;  %v2931_v11 = vadd.f32 %v10973_v26, %v10992_v30 }
 0x4e5   : > { %v2946_v26 = vadd.f32 %v10916_v63, %v10992_v30 }
 0x4ea   : > { %v10967_v17 = vpop.f32.mrf.mxu1 }
 0x4eb   : > { %v2997_v44 = vadd.f32 %v10967_v17, %v10979_v1 }
 0x4f2   : > { %v10971_v41 = vpop.f32.mrf.mxu1 }
 0x4fa   : > { %v3001_v20 = vpop.f32.mrf.mxu1 }
 0x4fb   : > { %v3002_v0 = vadd.f32 %v3001_v20, %v10979_v1 }
 0x502   : > { %v3003_v21 = vpop.f32.mrf.mxu1 }
 0x503   : > { %v3004_v56 = vadd.f32 %v3003_v21, %v10979_v1  ;;  %v8176_v21 = vld [vmem:[%s9765_s2 + $0x38] sm:$0xf] }
 0x505   : > { %v10983_v55 = vpack.c.bf16 %v3004_v56, %v3002_v0  ;;  %v8810_v0 = vld [vmem:[%s9765_s2 + $0x40] sm:$0xf0] }
 0x506   : > { %v8177_v56 = vor.u32 %v8810_v0, %v8176_v21  ;;  %v2984_v21 = vadd.f32 %v10943_v18, %v10979_v1  ;;  %v2926_v18 = vadd.f32 %v10965_v47, %v10992_v30  ;;  %v2949_v47 = vadd.f32 %v10918_v7, %v10992_v30 }
 0x507   : > { %3777 = vrot.lane.b32.xlu0 %v10983_v55, %s9620_s29 }
 0x508   : > { %3025 = vmatpush.bf16.msrb.mxu2 %v8177_v56  ;;  %v2982_v56 = vadd.f32 %v10936_v59, %v10979_v1  ;;  %v2994_v59 = vadd.f32 %v10963_v45, %v10979_v1 }
 0x50a   : > { %v3099_v48 = vpack.c.bf16 %v2984_v21, %v2982_v56 }
 0x50c   : > { %3026 = vmatpush.bf16.msrb.mxu2 %v8165_v37 }
 0x50f   : > { %3771 = vrot.lane.b32.xlu0 %v10989_v27, %s9620_s29 }
 0x510   : > { %3027 = vmatpush.bf16.msrb.mxu2 %v8153_v32 }
 0x517   : > { %3744 = vrot.lane.b32.xlu0 %v10998_v57, %s9620_s29 }
 0x51f   : > { %3746 = vrot.lane.b32.xlu0 %v11010_v35, %s9620_s29 }
 0x529   : > { %v2475_v34 = vpop.xlane.xlu0 %2474 }
 0x52a   : > { %v2492_v4 = vmul.f32 %v2475_v34, %v10598_v42 }
 0x52c   : > { %v2509_v20 = vadd.f32 1e-05, %v2492_v4 }
 0x52e   : > { %9036 = vrsqrt.f32 %v2509_v20  ;;  %vm2676_vm6 = vweird.f32 %v2509_v20 }
 0x534   : > { %v9037_v58 = vpop.eup %9036 }
 0x535   : > { %v2671_v33 = vmul.f32 %v9037_v58, %v2509_v20  ;;  %vm2677_vm5 = vweird.f32 %v9037_v58 }
 0x536   : > { %vm2678_vm7 = vmor %vm2676_vm6, %vm2677_vm5 }
 0x537   : > { %v2672_v28 = vmul.f32 %v9037_v58, %v2671_v33  ;;  %v2992_v33 = vadd.f32 %v10959_v46, %v10979_v1  ;;  %v2979_v46 = vadd.f32 %v10931_v38, %v10979_v1 }
 0x539   : > { %v2673_v61 = vmul.f32 0.5, %v2672_v28  ;;  %v3089_v28 = vpack.c.bf16 %v2926_v18, %v2924_v5 }
 0x53b   : > { %v2674_v14 = vsub.f32 1.5, %v2673_v61  ;;  %v3101_v61 = vpack.c.bf16 %v2994_v59, %v2992_v33 }
 0x53d   : > { %v2675_v29 = vmul.f32 %v9037_v58, %v2674_v14  ;;  %v2977_v14 = vadd.f32 %v10926_v22, %v10979_v1  ;;  %v2929_v22 = vadd.f32 %v10969_v12, %v10992_v30  ;;  %v2944_v12 = vadd.f32 %v10914_v15, %v10992_v30 }
 0x53f   : > { %v2679_v13 = vsel %vm2678_vm7, %v9037_v58, %v2675_v29  ;;  %v11078_v29 = vpack.c.bf16 %v2951_v40, %v2949_v47 }
 0x540   : > { %v2696_v24 = vmul.f32 %v2679_v13, %v10929_v60  ;;  %v3098_v13 = vpack.c.bf16 %v2979_v46, %v2977_v14 }
 0x542   : > { %v2716_v3 = vmul.f32 %v10717_v54, %v2696_v24  ;;  %v2999_v54 = vadd.f32 %v10971_v41, %v10979_v1  ;;  %v3090_v24 = vpack.c.bf16 %v2931_v11, %v2929_v22  ;;  %v3145_v63 = vsel %vm3116_vm8, %v3098_v13, 0 }
 0x543   : > { %v3006_v36 = vpop.f32.mrf.mxu1 }
 0x544   : > { %v2736_v2 = vadd.f32 %v10735_v43, %v2716_v3  ;;  %v3007_v34 = vadd.f32 %v3006_v36, %v10979_v1  ;;  %v3102_v8 = vpack.c.bf16 %v2999_v54, %v2997_v44  ;;  %v11102_v36 = vpack.c.bf16 %v2946_v26, %v2944_v12  ;;  %v11208_v26 = vld [vmem:[%s15636_s28] sm:$0xff] }
 0x546   : > { %v11030_v9 = vpack.c.bf16 %v2736_v2, %v2736_v2  ;;  %v3154_v2 = vsel %vm3116_vm8, %v3101_v61, 0 }
 0x548   : > { %2962 = vmatmul.bf16.gmra.mxu2 %v11030_v9  ;;  %3015 = vmatmul.bf16.gmra.mxu1 %v11030_v9 }
 0x549   : > { %v2953_v19 = vpop.f32.mrf.mxu2 }
 0x54a   : > { %v2954_v38 = vadd.f32 %v2953_v19, %v10992_v30  ;;  %v3151_v19 = vsel %vm3116_vm8, %v10989_v27, 0 }
 0x54b   : > { %v3008_v53 = vpop.f32.mrf.mxu1 }
 0x54c   : > { %v3009_v4 = vadd.f32 %v3008_v53, %v10979_v1 }
 0x54e   : > { %v3104_v50 = vpack.c.bf16 %v3009_v4, %v3007_v34 }
 0x550   : > { %3779 = vrot.lane.b32.xlu2 %v3104_v50, %s9620_s29  ;;  %v3163_v45 = vsel %vm3116_vm8, %v3104_v50, 0 }
 0x551   : > { %v2955_v60 = vpop.f32.mrf.mxu2 }
 0x552   : > { %v2956_v7 = vadd.f32 %v2955_v60, %v10992_v30 }
 0x553   : > { %v3011_v43 = vpop.f32.mrf.mxu1 }
 0x554   : > { %v3012_v31 = vadd.f32 %v3011_v43, %v10979_v1  ;;  %v11091_v3 = vpack.c.bf16 %v2956_v7, %v2954_v38 }
 0x558   : > { %3775 = vrot.lane.b32.xlu2 %v3102_v8, %s9620_s29  ;;  %3028 = vmatmul.bf16.vlgmr.msrb.gmra.mxu2 %v10858_v39 }
 0x559   : > { %v2958_v20 = vpop.f32.mrf.mxu2 }
 0x55a   : > { %v2959_v58 = vadd.f32 %v2958_v20, %v10992_v30 }
 0x55b   : > { %v3013_v0 = vpop.f32.mrf.mxu1 }
 0x55c   : > { %v3014_v41 = vadd.f32 %v3013_v0, %v10979_v1 }
 0x55e   : > { %v3105_v37 = vpack.c.bf16 %v3014_v41, %v3012_v31 }
 0x560   : > { %3781 = vrot.lane.b32.xlu1 %v3105_v37, %s9620_s29  ;;  %3769 = vrot.lane.b32.xlu2 %v3099_v48, %s9620_s29  ;;  %v3166_v39 = vsel %vm3116_vm8, %v3105_v37, 0 }
 0x561   : > { %v2960_v17 = vpop.f32.mrf.mxu2  ;;  %3171 = vmatpush.bf16.xpose.msra.mxu3 %v3166_v39 }
 0x562   : > { %v2961_v52 = vadd.f32 %v2960_v17, %v10992_v30 }
 0x564   : > { %v11062_v32 = vpack.c.bf16 %v2961_v52, %v2959_v58 }
 0x566   : > { %3754 = vrot.lane.b32.xlu0 %v11062_v32, %s9620_s29 }
 0x568   : > { %3773 = vrot.lane.b32.xlu1 %v3101_v61, %s9620_s29  ;;  %3740 = vrot.lane.b32.xlu2 %v3089_v28, %s9620_s29 }
 0x569   : > { %3033 = vmatmul.bf16.gmra.mxu2 %v10892_v49  ;;  %3172 = vmatpush.bf16.xpose.msra.mxu3 %v3163_v45  ;;  %v3160_v49 = vsel %vm3116_vm8, %v10983_v55, 0  ;;  %v3157_v55 = vsel %vm3116_vm8, %v3102_v8, 0 }
 0x570   : > { %3767 = vrot.lane.b32.xlu1 %v3098_v13, %s9620_s29  ;;  %3750 = vrot.lane.b32.xlu2 %v11078_v29, %s9620_s29 }
 0x571   : > { %3173 = vmatpush.bf16.xpose.msra.mxu3 %v3160_v49 }
 0x578   : > { %3742 = vrot.lane.b32.xlu1 %v3090_v24, %s9620_s29  ;;  %3752 = vrot.lane.b32.xlu2 %v11091_v3, %s9620_s29 }
 0x579   : > { %3038 = vmatmul.bf16.gmra.mxu2 %v10903_v62  ;;  %3174 = vmatpush.bf16.xpose.msra.mxu3 %v3157_v55  ;;  %v3148_v62 = vsel %vm3116_vm8, %v3099_v48, 0  ;;  %v3778_v60 = vpop.permute.xlu0 %3777  ;;  %v11203_v55 = vld [vmem:[%s15636_s28 + $0x8] sm:$0xff] }
 0x57a   : > { %v3828_v43 = vsel %vm3116_vm8, %v3778_v60, 0 }
 0x580   : > { %3748 = vrot.lane.b32.xlu1 %v11102_v36, %s9620_s29 }
 0x581   : > { %3175 = vmatpush.bf16.xpose.msra.mxu3 %v3154_v2  ;;  %v3772_v56 = vpop.permute.xlu0 %3771 }
 0x582   : > { %v3819_v31 = vsel %vm3116_vm8, %v3772_v56, 0 }
 0x589   : > { %3043 = vmatmul.bf16.gmra.mxu2 %v10757_v16  ;;  %3176 = vmatpush.bf16.xpose.msra.mxu3 %v3151_v19  ;;  %v11173_v5 = vpop.permute.xlu0 %3744  ;;  %v11223_v19 = vperm.slane %v10976_v6, 2  ;;  %v11238_v6 = vld [vmem:[%s15636_s28 + $0x10] sm:$0xff] }
 0x591   : > { %3177 = vmatpush.bf16.xpose.msra.mxu3 %v3148_v62  ;;  %v11177_v45 = vpop.permute.xlu0 %3746 }
 0x599   : > { %3048 = vmatmul.bf16.gmra.mxu2 %v10790_v23  ;;  %3178 = vmatpush.bf16.xpose.msra.mxu3 %v3145_v63 }
 0x5a0   : > { %8238 = vmatmul.msk.bf16.vlgmr.msra.gmra.mxu3 %vm3116_vm8, %v3089_v28 }
 0x5a9   : > { %3053 = vmatmul.bf16.gmra.mxu2 %v10800_v25 }
 0x5b0   : > { %8239 = vmatmul.msk.bf16.gmra.mxu3 %vm3116_vm8, %v3090_v24 }
 0x5b9   : > { %3058 = vmatmul.bf16.gmra.mxu2 %v10945_v51 }
 0x5c0   : > { %8240 = vmatmul.msk.bf16.gmra.mxu3 %vm3116_vm8, %v10998_v57 }
 0x5c5   : > { %v3016_v16 = vpop.f32.mrf.mxu1 }
 0x5c6   : > { %v3017_v15 = vadd.f32 %v3016_v16, %v10979_v1  ;;  %v3780_v1 = vpop.permute.xlu2 %3779 }
 0x5c7   : > { %v3831_v50 = vsel %vm3116_vm8, %v3780_v1, 0 }
 0x5c8   : > { %v3106_v27 = vpack.c.bf16 %v3017_v15, %v3017_v15 }
 0x5c9   : > { %3063 = vmatmul.bf16.gmra.mxu2 %v10955_v10 }
 0x5ca   : > { %3783 = vrot.lane.b32.xlu0 %v3106_v27, %s9620_s29  ;;  %v3169_v23 = vsel %vm3116_vm8, %v3106_v27, 0 }
 0x5cb   : > { %v2963_v53 = vpop.f32.mrf.mxu2  ;;  %3231 = vmatpush.bf16.xpose.msrb.mxu0 %v3169_v23  ;;  %v11233_v23 = vld [vmem:[%s15636_s28 + $0x18] sm:$0xff] }
 0x5cd   : > { %v3018_v25 = vpop.f32.mrf.mxu1 }
 0x5ce   : > { %v3776_v44 = vpop.permute.xlu2 %3775 }
 0x5cf   : > { %v3825_v8 = vsel %vm3116_vm8, %v3776_v44, 0 }
 0x5d0   : > { %8241 = vmatmul.msk.bf16.gmra.mxu3 %vm3116_vm8, %v11010_v35 }
 0x5d2   : > { %v3782_v51 = vpop.permute.xlu1 %3781  ;;  %8247 = vmatmul.msk.bf16.vlgmr.msrb.gmra.mxu0 %vm3116_vm8, %v3089_v28 }
 0x5d3   : > { %v2965_v34 = vpop.f32.mrf.mxu2  ;;  %v3834_v4 = vsel %vm3116_vm8, %v3782_v51, 0 }
 0x5d4   : > { %3839 = vmatpush.bf16.xpose.msrb.mxu3 %v3834_v4 }
 0x5d6   : > { %v3770_v48 = vpop.permute.xlu2 %3769 }
 0x5d8   : > { %v11185_v47 = vpop.permute.xlu0 %3754 }
 0x5d9   : > { %3068 = vmatmul.bf16.gmra.mxu2 %v11030_v9 }
 0x5da   : > { %v3774_v20 = vpop.permute.xlu1 %3773 }
 0x5db   : > { %v11128_v10 = vpop.f32.mrf.mxu2  ;;  %v3822_v21 = vsel %vm3116_vm8, %v3774_v20, 0 }
 0x5dc   : > { %3840 = vmatpush.bf16.xpose.msrb.mxu3 %v3831_v50 }
 0x5de   : > { %v11179_v46 = vpop.permute.xlu2 %3740 }
 0x5e0   : > { %8242 = vmatmul.msk.bf16.gmra.mxu3 %vm3116_vm8, %v11102_v36 }
 0x5e2   : > { %8248 = vmatmul.msk.bf16.gmra.mxu0 %vm3116_vm8, %v3090_v24  ;;  %v3768_v39 = vpop.permute.xlu1 %3767 }
 0x5e3   : > { %v11134_v54 = vpop.f32.mrf.mxu2  ;;  %v3813_v17 = vsel %vm3116_vm8, %v3768_v39, 0 }
 0x5e4   : > { %3841 = vmatpush.bf16.xpose.msrb.mxu3 %v3828_v43 }
 0x5ea   : > { %v11190_v7 = vpop.permute.xlu1 %3742 }
 0x5ec   : > { %v11138_v9 = vpop.f32.mrf.mxu2  ;;  %3842 = vmatpush.bf16.xpose.msrb.mxu3 %v3825_v8 }
 0x5f0   : > { %8243 = vmatmul.msk.bf16.gmra.mxu3 %vm3116_vm8, %v11078_v29 }
 0x5f2   : > { %8249 = vmatmul.msk.bf16.gmra.mxu0 %vm3116_vm8, %v10998_v57  ;;  %v3816_v57 = vsel %vm3116_vm8, %v3770_v48, 0  ;;  %v11270_v48 = vld [vmem:[%s15636_s28 + $0x20] sm:$0xff] }
 0x5f4   : > { %v11145_v0 = vpop.f32.mrf.mxu2  ;;  %3843 = vmatpush.bf16.xpose.msrb.mxu3 %v3822_v21 }
 0x5fc   : > { %v11148_v41 = vpop.f32.mrf.mxu2  ;;  %3844 = vmatpush.bf16.xpose.msrb.mxu3 %v3819_v31  ;;  %v11265_v31 = vld [vmem:[%s15636_s28 + $0x28] sm:$0xff] }
 0x600   : > { %8244 = vmatmul.msk.bf16.gmra.mxu3 %vm3116_vm8, %v11091_v3 }
 0x602   : > { %8250 = vmatmul.msk.bf16.gmra.mxu0 %vm3116_vm8, %v11010_v35  ;;  %v2964_v35 = vadd.f32 %v2963_v53, %v10992_v30 }
 0x604   : > { %v11155_v37 = vpop.f32.mrf.mxu2  ;;  %3845 = vmatpush.bf16.xpose.msrb.mxu3 %v3816_v57  ;;  %v11169_v52 = vpack.c.bf16 %v2964_v35, %v2964_v35 }
 0x60c   : > { %v11158_v18 = vpop.f32.mrf.mxu2  ;;  %3846 = vmatpush.bf16.xpose.msrb.mxu3 %v3813_v17 }
 0x610   : > { %8245 = vmatmul.msk.bf16.gmra.mxu3 %vm3116_vm8, %v11062_v32 }
 0x612   : > { %8251 = vmatmul.msk.bf16.gmra.mxu0 %vm3116_vm8, %v11102_v36 }
 0x614   : > { %v11164_v59 = vpop.f32.mrf.mxu2 }
 0x61c   : > { %v11167_v58 = vpop.f32.mrf.mxu2 }
 0x620   : > { %8246 = vmatmul.msk.bf16.gmra.mxu3 %vm3116_vm8, %v11169_v52 }
 0x622   : > { %8252 = vmatmul.msk.bf16.gmra.mxu0 %vm3116_vm8, %v11078_v29 }
 0x623   : > { %v3180_v33 = vpop.f32.mrf.mxu3 }
 0x624   : > { %v3051_v28 = vpop.f32.mrf.mxu2  ;;  %v11216_v36 = vadd.f32 %v3180_v33, %v11208_v26 }
 0x625   : > { %v3052_v57 = vadd.f32 %v3051_v28, %v11223_v19 }
 0x62b   : > { %v3182_v61 = vpop.f32.mrf.mxu3 }
 0x62c   : > { %v3054_v40 = vpop.f32.mrf.mxu2  ;;  %v11247_v4 = vadd.f32 %v3182_v61, %v11238_v6  ;;  %v3050_v61 = vadd.f32 %v11167_v58, %v11223_v19 }
 0x62d   : > { %v3055_v21 = vadd.f32 %v3054_v40, %v11223_v19 }
 0x630   : > { %8265 = vmatmul.msk.bf16.vlgmr.msrb.gmra.mxu3 %vm3116_vm8, %v11179_v46 }
 0x632   : > { %8253 = vmatmul.msk.bf16.gmra.mxu0 %vm3116_vm8, %v11091_v3 }
 0x633   : > { %v3185_v30 = vpop.f32.mrf.mxu3 }
 0x634   : > { %v3056_v14 = vpop.f32.mrf.mxu2  ;;  %v11285_v40 = vadd.f32 %v3185_v30, %v11270_v48 }
 0x635   : > { %v3057_v60 = vadd.f32 %v3056_v14, %v11223_v19 }
 0x637   : > { %v11273_v39 = vpack.c.bf16 %v3057_v60, %v3055_v21 }
 0x639   : > { %15637 = vst [vmem:[#allocation8_spill] sm:$0xff] %v11273_v39 }
 0x63b   : > { %v11187_v13 = vpop.f32.mrf.mxu3 }
 0x63c   : > { %v3059_v29 = vpop.f32.mrf.mxu2  ;;  %v3784_v49 = vpop.permute.xlu0 %3783 }
 0x63d   : > { %v3837_v11 = vsel %vm3116_vm8, %v3784_v49, 0  ;;  %v3060_v1 = vadd.f32 %v3059_v29, %v11223_v19  ;;  %v3047_v29 = vadd.f32 %v11164_v59, %v11223_v19  ;;  %v11296_v49 = vpack.c.bf16 %v3052_v57, %v3050_v61  ;;  %v11312_v59 = vld [vmem:[%s15636_s28 + $0x30] sm:$0xff] }
 0x63e   : > { %3899 = vmatpush.bf16.xpose.msra.mxu0 %v3837_v11 }
 0x640   : > { %8266 = vmatmul.msk.bf16.gmra.mxu3 %vm3116_vm8, %v11190_v7 }
 0x642   : > { %8254 = vmatmul.msk.bf16.gmra.mxu0 %vm3116_vm8, %v11062_v32 }
 0x643   : > { %v11196_v22 = vpop.f32.mrf.mxu3 }
 0x644   : > { %v3061_v38 = vpop.f32.mrf.mxu2 }
 0x645   : > { %v3062_v53 = vadd.f32 %v3061_v38, %v11223_v19  ;;  %v3045_v38 = vadd.f32 %v11158_v18, %v11223_v19 }
 0x647   : > { %v11254_v43 = vpack.c.bf16 %v3062_v53, %v3060_v1  ;;  %v3032_v1 = vadd.f32 %v11134_v54, %v11223_v19 }
 0x64b   : > { %v11198_v24 = vpop.f32.mrf.mxu3 }
 0x64c   : > { %v3064_v3 = vpop.f32.mrf.mxu2 }
 0x64d   : > { %v3065_v15 = vadd.f32 %v3064_v3, %v11223_v19  ;;  %v3042_v3 = vadd.f32 %v11155_v37, %v11223_v19  ;;  %v3037_v37 = vadd.f32 %v11145_v0, %v11223_v19  ;;  %v11348_v0 = vld [vmem:[%s15636_s28 + $0x40] sm:$0xff] }
 0x64e   : > { %v11365_v21 = vadd.f32 %v11196_v22, %v11348_v0 }
 0x64f   : > { %v3233_v12 = vpop.f32.mrf.mxu0 }
 0x650   : > { %v11211_v32 = vadd.f32 %v3233_v12, %v11203_v55  ;;  %8267 = vmatmul.msk.bf16.gmra.mxu3 %vm3116_vm8, %v11173_v5  ;;  %v11316_v12 = vpack.c.bf16 %v3047_v29, %v3045_v38  ;;  %v3751_v38 = vpop.permute.xlu2 %3750 }
 0x652   : > { %8255 = vmatmul.msk.bf16.gmra.mxu0 %vm3116_vm8, %v11169_v52  ;;  %v3278_v2 = vsel %vm3277_vm9, %v11211_v32, -inf }
 0x653   : > { %v11225_v62 = vpop.f32.mrf.mxu3  ;;  %v3279_v63 = vmax.f32 %v11216_v36, %v3278_v2 }
 0x654   : > { %v3066_v16 = vpop.f32.mrf.mxu2 }
 0x655   : > { %v3067_v27 = vadd.f32 %v3066_v16, %v11223_v19  ;;  %3280 = vmax.xlane.f32.xlu2 %v3279_v63  ;;  %v3040_v63 = vadd.f32 %v11148_v41, %v11223_v19  ;;  %v11325_v16 = vadd.f32 %v11187_v13, %v11312_v59  ;;  %v3035_v41 = vadd.f32 %v11138_v9, %v11223_v19  ;;  %v11343_v13 = vld [vmem:[%s15636_s28 + $0x48] sm:$0xff] }
 0x657   : > { %v11241_v25 = vpack.c.bf16 %v3067_v27, %v3065_v15  ;;  %v3235_v51 = vpop.f32.mrf.mxu0  ;;  %v11332_v27 = vpack.c.bf16 %v3042_v3, %v3040_v63  ;;  %v11354_v60 = vpack.c.bf16 %v3037_v37, %v3035_v41 }
 0x658   : > { %v11244_v34 = vadd.f32 %v3235_v51, %v11233_v23 }
 0x659   : > { %3616 = vmatpush.bf16.msra.mxu1 %v11241_v25  ;;  %15639 = vst [vmem:[#allocation10_spill] sm:$0xff] %v11332_v27 }
 0x65a   : > { %v3282_v50 = vsel %vm3277_vm9, %v11244_v34, -inf  ;;  %15640 = vst [vmem:[#allocation11_spill] sm:$0xff] %v11354_v60 }
 0x65b   : > { %v11256_v44 = vpop.f32.mrf.mxu3  ;;  %v3283_v8 = vmax.f32 %v11247_v4, %v3282_v50  ;;  %v11352_v50 = vpop.permute.xlu1 %3748 }
 0x65c   : > { %v3069_v20 = vpop.f32.mrf.mxu2 }
 0x65d   : > { %v3070_v56 = vadd.f32 %v3069_v20, %v11223_v19  ;;  %3617 = vmatpush.bf16.msra.mxu1 %v11254_v43  ;;  %3284 = vmax.xlane.f32.xlu1 %v3283_v8  ;;  %v3030_v20 = vadd.f32 %v11128_v10, %v11223_v19  ;;  %v11379_v10 = vld [vmem:[%s15636_s28 + $0x58] sm:$0xff] }
 0x65f   : > { %v11275_v17 = vpack.c.bf16 %v3070_v56, %v3070_v56  ;;  %v3238_v35 = vpop.f32.mrf.mxu0  ;;  %v11372_v56 = vpack.c.bf16 %v3032_v1, %v3030_v20 }
 0x660   : > { %v11278_v33 = vadd.f32 %v3238_v35, %v11265_v31  ;;  %8268 = vmatmul.msk.bf16.gmra.mxu3 %vm3116_vm8, %v11177_v45 }
 0x661   : > { %15638 = vst [vmem:[#allocation9_spill] sm:$0xff] %v11275_v17  ;;  %v3614_v28 = vsel %vm3612_vm10, %v11275_v17, 0  ;;  %3618 = vmatpush.bf16.msra.mxu1 %v11273_v39 }
 0x662   : > { %3676 = vmatpush.bf16.msra.mxu2 %v3614_v28  ;;  %8274 = vmatmul.msk.bf16.vlgmr.msra.gmra.mxu0 %vm3116_vm8, %v11179_v46  ;;  %v3286_v14 = vsel %vm3277_vm9, %v11278_v33, -inf  ;;  %v11307_v46 = vld [vmem:[%s15636_s28 + $0x38] sm:$0xff]  ;;  %15641 = vst [vmem:[#allocation12_spill] sm:$0xff] %v11372_v56 }
 0x663   : > { %v11298_v58 = vpop.f32.mrf.mxu3  ;;  %v3287_v30 = vmax.f32 %v11285_v40, %v3286_v14 }
 0x664   : > { %v3071_v11 = vpop.f32.mrf.mxu2 }
 0x665   : > { %3619 = vmatpush.bf16.msra.mxu1 %v11296_v49  ;;  %3288 = vmax.xlane.f32.xlu0 %v3287_v30  ;;  %v11399_v30 = vld [vmem:[%s15636_s28 + $0x68] sm:$0xff]  ;;  %v11404_v11 = vld [vmem:[%s15636_s28 + $0x60] sm:$0xff] }
 0x667   : > { %v3240_v2 = vpop.f32.mrf.mxu0 }
 0x668   : > { %v11319_v18 = vadd.f32 %v3240_v2, %v11307_v46  ;;  %v11412_v2 = vadd.f32 %v11225_v62, %v11404_v11  ;;  %v11429_v62 = vld [vmem:[%s15636_s28 + $0x70] sm:$0xff] }
 0x669   : > { %3620 = vmatpush.bf16.msra.mxu1 %v11316_v12  ;;  %v11436_v1 = vadd.f32 %v11256_v44, %v11429_v62  ;;  %v11451_v44 = vld [vmem:[%s15636_s28 + $0x80] sm:$0xff] }
 0x66a   : > { %v3290_v15 = vsel %vm3277_vm9, %v11319_v18, -inf  ;;  %15643 = vst [vmem:[#allocation14_spill] sm:$0xff] %v11451_v44 }
 0x66b   : > { %v11334_v53 = vpop.f32.mrf.mxu3  ;;  %v3291_v51 = vmax.f32 %v11325_v16, %v3290_v15 }
 0x66d   : > { %3621 = vmatpush.bf16.msra.mxu1 %v11332_v27  ;;  %3292 = vmax.xlane.f32.xlu2 %v3291_v51  ;;  %v11424_v51 = vld [vmem:[%s15636_s28 + $0x78] sm:$0xff] }
 0x66f   : > { %v3243_v9 = vpop.f32.mrf.mxu0 }
 0x670   : > { %v11357_v8 = vadd.f32 %v3243_v9, %v11343_v13  ;;  %8269 = vmatmul.msk.bf16.gmra.mxu3 %vm3116_vm8, %v11352_v50 }
 0x671   : > { %3622 = vmatpush.bf16.msra.mxu1 %v11354_v60 }
 0x672   : > { %8275 = vmatmul.msk.bf16.gmra.mxu0 %vm3116_vm8, %v11190_v7  ;;  %v3294_v54 = vsel %vm3277_vm9, %v11357_v8, -inf  ;;  %v11384_v7 = vld [vmem:[%s15636_s28 + $0x50] sm:$0xff] }
 0x673   : > { %v3205_v57 = vpop.f32.mrf.mxu3  ;;  %v3295_v35 = vmax.f32 %v11365_v21, %v3294_v54  ;;  %v11391_v61 = vadd.f32 %v11198_v24, %v11384_v7 }
 0x675   : > { %3623 = vmatpush.bf16.msra.mxu1 %v11372_v56  ;;  %3296 = vmax.xlane.f32.xlu2 %v3295_v35  ;;  %v11446_v35 = vld [vmem:[%s15636_s28 + $0x88] sm:$0xff] }
 0x676   : > { %15642 = vst [vmem:[#allocation13_spill] sm:$0xff] %v11446_v35 }
 0x677   : > { %v3245_v22 = vpop.f32.mrf.mxu0 }
 0x678   : > { %v11387_v19 = vadd.f32 %v3245_v22, %v11379_v10  ;;  %v3753_v22 = vpop.permute.xlu2 %3752 }
 0x67a   : > { %v3298_v28 = vsel %vm3277_vm9, %v11387_v19, -inf }
 0x67b   : > { %v3207_v14 = vpop.f32.mrf.mxu3  ;;  %v3299_v29 = vmax.f32 %v11391_v61, %v3298_v28 }
 0x67d   : > { %3300 = vmax.xlane.f32.xlu0 %v3299_v29 }
 0x67f   : > { %v3248_v24 = vpop.f32.mrf.mxu0 }
 0x680   : > { %v11407_v3 = vadd.f32 %v3248_v24, %v11399_v30  ;;  %8270 = vmatmul.msk.bf16.gmra.mxu3 %vm3116_vm8, %v3751_v38 }
 0x682   : > { %8276 = vmatmul.msk.bf16.gmra.mxu0 %vm3116_vm8, %v11173_v5  ;;  %v3302_v63 = vsel %vm3277_vm9, %v11407_v3, -inf }
 0x683   : > { %v11418_v15 = vpop.f32.mrf.mxu3  ;;  %v3303_v37 = vmax.f32 %v11412_v2, %v3302_v63 }
 0x685   : > { %3304 = vmax.xlane.f32.xlu0 %v3303_v37 }
 0x687   : > { %v3250_v41 = vpop.f32.mrf.mxu0 }
 0x688   : > { %v11432_v5 = vadd.f32 %v3250_v41, %v11424_v51 }
 0x68a   : > { %v3306_v9 = vsel %vm3277_vm9, %v11432_v5, -inf }
 0x68b   : > { %v3212_v20 = vpop.f32.mrf.mxu3  ;;  %v3307_v54 = vmax.f32 %v11436_v1, %v3306_v9 }
 0x68d   : > { %3308 = vmax.xlane.f32.xlu1 %v3307_v54  ;;  %3756 = vrot.lane.b32.xlu2 %v11169_v52, %s9620_s29  ;;  %v11459_v52 = vadd.f32 %v11298_v58, %v11451_v44  ;;  %v11469_v54 = vld [vmem:[%s15636_s28 + $0xa8] sm:$0xff]  ;;  %v11474_v58 = vld [vmem:[%s15636_s28 + $0xa0] sm:$0xff] }
 0x68e   : > { %15644 = vst [vmem:[#allocation15_spill] sm:$0xff] %v11469_v54 }
 0x68f   : > { %v3253_v28 = vpop.f32.mrf.mxu0  ;;  %15645 = vst [vmem:[#allocation16_spill] sm:$0xff] %v11474_v58 }
 0x690   : > { %v11454_v29 = vadd.f32 %v3253_v28, %v11446_v35  ;;  %8271 = vmatmul.msk.bf16.gmra.mxu3 %vm3116_vm8, %v3753_v22 }
 0x692   : > { %8277 = vmatmul.msk.bf16.gmra.mxu0 %vm3116_vm8, %v11177_v45  ;;  %v3310_v24 = vsel %vm3277_vm9, %v11454_v29, -inf }
 0x693   : > { %v3215_v63 = vpop.f32.mrf.mxu3  ;;  %v3311_v37 = vmax.f32 %v11459_v52, %v3310_v24  ;;  %v11482_v24 = vadd.f32 %v3205_v57, %v11474_v58  ;;  %v11499_v57 = vld [vmem:[%s15636_s28 + $0xb0] sm:$0xff] }
 0x694   : > { %15647 = vst [vmem:[#allocation18_spill] sm:$0xff] %v11499_v57 }
 0x695   : > { %3312 = vmax.xlane.f32.xlu0 %v3311_v37 }
 0x697   : > { %v3255_v41 = vpop.f32.mrf.mxu0 }
 0x69b   : > { %v3217_v9 = vpop.f32.mrf.mxu3 }
 0x69f   : > { %v3258_v45 = vpop.f32.mrf.mxu0 }
 0x6a0   : > { %v11477_v28 = vadd.f32 %v3258_v45, %v11469_v54  ;;  %8272 = vmatmul.msk.bf16.gmra.mxu3 %vm3116_vm8, %v11185_v47  ;;  %v11494_v45 = vld [vmem:[%s15636_s28 + $0xb8] sm:$0xff]  ;;  %v11505_v54 = vadd.f32 %v3207_v14, %v11499_v57  ;;  %v11521_v14 = vld [vmem:[%s15636_s28 + $0x90] sm:$0xff] }
 0x6a1   : > { %15646 = vst [vmem:[#allocation17_spill] sm:$0xff] %v11494_v45 }
 0x6a2   : > { %8278 = vmatmul.msk.bf16.gmra.mxu0 %vm3116_vm8, %v11352_v50  ;;  %v3318_v37 = vsel %vm3277_vm9, %v11477_v28, -inf  ;;  %15649 = vst [vmem:[#allocation20_spill] sm:$0xff] %v11521_v14 }
 0x6a3   : > { %v11488_v42 = vpop.f32.mrf.mxu3  ;;  %v3319_v56 = vmax.f32 %v11482_v24, %v3318_v37 }
 0x6a5   : > { %3320 = vmax.xlane.f32.xlu1 %v3319_v56  ;;  %v11510_v56 = vld [vmem:[%s15636_s28 + $0x98] sm:$0xff] }
 0x6a6   : > { %15648 = vst [vmem:[#allocation19_spill] sm:$0xff] %v11510_v56  ;;  %v11516_v60 = vadd.f32 %v3255_v41, %v11510_v56 }
 0x6a7   : > { %v3260_v58 = vpop.f32.mrf.mxu0 }
 0x6a8   : > { %v11502_v50 = vadd.f32 %v3260_v58, %v11494_v45  ;;  %v3314_v57 = vsel %vm3277_vm9, %v11516_v60, -inf  ;;  %v11527_v45 = vadd.f32 %v11334_v53, %v11521_v14  ;;  %v2340_v53 = vld [vmem:[%s15636_s28 + $0xd0] sm:$0xff]  ;;  %v2338_v14 = vld [vmem:[%s15636_s28 + $0xc0] sm:$0xff] }
 0x6aa   : > { %v3322_v37 = vsel %vm3277_vm9, %v11502_v50, -inf }
 0x6ab   : > { %v3222_v44 = vpop.f32.mrf.mxu3  ;;  %v3323_v35 = vmax.f32 %v11505_v54, %v3322_v37  ;;  %v2341_v37 = vld [vmem:[%s15636_s28 + $0xd8] sm:$0xff] }
 0x6ac   : > { %v11532_v44 = vld [vmem:[%s15636_s28 + $0xc8] sm:$0xff] }
 0x6ad   : > { %3324 = vmax.xlane.f32.xlu1 %v3323_v35  ;;  %15650 = vst [vmem:[#allocation21_spill] sm:$0xff] %v11532_v44  ;;  %v3315_v35 = vmax.f32 %v11527_v45, %v3314_v57  ;;  %v11550_v57 = vadd.f32 %v3212_v20, %v2340_v53  ;;  %v11569_v20 = vld [vmem:[%s15636_s28 + $0xe0] sm:$0xff] }
 0x6ae   : > { %15652 = vst [vmem:[#allocation23_spill] sm:$0xff] %v11569_v20 }
 0x6af   : > { %v3263_v58 = vpop.f32.mrf.mxu0 }
 0x6b0   : > { %v11537_v41 = vadd.f32 %v3263_v58, %v11532_v44  ;;  %v11555_v44 = vadd.f32 %v11418_v15, %v2338_v14 }
 0x6b2   : > { %8279 = vmatmul.msk.bf16.gmra.mxu0 %vm3116_vm8, %v3751_v38  ;;  %v3326_v58 = vsel %vm3277_vm9, %v11537_v41, -inf }
 0x6b3   : > { %v3327_v17 = vmax.f32 %v11555_v44, %v3326_v58  ;;  %v2345_v58 = vld [vmem:[%s15636_s28 + $0xf8] sm:$0xff] }
 0x6b6   : > { %3316 = vmax.xlane.f32.xlu2 %v3315_v35 }
 0x6b7   : > { %v3265_v56 = vpop.f32.mrf.mxu0 }
 0x6b8   : > { %v11548_v38 = vadd.f32 %v3265_v56, %v2341_v37  ;;  %v11564_v56 = vld [vmem:[%s15636_s28 + $0xe8] sm:$0xff] }
 0x6b9   : > { %15651 = vst [vmem:[#allocation22_spill] sm:$0xff] %v11564_v56 }
 0x6ba   : > { %v3330_v39 = vsel %vm3277_vm9, %v11548_v38, -inf }
 0x6bb   : > { %v3331_v35 = vmax.f32 %v11550_v57, %v3330_v39  ;;  %v11575_v39 = vadd.f32 %v3215_v63, %v11569_v20 }
 0x6bd   : > { %3332 = vmax.xlane.f32.xlu1 %v3331_v35  ;;  %15654 = vst [vmem:[#allocation25_spill] sm:$0xff] %v11575_v39 }
 0x6be   : > { %3328 = vmax.xlane.f32.xlu2 %v3327_v17  ;;  %v2344_v17 = vld [vmem:[%s15636_s28 + $0xf0] sm:$0xff] }
 0x6bf   : > { %v3268_v15 = vpop.f32.mrf.mxu0  ;;  %v11589_v20 = vadd.f32 %v3217_v9, %v2344_v17  ;;  %v2346_v9 = vld [vmem:[%s15636_s28 + $0x100] sm:$0xff] }
 0x6c0   : > { %v11572_v14 = vadd.f32 %v3268_v15, %v11564_v56  ;;  %v11605_v17 = vadd.f32 %v11488_v42, %v2346_v9 }
 0x6c2   : > { %15653 = vst [vmem:[#allocation24_spill] sm:$0xff] %v11572_v14  ;;  %8280 = vmatmul.msk.bf16.gmra.mxu0 %vm3116_vm8, %v3753_v22  ;;  %v3334_v37 = vsel %vm3277_vm9, %v11572_v14, -inf }
 0x6c3   : > { %v3335_v53 = vmax.f32 %v11575_v39, %v3334_v37  ;;  %15655 = vst [vmem:[#allocation26_spill] sm:$0xff] %v11605_v17 }
 0x6c6   : > { %3336 = vmax.xlane.f32.xlu2 %v3335_v53  ;;  %v2347_v53 = vld [vmem:[%s15636_s28 + $0x108] sm:$0xff] }
 0x6c7   : > { %v3270_v35 = vpop.f32.mrf.mxu0 }
 0x6c8   : > { %v11587_v15 = vadd.f32 %v3270_v35, %v2345_v58  ;;  %v3281_v63 = vpop.xlane.xlu2 %3280 }
 0x6c9   : > { %v3346_v22 = vsub.f32 %v11216_v36, %v3281_v63  ;;  %v3347_v56 = vsub.f32 %v11211_v32, %v3281_v63 }
 0x6ca   : > { %v3338_v37 = vsel %vm3277_vm9, %v11587_v15, -inf }
 0x6cb   : > { %v3380_v39 = vmul.f32 1.442695, %v3346_v22  ;;  %v3382_v14 = vmul.f32 1.442695, %v3347_v56  ;;  %v3339_v27 = vmax.f32 %v11589_v20, %v3338_v37 }
 0x6cd   : > { %9038 = vpow2.f32 %v3380_v39  ;;  %3340 = vmax.xlane.f32.xlu1 %v3339_v27 }
 0x6ce   : > { %9040 = vpow2.f32 %v3382_v14 }
 0x6cf   : > { %v3273_v36 = vpop.f32.mrf.mxu0 }
 0x6d0   : > { %v11602_v32 = vadd.f32 %v3273_v36, %v2347_v53  ;;  %v3285_v58 = vpop.xlane.xlu1 %3284 }
 0x6d1   : > { %v3348_v56 = vsub.f32 %v11247_v4, %v3285_v58  ;;  %v3349_v27 = vsub.f32 %v11244_v34, %v3285_v58  ;;  %v3848_v34 = vpop.f32.mrf.mxu3 }
 0x6d2   : > { %8281 = vmatmul.msk.bf16.gmra.mxu0 %vm3116_vm8, %v11185_v47  ;;  %v3342_v39 = vsel %vm3277_vm9, %v11602_v32, -inf }
 0x6d3   : > { %v11613_v35 = vpop.eup %9038  ;;  %v3384_v14 = vmul.f32 1.442695, %v3348_v56  ;;  %v3386_v63 = vmul.f32 1.442695, %v3349_v27  ;;  %v3343_v22 = vmax.f32 %v11605_v17, %v3342_v39 }
 0x6d4   : > { %v11616_v37 = vpop.eup %9040 }
 0x6d5   : > { %9042 = vpow2.f32 %v3384_v14  ;;  %3344 = vmax.xlane.f32.xlu1 %v3343_v22  ;;  %v3448_v42 = vsel %vm3277_vm9, %v11616_v37, 0.0 }
 0x6d6   : > { %9044 = vpow2.f32 %v3386_v63  ;;  %v3449_v47 = vadd.f32 %v11613_v35, %v3448_v42 }
 0x6d7   : > { %v3275_v4 = vpop.f32.mrf.mxu0 }
 0x6d8   : > { %3450 = vadd.xlane.f32.xlu0 %v3449_v47  ;;  %v3289_v53 = vpop.xlane.xlu0 %3288 }
 0x6d9   : > { %v3351_v9 = vsub.f32 %v11278_v33, %v3289_v53  ;;  %v3350_v56 = vsub.f32 %v11285_v40, %v3289_v53  ;;  %v3850_v22 = vpop.f32.mrf.mxu3  ;;  %v11637_v53 = vadd.f32 %v3848_v34, %v11208_v26 }
 0x6db   : > { %v11622_v36 = vpop.eup %9042  ;;  %v3390_v39 = vmul.f32 1.442695, %v3351_v9  ;;  %v3388_v33 = vmul.f32 1.442695, %v3350_v56 }
 0x6dc   : > { %v11624_v58 = vpop.eup %9044 }
 0x6dd   : > { %v3452_v27 = vsel %vm3277_vm9, %v11624_v58, 0.0  ;;  %9046 = vpow2.f32 %v3390_v39  ;;  %v11647_v39 = vadd.f32 %v3850_v22, %v11238_v6 }
 0x6de   : > { %v3453_v14 = vadd.f32 %v11622_v36, %v3452_v27  ;;  %9048 = vpow2.f32 %v3388_v33 }
 0x6df   : > { %v3901_v63 = vpop.f32.mrf.mxu0 }
 0x6e0   : > { %v11631_v42 = vadd.f32 %v3901_v63, %v11203_v55  ;;  %3454 = vadd.xlane.f32.xlu0 %v3453_v14  ;;  %v3293_v47 = vpop.xlane.xlu2 %3292 }
 0x6e1   : > { %v3353_v4 = vsub.f32 %v11319_v18, %v3293_v47  ;;  %v3352_v9 = vsub.f32 %v11325_v16, %v3293_v47  ;;  %v3853_v34 = vpop.f32.mrf.mxu3 }
 0x6e2   : > { %v3945_v40 = vsel %vm3277_vm9, %v11631_v42, -inf }
 0x6e3   : > { %v3394_v27 = vmul.f32 1.442695, %v3353_v4  ;;  %v3946_v17 = vmax.f32 %v11637_v53, %v3945_v40  ;;  %v11641_v63 = vpop.eup %9046  ;;  %v3392_v14 = vmul.f32 1.442695, %v3352_v9 }
 0x6e4   : > { %v11653_v33 = vpop.eup %9048 }
 0x6e5   : > { %9050 = vpow2.f32 %v3394_v27 }
 0x6e6   : > { %9052 = vpow2.f32 %v3392_v14 }
 0x6e7   : > { %v3903_v55 = vpop.f32.mrf.mxu0 }
 0x6e8   : > { %v11644_v56 = vadd.f32 %v3903_v55, %v11233_v23  ;;  %3947 = vmax.xlane.f32.xlu0 %v3946_v17  ;;  %v3297_v18 = vpop.xlane.xlu2 %3296  ;;  %v3456_v17 = vsel %vm3277_vm9, %v11641_v63, 0.0  ;;  %v11665_v55 = vadd.f32 %v3853_v34, %v11270_v48 }
 0x6e9   : > { %v3355_v26 = vsub.f32 %v11357_v8, %v3297_v18  ;;  %v3354_v16 = vsub.f32 %v11365_v21, %v3297_v18  ;;  %v3457_v8 = vadd.f32 %v11653_v33, %v3456_v17 }
 0x6ea   : > { %v3949_v47 = vsel %vm3277_vm9, %v11644_v56, -inf }
 0x6eb   : > { %v3398_v4 = vmul.f32 1.442695, %v3355_v26  ;;  %v3950_v23 = vmax.f32 %v11647_v39, %v3949_v47  ;;  %v3396_v6 = vmul.f32 1.442695, %v3354_v16  ;;  %v11659_v40 = vpop.eup %9050  ;;  %v3855_v47 = vpop.f32.mrf.mxu3 }
 0x6ec   : > { %v11672_v26 = vpop.eup %9052  ;;  %v3460_v16 = vsel %vm3277_vm9, %v11659_v40, 0.0 }
 0x6ed   : > { %3951 = vmax.xlane.f32.xlu1 %v3950_v23  ;;  %9054 = vpow2.f32 %v3398_v4  ;;  %v3461_v23 = vadd.f32 %v11672_v26, %v3460_v16 }
 0x6ee   : > { %9056 = vpow2.f32 %v3396_v6 }
 0x6ef   : > { %v3906_v22 = vpop.f32.mrf.mxu0 }
 0x6f0   : > { %v11662_v21 = vadd.f32 %v3906_v22, %v11265_v31  ;;  %3458 = vadd.xlane.f32.xlu0 %v3457_v8  ;;  %v3301_v9 = vpop.xlane.xlu0 %3300  ;;  %v3757_v27 = vpop.permute.xlu2 %3756 }
 0x6f1   : > { %8273 = vmatmul.msk.bf16.gmra.mxu3 %vm3116_vm8, %v3757_v27  ;;  %8282 = vmatmul.msk.bf16.gmra.mxu0 %vm3116_vm8, %v3757_v27  ;;  %v3357_v18 = vsub.f32 %v11387_v19, %v3301_v9  ;;  %v3356_v48 = vsub.f32 %v11391_v61, %v3301_v9 }
 0x6f2   : > { %v3953_v14 = vsel %vm3277_vm9, %v11662_v21, -inf }
 0x6f3   : > { %v3954_v31 = vmax.f32 %v11665_v55, %v3953_v14  ;;  %v11678_v34 = vpop.eup %9054  ;;  %v3402_v4 = vmul.f32 1.442695, %v3357_v18  ;;  %v3400_v6 = vmul.f32 1.442695, %v3356_v48  ;;  %v3858_v48 = vpop.f32.mrf.mxu3 }
 0x6f4   : > { %v11681_v17 = vpop.eup %9056  ;;  %v3464_v27 = vsel %vm3277_vm9, %v11678_v34, 0.0 }
 0x6f5   : > { %3955 = vmax.xlane.f32.xlu1 %v3954_v31  ;;  %9058 = vpow2.f32 %v3402_v4  ;;  %v3465_v31 = vadd.f32 %v11681_v17, %v3464_v27 }
 0x6f6   : > { %9060 = vpow2.f32 %v3400_v6 }
 0x6f7   : > { %v3908_v19 = vpop.f32.mrf.mxu0 }
 0x6f8   : > { %v11684_v8 = vadd.f32 %v3908_v19, %v11307_v46  ;;  %3462 = vadd.xlane.f32.xlu0 %v3461_v23  ;;  %v3305_v22 = vpop.xlane.xlu0 %3304  ;;  %v11694_v46 = vadd.f32 %v3855_v47, %v11312_v59 }
 0x6f9   : > { %v3358_v61 = vsub.f32 %v11412_v2, %v3305_v22  ;;  %v3359_v9 = vsub.f32 %v11407_v3, %v3305_v22  ;;  %v11703_v22 = vadd.f32 %v3858_v48, %v11348_v0 }
 0x6fa   : > { %v3957_v16 = vsel %vm3277_vm9, %v11684_v8, -inf }
 0x6fb   : > { %v3404_v18 = vmul.f32 1.442695, %v3358_v61  ;;  %v3406_v14 = vmul.f32 1.442695, %v3359_v9  ;;  %v3958_v2 = vmax.f32 %v11694_v46, %v3957_v16  ;;  %v11697_v3 = vpop.eup %9058  ;;  %15656 = vst [vmem:[#allocation27_spill] sm:$0xff] %v11703_v22  ;;  %v11724_v48 = vpop.f32.mrf.mxu3 }
 0x6fc   : > { %v11707_v6 = vpop.eup %9060 }
 0x6fd   : > { %9062 = vpow2.f32 %v3404_v18  ;;  %3466 = vadd.xlane.f32.xlu1 %v3465_v31 }
 0x6fe   : > { %9064 = vpow2.f32 %v3406_v14  ;;  %v3468_v14 = vsel %vm3277_vm9, %v11697_v3, 0.0 }
 0x6ff   : > { %v3911_v23 = vpop.f32.mrf.mxu0  ;;  %v3469_v31 = vadd.f32 %v11707_v6, %v3468_v14 }
 0x700   : > { %v11700_v4 = vadd.f32 %v3911_v23, %v11343_v13  ;;  %3959 = vmax.xlane.f32.xlu0 %v3958_v2  ;;  %v3309_v19 = vpop.xlane.xlu1 %3308 }
 0x701   : > { %v3360_v59 = vsub.f32 %v11436_v1, %v3309_v19  ;;  %v3361_v47 = vsub.f32 %v11432_v5, %v3309_v19 }
 0x702   : > { %v3961_v27 = vsel %vm3277_vm9, %v11700_v4, -inf }
 0x703   : > { %v11711_v61 = vpop.eup %9062  ;;  %v3408_v9 = vmul.f32 1.442695, %v3360_v59  ;;  %v3410_v18 = vmul.f32 1.442695, %v3361_v47  ;;  %v3962_v13 = vmax.f32 %v11703_v22, %v3961_v27 }
 0x704   : > { %v11716_v0 = vpop.eup %9064 }
 0x705   : > { %9066 = vpow2.f32 %v3408_v9  ;;  %3963 = vmax.xlane.f32.xlu1 %v3962_v13  ;;  %v3472_v5 = vsel %vm3277_vm9, %v11716_v0, 0.0 }
 0x706   : > { %9068 = vpow2.f32 %v3410_v18  ;;  %v3473_v1 = vadd.f32 %v11711_v61, %v3472_v5  ;;  %v3863_v5 = vpop.f32.mrf.mxu3 }
 0x707   : > { %v11722_v16 = vpop.f32.mrf.mxu0 }
 0x708   : > { %3474 = vadd.xlane.f32.xlu2 %v3473_v1  ;;  %3470 = vadd.xlane.f32.xlu0 %v3469_v31  ;;  %v3313_v2 = vpop.xlane.xlu0 %3312 }
 0x709   : > { %v3362_v23 = vsub.f32 %v11459_v52, %v3313_v2  ;;  %v3363_v19 = vsub.f32 %v11454_v29, %v3313_v2 }
 0x70b   : > { %v11728_v59 = vpop.eup %9066  ;;  %v3412_v47 = vmul.f32 1.442695, %v3362_v23  ;;  %v3414_v27 = vmul.f32 1.442695, %v3363_v19 }
 0x70c   : > { %v11730_v9 = vpop.eup %9068 }
 0x70d   : > { %9070 = vpow2.f32 %v3412_v47  ;;  %v3476_v18 = vsel %vm3277_vm9, %v11730_v9, 0.0  ;;  %v11748_v47 = vadd.f32 %v3863_v5, %v11404_v11 }
 0x70e   : > { %9072 = vpow2.f32 %v3414_v27  ;;  %v3477_v13 = vadd.f32 %v11728_v59, %v3476_v18  ;;  %v3865_v27 = vpop.f32.mrf.mxu3 }
 0x70f   : > { %v3916_v14 = vpop.f32.mrf.mxu0 }
 0x710   : > { %3478 = vadd.xlane.f32.xlu1 %v3477_v13  ;;  %v11743_v2 = vadd.f32 %v3916_v14, %v11399_v30  ;;  %v11761_v14 = vadd.f32 %v3865_v27, %v11429_v62 }
 0x712   : > { %v3969_v19 = vsel %vm3277_vm9, %v11743_v2, -inf  ;;  %15660 = vst [vmem:[#allocation31_spill] sm:$0xff] %v11761_v14 }
 0x713   : > { %v11735_v1 = vpop.eup %9070  ;;  %v3970_v18 = vmax.f32 %v11748_v47, %v3969_v19 }
 0x714   : > { %15657 = vst [vmem:[#allocation28_spill] sm:$0xff] %v11735_v1  ;;  %v11737_v52 = vpop.eup %9072 }
 0x715   : > { %15658 = vst [vmem:[#allocation29_spill] sm:$0xff] %v11737_v52  ;;  %v3480_v29 = vsel %vm3277_vm9, %v11737_v52, 0.0 }
 0x716   : > { %v3481_v31 = vadd.f32 %v11735_v1, %v3480_v29  ;;  %v11763_v11 = vpop.f32.mrf.mxu3 }
 0x717   : > { %v3918_v23 = vpop.f32.mrf.mxu0 }
 0x718   : > { %3482 = vadd.xlane.f32.xlu2 %v3481_v31  ;;  %v11754_v13 = vadd.f32 %v3918_v23, %v11424_v51  ;;  %v3321_v19 = vpop.xlane.xlu1 %3320 }
 0x71a   : > { %15659 = vst [vmem:[#allocation30_spill] sm:$0xff] %v11754_v13  ;;  %v3973_v30 = vsel %vm3277_vm9, %v11754_v13, -inf }
 0x71b   : > { %v3974_v5 = vmax.f32 %v11761_v14, %v3973_v30 }
 0x71c   : > { %4275 = vrot.lane.b32.xlu0 %v11241_v25, %s9620_s29 }
 0x71e   : > { %v11770_v13 = vpop.f32.mrf.mxu3 }
 0x71f   : > { %v11756_v29 = vpop.f32.mrf.mxu0 }
 0x720   : > { %3971 = vmax.xlane.f32.xlu2 %v3970_v18 }
 0x727   : > { %v11766_v31 = vpop.f32.mrf.mxu0 }
 0x728   : > { %3975 = vmax.xlane.f32.xlu2 %v3974_v5 }
 0x729   : > { %v3317_v25 = vpop.xlane.xlu2 %3316 }
 0x72a   : > { %v3364_v51 = vsub.f32 %v11527_v45, %v3317_v25  ;;  %v3365_v23 = vsub.f32 %v11516_v60, %v3317_v25  ;;  %v11780_v60 = vpop.xlane.xlu1 %3324 }
 0x72c   : > { %v3416_v18 = vmul.f32 1.442695, %v3364_v51  ;;  %v3418_v1 = vmul.f32 1.442695, %v3365_v23  ;;  %v3366_v51 = vsub.f32 %v11482_v24, %v3321_v19 }
 0x72e   : > { %9074 = vpow2.f32 %v3416_v18 }
 0x72f   : > { %9076 = vpow2.f32 %v3418_v1  ;;  %v11776_v14 = vpop.f32.mrf.mxu0 }
 0x731   : > { %v3329_v62 = vpop.xlane.xlu2 %3328 }
 0x732   : > { %v3370_v27 = vsub.f32 %v11555_v44, %v3329_v62  ;;  %v3371_v30 = vsub.f32 %v11537_v41, %v3329_v62  ;;  %v3367_v44 = vsub.f32 %v11477_v28, %v3321_v19  ;;  %v11786_v41 = vpop.f32.mrf.mxu3  ;;  %v11793_v62 = vadd.f32 %v11722_v16, %v11379_v10 }
 0x733   : > { %v11807_v10 = vadd.f32 %v11724_v48, %v11384_v7 }
 0x734   : > { %v11774_v5 = vpop.eup %9074  ;;  %v3428_v52 = vmul.f32 1.442695, %v3370_v27  ;;  %v3430_v45 = vmul.f32 1.442695, %v3371_v30  ;;  %v3422_v23 = vmul.f32 1.442695, %v3367_v44  ;;  %v3333_v27 = vpop.xlane.xlu1 %3332 }
 0x735   : > { %v11778_v22 = vpop.eup %9076  ;;  %v3965_v19 = vsel %vm3277_vm9, %v11793_v62, -inf  ;;  %v3372_v16 = vsub.f32 %v11550_v57, %v3333_v27 }
 0x736   : > { %v3484_v1 = vsel %vm3277_vm9, %v11778_v22, 0.0  ;;  %9078 = vpow2.f32 %v3428_v52 }
 0x737   : > { %v3485_v25 = vadd.f32 %v11774_v5, %v3484_v1  ;;  %9080 = vpow2.f32 %v3430_v45  ;;  %v11797_v52 = vpop.f32.mrf.mxu0  ;;  %v3420_v1 = vmul.f32 1.442695, %v3366_v51  ;;  %v3373_v45 = vsub.f32 %v11548_v38, %v3333_v27 }
 0x738   : > { %9082 = vpow2.f32 %v3422_v23  ;;  %v3966_v51 = vmax.f32 %v11807_v10, %v3965_v19 }
 0x739   : > { %3486 = vadd.xlane.f32.xlu1 %v3485_v25  ;;  %9084 = vpow2.f32 %v3420_v1  ;;  %v3434_v44 = vmul.f32 1.442695, %v3373_v45 }
 0x73a   : > { %v11810_v25 = vpop.f32.mrf.mxu3 }
 0x73b   : > { %9086 = vpow2.f32 %v3434_v44 }
 0x73c   : > { %v11789_v18 = vpop.eup %9078 }
 0x73d   : > { %15661 = vst [vmem:[#allocation32_spill] sm:$0xff] %v11789_v18  ;;  %v11795_v30 = vpop.eup %9080 }
 0x73e   : > { %15662 = vst [vmem:[#allocation33_spill] sm:$0xff] %v11795_v30  ;;  %v3496_v28 = vsel %vm3277_vm9, %v11795_v30, 0.0  ;;  %v11813_v38 = vpop.eup %9082 }
 0x73f   : > { %v3497_v24 = vadd.f32 %v11789_v18, %v3496_v28  ;;  %15663 = vst [vmem:[#allocation34_spill] sm:$0xff] %v11813_v38  ;;  %v3432_v28 = vmul.f32 1.442695, %v3372_v16  ;;  %v11815_v18 = vpop.f32.mrf.mxu0  ;;  %v11818_v48 = vpop.eup %9084  ;;  %v3488_v57 = vsel %vm3277_vm9, %v11813_v38, 0.0 }
 0x740   : > { %v3341_v23 = vpop.xlane.xlu1 %3340  ;;  %15664 = vst [vmem:[#allocation35_spill] sm:$0xff] %v11818_v48 }
 0x741   : > { %3498 = vadd.xlane.f32.xlu2 %v3497_v24  ;;  %v3377_v7 = vsub.f32 %v11587_v15, %v3341_v23  ;;  %9088 = vpow2.f32 %v3432_v28  ;;  %v3376_v27 = vsub.f32 %v11589_v20, %v3341_v23  ;;  %v3489_v24 = vadd.f32 %v11818_v48, %v3488_v57  ;;  %v11824_v19 = vpop.eup %9086 }
 0x742   : > { %15665 = vst [vmem:[#allocation36_spill] sm:$0xff] %v11824_v19  ;;  %v11826_v16 = vpop.f32.mrf.mxu3 }
 0x743   : > { %v3442_v45 = vmul.f32 1.442695, %v3377_v7  ;;  %v3440_v44 = vmul.f32 1.442695, %v3376_v27 }
 0x745   : > { %9090 = vpow2.f32 %v3442_v45 }
 0x746   : > { %3967 = vmax.xlane.f32.xlu0 %v3966_v51  ;;  %v3500_v51 = vsel %vm3277_vm9, %v11824_v19, 0.0 }
 0x747   : > { %v11828_v15 = vpop.eup %9088  ;;  %v11832_v30 = vpop.f32.mrf.mxu0 }
 0x748   : > { %15666 = vst [vmem:[#allocation37_spill] sm:$0xff] %v11828_v15  ;;  %v3501_v23 = vadd.f32 %v11828_v15, %v3500_v51  ;;  %v11841_v27 = vpop.xlane.xlu1 %3344 }
 0x74a   : > { %v11839_v57 = vpop.f32.mrf.mxu3 }
 0x74b   : > { %v3451_v1 = vpop.xlane.xlu0 %3450  ;;  %v11837_v28 = vpop.eup %9090 }
 0x74c   : > { %9092 = vrcp.f32 %v3451_v1  ;;  %15667 = vst [vmem:[#allocation38_spill] sm:$0xff] %v11837_v28  ;;  %v3508_v1 = vsel %vm3277_vm9, %v11837_v28, 0.0 }
 0x74d   : > { %9094 = vpow2.f32 %v3440_v44 }
 0x74e   : > { %3490 = vadd.xlane.f32.xlu0 %v3489_v24 }
 0x74f   : > { %v11855_v15 = vpop.f32.mrf.mxu0 }
 0x752   : > { %4273 = vrot.lane.b32.xlu1 %v11254_v43, %s9620_s29  ;;  %v9093_v7 = vpop.eup %9092 }
 0x753   : > { %v3455_v20 = vpop.xlane.xlu0 %3454  ;;  %v11843_v45 = vpop.eup %9094  ;;  %v3533_v43 = vmul.f32 %v9093_v7, %v11613_v35  ;;  %v3534_v44 = vmul.f32 %v9093_v7, %v11616_v37  ;;  %v3368_v7 = vsub.f32 %v11505_v54, %v11780_v60  ;;  %v15673_v54 = vld [vmem:[#allocation25_spill] sm:$0xff] }
 0x754   : > { %9096 = vrcp.f32 %v3455_v20  ;;  %15668 = vst [vmem:[#allocation39_spill] sm:$0xff] %v11843_v45  ;;  %v3509_v19 = vadd.f32 %v11843_v45, %v3508_v1  ;;  %v11861_v35 = vpop.f32.mrf.mxu3  ;;  %v3337_v1 = vpop.xlane.xlu2 %3336  ;;  %v15674_v45 = vld [vmem:[#allocation9_spill] sm:$0xff] }
 0x756   : > { %3502 = vadd.xlane.f32.xlu0 %v3501_v23 }
 0x759   : > { %4269 = vrot.lane.b32.xlu2 %v11296_v49, %s9620_s29 }
 0x75a   : > { %v9097_v24 = vpop.eup %9096 }
 0x75b   : > { %v3535_v51 = vmul.f32 %v9097_v24, %v11622_v36  ;;  %v3536_v20 = vmul.f32 %v9097_v24, %v11624_v58  ;;  %v11853_v23 = vpop.xlane.xlu0 %3947  ;;  %v3369_v36 = vsub.f32 %v11502_v50, %v11780_v60  ;;  %v11867_v58 = vpop.f32.mrf.mxu0  ;;  %v15671_v50 = vld [vmem:[#allocation24_spill] sm:$0xff]  ;;  %v3374_v60 = vsub.f32 %v15673_v54, %v3337_v1 }
 0x75d   : > { %v3567_v48 = vpack.c.bf16 %v3535_v51, %v3533_v43  ;;  %v3568_v28 = vpack.c.bf16 %v3536_v20, %v3534_v44  ;;  %v11875_v43 = vpop.f32.mrf.mxu3  ;;  %v3375_v44 = vsub.f32 %v15671_v50, %v3337_v1  ;;  %v3436_v54 = vmul.f32 1.442695, %v3374_v60 }
 0x75e   : > { %3510 = vadd.xlane.f32.xlu0 %v3509_v19 }
 0x75f   : > { %3624 = vmatmul.bf16.vlgmr.msra.gmra.mxu1 %v3567_v48  ;;  %8256 = vmatmul.msk.bf16.vlgmr.msra.gmra.mxu2 %vm3277_vm9, %v3568_v28  ;;  %v3426_v48 = vmul.f32 1.442695, %v3369_v36  ;;  %v15669_v28 = vld [vmem:[#allocation10_spill] sm:$0xff] }
 0x760   : > { %v11859_v49 = vpop.xlane.xlu1 %3951  ;;  %15670 = vst [vmem:[#allocation10_spill] sm:$0xff] %v11875_v43 }
 0x761   : > { %4267 = vrot.lane.b32.xlu2 %v11316_v12, %s9620_s29  ;;  %v3424_v12 = vmul.f32 1.442695, %v3368_v7 }
 0x763   : > { %v3459_v37 = vpop.xlane.xlu0 %3458 }
 0x764   : > { %9098 = vrcp.f32 %v3459_v37  ;;  %v3438_v37 = vmul.f32 1.442695, %v3375_v44 }
 0x768   : > { %v11871_v19 = vpop.xlane.xlu1 %3955 }
 0x769   : > { %4265 = vrot.lane.b32.xlu2 %v15669_v28, %s9620_s29  ;;  %v15675_v28 = vld [vmem:[#allocation8_spill] sm:$0xff] }
 0x76a   : > { %v9099_v20 = vpop.eup %9098 }
 0x76b   : > { %v3463_v24 = vpop.xlane.xlu0 %3462 }
 0x76c   : > { %9100 = vrcp.f32 %v3463_v24  ;;  %v3538_v24 = vmul.f32 %v9099_v20, %v11641_v63 }
 0x76d   : > { %9102 = vpow2.f32 %v3426_v48 }
 0x76e   : > { %v11878_v51 = vpop.f32.mrf.mxu0  ;;  %9104 = vpow2.f32 %v3424_v12 }
 0x76f   : > { %15672 = vst [vmem:[#allocation24_spill] sm:$0xff] %v11878_v51  ;;  %v3537_v51 = vmul.f32 %v9099_v20, %v11653_v33  ;;  %9106 = vpow2.f32 %v3438_v37  ;;  %v15677_v33 = vld [vmem:[#allocation11_spill] sm:$0xff] }
 0x770   : > { %v3467_v48 = vpop.xlane.xlu1 %3466  ;;  %9108 = vpow2.f32 %v3436_v54  ;;  %v15680_v54 = vld [vmem:[#allocation13_spill] sm:$0xff] }
 0x771   : > { %4277 = vrot.lane.b32.xlu2 %v15674_v45, %s9620_s29  ;;  %9110 = vrcp.f32 %v3467_v48 }
 0x772   : > { %v9101_v36 = vpop.eup %9100  ;;  %4271 = vrot.lane.b32.xlu0 %v15675_v28, %s9620_s29 }
 0x773   : > { %v3540_v7 = vmul.f32 %v9101_v36, %v11659_v40  ;;  %v11887_v50 = vpop.xlane.xlu0 %3959  ;;  %v3539_v12 = vmul.f32 %v9101_v36, %v11672_v26  ;;  %v11891_v1 = vpop.eup %9102 }
 0x774   : > { %v11893_v44 = vpop.f32.mrf.mxu3  ;;  %v11895_v43 = vpop.eup %9104  ;;  %v3492_v63 = vsel %vm3277_vm9, %v11891_v1, 0.0 }
 0x775   : > { %15676 = vst [vmem:[#allocation25_spill] sm:$0xff] %v11893_v44  ;;  %v3569_v45 = vpack.c.bf16 %v3539_v12, %v3537_v51  ;;  %v3570_v38 = vpack.c.bf16 %v3540_v7, %v3538_v24  ;;  %v3493_v40 = vadd.f32 %v11895_v43, %v3492_v63  ;;  %v11903_v51 = vpop.eup %9106  ;;  %v15679_v7 = vld [vmem:[#allocation26_spill] sm:$0xff] }
 0x776   : > { %v3943_v28 = vpop.f32.mrf.mxu0  ;;  %15678 = vst [vmem:[#allocation9_spill] sm:$0xff] %v11903_v51  ;;  %v11909_v36 = vpop.eup %9108  ;;  %v3504_v37 = vsel %vm3277_vm9, %v11903_v51, 0.0  ;;  %v3378_v48 = vsub.f32 %v15679_v7, %v11841_v27 }
 0x777   : > { %3629 = vmatmul.bf16.gmra.mxu1 %v3569_v45  ;;  %8257 = vmatmul.msk.bf16.gmra.mxu2 %vm3277_vm9, %v3570_v38  ;;  %v3379_v38 = vsub.f32 %v11602_v32, %v11841_v27  ;;  %v9111_v24 = vpop.eup %9110  ;;  %v11917_v45 = vadd.f32 %v11756_v29, %v15680_v54  ;;  %v3505_v63 = vadd.f32 %v11909_v36, %v3504_v37 }
 0x778   : > { %v11905_v60 = vpop.xlane.xlu1 %3963  ;;  %v3444_v44 = vmul.f32 1.442695, %v3378_v48  ;;  %v4014_v29 = vsub.f32 %v11631_v42, %v11853_v23  ;;  %v4020_v48 = vsub.f32 %v11684_v8, %v11887_v50 }
 0x779   : > { %4263 = vrot.lane.b32.xlu2 %v15677_v33, %s9620_s29  ;;  %v3446_v28 = vmul.f32 1.442695, %v3379_v38  ;;  %v3542_v33 = vmul.f32 %v9111_v24, %v11678_v34  ;;  %v3977_v34 = vsel %vm3277_vm9, %v11917_v45, -inf }
 0x77a   : > { %v4049_v38 = vmul.f32 1.442695, %v4014_v29  ;;  %v4061_v8 = vmul.f32 1.442695, %v4020_v48 }
 0x77b   : > { %v3471_v26 = vpop.xlane.xlu0 %3470 }
 0x77c   : > { %9112 = vrcp.f32 %v3471_v26  ;;  %3494 = vadd.xlane.f32.xlu1 %v3493_v40  ;;  %v3890_v20 = vpop.f32.mrf.mxu3  ;;  %v3475_v40 = vpop.xlane.xlu2 %3474  ;;  %v3541_v26 = vmul.f32 %v9111_v24, %v11681_v17 }
 0x77d   : > { %9114 = vpow2.f32 %v3446_v28  ;;  %v4015_v28 = vsub.f32 %v11647_v39, %v11859_v49 }
 0x782   : > { %v9113_v12 = vpop.eup %9112 }
 0x783   : > { %v3544_v32 = vmul.f32 %v9113_v12, %v11697_v3  ;;  %v3543_v20 = vmul.f32 %v9113_v12, %v11707_v6  ;;  %v3479_v27 = vpop.xlane.xlu1 %3478  ;;  %v15681_v3 = vld [vmem:[#allocation14_spill] sm:$0xff]  ;;  %v4013_v6 = vsub.f32 %v11637_v53, %v11853_v23  ;;  %v11938_v24 = vpop.eup %9114 }
 0x784   : > { %3506 = vadd.xlane.f32.xlu1 %v3505_v63  ;;  %v11931_v17 = vadd.f32 %v11763_v11, %v15681_v3  ;;  %9116 = vrcp.f32 %v3479_v27  ;;  %v3512_v23 = vsel %vm3277_vm9, %v11938_v24, 0.0  ;;  %v4019_v63 = vsub.f32 %v11694_v46, %v11887_v50  ;;  %v15683_v3 = vld [vmem:[#allocation20_spill] sm:$0xff] }
 0x785   : > { %v3571_v7 = vpack.c.bf16 %v3543_v20, %v3541_v26  ;;  %v3572_v51 = vpack.c.bf16 %v3544_v32, %v3542_v33  ;;  %9118 = vpow2.f32 %v3444_v44  ;;  %v4016_v44 = vsub.f32 %v11644_v56, %v11859_v49  ;;  %v15682_v26 = vld [vmem:[#allocation19_spill] sm:$0xff] }
 0x786   : > { %9120 = vrcp.f32 %v3475_v40  ;;  %v3978_v37 = vmax.f32 %v11931_v17, %v3977_v34  ;;  %v11957_v20 = vadd.f32 %v11766_v31, %v15682_v26  ;;  %v4051_v46 = vmul.f32 1.442695, %v4015_v28 }
 0x787   : > { %3634 = vmatmul.bf16.gmra.mxu1 %v3571_v7  ;;  %8258 = vmatmul.msk.bf16.gmra.mxu2 %vm3277_vm9, %v3572_v51  ;;  %v4047_v51 = vmul.f32 1.442695, %v4013_v6  ;;  %9122 = vpow2.f32 %v4049_v38  ;;  %v4053_v32 = vmul.f32 1.442695, %v4016_v44  ;;  %v4059_v50 = vmul.f32 1.442695, %v4019_v63 }
 0x788   : > { %v4018_v31 = vsub.f32 %v11662_v21, %v11871_v19  ;;  %v4017_v21 = vsub.f32 %v11665_v55, %v11871_v19 }
 0x789   : > { %9124 = vpow2.f32 %v4047_v51 }
 0x78a   : > { %v9117_v11 = vpop.eup %9116  ;;  %9126 = vpow2.f32 %v4061_v8 }
 0x78b   : > { %v11936_v42 = vpop.xlane.xlu2 %3482  ;;  %v11944_v53 = vpop.eup %9118  ;;  %v3548_v33 = vmul.f32 %v9117_v11, %v11730_v9  ;;  %v3547_v56 = vmul.f32 %v9117_v11, %v11728_v59  ;;  %9128 = vpow2.f32 %v4053_v32 }
 0x78c   : > { %3979 = vmax.xlane.f32.xlu1 %v3978_v37  ;;  %v9121_v54 = vpop.eup %9120  ;;  %v3513_v40 = vadd.f32 %v11944_v53, %v3512_v23  ;;  %9130 = vpow2.f32 %v4059_v50  ;;  %v4057_v37 = vmul.f32 1.442695, %v4018_v31  ;;  %v15686_v31 = vld [vmem:[#allocation23_spill] sm:$0xff] }
 0x78d   : > { %v3546_v27 = vmul.f32 %v9121_v54, %v11716_v0  ;;  %v3545_v39 = vmul.f32 %v9121_v54, %v11711_v61  ;;  %v11961_v49 = vpop.eup %9122  ;;  %v3981_v61 = vsel %vm3277_vm9, %v11957_v20, -inf  ;;  %9132 = vpow2.f32 %v4051_v46  ;;  %v15685_v46 = vld [vmem:[#allocation15_spill] sm:$0xff] }
 0x78e   : > { %v4276_v12 = vpop.permute.xlu0 %4275  ;;  %v4115_v0 = vsel %vm3277_vm9, %v11961_v49, 0.0  ;;  %v12016_v50 = vadd.f32 %v11776_v14, %v15685_v46 }
 0x78f   : > { %4317 = vmatpush.bf16.msrb.mxu1 %v4276_v12  ;;  %v3573_v9 = vpack.c.bf16 %v3547_v56, %v3545_v39  ;;  %v3574_v29 = vpack.c.bf16 %v3548_v33, %v3546_v27  ;;  %v11966_v34 = vpop.eup %9124  ;;  %v15684_v27 = vld [vmem:[#allocation22_spill] sm:$0xff] }
 0x790   : > { %v4116_v48 = vadd.f32 %v11966_v34, %v4115_v0  ;;  %v11982_v11 = vpop.eup %9126  ;;  %v3985_v14 = vsel %vm3277_vm9, %v12016_v50, -inf  ;;  %v15687_v0 = vld [vmem:[#allocation16_spill] sm:$0xff] }
 0x791   : > { %v11984_v44 = vpop.eup %9128  ;;  %v4127_v55 = vsel %vm3277_vm9, %v11982_v11, 0.0 }
 0x792   : > { %v4119_v23 = vsel %vm3277_vm9, %v11984_v44, 0.0 }
 0x793   : > { %v3972_v7 = vpop.xlane.xlu2 %3971 }
 0x794   : > { %3514 = vadd.xlane.f32.xlu1 %v3513_v40  ;;  %v4026_v59 = vsub.f32 %v11743_v2, %v3972_v7  ;;  %v11975_v2 = vadd.f32 %v11770_v13, %v15683_v3  ;;  %v4025_v6 = vsub.f32 %v11748_v47, %v3972_v7  ;;  %v4055_v13 = vmul.f32 1.442695, %v4017_v21  ;;  %v11986_v47 = vpop.eup %9130 }
 0x795   : > { %v11990_v19 = vpop.eup %9132  ;;  %v4128_v54 = vadd.f32 %v11986_v47, %v4127_v55  ;;  %v12011_v7 = vadd.f32 %v11855_v15, %v15684_v27  ;;  %v15691_v55 = vld [vmem:[#allocation28_spill] sm:$0xff]  ;;  %v15693_v27 = vld [vmem:[#allocation18_spill] sm:$0xff] }
 0x796   : > { %v4073_v38 = vmul.f32 1.442695, %v4026_v59  ;;  %v3982_v51 = vmax.f32 %v11975_v2, %v3981_v61  ;;  %v4071_v12 = vmul.f32 1.442695, %v4025_v6  ;;  %v4120_v28 = vadd.f32 %v11990_v19, %v4119_v23  ;;  %v15688_v6 = vld [vmem:[#allocation27_spill] sm:$0xff] }
 0x797   : > { %3639 = vmatmul.bf16.gmra.mxu1 %v3573_v9  ;;  %8259 = vmatmul.msk.bf16.gmra.mxu2 %vm3277_vm9, %v3574_v29  ;;  %v4022_v29 = vsub.f32 %v11700_v4, %v11905_v60  ;;  %v4001_v15 = vsel %vm3277_vm9, %v12011_v7, -inf  ;;  %v12025_v61 = vadd.f32 %v11861_v35, %v15686_v31  ;;  %v4021_v21 = vsub.f32 %v15688_v6, %v11905_v60  ;;  %v8828_v6 = vld [vmem:[%s9760_s24 + $0x10] sm:$0xff] }
 0x798   : > { %9134 = vpow2.f32 %v4073_v38 }
 0x799   : > { %9136 = vpow2.f32 %v4057_v37  ;;  %v4002_v4 = vmax.f32 %v12025_v61, %v4001_v15  ;;  %v4065_v38 = vmul.f32 1.442695, %v4022_v29  ;;  %v8829_v15 = vld [vmem:[%s9760_s24 + $0x18] sm:$0xff] }
 0x79a   : > { %9138 = vpow2.f32 %v4071_v12  ;;  %v15690_v12 = vld [vmem:[#allocation29_spill] sm:$0xff]  ;;  %4591 = vmatpush.bf16.msrb.mxu0 %v8829_v15 }
 0x79b   : > { %9140 = vpow2.f32 %v4055_v13  ;;  %v3976_v9 = vpop.xlane.xlu2 %3975 }
 0x79c   : > { %3983 = vmax.xlane.f32.xlu0 %v3982_v51  ;;  %4117 = vadd.xlane.f32.xlu1 %v4116_v48  ;;  %9142 = vrcp.f32 %v11936_v42  ;;  %v12031_v42 = vadd.f32 %v11786_v41, %v15687_v0  ;;  %v15689_v48 = vld [vmem:[#allocation17_spill] sm:$0xff] }
 0x79d   : > { %v12039_v35 = vadd.f32 %v11797_v52, %v15689_v48  ;;  %v9548_v48 = vld [vmem:[%s15636_s28 + $0xc0] sm:$0xff] }
 0x79e   : > { %v11996_v63 = vpop.eup %9134  ;;  %v3986_v37 = vmax.f32 %v12031_v42, %v3985_v14  ;;  %v15694_v14 = vld [vmem:[#allocation21_spill] sm:$0xff]  ;;  %4592 = vmatpush.bf16.msrb.mxu0 %v8828_v6 }
 0x79f   : > { %v11998_v8 = vpop.eup %9136  ;;  %v4139_v56 = vsel %vm3277_vm9, %v11996_v63, 0.0  ;;  %v12069_v0 = vadd.f32 %v11815_v18, %v15694_v14  ;;  %v12082_v18 = vadd.f32 %v9548_v48, %v11826_v16 }
 0x7a0   : > { %v12000_v33 = vpop.eup %9138  ;;  %v4123_v40 = vsel %vm3277_vm9, %v11998_v8, 0.0 }
 0x7a1   : > { %v12004_v32 = vpop.eup %9140  ;;  %v4140_v26 = vadd.f32 %v12000_v33, %v4139_v56  ;;  %v15692_v56 = vld [vmem:[#allocation12_spill] sm:$0xff] }
 0x7a2   : > { %4129 = vadd.xlane.f32.xlu2 %v4128_v54  ;;  %v4124_v39 = vadd.f32 %v12004_v32, %v4123_v40  ;;  %v9143_v3 = vpop.eup %9142  ;;  %v4063_v54 = vmul.f32 1.442695, %v4021_v21 }
 0x7a3   : > { %v3550_v13 = vmul.f32 %v9143_v3, %v15690_v12  ;;  %v3549_v23 = vmul.f32 %v9143_v3, %v15691_v55  ;;  %v15696_v12 = vld [vmem:[#allocation31_spill] sm:$0xff] }
 0x7a4   : > { %4121 = vadd.xlane.f32.xlu0 %v4120_v28 }
 0x7aa   : > { %4141 = vadd.xlane.f32.xlu2 %v4140_v26  ;;  %v3989_v26 = vsel %vm3277_vm9, %v12039_v35, -inf }
 0x7ac   : > { %4125 = vadd.xlane.f32.xlu0 %v4124_v39  ;;  %v3487_v59 = vpop.xlane.xlu1 %3486 }
 0x7ad   : > { %9144 = vrcp.f32 %v3487_v59 }
 0x7ae   : > { %9146 = vpow2.f32 %v4065_v38 }
 0x7af   : > { %9148 = vpow2.f32 %v4063_v54  ;;  %v9549_v54 = vld [vmem:[%s15636_s28 + $0xd8] sm:$0xff] }
 0x7b2   : > { %4003 = vmax.xlane.f32.xlu2 %v4002_v4  ;;  %v15695_v4 = vld [vmem:[#allocation30_spill] sm:$0xff] }
 0x7b3   : > { %v9145_v51 = vpop.eup %9144  ;;  %v4028_v38 = vsub.f32 %v15695_v4, %v3976_v9 }
 0x7b4   : > { %v3552_v41 = vmul.f32 %v9145_v51, %v11778_v22  ;;  %3987 = vmax.xlane.f32.xlu0 %v3986_v37  ;;  %v3551_v60 = vmul.f32 %v9145_v51, %v11774_v5  ;;  %v12045_v28 = vpop.xlane.xlu2 %3498  ;;  %v12053_v22 = vadd.f32 %v11810_v25, %v15693_v27  ;;  %v12057_v39 = vpop.eup %9146  ;;  %v8827_v37 = vld [vmem:[%s9760_s24 + $0x8] sm:$0xff]  ;;  %v3993_v51 = vsel %vm3277_vm9, %v12069_v0, -inf  ;;  %v9550_v27 = vld [vmem:[%s15636_s28 + $0xd0] sm:$0xff] }
 0x7b5   : > { %4261 = vrot.lane.b32.xlu1 %v15692_v56, %s9620_s29  ;;  %v12061_v29 = vpop.eup %9148  ;;  %v4131_v25 = vsel %vm3277_vm9, %v12057_v39, 0.0  ;;  %4593 = vmatpush.bf16.msrb.mxu0 %v8827_v37  ;;  %v12091_v56 = vadd.f32 %v9549_v54, %v11832_v30  ;;  %v9551_v37 = vld [vmem:[%s15636_s28 + $0xf8] sm:$0xff] }
 0x7b6   : > { %v3575_v52 = vpack.c.bf16 %v3551_v60, %v3549_v23  ;;  %v3576_v40 = vpack.c.bf16 %v3552_v41, %v3550_v13  ;;  %v3990_v5 = vmax.f32 %v12053_v22, %v3989_v26  ;;  %v4132_v31 = vadd.f32 %v12061_v29, %v4131_v25  ;;  %v8826_v26 = vld [vmem:[%s9760_s24] sm:$0xff] }
 0x7b7   : > { %v4027_v13 = vsub.f32 %v15696_v12, %v3976_v9  ;;  %v4077_v23 = vmul.f32 1.442695, %v4028_v38  ;;  %v3994_v60 = vmax.f32 %v12082_v18, %v3993_v51  ;;  %v12122_v51 = vadd.f32 %v9551_v37, %v11867_v58 }
 0x7b8   : > { %3644 = vmatmul.bf16.gmra.mxu1 %v3575_v52  ;;  %8260 = vmatmul.msk.bf16.gmra.mxu2 %vm3277_vm9, %v3576_v40 }
 0x7b9   : > { %v3968_v59 = vpop.xlane.xlu0 %3967  ;;  %v4075_v52 = vmul.f32 1.442695, %v4027_v13  ;;  %9150 = vpow2.f32 %v4077_v23  ;;  %4594 = vmatpush.bf16.msrb.mxu0 %v8826_v26  ;;  %v4005_v13 = vsel %vm3277_vm9, %v12122_v51, -inf  ;;  %v15697_v23 = vld [vmem:[#allocation10_spill] sm:$0xff] }
 0x7ba   : > { %v4024_v55 = vsub.f32 %v11793_v62, %v3968_v59  ;;  %v4023_v16 = vsub.f32 %v11807_v10, %v3968_v59  ;;  %v3997_v62 = vsel %vm3277_vm9, %v12091_v56, -inf }
 0x7bb   : > { %9152 = vpow2.f32 %v4075_v52 }
 0x7bc   : > { %3991 = vmax.xlane.f32.xlu0 %v3990_v5  ;;  %v12059_v46 = vpop.permute.xlu2 %4269  ;;  %v4069_v40 = vmul.f32 1.442695, %v4024_v55  ;;  %v12101_v5 = vadd.f32 %v9550_v27, %v11839_v57  ;;  %v4067_v30 = vmul.f32 1.442695, %v4023_v16  ;;  %v9552_v55 = vld [vmem:[%s15636_s28 + $0xf0] sm:$0xff] }
 0x7be   : > { %9154 = vpow2.f32 %v4069_v40  ;;  %v3998_v59 = vmax.f32 %v12101_v5, %v3997_v62 }
 0x7bf   : > { %v12104_v25 = vpop.eup %9150  ;;  %9156 = vpow2.f32 %v4067_v30 }
 0x7c0   : > { %v4143_v57 = vsel %vm3277_vm9, %v12104_v25, 0.0 }
 0x7c1   : > { %v3491_v41 = vpop.xlane.xlu0 %3490 }
 0x7c2   : > { %9158 = vrcp.f32 %v3491_v41 }
 0x7c4   : > { %4133 = vadd.xlane.f32.xlu0 %v4132_v31  ;;  %v4274_v3 = vpop.permute.xlu1 %4273  ;;  %v12072_v21 = vpop.permute.xlu2 %4267 }
 0x7c5   : > { %4318 = vmatpush.bf16.msrb.mxu1 %v4274_v3  ;;  %v12106_v31 = vpop.eup %9152 }
 0x7c6   : > { %v12109_v3 = vpop.eup %9154  ;;  %v4144_v4 = vadd.f32 %v12106_v31, %v4143_v57 }
 0x7c7   : > { %v12113_v6 = vpop.eup %9156  ;;  %v4135_v38 = vsel %vm3277_vm9, %v12109_v3, 0.0 }
 0x7c8   : > { %v4136_v12 = vadd.f32 %v12113_v6, %v4135_v38  ;;  %v15698_v38 = vld [vmem:[#allocation34_spill] sm:$0xff] }
 0x7c9   : > { %v3503_v10 = vpop.xlane.xlu0 %3502 }
 0x7cc   : > { %3995 = vmax.xlane.f32.xlu0 %v3994_v60  ;;  %v4266_v9 = vpop.permute.xlu2 %4265  ;;  %v12133_v60 = vadd.f32 %v9552_v55, %v15697_v23 }
 0x7ce   : > { %v4006_v58 = vmax.f32 %v12133_v60, %v4005_v13  ;;  %v15699_v13 = vld [vmem:[#allocation35_spill] sm:$0xff] }
 0x7d1   : > { %v12124_v48 = vpop.xlane.xlu0 %3510 }
 0x7d4   : > { %3999 = vmax.xlane.f32.xlu0 %v3998_v59  ;;  %v4278_v15 = vpop.permute.xlu2 %4277 }
 0x7d5   : > { %v4315_v14 = vsel %vm3612_vm10, %v4278_v15, 0  ;;  %v9159_v15 = vpop.eup %9158 }
 0x7d6   : > { %4377 = vmatpush.bf16.msrb.mxu2 %v4315_v14  ;;  %v3553_v55 = vmul.f32 %v9159_v15, %v15699_v13 }
 0x7dc   : > { %4145 = vadd.xlane.f32.xlu0 %v4144_v4  ;;  %v3625_v54 = vpop.f32.mrf.mxu1  ;;  %v4264_v14 = vpop.permute.xlu2 %4263 }
 0x7df   : > { %4137 = vadd.xlane.f32.xlu1 %v4136_v12 }
 0x7e2   : > { %v3678_v52 = vpop.f32.mrf.mxu2 }
 0x7e3   : > { %v3679_v62 = vadd.f32 %v3678_v52, %v3625_v54 }
 0x7e4   : > { %v4272_v16 = vpop.permute.xlu0 %4271  ;;  %4007 = vmax.xlane.f32.xlu0 %v4006_v58  ;;  %v3627_v40 = vpop.f32.mrf.mxu1 }
 0x7e5   : > { %4319 = vmatpush.bf16.msrb.mxu1 %v4272_v16 }
 0x7e9   : > { %4320 = vmatpush.bf16.msrb.mxu1 %v12059_v46  ;;  %v3554_v46 = vmul.f32 %v9159_v15, %v15698_v38  ;;  %v15700_v15 = vld [vmem:[#allocation36_spill] sm:$0xff]  ;;  %v15702_v38 = vld [vmem:[#allocation33_spill] sm:$0xff] }
 0x7ea   : > { %v3680_v26 = vpop.f32.mrf.mxu2 }
 0x7eb   : > { %v3681_v27 = vadd.f32 %v3680_v26, %v3627_v40 }
 0x7ed   : > { %v3722_v30 = vpack.c.bf16 %v3681_v27, %v3679_v62  ;;  %4321 = vmatpush.bf16.msrb.mxu1 %v12072_v21 }
 0x7ef   : > { %8333 = vmatmul.msk.bf16.vlgmr.msrb.gmra.mxu0 %vm3116_vm8, %v3722_v30  ;;  %v3495_v59 = vpop.xlane.xlu1 %3494 }
 0x7f0   : > { %9160 = vrcp.f32 %v3495_v59 }
 0x7f1   : > { %4322 = vmatpush.bf16.msrb.mxu1 %v4266_v9  ;;  %9162 = vrcp.f32 %v3503_v10 }
 0x7f2   : > { %9164 = vrcp.f32 %v12045_v28 }
 0x7f4   : > { %v3630_v57 = vpop.f32.mrf.mxu1 }
 0x7f5   : > { %4323 = vmatpush.bf16.msrb.mxu1 %v4264_v14 }
 0x7f6   : > { %v9161_v4 = vpop.eup %9160 }
 0x7f7   : > { %v3556_v37 = vmul.f32 %v9161_v4, %v11891_v1  ;;  %v3507_v12 = vpop.xlane.xlu1 %3506  ;;  %v3555_v21 = vmul.f32 %v9161_v4, %v11895_v43  ;;  %v9163_v16 = vpop.eup %9162  ;;  %v15701_v4 = vld [vmem:[#allocation37_spill] sm:$0xff] }
 0x7f8   : > { %v9165_v30 = vpop.eup %9164  ;;  %v3560_v14 = vmul.f32 %v9163_v16, %v15700_v15  ;;  %v3559_v28 = vmul.f32 %v9163_v16, %v15701_v4 }
 0x7f9   : > { %v3577_v41 = vpack.c.bf16 %v3555_v21, %v3553_v55  ;;  %v3578_v23 = vpack.c.bf16 %v3556_v37, %v3554_v46  ;;  %v3558_v46 = vmul.f32 %v9165_v30, %v15702_v38 }
 0x7fa   : > { %v3683_v54 = vpop.f32.mrf.mxu2 }
 0x7fb   : > { %3649 = vmatmul.bf16.gmra.mxu1 %v3577_v41  ;;  %8261 = vmatmul.msk.bf16.gmra.mxu2 %vm3277_vm9, %v3578_v23  ;;  %v3684_v43 = vadd.f32 %v3683_v54, %v3630_v57  ;;  %v3580_v13 = vpack.c.bf16 %v3560_v14, %v3558_v46 }
 0x7fc   : > { %v3632_v9 = vpop.f32.mrf.mxu1 }
 0x7ff   : > { %v3980_v52 = vpop.xlane.xlu1 %3979 }
 0x800   : > { %v4029_v58 = vsub.f32 %v11931_v17, %v3980_v52  ;;  %v4030_v1 = vsub.f32 %v11917_v45, %v3980_v52  ;;  %v15703_v45 = vld [vmem:[#allocation32_spill] sm:$0xff] }
 0x801   : > { %v3557_v17 = vmul.f32 %v9165_v30, %v15703_v45 }
 0x802   : > { %v4079_v40 = vmul.f32 1.442695, %v4029_v58  ;;  %v4081_v26 = vmul.f32 1.442695, %v4030_v1  ;;  %v3685_v62 = vpop.f32.mrf.mxu2 }
 0x803   : > { %v3686_v27 = vadd.f32 %v3685_v62, %v3632_v9  ;;  %v3579_v37 = vpack.c.bf16 %v3559_v28, %v3557_v17 }
 0x804   : > { %9166 = vpow2.f32 %v4079_v40  ;;  %v3635_v59 = vpop.f32.mrf.mxu1 }
 0x805   : > { %9168 = vpow2.f32 %v4081_v26  ;;  %v3723_v10 = vpack.c.bf16 %v3686_v27, %v3684_v43  ;;  %v15704_v27 = vld [vmem:[#allocation9_spill] sm:$0xff] }
 0x806   : > { %9170 = vrcp.f32 %v3507_v12 }
 0x807   : > { %8334 = vmatmul.msk.bf16.gmra.mxu0 %vm3116_vm8, %v3723_v10  ;;  %9172 = vrcp.f32 %v12124_v48  ;;  %v3515_v15 = vpop.xlane.xlu1 %3514  ;;  %v15705_v10 = vld [vmem:[#allocation38_spill] sm:$0xff] }
 0x80a   : > { %v12152_v55 = vpop.eup %9166  ;;  %v3688_v57 = vpop.f32.mrf.mxu2 }
 0x80b   : > { %v12154_v21 = vpop.eup %9168  ;;  %3654 = vmatmul.bf16.gmra.mxu1 %v3579_v37  ;;  %8262 = vmatmul.msk.bf16.gmra.mxu2 %vm3277_vm9, %v3580_v13  ;;  %v3689_v62 = vadd.f32 %v3688_v57, %v3635_v59 }
 0x80c   : > { %v4147_v41 = vsel %vm3277_vm9, %v12154_v21, 0.0  ;;  %v3637_v54 = vpop.f32.mrf.mxu1  ;;  %v9171_v1 = vpop.eup %9170 }
 0x80d   : > { %v4148_v23 = vadd.f32 %v12152_v55, %v4147_v41  ;;  %v9173_v43 = vpop.eup %9172  ;;  %v3562_v30 = vmul.f32 %v9171_v1, %v15704_v27  ;;  %v3561_v14 = vmul.f32 %v9171_v1, %v11909_v36 }
 0x80e   : > { %v3564_v4 = vmul.f32 %v9173_v43, %v15705_v10 }
 0x80f   : > { %4149 = vadd.xlane.f32.xlu2 %v4148_v23  ;;  %v3984_v9 = vpop.xlane.xlu0 %3983  ;;  %v4118_v57 = vpop.xlane.xlu1 %4117 }
 0x810   : > { %v4031_v52 = vsub.f32 %v11975_v2, %v3984_v9  ;;  %v4032_v58 = vsub.f32 %v11957_v20, %v3984_v9  ;;  %v15706_v20 = vld [vmem:[#allocation39_spill] sm:$0xff]  ;;  %v3582_v59 = vpack.c.bf16 %v3564_v4, %v3562_v30 }
 0x811   : > { %v3563_v28 = vmul.f32 %v9173_v43, %v15706_v20 }
 0x812   : > { %v4083_v16 = vmul.f32 1.442695, %v4031_v52  ;;  %v4085_v40 = vmul.f32 1.442695, %v4032_v58  ;;  %v3690_v26 = vpop.f32.mrf.mxu2 }
 0x813   : > { %v3691_v12 = vadd.f32 %v3690_v26, %v3637_v54  ;;  %v3581_v46 = vpack.c.bf16 %v3563_v28, %v3561_v14 }
 0x814   : > { %9174 = vpow2.f32 %v4083_v16  ;;  %v3640_v38 = vpop.f32.mrf.mxu1 }
 0x815   : > { %9176 = vpow2.f32 %v4085_v40  ;;  %v3724_v48 = vpack.c.bf16 %v3691_v12, %v3689_v62 }
 0x816   : > { %9178 = vrcp.f32 %v3515_v15  ;;  %v4130_v15 = vpop.xlane.xlu2 %4129 }
 0x817   : > { %v4122_v2 = vpop.xlane.xlu0 %4121  ;;  %8335 = vmatmul.msk.bf16.gmra.mxu0 %vm3116_vm8, %v3724_v48  ;;  %9180 = vrcp.f32 %v4118_v57 }
 0x818   : > { %9182 = vrcp.f32 %v4122_v2 }
 0x81a   : > { %v12168_v45 = vpop.eup %9174  ;;  %v3693_v17 = vpop.f32.mrf.mxu2 }
 0x81b   : > { %v12170_v37 = vpop.eup %9176  ;;  %3659 = vmatmul.bf16.gmra.mxu1 %v3581_v46  ;;  %8263 = vmatmul.msk.bf16.gmra.mxu2 %vm3277_vm9, %v3582_v59  ;;  %v3694_v52 = vadd.f32 %v3693_v17, %v3640_v38 }
 0x81c   : > { %v4151_v36 = vsel %vm3277_vm9, %v12170_v37, 0.0  ;;  %v9179_v23 = vpop.eup %9178  ;;  %v3642_v54 = vpop.f32.mrf.mxu1 }
 0x81d   : > { %v4152_v13 = vadd.f32 %v12168_v45, %v4151_v36  ;;  %v3566_v1 = vmul.f32 %v9179_v23, %v11938_v24  ;;  %v3565_v40 = vmul.f32 %v9179_v23, %v11944_v53  ;;  %v9181_v10 = vpop.eup %9180 }
 0x81e   : > { %v12188_v46 = vpop.xlane.xlu2 %4141  ;;  %v4200_v17 = vmul.f32 %v9181_v10, %v11966_v34  ;;  %v4201_v36 = vmul.f32 %v9181_v10, %v11961_v49 }
 0x81f   : > { %4153 = vadd.xlane.f32.xlu0 %v4152_v13  ;;  %v4126_v41 = vpop.xlane.xlu0 %4125  ;;  %v3583_v27 = vpack.c.bf16 %v3565_v40, %v3565_v40  ;;  %v3584_v30 = vpack.c.bf16 %v3566_v1, %v3566_v1  ;;  %v15707_v1 = vld [vmem:[#allocation24_spill] sm:$0xff] }
 0x822   : > { %v3695_v9 = vpop.f32.mrf.mxu2 }
 0x823   : > { %v3696_v58 = vadd.f32 %v3695_v9, %v3642_v54 }
 0x825   : > { %v3725_v16 = vpack.c.bf16 %v3696_v58, %v3694_v52  ;;  %v9553_v58 = vld [vmem:[%s15636_s28 + $0x108] sm:$0xff] }
 0x826   : > { %v4004_v52 = vpop.xlane.xlu2 %4003 }
 0x827   : > { %v3988_v26 = vpop.xlane.xlu0 %3987  ;;  %v4262_v62 = vpop.permute.xlu1 %4261  ;;  %8336 = vmatmul.msk.bf16.gmra.mxu0 %vm3116_vm8, %v3725_v16  ;;  %v12211_v16 = vadd.f32 %v9553_v58, %v15707_v1 }
 0x828   : > { %v4033_v12 = vsub.f32 %v12031_v42, %v3988_v26  ;;  %v4034_v43 = vsub.f32 %v12016_v50, %v3988_v26  ;;  %4324 = vmatpush.bf16.msrb.mxu1 %v4262_v62  ;;  %v9183_v50 = vpop.eup %9182  ;;  %v15708_v26 = vld [vmem:[#allocation25_spill] sm:$0xff] }
 0x829   : > { %v4202_v2 = vmul.f32 %v9183_v50, %v11990_v19  ;;  %v4203_v59 = vmul.f32 %v9183_v50, %v11984_v44 }
 0x82a   : > { %v4087_v48 = vmul.f32 1.442695, %v4033_v12  ;;  %v4089_v14 = vmul.f32 1.442695, %v4034_v43 }
 0x82b   : > { %3664 = vmatmul.bf16.gmra.mxu1 %v3583_v27  ;;  %8264 = vmatmul.msk.bf16.gmra.mxu2 %vm3277_vm9, %v3584_v30  ;;  %v4234_v57 = vpack.c.bf16 %v4202_v2, %v4200_v17  ;;  %v4235_v23 = vpack.c.bf16 %v4203_v59, %v4201_v36  ;;  %v4042_v27 = vsub.f32 %v12011_v7, %v4004_v52 }
 0x82c   : > { %9184 = vpow2.f32 %v4087_v48 }
 0x82d   : > { %9186 = vpow2.f32 %v4089_v14  ;;  %v4041_v14 = vsub.f32 %v12025_v61, %v4004_v52 }
 0x82f   : > { %v3992_v24 = vpop.xlane.xlu0 %3991  ;;  %v4103_v59 = vmul.f32 1.442695, %v4041_v14 }
 0x830   : > { %v4035_v53 = vsub.f32 %v12053_v22, %v3992_v24  ;;  %v4036_v42 = vsub.f32 %v12039_v35, %v3992_v24 }
 0x832   : > { %v4091_v4 = vmul.f32 1.442695, %v4035_v53  ;;  %v4093_v20 = vmul.f32 1.442695, %v4036_v42  ;;  %v12184_v28 = vpop.eup %9184  ;;  %v4009_v42 = vsel %vm3277_vm9, %v12211_v16, -inf }
 0x833   : > { %v12186_v38 = vpop.eup %9186 }
 0x834   : > { %9188 = vpow2.f32 %v4091_v4  ;;  %v4155_v22 = vsel %vm3277_vm9, %v12186_v38, 0.0 }
 0x835   : > { %9190 = vpow2.f32 %v4093_v20  ;;  %v4156_v35 = vadd.f32 %v12184_v28, %v4155_v22  ;;  %v3645_v54 = vpop.f32.mrf.mxu1  ;;  %v4105_v20 = vmul.f32 1.442695, %v4042_v27 }
 0x836   : > { %9192 = vrcp.f32 %v4126_v41  ;;  %v9554_v41 = vld [vmem:[%s15636_s28 + $0x100] sm:$0xff] }
 0x837   : > { %v12197_v13 = vpop.xlane.xlu0 %4133  ;;  %4157 = vadd.xlane.f32.xlu1 %v4156_v35  ;;  %9194 = vrcp.f32 %v4130_v15  ;;  %v12217_v62 = vadd.f32 %v9554_v41, %v15708_v26 }
 0x83a   : > { %v12199_v9 = vpop.eup %9188 }
 0x83b   : > { %v12201_v19 = vpop.eup %9190  ;;  %v3698_v44 = vpop.f32.mrf.mxu2  ;;  %4325 = vmatmul.bf16.vlgmr.msrb.gmra.mxu1 %v4234_v57  ;;  %8283 = vmatmul.msk.bf16.vlgmr.msrb.gmra.mxu2 %vm3277_vm9, %v4235_v23 }
 0x83c   : > { %v4159_v34 = vsel %vm3277_vm9, %v12201_v19, 0.0  ;;  %v9193_v30 = vpop.eup %9192  ;;  %v3699_v50 = vadd.f32 %v3698_v44, %v3645_v54 }
 0x83d   : > { %v4160_v49 = vadd.f32 %v12199_v9, %v4159_v34  ;;  %v3647_v24 = vpop.f32.mrf.mxu1  ;;  %v9195_v10 = vpop.eup %9194  ;;  %v4204_v7 = vmul.f32 %v9193_v30, %v12004_v32 }
 0x83e   : > { %v4207_v61 = vmul.f32 %v9195_v10, %v11982_v11  ;;  %v4206_v35 = vmul.f32 %v9195_v10, %v11986_v47 }
 0x83f   : > { %4161 = vadd.xlane.f32.xlu2 %v4160_v49  ;;  %v3996_v40 = vpop.xlane.xlu0 %3995 }
 0x840   : > { %v4037_v12 = vsub.f32 %v12082_v18, %v3996_v40  ;;  %v4038_v43 = vsub.f32 %v12069_v0, %v3996_v40  ;;  %v4010_v18 = vmax.f32 %v12217_v62, %v4009_v42  ;;  %v4205_v0 = vmul.f32 %v9193_v30, %v11998_v8 }
 0x841   : > { %v4236_v8 = vpack.c.bf16 %v4206_v35, %v4204_v7 }
 0x842   : > { %v4095_v15 = vmul.f32 1.442695, %v4037_v12  ;;  %v4097_v48 = vmul.f32 1.442695, %v4038_v43  ;;  %v4237_v57 = vpack.c.bf16 %v4207_v61, %v4205_v0 }
 0x843   : > { %v3700_v53 = vpop.f32.mrf.mxu2 }
 0x844   : > { %9196 = vpow2.f32 %v4095_v15  ;;  %v3701_v4 = vadd.f32 %v3700_v53, %v3647_v24 }
 0x845   : > { %9198 = vpow2.f32 %v4097_v48 }
 0x846   : > { %v3726_v2 = vpack.c.bf16 %v3701_v4, %v3699_v50  ;;  %9200 = vpow2.f32 %v4105_v20 }
 0x847   : > { %4011 = vmax.xlane.f32.xlu2 %v4010_v18  ;;  %v4000_v22 = vpop.xlane.xlu0 %3999  ;;  %9202 = vpow2.f32 %v4103_v59 }
 0x848   : > { %v4039_v17 = vsub.f32 %v12101_v5, %v4000_v22  ;;  %v4040_v36 = vsub.f32 %v12091_v56, %v4000_v22  ;;  %8337 = vmatmul.msk.bf16.gmra.mxu0 %vm3116_vm8, %v3726_v2  ;;  %v8833_v2 = vld [vmem:[%s9760_s24 + $0x38] sm:$0xff] }
 0x849   : > { %4487 = vmatpush.bf16.msra.mxu3 %v8833_v2 }
 0x84a   : > { %v12233_v23 = vpop.eup %9196  ;;  %v4099_v32 = vmul.f32 1.442695, %v4039_v17  ;;  %v4101_v54 = vmul.f32 1.442695, %v4040_v36 }
 0x84b   : > { %v12235_v44 = vpop.eup %9198  ;;  %4330 = vmatmul.bf16.gmra.mxu1 %v4236_v8  ;;  %8284 = vmatmul.msk.bf16.gmra.mxu2 %vm3277_vm9, %v4237_v57 }
 0x84c   : > { %9204 = vpow2.f32 %v4099_v32  ;;  %v4163_v11 = vsel %vm3277_vm9, %v12235_v44, 0.0  ;;  %v12241_v56 = vpop.eup %9200  ;;  %v8832_v32 = vld [vmem:[%s9760_s24 + $0x30] sm:$0xff] }
 0x84d   : > { %9206 = vpow2.f32 %v4101_v54  ;;  %v4164_v47 = vadd.f32 %v12233_v23, %v4163_v11  ;;  %v12244_v34 = vpop.eup %9202  ;;  %v4171_v58 = vsel %vm3277_vm9, %v12241_v56, 0.0  ;;  %4488 = vmatpush.bf16.msra.mxu3 %v8832_v32 }
 0x84e   : > { %9208 = vrcp.f32 %v12197_v13  ;;  %v4172_v26 = vadd.f32 %v12244_v34, %v4171_v58 }
 0x84f   : > { %4165 = vadd.xlane.f32.xlu0 %v4164_v47  ;;  %v4146_v5 = vpop.xlane.xlu0 %4145 }
 0x852   : > { %v12246_v49 = vpop.eup %9204  ;;  %v4138_v52 = vpop.xlane.xlu1 %4137 }
 0x853   : > { %v12250_v1 = vpop.eup %9206  ;;  %9210 = vrcp.f32 %v4138_v52 }
 0x854   : > { %v4167_v40 = vsel %vm3277_vm9, %v12250_v1, 0.0  ;;  %v9209_v12 = vpop.eup %9208 }
 0x855   : > { %v4168_v41 = vadd.f32 %v12246_v49, %v4167_v40  ;;  %v4209_v15 = vmul.f32 %v9209_v12, %v12057_v39  ;;  %v4208_v48 = vmul.f32 %v9209_v12, %v12061_v29 }
 0x857   : > { %4169 = vadd.xlane.f32.xlu1 %v4168_v41  ;;  %4173 = vadd.xlane.f32.xlu0 %v4172_v26  ;;  %v4008_v13 = vpop.xlane.xlu0 %4007 }
 0x858   : > { %v4043_v43 = vsub.f32 %v12133_v60, %v4008_v13  ;;  %v4044_v27 = vsub.f32 %v12122_v51, %v4008_v13 }
 0x859   : > { %v9211_v30 = vpop.eup %9210 }
 0x85a   : > { %v4211_v14 = vmul.f32 %v9211_v30, %v12109_v3  ;;  %v4107_v24 = vmul.f32 1.442695, %v4043_v43  ;;  %v4109_v53 = vmul.f32 1.442695, %v4044_v27  ;;  %v4210_v42 = vmul.f32 %v9211_v30, %v12113_v6 }
 0x85c   : > { %9212 = vpow2.f32 %v4107_v24  ;;  %v4238_v10 = vpack.c.bf16 %v4210_v42, %v4208_v48  ;;  %v4239_v50 = vpack.c.bf16 %v4211_v14, %v4209_v15  ;;  %v8831_v48 = vld [vmem:[%s9760_s24 + $0x28] sm:$0xff] }
 0x85d   : > { %9214 = vpow2.f32 %v4109_v53  ;;  %4489 = vmatpush.bf16.msra.mxu3 %v8831_v48 }
 0x85e   : > { %4335 = vmatmul.bf16.gmra.mxu1 %v4238_v10  ;;  %8285 = vmatmul.msk.bf16.gmra.mxu2 %vm3277_vm9, %v4239_v50  ;;  %9216 = vrcp.f32 %v4146_v5 }
 0x85f   : > { %9218 = vrcp.f32 %v12188_v46 }
 0x862   : > { %v12264_v39 = vpop.eup %9212 }
 0x863   : > { %v12266_v29 = vpop.eup %9214 }
 0x864   : > { %v4175_v3 = vsel %vm3277_vm9, %v12266_v29, 0.0  ;;  %v9217_v51 = vpop.eup %9216 }
 0x865   : > { %v4176_v6 = vadd.f32 %v12264_v39, %v4175_v3  ;;  %v9219_v60 = vpop.eup %9218  ;;  %v4215_v4 = vmul.f32 %v9217_v51, %v12104_v25  ;;  %v4214_v18 = vmul.f32 %v9217_v51, %v12106_v31 }
 0x866   : > { %v4213_v0 = vmul.f32 %v9219_v60, %v11996_v63  ;;  %v4212_v46 = vmul.f32 %v9219_v60, %v12000_v33 }
 0x867   : > { %4177 = vadd.xlane.f32.xlu1 %v4176_v6 }
 0x868   : > { %v4240_v20 = vpack.c.bf16 %v4214_v18, %v4212_v46  ;;  %v4241_v7 = vpack.c.bf16 %v4215_v4, %v4213_v0 }
 0x86c   : > { %v12286_v53 = vpop.f32.mrf.mxu0 }
 0x86e   : > { %4340 = vmatmul.bf16.gmra.mxu1 %v4240_v20  ;;  %8286 = vmatmul.msk.bf16.gmra.mxu2 %vm3277_vm9, %v4241_v7 }
 0x874   : > { %v12290_v51 = vpop.f32.mrf.mxu0 }
 0x878   : > { %v3650_v61 = vpop.f32.mrf.mxu1 }
 0x87e   : > { %v3703_v59 = vpop.f32.mrf.mxu2 }
 0x87f   : > { %v3704_v17 = vadd.f32 %v3703_v59, %v3650_v61 }
 0x880   : > { %v3652_v22 = vpop.f32.mrf.mxu1 }
 0x882   : > { %v4150_v63 = vpop.xlane.xlu2 %4149 }
 0x883   : > { %9220 = vrcp.f32 %v4150_v63 }
 0x886   : > { %v3705_v35 = vpop.f32.mrf.mxu2 }
 0x887   : > { %v3706_v25 = vadd.f32 %v3705_v35, %v3652_v22  ;;  %v12296_v22 = vpop.f32.mrf.mxu0 }
 0x888   : > { %v3655_v36 = vpop.f32.mrf.mxu1 }
 0x889   : > { %v3727_v31 = vpack.c.bf16 %v3706_v25, %v3704_v17  ;;  %v9221_v11 = vpop.eup %9220 }
 0x88a   : > { %v4217_v41 = vmul.f32 %v9221_v11, %v12154_v21  ;;  %v4216_v12 = vmul.f32 %v9221_v11, %v12152_v55 }
 0x88b   : > { %8338 = vmatmul.msk.bf16.gmra.mxu0 %vm3116_vm8, %v3727_v31 }
 0x88e   : > { %v3708_v33 = vpop.f32.mrf.mxu2 }
 0x88f   : > { %v3709_v47 = vadd.f32 %v3708_v33, %v3655_v36 }
 0x890   : > { %v3657_v8 = vpop.f32.mrf.mxu1 }
 0x892   : > { %v4154_v57 = vpop.xlane.xlu0 %4153 }
 0x893   : > { %9222 = vrcp.f32 %v4154_v57 }
 0x896   : > { %v3710_v54 = vpop.f32.mrf.mxu2 }
 0x897   : > { %v3711_v5 = vadd.f32 %v3710_v54, %v3657_v8 }
 0x898   : > { %v3660_v52 = vpop.f32.mrf.mxu1 }
 0x899   : > { %v9223_v58 = vpop.eup %9222  ;;  %v3728_v40 = vpack.c.bf16 %v3711_v5, %v3709_v47 }
 0x89a   : > { %v4219_v26 = vmul.f32 %v9223_v58, %v12170_v37  ;;  %v4218_v13 = vmul.f32 %v9223_v58, %v12168_v45  ;;  %v8830_v45 = vld [vmem:[%s9760_s24 + $0x20] sm:$0xff] }
 0x89b   : > { %8339 = vmatmul.msk.bf16.gmra.mxu0 %vm3116_vm8, %v3728_v40  ;;  %4490 = vmatpush.bf16.msra.mxu3 %v8830_v45 }
 0x89c   : > { %v4242_v43 = vpack.c.bf16 %v4218_v13, %v4216_v12  ;;  %v4243_v27 = vpack.c.bf16 %v4219_v26, %v4217_v41 }
 0x89e   : > { %4345 = vmatmul.bf16.gmra.mxu1 %v4242_v43  ;;  %8287 = vmatmul.msk.bf16.gmra.mxu2 %vm3277_vm9, %v4243_v27  ;;  %v3713_v30 = vpop.f32.mrf.mxu2 }
 0x89f   : > { %v3714_v24 = vadd.f32 %v3713_v30, %v3660_v52 }
 0x8a0   : > { %v3662_v15 = vpop.f32.mrf.mxu1 }
 0x8a6   : > { %v3715_v14 = vpop.f32.mrf.mxu2 }
 0x8a7   : > { %v3716_v21 = vadd.f32 %v3715_v14, %v3662_v15 }
 0x8a8   : > { %v3665_v37 = vpop.f32.mrf.mxu1 }
 0x8a9   : > { %v3729_v55 = vpack.c.bf16 %v3716_v21, %v3714_v24 }
 0x8aa   : > { %v4158_v42 = vpop.xlane.xlu1 %4157 }
 0x8ab   : > { %8340 = vmatmul.msk.bf16.gmra.mxu0 %vm3116_vm8, %v3729_v55  ;;  %9224 = vrcp.f32 %v4158_v42 }
 0x8ae   : > { %v3718_v10 = vpop.f32.mrf.mxu2 }
 0x8af   : > { %v3719_v6 = vadd.f32 %v3718_v10, %v3665_v37 }
 0x8b0   : > { %v3667_v50 = vpop.f32.mrf.mxu1 }
 0x8b1   : > { %v9225_v4 = vpop.eup %9224  ;;  %v3730_v46 = vpack.c.bf16 %v3719_v6, %v3719_v6 }
 0x8b2   : > { %v4162_v3 = vpop.xlane.xlu2 %4161  ;;  %v4221_v20 = vmul.f32 %v9225_v4, %v12186_v38  ;;  %v4220_v61 = vmul.f32 %v9225_v4, %v12184_v28 }
 0x8b3   : > { %9226 = vrcp.f32 %v4162_v3 }
 0x8b6   : > { %v3720_v60 = vpop.f32.mrf.mxu2 }
 0x8b8   : > { %v4326_v18 = vpop.f32.mrf.mxu1 }
 0x8b9   : > { %v9227_v0 = vpop.eup %9226 }
 0x8ba   : > { %v4223_v7 = vmul.f32 %v9227_v0, %v12201_v19  ;;  %v4012_v2 = vpop.xlane.xlu2 %4011  ;;  %v4222_v59 = vmul.f32 %v9227_v0, %v12199_v9  ;;  %v12304_v19 = vpop.f32.mrf.mxu0 }
 0x8bb   : > { %v4045_v35 = vsub.f32 %v12217_v62, %v4012_v2  ;;  %v4046_v17 = vsub.f32 %v12211_v16, %v4012_v2  ;;  %8341 = vmatmul.msk.bf16.gmra.mxu0 %vm3116_vm8, %v3730_v46 }
 0x8bc   : > { %v4244_v25 = vpack.c.bf16 %v4222_v59, %v4220_v61  ;;  %v4245_v36 = vpack.c.bf16 %v4223_v7, %v4221_v20 }
 0x8bd   : > { %v4111_v31 = vmul.f32 1.442695, %v4045_v35  ;;  %v4113_v63 = vmul.f32 1.442695, %v4046_v17 }
 0x8be   : > { %4350 = vmatmul.bf16.gmra.mxu1 %v4244_v25  ;;  %8288 = vmatmul.msk.bf16.gmra.mxu2 %vm3277_vm9, %v4245_v36  ;;  %v4379_v38 = vpop.f32.mrf.mxu2 }
 0x8bf   : > { %9228 = vpow2.f32 %v4111_v31  ;;  %v4380_v8 = vadd.f32 %v4379_v38, %v4326_v18 }
 0x8c0   : > { %9230 = vpow2.f32 %v4113_v63  ;;  %v4328_v28 = vpop.f32.mrf.mxu1 }
 0x8c2   : > { %v4166_v16 = vpop.xlane.xlu0 %4165  ;;  %v12312_v40 = vpop.f32.mrf.mxu0 }
 0x8c3   : > { %9232 = vrcp.f32 %v4166_v16 }
 0x8c5   : > { %v12302_v9 = vpop.eup %9228 }
 0x8c6   : > { %v12306_v62 = vpop.eup %9230  ;;  %v4381_v33 = vpop.f32.mrf.mxu2 }
 0x8c7   : > { %v4382_v57 = vadd.f32 %v4381_v33, %v4328_v28  ;;  %v4179_v32 = vsel %vm3277_vm9, %v12306_v62, 0.0 }
 0x8c8   : > { %v4180_v54 = vadd.f32 %v12302_v9, %v4179_v32  ;;  %v4331_v47 = vpop.f32.mrf.mxu1 }
 0x8c9   : > { %v4423_v11 = vpack.c.bf16 %v4382_v57, %v4380_v8  ;;  %v9233_v58 = vpop.eup %9232 }
 0x8ca   : > { %4181 = vadd.xlane.f32.xlu2 %v4180_v54  ;;  %v4170_v5 = vpop.xlane.xlu1 %4169  ;;  %v4225_v26 = vmul.f32 %v9233_v58, %v12235_v44  ;;  %v4224_v13 = vmul.f32 %v9233_v58, %v12233_v23  ;;  %v4174_v48 = vpop.xlane.xlu0 %4173 }
 0x8cb   : > { %9234 = vrcp.f32 %v4170_v5  ;;  %8308 = vmatmul.msk.bf16.vlgmr.msra.gmra.mxu3 %vm3116_vm8, %v4423_v11  ;;  %v12319_v55 = vpop.f32.mrf.mxu0 }
 0x8cc   : > { %9236 = vrcp.f32 %v4174_v48 }
 0x8ce   : > { %v4384_v52 = vpop.f32.mrf.mxu2 }
 0x8cf   : > { %v4385_v24 = vadd.f32 %v4384_v52, %v4331_v47 }
 0x8d0   : > { %v4333_v27 = vpop.f32.mrf.mxu1 }
 0x8d1   : > { %v9235_v41 = vpop.eup %9234 }
 0x8d2   : > { %v4227_v12 = vmul.f32 %v9235_v41, %v12250_v1  ;;  %v4226_v43 = vmul.f32 %v9235_v41, %v12246_v49  ;;  %v9237_v23 = vpop.eup %9236 }
 0x8d3   : > { %v4229_v42 = vmul.f32 %v9237_v23, %v12241_v56  ;;  %v4228_v50 = vmul.f32 %v9237_v23, %v12244_v34  ;;  %v12326_v6 = vpop.f32.mrf.mxu0 }
 0x8d4   : > { %v4246_v30 = vpack.c.bf16 %v4226_v43, %v4224_v13  ;;  %v4247_v15 = vpack.c.bf16 %v4227_v12, %v4225_v26 }
 0x8d6   : > { %4355 = vmatmul.bf16.gmra.mxu1 %v4246_v30  ;;  %8289 = vmatmul.msk.bf16.gmra.mxu2 %vm3277_vm9, %v4247_v15  ;;  %v4386_v14 = vpop.f32.mrf.mxu2 }
 0x8d7   : > { %v4387_v21 = vadd.f32 %v4386_v14, %v4333_v27 }
 0x8d9   : > { %v4424_v37 = vpack.c.bf16 %v4387_v21, %v4385_v24 }
 0x8da   : > { %v4178_v44 = vpop.xlane.xlu1 %4177 }
 0x8db   : > { %9238 = vrcp.f32 %v4178_v44  ;;  %v4336_v1 = vpop.f32.mrf.mxu1  ;;  %8309 = vmatmul.msk.bf16.gmra.mxu3 %vm3116_vm8, %v4424_v37  ;;  %v12329_v2 = vpop.f32.mrf.mxu0 }
 0x8e1   : > { %v9239_v49 = vpop.eup %9238  ;;  %v4389_v45 = vpop.f32.mrf.mxu2 }
 0x8e2   : > { %v4231_v10 = vmul.f32 %v9239_v49, %v12266_v29  ;;  %v4230_v3 = vmul.f32 %v9239_v49, %v12264_v39  ;;  %v4390_v46 = vadd.f32 %v4389_v45, %v4336_v1 }
 0x8e3   : > { %v4338_v18 = vpop.f32.mrf.mxu1  ;;  %v12332_v29 = vpop.f32.mrf.mxu0 }
 0x8e4   : > { %v4248_v60 = vpack.c.bf16 %v4230_v3, %v4228_v50  ;;  %v4249_v4 = vpack.c.bf16 %v4231_v10, %v4229_v42  ;;  %v9556_v10 = vld [vmem:[#allocation2 + $0x38] sm:$0xff] }
 0x8e6   : > { %4360 = vmatmul.bf16.gmra.mxu1 %v4248_v60  ;;  %8290 = vmatmul.msk.bf16.gmra.mxu2 %vm3277_vm9, %v4249_v4 }
 0x8e9   : > { %v4391_v0 = vpop.f32.mrf.mxu2 }
 0x8ea   : > { %v4392_v20 = vadd.f32 %v4391_v0, %v4338_v18  ;;  %v9557_v0 = vld [vmem:[#allocation2 + $0x78] sm:$0xff] }
 0x8eb   : > { %v4341_v56 = vpop.f32.mrf.mxu1  ;;  %v12335_v25 = vpop.f32.mrf.mxu0 }
 0x8ec   : > { %v4425_v7 = vpack.c.bf16 %v4392_v20, %v4390_v46 }
 0x8ee   : > { %8310 = vmatmul.msk.bf16.gmra.mxu3 %vm3116_vm8, %v4425_v7 }
 0x8f1   : > { %v4394_v34 = vpop.f32.mrf.mxu2 }
 0x8f2   : > { %v4395_v59 = vadd.f32 %v4394_v34, %v4341_v56 }
 0x8f3   : > { %v4343_v39 = vpop.f32.mrf.mxu1 }
 0x8f9   : > { %v4396_v61 = vpop.f32.mrf.mxu2 }
 0x8fa   : > { %v4397_v35 = vadd.f32 %v4396_v61, %v4343_v39 }
 0x8fc   : > { %v4426_v17 = vpack.c.bf16 %v4397_v35, %v4395_v59  ;;  %v9558_v35 = vld [vmem:[#allocation2 + $0x58] sm:$0xff] }
 0x8fe   : > { %8311 = vmatmul.msk.bf16.gmra.mxu3 %vm3116_vm8, %v4426_v17 }
 0x908   : > { %v12337_v36 = vpop.f32.mrf.mxu0 }
 0x910   : > { %v12339_v31 = vpop.f32.mrf.mxu0 }
 0x918   : > { %v12341_v63 = vpop.f32.mrf.mxu0 }
 0x91b   : > { %v4346_v38 = vpop.f32.mrf.mxu1 }
 0x920   : > { %v12343_v28 = vpop.f32.mrf.mxu0 }
 0x921   : > { %v4399_v16 = vpop.f32.mrf.mxu2 }
 0x922   : > { %v4400_v32 = vadd.f32 %v4399_v16, %v4346_v38 }
 0x923   : > { %v4348_v8 = vpop.f32.mrf.mxu1 }
 0x928   : > { %v12345_v33 = vpop.f32.mrf.mxu0 }
 0x929   : > { %v4401_v57 = vpop.f32.mrf.mxu2 }
 0x92a   : > { %v4402_v54 = vadd.f32 %v4401_v57, %v4348_v8 }
 0x92c   : > { %v4427_v11 = vpack.c.bf16 %v4402_v54, %v4400_v32 }
 0x92e   : > { %8312 = vmatmul.msk.bf16.gmra.mxu3 %vm3116_vm8, %v4427_v11 }
 0x930   : > { %v12348_v47 = vpop.f32.mrf.mxu0 }
 0x938   : > { %v12350_v5 = vpop.f32.mrf.mxu0 }
 0x93b   : > { %v4351_v58 = vpop.f32.mrf.mxu1 }
 0x93d   : > { %v4182_v52 = vpop.xlane.xlu2 %4181 }
 0x93e   : > { %9240 = vrcp.f32 %v4182_v52 }
 0x940   : > { %v4638_v41 = vpop.f32.mrf.mxu0 }
 0x941   : > { %v4404_v26 = vpop.f32.mrf.mxu2 }
 0x942   : > { %v4405_v14 = vadd.f32 %v4404_v26, %v4351_v58  ;;  %v9559_v58 = vld [vmem:[#allocation2 + $0x20] sm:$0xff] }
 0x943   : > { %v4353_v15 = vpop.f32.mrf.mxu1 }
 0x944   : > { %v9241_v12 = vpop.eup %9240 }
 0x945   : > { %v4233_v13 = vmul.f32 %v9241_v12, %v12306_v62  ;;  %v4232_v43 = vmul.f32 %v9241_v12, %v12302_v9  ;;  %v12362_v9 = vld [vmem:[%s15709_s18] ss:$0 sm:$0xff] }
 0x946   : > { %v9555_v62 = vld [vmem:[#allocation2] sm:$0xff] }
 0x947   : > { %v4250_v27 = vpack.c.bf16 %v4232_v43, %v4232_v43  ;;  %v4251_v30 = vpack.c.bf16 %v4233_v13, %v4233_v13  ;;  %v9560_v13 = vld [vmem:[#allocation2 + $0x8] sm:$0xff] }
 0x949   : > { %4365 = vmatmul.bf16.gmra.mxu1 %v4250_v27  ;;  %8291 = vmatmul.msk.bf16.gmra.mxu2 %vm3277_vm9, %v4251_v30  ;;  %v4406_v48 = vpop.f32.mrf.mxu2 }
 0x94a   : > { %v4407_v24 = vadd.f32 %v4406_v48, %v4353_v15  ;;  %v9561_v15 = vld [vmem:[#allocation2 + $0x70] sm:$0xff] }
 0x94c   : > { %v4428_v21 = vpack.c.bf16 %v4407_v24, %v4405_v14 }
 0x94e   : > { %8313 = vmatmul.msk.bf16.gmra.mxu3 %vm3116_vm8, %v4428_v21  ;;  %v4492_v37 = vpop.f32.mrf.mxu3 }
 0x94f   : > { %v4597_v44 = vadd.f32 %v12286_v53, %v4492_v37  ;;  %v15717_v37 = vld [vmem:[#allocation7_spill] sm:$0xff] }
 0x951   : > { %v4640_v1 = vadd.f32 %v9555_v62, %v4597_v44 }
 0x953   : > { %v4356_v23 = vpop.f32.mrf.mxu1  ;;  %v12365_v49 = vadd.f32 %v12362_v9, %v4640_v1 }
 0x955   : > { %15710 = vst [vmem:[#allocation8_spill] sm:$0xff] %v12365_v49  ;;  %4680 = vadd.xlane.f32.xlu0 %v12365_v49 }
 0x956   : > { %v4494_v45 = vpop.f32.mrf.mxu3 }
 0x957   : > { %v4599_v42 = vadd.f32 %v12290_v51, %v4494_v45 }
 0x959   : > { %v4641_v50 = vadd.f32 %v9556_v10, %v4599_v42  ;;  %v4409_v53 = vpop.f32.mrf.mxu2 }
 0x95a   : > { %v4410_v7 = vadd.f32 %v4409_v53, %v4356_v23 }
 0x95b   : > { %v12370_v3 = vadd.f32 %v12362_v9, %v4641_v50  ;;  %v4358_v60 = vpop.f32.mrf.mxu1 }
 0x95d   : > { %15711 = vst [vmem:[#allocation11_spill] sm:$0xff] %v12370_v3  ;;  %4682 = vadd.xlane.f32.xlu1 %v12370_v3 }
 0x95e   : > { %v4497_v4 = vpop.f32.mrf.mxu3 }
 0x95f   : > { %v4602_v18 = vadd.f32 %v12296_v22, %v4497_v4 }
 0x961   : > { %v4642_v46 = vadd.f32 %v9557_v0, %v4602_v18  ;;  %v4411_v20 = vpop.f32.mrf.mxu2 }
 0x962   : > { %v4412_v56 = vadd.f32 %v4411_v20, %v4358_v60  ;;  %v9562_v60 = vld [vmem:[#allocation2 + $0x80] sm:$0xff] }
 0x963   : > { %v12375_v34 = vadd.f32 %v12362_v9, %v4642_v46  ;;  %v4361_v39 = vpop.f32.mrf.mxu1 }
 0x964   : > { %v4429_v51 = vpack.c.bf16 %v4412_v56, %v4410_v7 }
 0x965   : > { %15712 = vst [vmem:[#allocation26_spill] sm:$0xff] %v12375_v34  ;;  %4684 = vadd.xlane.f32.xlu2 %v12375_v34 }
 0x966   : > { %8314 = vmatmul.msk.bf16.gmra.mxu3 %vm3116_vm8, %v4429_v51  ;;  %v4499_v61 = vpop.f32.mrf.mxu3 }
 0x967   : > { %v4604_v59 = vadd.f32 %v12304_v19, %v4499_v61 }
 0x969   : > { %v4643_v17 = vadd.f32 %v9558_v35, %v4604_v59  ;;  %v4414_v22 = vpop.f32.mrf.mxu2 }
 0x96a   : > { %v4415_v32 = vadd.f32 %v4414_v22, %v4361_v39  ;;  %v9563_v39 = vld [vmem:[#allocation2 + $0x28] sm:$0xff] }
 0x96b   : > { %v12381_v38 = vadd.f32 %v12362_v9, %v4643_v17  ;;  %v4363_v16 = vpop.f32.mrf.mxu1 }
 0x96d   : > { %15713 = vst [vmem:[#allocation13_spill] sm:$0xff] %v12381_v38  ;;  %4686 = vadd.xlane.f32.xlu0 %v12381_v38 }
 0x971   : > { %v4416_v8 = vpop.f32.mrf.mxu2  ;;  %v4502_v57 = vpop.f32.mrf.mxu3 }
 0x972   : > { %v4417_v54 = vadd.f32 %v4416_v8, %v4363_v16  ;;  %v4607_v11 = vadd.f32 %v12312_v40, %v4502_v57  ;;  %v9564_v57 = vld [vmem:[#allocation2 + $0x48] sm:$0xff] }
 0x974   : > { %v4430_v52 = vpack.c.bf16 %v4417_v54, %v4415_v32  ;;  %v4644_v41 = vadd.f32 %v9559_v58, %v4607_v11 }
 0x976   : > { %8315 = vmatmul.msk.bf16.gmra.mxu3 %vm3116_vm8, %v4430_v52  ;;  %v12387_v19 = vadd.f32 %v12362_v9, %v4644_v41  ;;  %v9565_v41 = vld [vmem:[#allocation2 + $0x10] sm:$0xff] }
 0x978   : > { %15714 = vst [vmem:[#allocation14_spill] sm:$0xff] %v12387_v19  ;;  %4688 = vadd.xlane.f32.xlu1 %v12387_v19 }
 0x979   : > { %v4504_v26 = vpop.f32.mrf.mxu3 }
 0x97a   : > { %v4609_v12 = vadd.f32 %v12319_v55, %v4504_v26 }
 0x97c   : > { %v4645_v43 = vadd.f32 %v9560_v13, %v4609_v12 }
 0x97e   : > { %v12392_v27 = vadd.f32 %v12362_v9, %v4645_v43 }
 0x980   : > { %15715 = vst [vmem:[#allocation19_spill] sm:$0xff] %v12392_v27  ;;  %4690 = vadd.xlane.f32.xlu2 %v12392_v27 }
 0x981   : > { %v4507_v40 = vpop.f32.mrf.mxu3 }
 0x982   : > { %v4612_v30 = vadd.f32 %v12326_v6, %v4507_v40 }
 0x984   : > { %v4646_v48 = vadd.f32 %v9561_v15, %v4612_v30 }
 0x986   : > { %v12397_v14 = vadd.f32 %v12362_v9, %v4646_v48 }
 0x988   : > { %15716 = vst [vmem:[#allocation20_spill] sm:$0xff] %v12397_v14  ;;  %4692 = vadd.xlane.f32.xlu2 %v12397_v14 }
 0x989   : > { %v4509_v24 = vpop.f32.mrf.mxu3 }
 0x98a   : > { %v4614_v23 = vadd.f32 %v12329_v2, %v4509_v24 }
 0x98c   : > { %v4647_v4 = vadd.f32 %v9562_v60, %v4614_v23 }
 0x98e   : > { %v12416_v7 = vadd.f32 %v12362_v9, %v4647_v4 }
 0x990   : > { %15718 = vst [vmem:[#allocation22_spill] sm:$0xff] %v12416_v7 }
 0x9b1   : > { %v4512_v45 = vpop.f32.mrf.mxu3 }
 0x9b2   : > { %v4617_v2 = vadd.f32 %v12332_v29, %v4512_v45 }
 0x9b4   : > { %v4648_v61 = vadd.f32 %v9563_v39, %v4617_v2 }
 0x9b6   : > { %v12425_v17 = vadd.f32 %v12362_v9, %v4648_v61 }
 0x9b8   : > { %15719 = vst [vmem:[#allocation15_spill] sm:$0xff] %v12425_v17 }
 0x9b9   : > { %v4514_v56 = vpop.f32.mrf.mxu3 }
 0x9ba   : > { %v4619_v29 = vadd.f32 %v12335_v25, %v4514_v56 }
 0x9bc   : > { %v4649_v32 = vadd.f32 %v9564_v57, %v4619_v29  ;;  %v8864_v29 = vld [vmem:[%s9792_s21 + $0xec] sm:$0xf0]  ;;  %v8865_v57 = vld [vmem:[%s9792_s21 + $0xf4] sm:$0xf0] }
 0x9be   : > { %v12438_v58 = vadd.f32 %v12362_v9, %v4649_v32 }
 0x9c0   : > { %15720 = vst [vmem:[#allocation23_spill] sm:$0xff] %v12438_v58 }
 0x9c6   : > { %v4366_v21 = vpop.f32.mrf.mxu1 }
 0x9c8   : > { %v4681_v55 = vpop.xlane.xlu0 %4680 }
 0x9c9   : > { %v4714_v44 = vmul.f32 %v4681_v55, %v15717_v37 }
 0x9cb   : > { %v12402_v62 = vsub.f32 %v12365_v49, %v4714_v44 }
 0x9cc   : > { %v4419_v1 = vpop.f32.mrf.mxu2 }
 0x9cd   : > { %v4420_v6 = vadd.f32 %v4419_v1, %v4366_v21  ;;  %v4748_v42 = vmul.f32 %v12402_v62, %v12402_v62  ;;  %v9566_v21 = vld [vmem:[#allocation2 + $0x30] sm:$0xff] }
 0x9ce   : > { %v4368_v10 = vpop.f32.mrf.mxu1 }
 0x9cf   : > { %v4431_v50 = vpack.c.bf16 %v4420_v6, %v4420_v6  ;;  %4765 = vadd.xlane.f32.xlu0 %v4748_v42  ;;  %v9567_v10 = vld [vmem:[#allocation2 + $0x40] sm:$0xff] }
 0x9d0   : > { %v4683_v53 = vpop.xlane.xlu1 %4682 }
 0x9d1   : > { %8316 = vmatmul.msk.bf16.gmra.mxu3 %vm3116_vm8, %v4431_v50  ;;  %v4715_v18 = vmul.f32 %v4683_v53, %v15717_v37  ;;  %v4517_v16 = vpop.f32.mrf.mxu3 }
 0x9d2   : > { %v4622_v25 = vadd.f32 %v12337_v36, %v4517_v16  ;;  %v8458_v16 = vld [vmem:[%s9792_s21 + $0xf0] sm:$0xf0] }
 0x9d3   : > { %v12410_v0 = vsub.f32 %v12370_v3, %v4715_v18 }
 0x9d4   : > { %v4421_v46 = vpop.f32.mrf.mxu2  ;;  %v4650_v26 = vadd.f32 %v9565_v41, %v4622_v25  ;;  %v8863_v25 = vld [vmem:[%s9792_s21 + $0xec] sm:$0xf] }
 0x9d5   : > { %v4749_v20 = vmul.f32 %v12410_v0, %v12410_v0  ;;  %v9568_v46 = vld [vmem:[#allocation2 + $0x68] sm:$0xff] }
 0x9d6   : > { %v12443_v40 = vadd.f32 %v12362_v9, %v4650_v26  ;;  %v8440_v26 = vld [vmem:[%s9792_s21 + $0xc0] sm:$0xf] }
 0x9d7   : > { %4767 = vadd.xlane.f32.xlu1 %v4749_v20  ;;  %4694 = vadd.xlane.f32.xlu0 %v12416_v7 }
 0x9d8   : > { %v4685_v51 = vpop.xlane.xlu2 %4684  ;;  %15721 = vst [vmem:[#allocation16_spill] sm:$0xff] %v12443_v40 }
 0x9d9   : > { %v4716_v59 = vmul.f32 %v4685_v51, %v15717_v37  ;;  %v4519_v12 = vpop.f32.mrf.mxu3  ;;  %v9569_v51 = vld [vmem:[#allocation2 + $0x50] sm:$0xff] }
 0x9da   : > { %v4624_v30 = vadd.f32 %v12339_v31, %v4519_v12  ;;  %v8860_v12 = vld [vmem:[%s9792_s21 + $0xcc] sm:$0xf0] }
 0x9db   : > { %v12421_v35 = vsub.f32 %v12375_v34, %v4716_v59  ;;  %v8456_v59 = vld [vmem:[%s9792_s21 + $0xe0] sm:$0xf] }
 0x9dc   : > { %v4651_v55 = vadd.f32 %v9566_v21, %v4624_v30  ;;  %v8442_v30 = vld [vmem:[%s9792_s21 + $0xd0] sm:$0xf0] }
 0x9dd   : > { %v4750_v22 = vmul.f32 %v12421_v35, %v12421_v35 }
 0x9de   : > { %v12458_v45 = vadd.f32 %v12362_v9, %v4651_v55  ;;  %v8859_v55 = vld [vmem:[%s9792_s21 + $0xcc] sm:$0xf] }
 0x9df   : > { %4696 = vadd.xlane.f32.xlu0 %v12425_v17  ;;  %4769 = vadd.xlane.f32.xlu1 %v4750_v22  ;;  %v8457_v22 = vor.u32 %v8864_v29, %v8456_v59  ;;  %v8850_v59 = vld [vmem:[%s9792_s21 + $0x84] sm:$0xf] }
 0x9e0   : > { %v4687_v8 = vpop.xlane.xlu0 %4686  ;;  %15722 = vst [vmem:[#allocation27_spill] sm:$0xff] %v12458_v45 }
 0x9e1   : > { %v4717_v54 = vmul.f32 %v4687_v8, %v15717_v37  ;;  %v8464_v8 = vld [vmem:[%s9792_s21 + $0xe8] sm:$0xf]  ;;  %5271 = vmatpush.bf16.msra.mxu1 %v8457_v22 }
 0x9e2   : > { %v8416_v22 = vld [vmem:[%s9792_s21 + $0x88] sm:$0xf] }
 0x9e3   : > { %v12432_v11 = vsub.f32 %v12381_v38, %v4717_v54  ;;  %v8465_v54 = vor.u32 %v8865_v57, %v8464_v8 }
 0x9e5   : > { %v4751_v52 = vmul.f32 %v12432_v11, %v12432_v11  ;;  %5377 = vmatpush.bf16.msrb.mxu3 %v8465_v54  ;;  %v8418_v54 = vld [vmem:[%s9792_s21 + $0x98] sm:$0xf0] }
 0x9e7   : > { %4771 = vadd.xlane.f32.xlu2 %v4751_v52  ;;  %4698 = vadd.xlane.f32.xlu1 %v12438_v58  ;;  %v8466_v52 = vld [vmem:[%s9792_s21 + $0xf8] sm:$0xf0] }
 0x9e8   : > { %v8469_v41 = vor.u32 %v8863_v25, %v8466_v52  ;;  %v8392_v52 = vld [vmem:[%s9792_s21 + $0x60] sm:$0xf] }
 0x9e9   : > { %v4522_v48 = vpop.f32.mrf.mxu3 }
 0x9ea   : > { %v4627_v23 = vadd.f32 %v12341_v63, %v4522_v48  ;;  %5430 = vmatpush.bf16.msra.mxu0 %v8469_v41  ;;  %v8861_v48 = vld [vmem:[%s9792_s21 + $0xd4] sm:$0xf0]  ;;  %v8848_v41 = vld [vmem:[%s9792_s21 + $0x6c] sm:$0xf0] }
 0x9eb   : > { %v4689_v13 = vpop.xlane.xlu1 %4688 }
 0x9ec   : > { %v4718_v43 = vmul.f32 %v4689_v13, %v15717_v37  ;;  %v4652_v50 = vadd.f32 %v9567_v10, %v4627_v23  ;;  %v8858_v13 = vld [vmem:[%s9792_s21 + $0xc4] sm:$0xf] }
 0x9ee   : > { %v12446_v36 = vsub.f32 %v12387_v19, %v4718_v43  ;;  %v12469_v4 = vadd.f32 %v12362_v9, %v4652_v50  ;;  %v8441_v43 = vor.u32 %v8860_v12, %v8440_v26  ;;  %v8426_v50 = vld [vmem:[%s9792_s21 + $0xb0] sm:$0xf0]  ;;  %v8846_v26 = vld [vmem:[%s9792_s21 + $0x64] sm:$0xf]  ;;  %v8393_v12 = vor.u32 %v8848_v41, %v8392_v52  ;;  %v8344_v41 = vld [vmem:[%s9792_s21] sm:$0xf] }
 0x9ef   : > { %4700 = vadd.xlane.f32.xlu1 %v12443_v40 }
 0x9f0   : > { %v4752_v15 = vmul.f32 %v12446_v36, %v12446_v36  ;;  %15723 = vst [vmem:[#allocation17_spill] sm:$0xff] %v12469_v4  ;;  %5272 = vmatpush.bf16.msra.mxu1 %v8441_v43  ;;  %v8400_v43 = vld [vmem:[%s9792_s21 + $0x68] sm:$0xf] }
 0x9f1   : > { %v4524_v6 = vpop.f32.mrf.mxu3 }
 0x9f2   : > { %4773 = vadd.xlane.f32.xlu2 %v4752_v15  ;;  %v4629_v63 = vadd.f32 %v12343_v28, %v4524_v6  ;;  %v8448_v15 = vld [vmem:[%s9792_s21 + $0xc8] sm:$0xf]  ;;  %v8856_v6 = vld [vmem:[%s9792_s21 + $0xac] sm:$0xf0] }
 0x9f3   : > { %v4691_v24 = vpop.xlane.xlu2 %4690  ;;  %v8449_v21 = vor.u32 %v8861_v48, %v8448_v15 }
 0x9f4   : > { %v4719_v44 = vmul.f32 %v4691_v24, %v15717_v37  ;;  %v4653_v2 = vadd.f32 %v9568_v46, %v4629_v63  ;;  %v8445_v24 = vor.u32 %v8858_v13, %v8442_v30  ;;  %v8857_v63 = vld [vmem:[%s9792_s21 + $0xb4] sm:$0xf0]  ;;  %v8394_v13 = vld [vmem:[%s9792_s21 + $0x70] sm:$0xf0] }
 0x9f5   : > { %5378 = vmatpush.bf16.msrb.mxu3 %v8449_v21  ;;  %v8849_v30 = vld [vmem:[%s9792_s21 + $0x74] sm:$0xf0]  ;;  %v8397_v15 = vor.u32 %v8846_v26, %v8394_v13  ;;  %v8402_v21 = vld [vmem:[%s9792_s21 + $0x78] sm:$0xf0]  ;;  %v8836_v26 = vld [vmem:[%s9792_s21 + $0xc] sm:$0xf0] }
 0x9f6   : > { %v12454_v1 = vsub.f32 %v12392_v27, %v4719_v44  ;;  %v12476_v28 = vadd.f32 %v12362_v9, %v4653_v2  ;;  %v8450_v44 = vld [vmem:[%s9792_s21 + $0xd8] sm:$0xf0]  ;;  %v8855_v2 = vld [vmem:[%s9792_s21 + $0xac] sm:$0xf]  ;;  %v8401_v48 = vor.u32 %v8849_v30, %v8400_v43  ;;  %v8345_v13 = vor.u32 %v8836_v26, %v8344_v41  ;;  %v8346_v43 = vld [vmem:[%s9792_s21 + $0x10] sm:$0xf0] }
 0x9f7   : > { %v8453_v23 = vor.u32 %v8859_v55, %v8450_v44  ;;  %v8376_v44 = vld [vmem:[%s9792_s21 + $0x40] sm:$0xf]  ;;  %v8352_v30 = vld [vmem:[%s9792_s21 + $0x8] sm:$0xf] }
 0x9f8   : > { %v4753_v31 = vmul.f32 %v12454_v1, %v12454_v1  ;;  %15724 = vst [vmem:[#allocation29_spill] sm:$0xff] %v12476_v28 }
 0x9f9   : > { %v4527_v20 = vpop.f32.mrf.mxu3  ;;  %5431 = vmatpush.bf16.msra.mxu0 %v8453_v23  ;;  %v8844_v23 = vld [vmem:[%s9792_s21 + $0x4c] sm:$0xf0] }
 0x9fa   : > { %4702 = vadd.xlane.f32.xlu2 %v12458_v45  ;;  %4775 = vadd.xlane.f32.xlu0 %v4753_v31  ;;  %v4632_v56 = vadd.f32 %v12345_v33, %v4527_v20  ;;  %v8862_v33 = vld [vmem:[%s9792_s21 + $0xe4] sm:$0xf]  ;;  %v8424_v31 = vld [vmem:[%s9792_s21 + $0xa0] sm:$0xf]  ;;  %v8434_v20 = vld [vmem:[%s9792_s21 + $0xb8] sm:$0xf0] }
 0x9fb   : > { %v4693_v42 = vpop.xlane.xlu2 %4692  ;;  %v8461_v32 = vor.u32 %v8862_v33, %v8458_v16  ;;  %v8425_v10 = vor.u32 %v8856_v6, %v8424_v31  ;;  %v8410_v33 = vld [vmem:[%s9792_s21 + $0x90] sm:$0xf0]  ;;  %v8853_v16 = vld [vmem:[%s9792_s21 + $0x94] sm:$0xf0]  ;;  %v8842_v31 = vld [vmem:[%s9792_s21 + $0x44] sm:$0xf]  ;;  %v8377_v6 = vor.u32 %v8844_v23, %v8376_v44 }
 0x9fc   : > { %v4720_v53 = vmul.f32 %v4693_v42, %v15717_v37  ;;  %v4654_v39 = vadd.f32 %v9569_v51, %v4632_v56  ;;  %v8854_v42 = vld [vmem:[%s9792_s21 + $0xa4] sm:$0xf]  ;;  %v8437_v56 = vor.u32 %v8855_v2, %v8434_v20  ;;  %v8408_v51 = vld [vmem:[%s9792_s21 + $0x80] sm:$0xf]  ;;  %v8413_v8 = vor.u32 %v8850_v59, %v8410_v33  ;;  %v8362_v33 = vld [vmem:[%s9792_s21 + $0x30] sm:$0xf0] }
 0x9fd   : > { %5324 = vmatpush.bf16.msra.mxu2 %v8461_v32  ;;  %5273 = vmatpush.bf16.msra.mxu1 %v8425_v10  ;;  %v8417_v57 = vor.u32 %v8853_v16, %v8416_v22  ;;  %v8851_v32 = vld [vmem:[%s9792_s21 + $0x8c] sm:$0xf]  ;;  %v8384_v10 = vld [vmem:[%s9792_s21 + $0x48] sm:$0xf]  ;;  %v8841_v16 = vld [vmem:[%s9792_s21 + $0x34] sm:$0xf0] }
 0x9fe   : > { %v12465_v60 = vsub.f32 %v12397_v14, %v4720_v53  ;;  %v12480_v61 = vadd.f32 %v12362_v9, %v4654_v39  ;;  %v8432_v53 = vld [vmem:[%s9792_s21 + $0xa8] sm:$0xf]  ;;  %v8852_v39 = vld [vmem:[%s9792_s21 + $0x8c] sm:$0xf0]  ;;  %5432 = vmatpush.bf16.msra.mxu0 %v8437_v56  ;;  %v8421_v25 = vor.u32 %v8851_v32, %v8418_v54  ;;  %v8360_v56 = vld [vmem:[%s9792_s21 + $0x20] sm:$0xf] }
 0x9ff   : > { %v8433_v46 = vor.u32 %v8857_v63, %v8432_v53  ;;  %v8409_v29 = vor.u32 %v8852_v39, %v8408_v51  ;;  %v8840_v51 = vld [vmem:[%s9792_s21 + $0x2c] sm:$0xf0]  ;;  %v8838_v39 = vld [vmem:[%s9792_s21 + $0x24] sm:$0xf]  ;;  %v8368_v22 = vld [vmem:[%s9792_s21 + $0x28] sm:$0xf] }
 0xa00   : > { %v4754_v18 = vmul.f32 %v12465_v60, %v12465_v60  ;;  %15725 = vst [vmem:[#allocation28_spill] sm:$0xff] %v12480_v61  ;;  %v8839_v32 = vld [vmem:[%s9792_s21 + $0x2c] sm:$0xf]  ;;  %v8370_v54 = vld [vmem:[%s9792_s21 + $0x38] sm:$0xf0] }
 0xa01   : > { %5325 = vmatpush.bf16.msra.mxu2 %v8445_v24  ;;  %5379 = vmatpush.bf16.msrb.mxu3 %v8433_v46  ;;  %v8847_v24 = vld [vmem:[%s9792_s21 + $0x6c] sm:$0xf]  ;;  %v8386_v46 = vld [vmem:[%s9792_s21 + $0x58] sm:$0xf0]  ;;  %v8373_v52 = vor.u32 %v8839_v32, %v8370_v54 }
 0xa02   : > { %4704 = vadd.xlane.f32.xlu2 %v12469_v4  ;;  %4777 = vadd.xlane.f32.xlu0 %v4754_v18  ;;  %v8429_v18 = vor.u32 %v8854_v42, %v8426_v50  ;;  %v8405_v55 = vor.u32 %v8847_v24, %v8402_v21  ;;  %v8378_v42 = vld [vmem:[%s9792_s21 + $0x50] sm:$0xf0]  ;;  %v8845_v50 = vld [vmem:[%s9792_s21 + $0x54] sm:$0xf0]  ;;  %v8835_v21 = vld [vmem:[%s9792_s21 + $0xc] sm:$0xf] }
 0xa03   : > { %5274 = vmatpush.bf16.msra.mxu1 %v8409_v29  ;;  %5433 = vmatpush.bf16.msra.mxu0 %v8421_v25  ;;  %v8381_v53 = vor.u32 %v8842_v31, %v8378_v42  ;;  %v8385_v63 = vor.u32 %v8845_v50, %v8384_v10  ;;  %v8361_v29 = vor.u32 %v8840_v51, %v8360_v56  ;;  %v4529_v10 = vpop.f32.mrf.mxu3 }
 0xa04   : > { %v4634_v54 = vadd.f32 %v12348_v47, %v4529_v10 }
 0xa05   : > { %5326 = vmatpush.bf16.msra.mxu2 %v8429_v18  ;;  %5380 = vmatpush.bf16.msrb.mxu3 %v8417_v57  ;;  %v8843_v18 = vld [vmem:[%s9792_s21 + $0x4c] sm:$0xf]  ;;  %v8369_v57 = vor.u32 %v8841_v16, %v8368_v22 }
 0xa06   : > { %v8389_v2 = vor.u32 %v8843_v18, %v8386_v46 }
 0xa07   : > { %5275 = vmatpush.bf16.msra.mxu1 %v8393_v12  ;;  %5434 = vmatpush.bf16.msra.mxu0 %v8405_v55  ;;  %v8834_v12 = vld [vmem:[%s9792_s21 + $0x4] sm:$0xf]  ;;  %v8354_v55 = vld [vmem:[%s9792_s21 + $0x18] sm:$0xf0] }
 0xa08   : > { %v8357_v44 = vor.u32 %v8835_v21, %v8354_v55 }
 0xa09   : > { %5327 = vmatpush.bf16.msra.mxu2 %v8413_v8  ;;  %5381 = vmatpush.bf16.msrb.mxu3 %v8401_v48  ;;  %v8365_v8 = vor.u32 %v8838_v39, %v8362_v33  ;;  %v8349_v48 = vor.u32 %v8834_v12, %v8346_v43 }
 0xa0a   : > { %4706 = vadd.xlane.f32.xlu0 %v12476_v28 }
 0xa0b   : > { %5276 = vmatpush.bf16.msra.mxu1 %v8377_v6  ;;  %5435 = vmatpush.bf16.msra.mxu0 %v8389_v2 }
 0xa0d   : > { %5328 = vmatpush.bf16.msra.mxu2 %v8397_v15  ;;  %5382 = vmatpush.bf16.msrb.mxu3 %v8385_v63  ;;  %v8837_v15 = vld [vmem:[%s9792_s21 + $0x14] sm:$0xf0] }
 0xa0e   : > { %v8353_v24 = vor.u32 %v8837_v15, %v8352_v30  ;;  %v9570_v30 = vld [vmem:[#allocation2 + $0x60] sm:$0xff] }
 0xa0f   : > { %5277 = vmatpush.bf16.msra.mxu1 %v8361_v29  ;;  %5436 = vmatpush.bf16.msra.mxu0 %v8373_v52  ;;  %v4655_v15 = vadd.f32 %v9570_v30, %v4634_v54  ;;  %v9571_v54 = vld [vmem:[#allocation2 + $0x18] sm:$0xff] }
 0xa11   : > { %5329 = vmatpush.bf16.msra.mxu2 %v8381_v53  ;;  %5383 = vmatpush.bf16.msrb.mxu3 %v8369_v57  ;;  %v12577_v10 = vadd.f32 %v12362_v9, %v4655_v15 }
 0xa12   : > { %4708 = vadd.xlane.f32.xlu0 %v12480_v61 }
 0xa13   : > { %5278 = vmatpush.bf16.msra.mxu1 %v8345_v13  ;;  %5437 = vmatpush.bf16.msra.mxu0 %v8357_v44  ;;  %15726 = vst [vmem:[#allocation12_spill] sm:$0xff] %v12577_v10 }
 0xa15   : > { %5330 = vmatpush.bf16.msra.mxu2 %v8365_v8  ;;  %5384 = vmatpush.bf16.msrb.mxu3 %v8353_v24 }
 0xa19   : > { %5331 = vmatpush.bf16.msra.mxu2 %v8349_v48 }
 0xa42   : > { %v4766_v20 = vpop.xlane.xlu0 %4765 }
 0xa43   : > { %v4799_v59 = vmul.f32 %v4766_v20, %v15717_v37 }
 0xa45   : > { %v4816_v25 = vadd.f32 1e-05, %v4799_v59 }
 0xa47   : > { %9242 = vrsqrt.f32 %v4816_v25  ;;  %vm4839_vm12 = vweird.f32 %v4816_v25 }
 0xa4a   : > { %v4768_v23 = vpop.xlane.xlu1 %4767  ;;  %v4695_v31 = vpop.xlane.xlu0 %4694 }
 0xa4b   : > { %v4800_v6 = vmul.f32 %v4768_v23, %v15717_v37  ;;  %v4721_v42 = vmul.f32 %v4695_v31, %v15717_v37 }
 0xa4d   : > { %v9243_v50 = vpop.eup %9242  ;;  %v4817_v53 = vadd.f32 1e-05, %v4800_v6  ;;  %v12551_v63 = vsub.f32 %v12416_v7, %v4721_v42 }
 0xa4e   : > { %v4834_v18 = vmul.f32 %v9243_v50, %v4816_v25  ;;  %vm4840_vm11 = vweird.f32 %v9243_v50  ;;  %v12569_v25 = vld [vmem:[%s9780_s23] ss:$0 sm:$0xff] }
 0xa4f   : > { %9244 = vrsqrt.f32 %v4817_v53  ;;  %v4755_v46 = vmul.f32 %v12551_v63, %v12551_v63  ;;  %vm4841_vm13 = vmor %vm4839_vm12, %vm4840_vm11  ;;  %vm4849_vm15 = vweird.f32 %v4817_v53 }
 0xa50   : > { %v4835_v2 = vmul.f32 %v9243_v50, %v4834_v18 }
 0xa51   : > { %4779 = vadd.xlane.f32.xlu1 %v4755_v46 }
 0xa52   : > { %v4836_v20 = vmul.f32 0.5, %v4835_v2  ;;  %v4697_v56 = vpop.xlane.xlu0 %4696  ;;  %v4770_v51 = vpop.xlane.xlu1 %4769  ;;  %v12582_v2 = vld [vmem:[%s9786_s27] ss:$0 sm:$0xff] }
 0xa53   : > { %v4722_v39 = vmul.f32 %v4697_v56, %v15717_v37  ;;  %v4801_v59 = vmul.f32 %v4770_v51, %v15717_v37 }
 0xa54   : > { %v4837_v29 = vsub.f32 1.5, %v4836_v20  ;;  %v4532_v33 = vpop.f32.mrf.mxu3 }
 0xa55   : > { %v9245_v22 = vpop.eup %9244  ;;  %v12558_v16 = vsub.f32 %v12425_v17, %v4722_v39  ;;  %v12560_v8 = vadd.f32 1e-05, %v4801_v59 }
 0xa56   : > { %v4838_v57 = vmul.f32 %v9243_v50, %v4837_v29  ;;  %v4844_v32 = vmul.f32 %v9245_v22, %v4817_v53  ;;  %vm4850_vm14 = vweird.f32 %v9245_v22  ;;  %v4637_v53 = vadd.f32 %v12350_v5, %v4532_v33 }
 0xa57   : > { %9246 = vrsqrt.f32 %v12560_v8  ;;  %v4756_v52 = vmul.f32 %v12558_v16, %v12558_v16  ;;  %vm4851_vm0 = vmor %vm4849_vm15, %vm4850_vm14  ;;  %vm4859_vm2 = vweird.f32 %v12560_v8 }
 0xa58   : > { %v4845_v41 = vmul.f32 %v9245_v22, %v4844_v32  ;;  %v4842_v26 = vsel %vm4841_vm13, %v9243_v50, %v4838_v57 }
 0xa59   : > { %4781 = vadd.xlane.f32.xlu1 %v4756_v52  ;;  %v5003_v44 = vmul.f32 %v4842_v26, %v12402_v62  ;;  %v4656_v52 = vadd.f32 %v9571_v54, %v4637_v53 }
 0xa5a   : > { %v4846_v12 = vmul.f32 0.5, %v4845_v41  ;;  %v4699_v13 = vpop.xlane.xlu1 %4698  ;;  %v4772_v43 = vpop.xlane.xlu2 %4771 }
 0xa5b   : > { %v4723_v48 = vmul.f32 %v4699_v13, %v15717_v37  ;;  %v4802_v47 = vmul.f32 %v4772_v43, %v15717_v37  ;;  %v5023_v62 = vmul.f32 %v12569_v25, %v5003_v44  ;;  %v12600_v15 = vadd.f32 %v12362_v9, %v4656_v52 }
 0xa5c   : > { %v4847_v24 = vsub.f32 1.5, %v4846_v12  ;;  %v4534_v21 = vpop.f32.mrf.mxu3 }
 0xa5d   : > { %v9247_v55 = vpop.eup %9246  ;;  %v12573_v23 = vsub.f32 %v12438_v58, %v4723_v48  ;;  %v4819_v31 = vadd.f32 1e-05, %v4802_v47  ;;  %v5043_v57 = vadd.f32 %v12582_v2, %v5023_v62  ;;  %15727 = vst [vmem:[#allocation18_spill] sm:$0xff] %v12600_v15 }
 0xa5e   : > { %v4848_v6 = vmul.f32 %v9245_v22, %v4847_v24  ;;  %v4854_v42 = vmul.f32 %v9247_v55, %v12560_v8  ;;  %vm4860_vm1 = vweird.f32 %v9247_v55 }
 0xa5f   : > { %9248 = vrsqrt.f32 %v4819_v31  ;;  %v4757_v50 = vmul.f32 %v12573_v23, %v12573_v23  ;;  %vm4861_vm3 = vmor %vm4859_vm2, %vm4860_vm1  ;;  %vm4869_vm5 = vweird.f32 %v4819_v31 }
 0xa60   : > { %v4852_v18 = vsel %vm4851_vm0, %v9245_v22, %v4848_v6  ;;  %v4855_v46 = vmul.f32 %v9247_v55, %v4854_v42 }
 0xa61   : > { %v5004_v20 = vmul.f32 %v4852_v18, %v12410_v0  ;;  %4710 = vadd.xlane.f32.xlu1 %v12577_v10  ;;  %4783 = vadd.xlane.f32.xlu2 %v4757_v50 }
 0xa62   : > { %v4856_v56 = vmul.f32 0.5, %v4855_v46  ;;  %v4701_v51 = vpop.xlane.xlu1 %4700 }
 0xa63   : > { %v5024_v39 = vmul.f32 %v12569_v25, %v5004_v20  ;;  %v4724_v59 = vmul.f32 %v4701_v51, %v15717_v37 }
 0xa64   : > { %v4857_v29 = vsub.f32 1.5, %v4856_v56 }
 0xa65   : > { %v9249_v22 = vpop.eup %9248  ;;  %v5044_v32 = vadd.f32 %v12582_v2, %v5024_v39  ;;  %v12593_v0 = vsub.f32 %v12443_v40, %v4724_v59  ;;  %v4774_v5 = vpop.xlane.xlu2 %4773 }
 0xa66   : > { %v4858_v33 = vmul.f32 %v9247_v55, %v4857_v29  ;;  %v4864_v41 = vmul.f32 %v9249_v22, %v4819_v31  ;;  %v4803_v26 = vmul.f32 %v4774_v5, %v15717_v37  ;;  %vm4870_vm4 = vweird.f32 %v9249_v22 }
 0xa67   : > { %v5060_v12 = vpack.c.bf16 %v5044_v32, %v5043_v57  ;;  %v4758_v13 = vmul.f32 %v12593_v0, %v12593_v0  ;;  %vm4871_vm6 = vmor %vm4869_vm5, %vm4870_vm4 }
 0xa68   : > { %v4865_v43 = vmul.f32 %v9249_v22, %v4864_v41  ;;  %v4820_v30 = vadd.f32 1e-05, %v4803_v26  ;;  %v4862_v48 = vsel %vm4861_vm3, %v9247_v55, %v4858_v33 }
 0xa69   : > { %5279 = vmatmul.bf16.vlgmr.msra.gmra.mxu1 %v5060_v12  ;;  %5332 = vmatmul.bf16.vlgmr.msra.gmra.mxu2 %v5060_v12  ;;  %v5005_v8 = vmul.f32 %v4862_v48, %v12421_v35 }
 0xa6a   : > { %v4866_v47 = vmul.f32 0.5, %v4865_v43  ;;  %9250 = vrsqrt.f32 %v4820_v30  ;;  %5385 = vmatmul.bf16.vlgmr.msrb.gmra.mxu3 %v5060_v12  ;;  %5438 = vmatmul.bf16.vlgmr.msra.gmra.mxu0 %v5060_v12  ;;  %vm4879_vm8 = vweird.f32 %v4820_v30 }
 0xa6b   : > { %4712 = vadd.xlane.f32.xlu1 %v12600_v15  ;;  %4785 = vadd.xlane.f32.xlu2 %v4758_v13  ;;  %v5025_v35 = vmul.f32 %v12569_v25, %v5005_v8 }
 0xa6c   : > { %v4867_v24 = vsub.f32 1.5, %v4866_v47 }
 0xa6d   : > { %v4776_v21 = vpop.xlane.xlu0 %4775  ;;  %v4703_v44 = vpop.xlane.xlu2 %4702  ;;  %v5045_v29 = vadd.f32 %v12582_v2, %v5025_v35 }
 0xa6e   : > { %v4868_v6 = vmul.f32 %v9249_v22, %v4867_v24  ;;  %v4804_v42 = vmul.f32 %v4776_v21, %v15717_v37  ;;  %v4725_v9 = vmul.f32 %v4703_v44, %v15717_v37 }
 0xa70   : > { %v9251_v55 = vpop.eup %9250  ;;  %v4872_v50 = vsel %vm4871_vm6, %v9249_v22, %v4868_v6  ;;  %v4821_v18 = vadd.f32 1e-05, %v4804_v42  ;;  %v12607_v46 = vsub.f32 %v12458_v45, %v4725_v9 }
 0xa71   : > { %v5006_v62 = vmul.f32 %v4872_v50, %v12432_v11  ;;  %v4874_v20 = vmul.f32 %v9251_v55, %v4820_v30  ;;  %vm4880_vm7 = vweird.f32 %v9251_v55 }
 0xa72   : > { %9252 = vrsqrt.f32 %v4821_v18  ;;  %v4759_v31 = vmul.f32 %v12607_v46, %v12607_v46  ;;  %vm4881_vm9 = vmor %vm4879_vm8, %vm4880_vm7  ;;  %vm4889_vm11 = vweird.f32 %v4821_v18 }
 0xa73   : > { %v4875_v53 = vmul.f32 %v9251_v55, %v4874_v20  ;;  %v5026_v56 = vmul.f32 %v12569_v25, %v5006_v62 }
 0xa74   : > { %4787 = vadd.xlane.f32.xlu0 %v4759_v31 }
 0xa75   : > { %v4876_v51 = vmul.f32 0.5, %v4875_v53  ;;  %v4778_v39 = vpop.xlane.xlu0 %4777  ;;  %v4705_v59 = vpop.xlane.xlu2 %4704  ;;  %v5046_v22 = vadd.f32 %v12582_v2, %v5026_v56 }
 0xa76   : > { %v4726_v11 = vmul.f32 %v4705_v59, %v15717_v37 }
 0xa77   : > { %v4877_v57 = vsub.f32 1.5, %v4876_v51  ;;  %v5061_v32 = vpack.c.bf16 %v5046_v22, %v5045_v29 }
 0xa78   : > { %v9253_v54 = vpop.eup %9252  ;;  %v12618_v52 = vsub.f32 %v12469_v4, %v4726_v11 }
 0xa79   : > { %v4878_v5 = vmul.f32 %v9251_v55, %v4877_v57  ;;  %v4884_v33 = vmul.f32 %v9253_v54, %v4821_v18  ;;  %5284 = vmatmul.bf16.gmra.mxu1 %v5061_v32  ;;  %5337 = vmatmul.bf16.gmra.mxu2 %v5061_v32  ;;  %vm4890_vm10 = vweird.f32 %v9253_v54 }
 0xa7a   : > { %5390 = vmatmul.bf16.gmra.mxu3 %v5061_v32  ;;  %5443 = vmatmul.bf16.gmra.mxu0 %v5061_v32  ;;  %v4760_v41 = vmul.f32 %v12618_v52, %v12618_v52  ;;  %vm4891_vm12 = vmor %vm4889_vm11, %vm4890_vm10 }
 0xa7b   : > { %v4885_v26 = vmul.f32 %v9253_v54, %v4884_v33  ;;  %v4882_v12 = vsel %vm4881_vm9, %v9251_v55, %v4878_v5 }
 0xa7c   : > { %4789 = vadd.xlane.f32.xlu2 %v4760_v41  ;;  %v5007_v24 = vmul.f32 %v4882_v12, %v12446_v36 }
 0xa7d   : > { %v4886_v13 = vmul.f32 0.5, %v4885_v26  ;;  %v4707_v43 = vpop.xlane.xlu0 %4706 }
 0xa7e   : > { %v4727_v48 = vmul.f32 %v4707_v43, %v15717_v37  ;;  %v5027_v42 = vmul.f32 %v12569_v25, %v5007_v24 }
 0xa7f   : > { %v4887_v47 = vsub.f32 1.5, %v4886_v13 }
 0xa80   : > { %v12625_v8 = vsub.f32 %v12476_v28, %v4727_v48  ;;  %v5047_v18 = vadd.f32 %v12582_v2, %v5027_v42 }
 0xa81   : > { %v4888_v21 = vmul.f32 %v9253_v54, %v4887_v47 }
 0xa82   : > { %v4761_v30 = vmul.f32 %v12625_v8, %v12625_v8 }
 0xa83   : > { %v4892_v44 = vsel %vm4891_vm12, %v9253_v54, %v4888_v21 }
 0xa84   : > { %v5008_v6 = vmul.f32 %v4892_v44, %v12454_v1  ;;  %4791 = vadd.xlane.f32.xlu0 %v4761_v30  ;;  %v4805_v1 = vmul.f32 %v4778_v39, %v15717_v37 }
 0xa85   : > { %v4709_v9 = vpop.xlane.xlu0 %4708 }
 0xa86   : > { %v4728_v55 = vmul.f32 %v4709_v9, %v15717_v37  ;;  %v5028_v36 = vmul.f32 %v12569_v25, %v5008_v6  ;;  %v4822_v31 = vadd.f32 1e-05, %v4805_v1 }
 0xa88   : > { %v12634_v50 = vsub.f32 %v12480_v61, %v4728_v55  ;;  %v5048_v62 = vadd.f32 %v12582_v2, %v5028_v36  ;;  %9254 = vrsqrt.f32 %v4822_v31  ;;  %vm4899_vm14 = vweird.f32 %v4822_v31 }
 0xa8a   : > { %15728 = vst [vmem:[#allocation21_spill] sm:$0xff] %v12634_v50  ;;  %v4762_v20 = vmul.f32 %v12634_v50, %v12634_v50  ;;  %v5062_v35 = vpack.c.bf16 %v5048_v62, %v5047_v18 }
 0xa8c   : > { %4793 = vadd.xlane.f32.xlu1 %v4762_v20  ;;  %5289 = vmatmul.bf16.gmra.mxu1 %v5062_v35 }
 0xa8d   : > { %5342 = vmatmul.bf16.gmra.mxu2 %v5062_v35  ;;  %5395 = vmatmul.bf16.gmra.mxu3 %v5062_v35 }
 0xa8e   : > { %5448 = vmatmul.bf16.gmra.mxu0 %v5062_v35  ;;  %v9255_v53 = vpop.eup %9254 }
 0xa8f   : > { %v4894_v56 = vmul.f32 %v9255_v53, %v4822_v31  ;;  %vm4900_vm13 = vweird.f32 %v9255_v53 }
 0xa90   : > { %vm4901_vm15 = vmor %vm4899_vm14, %vm4900_vm13 }
 0xa91   : > { %v4895_v51 = vmul.f32 %v9255_v53, %v4894_v56 }
 0xa93   : > { %v4896_v11 = vmul.f32 0.5, %v4895_v51 }
 0xa95   : > { %v4897_v57 = vsub.f32 1.5, %v4896_v11 }
 0xa97   : > { %v4898_v41 = vmul.f32 %v9255_v53, %v4897_v57 }
 0xa99   : > { %v4902_v12 = vsel %vm4901_vm15, %v9255_v53, %v4898_v41 }
 0xa9a   : > { %v5009_v44 = vmul.f32 %v4902_v12, %v12465_v60 }
 0xa9c   : > { %v5029_v35 = vmul.f32 %v12569_v25, %v5009_v44 }
 0xac4   : > { %v4780_v59 = vpop.xlane.xlu1 %4779 }
 0xac5   : > { %v4806_v29 = vmul.f32 %v4780_v59, %v15717_v37  ;;  %v5049_v59 = vadd.f32 %v12582_v2, %v5029_v35 }
 0xac7   : > { %v4823_v22 = vadd.f32 1e-05, %v4806_v29 }
 0xac9   : > { %9256 = vrsqrt.f32 %v4823_v22  ;;  %vm4909_vm1 = vweird.f32 %v4823_v22 }
 0xacc   : > { %v4782_v32 = vpop.xlane.xlu1 %4781 }
 0xacd   : > { %v4807_v54 = vmul.f32 %v4782_v32, %v15717_v37 }
 0xacf   : > { %v9257_v5 = vpop.eup %9256  ;;  %v4824_v33 = vadd.f32 1e-05, %v4807_v54 }
 0xad0   : > { %v4904_v39 = vmul.f32 %v9257_v5, %v4823_v22  ;;  %vm4910_vm0 = vweird.f32 %v9257_v5 }
 0xad1   : > { %9258 = vrsqrt.f32 %v4824_v33  ;;  %vm4911_vm2 = vmor %vm4909_vm1, %vm4910_vm0  ;;  %vm4919_vm4 = vweird.f32 %v4824_v33 }
 0xad2   : > { %v4905_v26 = vmul.f32 %v9257_v5, %v4904_v39 }
 0xad4   : > { %v4906_v13 = vmul.f32 0.5, %v4905_v26  ;;  %v4711_v43 = vpop.xlane.xlu1 %4710  ;;  %v4784_v48 = vpop.xlane.xlu2 %4783 }
 0xad5   : > { %v4729_v47 = vmul.f32 %v4711_v43, %v15717_v37  ;;  %v4808_v24 = vmul.f32 %v4784_v48, %v15717_v37  ;;  %v5101_v48 = vld [vmem:[%s9798_s0] sm:$0xf]  ;;  %s16084_s0 = sld [smem:[#allocation62_spill]] (!%p8666_p5) }
 0xad6   : > { %v4907_v21 = vsub.f32 1.5, %v4906_v13  ;;  %v12683_v35 = vperm.slane %v5101_v48, 1 }
 0xad7   : > { %v9259_v30 = vpop.eup %9258  ;;  %v12647_v6 = vsub.f32 %v12577_v10, %v4729_v47  ;;  %v4825_v42 = vadd.f32 1e-05, %v4808_v24 }
 0xad8   : > { %v4908_v9 = vmul.f32 %v9257_v5, %v4907_v21  ;;  %v4914_v55 = vmul.f32 %v9259_v30, %v4824_v33  ;;  %vm4920_vm3 = vweird.f32 %v9259_v30 }
 0xad9   : > { %15729 = vst [vmem:[#allocation30_spill] sm:$0xff] %v12647_v6  ;;  %9260 = vrsqrt.f32 %v4825_v42  ;;  %v4763_v36 = vmul.f32 %v12647_v6, %v12647_v6  ;;  %vm4921_vm5 = vmor %vm4919_vm4, %vm4920_vm3  ;;  %vm4929_vm7 = vweird.f32 %v4825_v42 }
 0xada   : > { %v4912_v18 = vsel %vm4911_vm2, %v9257_v5, %v4908_v9  ;;  %v4915_v62 = vmul.f32 %v9259_v30, %v4914_v55 }
 0xadb   : > { %v5010_v20 = vmul.f32 %v4912_v18, %v12551_v63  ;;  %4795 = vadd.xlane.f32.xlu2 %v4763_v36 }
 0xadc   : > { %v4916_v60 = vmul.f32 0.5, %v4915_v62 }
 0xadd   : > { %v5030_v1 = vmul.f32 %v12569_v25, %v5010_v20 }
 0xade   : > { %v4917_v31 = vsub.f32 1.5, %v4916_v60  ;;  %v4713_v53 = vpop.xlane.xlu1 %4712 }
 0xadf   : > { %v9261_v56 = vpop.eup %9260  ;;  %v4730_v51 = vmul.f32 %v4713_v53, %v15717_v37  ;;  %v5050_v29 = vadd.f32 %v12582_v2, %v5030_v1 }
 0xae0   : > { %v4918_v22 = vmul.f32 %v9259_v30, %v4917_v31  ;;  %v4924_v11 = vmul.f32 %v9261_v56, %v4825_v42  ;;  %vm4930_vm6 = vweird.f32 %v9261_v56  ;;  %v12685_v31 = vperm.slane %v5101_v48, 2 }
 0xae1   : > { %v12658_v63 = vsub.f32 %v12600_v15, %v4730_v51  ;;  %v5063_v57 = vpack.c.bf16 %v5050_v29, %v5049_v59  ;;  %vm4931_vm8 = vmor %vm4929_vm7, %vm4930_vm6 }
 0xae2   : > { %v4925_v32 = vmul.f32 %v9261_v56, %v4924_v11  ;;  %v4922_v5 = vsel %vm4921_vm5, %v9259_v30, %v4918_v22  ;;  %v12669_v30 = vperm.slane %v5101_v48, 0 }
 0xae3   : > { %15730 = vst [vmem:[#allocation31_spill] sm:$0xff] %v12658_v63  ;;  %5294 = vmatmul.bf16.gmra.mxu1 %v5063_v57  ;;  %5347 = vmatmul.bf16.gmra.mxu2 %v5063_v57  ;;  %v4764_v54 = vmul.f32 %v12658_v63, %v12658_v63  ;;  %v5011_v26 = vmul.f32 %v4922_v5, %v12558_v16  ;;  %v4786_v16 = vpop.xlane.xlu2 %4785 }
 0xae4   : > { %v4926_v41 = vmul.f32 0.5, %v4925_v32  ;;  %5400 = vmatmul.bf16.gmra.mxu3 %v5063_v57  ;;  %5453 = vmatmul.bf16.gmra.mxu0 %v5063_v57  ;;  %v4809_v55 = vmul.f32 %v4786_v16, %v15717_v37 }
 0xae5   : > { %4797 = vadd.xlane.f32.xlu0 %v4764_v54  ;;  %v5031_v43 = vmul.f32 %v12569_v25, %v5011_v26 }
 0xae6   : > { %v4927_v39 = vsub.f32 1.5, %v4926_v41  ;;  %v5280_v44 = vpop.f32.mrf.mxu1  ;;  %v12681_v20 = vadd.f32 1e-05, %v4809_v55 }
 0xae7   : > { %v5051_v24 = vadd.f32 %v12582_v2, %v5031_v43  ;;  %v12672_v42 = vadd.f32 %v5280_v44, %v12669_v30  ;;  %v5439_v36 = vpop.f32.mrf.mxu0  ;;  %v4788_v60 = vpop.xlane.xlu0 %4787 }
 0xae8   : > { %v4928_v12 = vmul.f32 %v9261_v56, %v4927_v39  ;;  %9262 = vrsqrt.f32 %v12681_v20  ;;  %v4810_v29 = vmul.f32 %v4788_v60, %v15717_v37  ;;  %vm4939_vm10 = vweird.f32 %v12681_v20 }
 0xae9   : > { %v8470_v18 = vmul.f32 -1.702, %v12672_v42 }
 0xaea   : > { %v4932_v33 = vsel %vm4931_vm8, %v9261_v56, %v4928_v12  ;;  %v12699_v5 = vadd.f32 1e-05, %v4810_v29 }
 0xaeb   : > { %v5012_v13 = vmul.f32 %v4932_v33, %v12573_v23  ;;  %v12674_v23 = vperm.slane %v5101_v48, 3  ;;  %v5619_v53 = vmul.f32 1.442695, %v8470_v18 }
 0xaec   : > { %v5333_v1 = vpop.f32.mrf.mxu2  ;;  %vm4949_vm12 = vweird.f32 %v12699_v5 }
 0xaed   : > { %v5032_v47 = vmul.f32 %v12569_v25, %v5012_v13  ;;  %v12679_v62 = vadd.f32 %v5439_v36, %v12674_v23  ;;  %v5386_v51 = vpop.f32.mrf.mxu3  ;;  %v12691_v22 = vadd.f32 %v5333_v1, %v12683_v35  ;;  %9264 = vpow2.f32 %v5619_v53 }
 0xaee   : > { %v5282_v59 = vpop.f32.mrf.mxu1  ;;  %v12694_v11 = vadd.f32 %v5386_v51, %v12685_v31  ;;  %v12705_v26 = vpop.eup %9262 }
 0xaef   : > { %v5052_v21 = vadd.f32 %v12582_v2, %v5032_v47  ;;  %v8473_v56 = vmul.f32 -1.702, %v12679_v62  ;;  %v5441_v57 = vpop.f32.mrf.mxu0  ;;  %v12697_v54 = vadd.f32 %v5282_v59, %v12669_v30  ;;  %v8471_v41 = vmul.f32 -1.702, %v12691_v22  ;;  %v4790_v59 = vpop.xlane.xlu2 %4789 }
 0xaf0   : > { %v12703_v39 = vadd.f32 %v5441_v57, %v12674_v23  ;;  %v8472_v12 = vmul.f32 -1.702, %v12694_v11  ;;  %v4934_v43 = vmul.f32 %v12705_v26, %v12681_v20  ;;  %vm4940_vm9 = vweird.f32 %v12705_v26 }
 0xaf1   : > { %v5064_v9 = vpack.c.bf16 %v5052_v21, %v5051_v24  ;;  %v5625_v32 = vmul.f32 1.442695, %v8473_v56  ;;  %v8474_v33 = vmul.f32 -1.702, %v12697_v54  ;;  %v5621_v48 = vmul.f32 1.442695, %v8471_v41  ;;  %vm12750_vm11 = vmor %vm4939_vm10, %vm4940_vm9 }
 0xaf2   : > { %v8477_v47 = vmul.f32 -1.702, %v12703_v39  ;;  %v5623_v24 = vmul.f32 1.442695, %v8472_v12  ;;  %v4935_v16 = vmul.f32 %v12705_v26, %v4934_v43  ;;  %v4811_v43 = vmul.f32 %v4790_v59, %v15717_v37 }
 0xaf3   : > { %5299 = vmatmul.bf16.gmra.mxu1 %v5064_v9  ;;  %5352 = vmatmul.bf16.gmra.mxu2 %v5064_v9  ;;  %9266 = vpow2.f32 %v5625_v32  ;;  %v9265_v13 = vpop.eup %9264  ;;  %v5627_v21 = vmul.f32 1.442695, %v8474_v33 }
 0xaf4   : > { %5405 = vmatmul.bf16.gmra.mxu3 %v5064_v9  ;;  %5458 = vmatmul.bf16.gmra.mxu0 %v5064_v9  ;;  %9268 = vrsqrt.f32 %v12699_v5  ;;  %v12713_v44 = vadd.f32 1.0, %v9265_v13  ;;  %v5633_v55 = vmul.f32 1.442695, %v8477_v47  ;;  %v4936_v60 = vmul.f32 0.5, %v4935_v16  ;;  %v5335_v56 = vpop.f32.mrf.mxu2 }
 0xaf5   : > { %9270 = vpow2.f32 %v5621_v48  ;;  %v12728_v12 = vadd.f32 %v5335_v56, %v12683_v35 }
 0xaf6   : > { %9272 = vpow2.f32 %v5623_v24  ;;  %v4937_v57 = vsub.f32 1.5, %v4936_v60  ;;  %v5285_v56 = vpop.f32.mrf.mxu1  ;;  %vm5828_vm13 = vweird.f32 %v12713_v44 }
 0xaf7   : > { %9274 = vpow2.f32 %v5627_v21  ;;  %v4792_v50 = vpop.xlane.xlu0 %4791 }
 0xaf8   : > { %9276 = vrcp.f32 %v12713_v44  ;;  %v4938_v47 = vmul.f32 %v12705_v26, %v4937_v57 }
 0xaf9   : > { %v9267_v9 = vpop.eup %9266  ;;  %9278 = vpow2.f32 %v5633_v55 }
 0xafa   : > { %v12716_v36 = vpop.eup %9268  ;;  %v12719_v18 = vadd.f32 1.0, %v9267_v9  ;;  %v5388_v9 = vpop.f32.mrf.mxu3 }
 0xafb   : > { %v4944_v1 = vmul.f32 %v12716_v36, %v12699_v5  ;;  %v9271_v53 = vpop.eup %9270  ;;  %v12756_v59 = vadd.f32 %v5388_v9, %v12685_v31  ;;  %v5834_v9 = vand.u32 2147483648, %v12713_v44  ;;  %vm4950_vm14 = vweird.f32 %v12716_v36 }
 0xafc   : > { %v9273_v51 = vpop.eup %9272  ;;  %9280 = vrcp.f32 %v12719_v18  ;;  %v12730_v13 = vadd.f32 1.0, %v9271_v53  ;;  %v12748_v53 = vadd.f32 1e-05, %v4811_v43  ;;  %v12766_v43 = vadd.f32 %v5285_v56, %v12669_v30  ;;  %v5338_v61 = vpop.f32.mrf.mxu2  ;;  %vm12818_vm3 = vmor %vm4949_vm12, %vm4950_vm14 }
 0xafd   : > { %v9275_v29 = vpop.eup %9274  ;;  %v4945_v41 = vmul.f32 %v12716_v36, %v4944_v1  ;;  %v12733_v48 = vadd.f32 1.0, %v9273_v51  ;;  %v8475_v1 = vmul.f32 -1.702, %v12728_v12  ;;  %v5879_v15 = vand.u32 2147483648, %v12719_v18 }
 0xafe   : > { %v12724_v32 = vpop.eup %9276  ;;  %v12739_v21 = vadd.f32 1.0, %v9275_v29  ;;  %9282 = vrcp.f32 %v12730_v13  ;;  %v4942_v29 = vsel %vm12750_vm11, %v12705_v26, %v4938_v47  ;;  %v5444_v26 = vpop.f32.mrf.mxu0  ;;  %v5877_v10 = vand.u32 2147483647, %v12719_v18 }
 0xaff   : > { %v9279_v33 = vpop.eup %9278  ;;  %v5824_v24 = vmul.f32 %v12724_v32, %v12713_v44  ;;  %v4946_v55 = vmul.f32 0.5, %v4945_v41  ;;  %9284 = vrcp.f32 %v12733_v48  ;;  %v12773_v47 = vmul.f32 %v4942_v29, %v12593_v0 }
 0xb00   : > { %v12743_v60 = vadd.f32 1.0, %v9279_v33  ;;  %9286 = vrcp.f32 %v12739_v21  ;;  %v5629_v33 = vmul.f32 1.442695, %v8475_v1  ;;  %v8478_v29 = vmul.f32 -1.702, %v12766_v43 }
 0xb01   : > { %v5825_v57 = vsub.f32 1.0, %v5824_v24  ;;  %v4947_v41 = vsub.f32 1.5, %v4946_v55  ;;  %v5832_v24 = vand.u32 2147483647, %v12713_v44  ;;  %v8476_v55 = vmul.f32 -1.702, %v12756_v59 }
 0xb02   : > { %v12741_v16 = vpop.eup %9280  ;;  %9288 = vrcp.f32 %v12743_v60  ;;  %v12788_v4 = vadd.f32 %v5444_v26, %v12674_v23  ;;  %v5835_v40 = vor.u32 1.1754944e-38, %v5834_v9  ;;  %v5849_v58 = vand.u32 2147483648, %v12730_v13  ;;  %v5391_v3 = vpop.f32.mrf.mxu3 }
 0xb03   : > { %v5869_v20 = vmul.f32 %v12741_v16, %v12719_v18  ;;  %9290 = vrsqrt.f32 %v12748_v53  ;;  %v5826_v56 = vmul.f32 %v12724_v32, %v5825_v57  ;;  %v4948_v0 = vmul.f32 %v12716_v36, %v4947_v41 }
 0xb04   : > { %v12778_v1 = vpop.eup %9282  ;;  %9292 = vpow2.f32 %v5629_v33  ;;  %15733 = vst [vmem:[#allocation10_spill] sm:$0xff] %v12788_v4  ;;  %v12792_v57 = vor.u32 1.1754944e-38, %v5879_v15  ;;  %vm5829_vm15 = vweird.f32 %v12724_v32  ;;  %vm12799_vm0 = vcmp.eq.f32.partialorder %v5832_v24, 8.507059e+37 }
 0xb05   : > { %v5870_v51 = vsub.f32 1.0, %v5869_v20  ;;  %v12783_v28 = vpop.eup %9284  ;;  %v5847_v20 = vand.u32 2147483647, %v12730_v13  ;;  %vm5873_vm1 = vweird.f32 %v12719_v18  ;;  %v5839_v33 = vmul.f32 %v12778_v1, %v12730_v13  ;;  %vm12840_vm4 = vmor %vm5828_vm13, %vm5829_vm15 }
 0xb06   : > { %v12790_v45 = vpop.eup %9286  ;;  %v5631_v9 = vmul.f32 1.442695, %v8476_v55  ;;  %v12807_v15 = vadd.f32 %v5338_v61, %v12683_v35  ;;  %v5827_v7 = vadd.f32 %v12724_v32, %v5826_v56  ;;  %vm5874_vm2 = vweird.f32 %v12741_v16 }
 0xb07   : > { %v5871_v14 = vmul.f32 %v12741_v16, %v5870_v51  ;;  %v5864_v55 = vand.u32 2147483648, %v12733_v48  ;;  %v4952_v61 = vsel %vm12818_vm3, %v12716_v36, %v4948_v0  ;;  %v5884_v56 = vmul.f32 %v12790_v45, %v12739_v21  ;;  %vm12877_vm10 = vmor %vm5873_vm1, %vm5874_vm2 }
 0xb08   : > { %v12796_v17 = vpop.eup %9288  ;;  %v5635_v51 = vmul.f32 1.442695, %v8478_v29  ;;  %v8481_v27 = vmul.f32 -1.702, %v12788_v4  ;;  %v12829_v19 = vor.u32 1.1754944e-38, %v5849_v58  ;;  %v5854_v5 = vmul.f32 %v12783_v28, %v12733_v48 }
 0xb09   : > { %v12809_v26 = vpop.eup %9290  ;;  %v5862_v38 = vand.u32 2147483647, %v12733_v48  ;;  %v5929_v34 = vmul.f32 %v12796_v17, %v12743_v60  ;;  %vm12844_vm5 = vcmp.eq.f32.partialorder %v5877_v10, 8.507059e+37  ;;  %v5840_v0 = vsub.f32 1.0, %v5839_v33 }
 0xb0a   : > { %v9293_v49 = vpop.eup %9292  ;;  %v4954_v29 = vmul.f32 %v12809_v26, %v12748_v53  ;;  %9294 = vpow2.f32 %v5631_v9  ;;  %v8479_v24 = vmul.f32 -1.702, %v12807_v15  ;;  %v5831_v63 = vsel %vm12840_vm4, %v12724_v32, %v5827_v7 }
 0xb0b   : > { %v5872_v44 = vadd.f32 %v12741_v16, %v5871_v14  ;;  %v12856_v6 = vmul.f32 %v4952_v61, %v12607_v46  ;;  %v12858_v10 = vor.u32 1.1754944e-38, %v5864_v55  ;;  %vm5843_vm6 = vweird.f32 %v12730_v13 }
 0xb0c   : > { %v5885_v33 = vsub.f32 1.0, %v5884_v56  ;;  %9296 = vpow2.f32 %v5635_v51  ;;  %v5641_v4 = vmul.f32 1.442695, %v8481_v27  ;;  %v12862_v9 = vadd.f32 %v5391_v3, %v12685_v31 }
 0xb0d   : > { %vm5844_vm7 = vweird.f32 %v12778_v1  ;;  %v5855_v36 = vsub.f32 1.0, %v5854_v5  ;;  %vm5858_vm8 = vweird.f32 %v12733_v48  ;;  %v5930_v14 = vsub.f32 1.0, %v5929_v34  ;;  %v5287_v5 = vpop.f32.mrf.mxu1 }
 0xb0e   : > { %v12866_v7 = vadd.f32 1.0, %v9293_v49  ;;  %v5841_v46 = vmul.f32 %v12778_v1, %v5840_v0  ;;  %vm5859_vm9 = vweird.f32 %v12783_v28  ;;  %v4812_v32 = vmul.f32 %v4792_v50, %v15717_v37  ;;  %vm12921_vm15 = vmor %vm5843_vm6, %vm5844_vm7 }
 0xb0f   : > { %v5637_v55 = vmul.f32 1.442695, %v8479_v24  ;;  %v5836_v27 = vsel %vm12799_vm0, %v5835_v40, %v5831_v63  ;;  %vm5888_vm11 = vweird.f32 %v12739_v21  ;;  %v5892_v49 = vand.u32 2147483647, %v12739_v21  ;;  %vm12942_vm3 = vmor %vm5858_vm8, %vm5859_vm9 }
 0xb10   : > { %v4955_v34 = vmul.f32 %v12809_v26, %v4954_v29  ;;  %v9295_v61 = vpop.eup %9294  ;;  %v5876_v50 = vsel %vm12877_vm10, %v12741_v16, %v5872_v44  ;;  %vm12887_vm12 = vcmp.eq.f32.partialorder %v5847_v20, 8.507059e+37  ;;  %v5886_v63 = vmul.f32 %v12790_v45, %v5885_v33 }
 0xb11   : > { %9298 = vpow2.f32 %v5641_v4  ;;  %v8480_v18 = vmul.f32 -1.702, %v12862_v9  ;;  %v5856_v41 = vmul.f32 %v12783_v28, %v5855_v36  ;;  %v5894_v56 = vand.u32 2147483648, %v12739_v21 }
 0xb12   : > { %v5931_v51 = vmul.f32 %v12796_v17, %v5930_v14  ;;  %9300 = vrcp.f32 %v12866_v7  ;;  %v9297_v0 = vpop.eup %9296  ;;  %v12898_v16 = vmul.f32 %v5836_v27, %v12672_v42  ;;  %v5842_v20 = vadd.f32 %v12778_v1, %v5841_v46 }
 0xb13   : > { %v12901_v29 = vadd.f32 1e-05, %v4812_v32  ;;  %9302 = vpow2.f32 %v5637_v55  ;;  %v5881_v4 = vsel %vm12844_vm5, %v12792_v57, %v5876_v50  ;;  %vm12906_vm13 = vcmp.eq.f32.partialorder %v5892_v49, 8.507059e+37 }
 0xb14   : > { %15746 = vst [vmem:[#allocation34_spill] sm:$0xff] %v12898_v16  ;;  %v4956_v44 = vmul.f32 0.5, %v4955_v34  ;;  %v12910_v33 = vadd.f32 1.0, %v9295_v61  ;;  %v5887_v36 = vadd.f32 %v12790_v45, %v5886_v63  ;;  %vm5889_vm14 = vweird.f32 %v12790_v45 }
 0xb15   : > { %v5639_v42 = vmul.f32 1.442695, %v8480_v18  ;;  %v12915_v14 = vadd.f32 %v5287_v5, %v12669_v30  ;;  %v5857_v58 = vadd.f32 %v12783_v28, %v5856_v41  ;;  %vm12926_vm0 = vcmp.eq.f32.partialorder %v5862_v38, 8.507059e+37  ;;  %vm12954_vm5 = vmor %vm5888_vm11, %vm5889_vm14 }
 0xb16   : > { %v5932_v32 = vadd.f32 %v12796_v17, %v5931_v51  ;;  %vm5934_vm1 = vweird.f32 %v12796_v17  ;;  %vm4959_vm2 = vweird.f32 %v12748_v53  ;;  %v12933_v55 = vadd.f32 1.0, %v9297_v0 }
 0xb17   : > { %v9299_v27 = vpop.eup %9298  ;;  %v5846_v13 = vsel %vm12921_vm15, %v12778_v1, %v5842_v20  ;;  %v5895_v3 = vor.u32 1.1754944e-38, %v5894_v56  ;;  %vm5933_vm4 = vweird.f32 %v12743_v60  ;;  %9304 = vrsqrt.f32 %v12901_v29  ;;  %v5446_v56 = vpop.f32.mrf.mxu0 }
 0xb18   : > { %v12948_v49 = vpop.eup %9300  ;;  %v5937_v48 = vand.u32 2147483647, %v12743_v60  ;;  %v5939_v34 = vand.u32 2147483648, %v12743_v60  ;;  %v4957_v61 = vsub.f32 1.5, %v4956_v44  ;;  %9306 = vrcp.f32 %v12910_v33  ;;  %vm12966_vm6 = vmor %vm5933_vm4, %vm5934_vm1  ;;  %v5340_v1 = vpop.f32.mrf.mxu2 }
 0xb19   : > { %v9303_v50 = vpop.eup %9302  ;;  %v5891_v63 = vsel %vm12954_vm5, %v12790_v45, %v5887_v36  ;;  %vm4960_vm7 = vweird.f32 %v12809_v26  ;;  %9308 = vpow2.f32 %v5639_v42  ;;  %v8482_v18 = vmul.f32 -1.702, %v12915_v14 }
 0xb1a   : > { %v5851_v60 = vsel %vm12887_vm12, %v12829_v19, %v5846_v13  ;;  %v5861_v41 = vsel %vm12942_vm3, %v12783_v28, %v5857_v58  ;;  %v5936_v45 = vsel %vm12966_vm6, %v12796_v17, %v5932_v32  ;;  %9310 = vrcp.f32 %v12933_v55  ;;  %vm13020_vm9 = vmor %vm4959_vm2, %vm4960_vm7 }
 0xb1b   : > { %v5899_v51 = vmul.f32 %v12948_v49, %v12866_v7  ;;  %v12984_v5 = vadd.f32 1.0, %v9299_v27  ;;  %v5033_v40 = vmul.f32 %v12569_v25, %v12773_v47  ;;  %v5034_v19 = vmul.f32 %v12569_v25, %v12856_v6 }
 0xb1c   : > { %v5896_v28 = vsel %vm12906_vm13, %v5895_v3, %v5891_v63  ;;  %v5940_v0 = vor.u32 1.1754944e-38, %v5939_v34  ;;  %v4958_v17 = vmul.f32 %v12809_v26, %v4957_v61  ;;  %v12993_v20 = vadd.f32 1.0, %v9303_v50 }
 0xb1d   : > { %v12995_v44 = vpop.eup %9304  ;;  %v12998_v36 = vmul.f32 %v5881_v4, %v12679_v62  ;;  %vm5938_vm8 = vcmp.eq.f32.partialorder %v5937_v48, 8.507059e+37  ;;  %v5643_v42 = vmul.f32 1.442695, %v8482_v18  ;;  %v13001_v47 = vadd.f32 %v5446_v56, %v12674_v23 }
 0xb1e   : > { %v13003_v57 = vpop.eup %9306  ;;  %v13006_v25 = vmul.f32 %v5851_v60, %v12691_v22  ;;  %v5941_v6 = vsel %vm5938_vm8, %v5940_v0, %v5936_v45  ;;  %v5053_v24 = vadd.f32 %v12582_v2, %v5033_v40  ;;  %v5054_v58 = vadd.f32 %v12582_v2, %v5034_v19  ;;  %v4794_v2 = vpop.xlane.xlu1 %4793 }
 0xb1f   : > { %15759 = vst [vmem:[#allocation35_spill] sm:$0xff] %v12998_v36  ;;  %v9309_v32 = vpop.eup %9308  ;;  %v5866_v62 = vsel %vm12926_vm0, %v12858_v10, %v5861_v41  ;;  %v13014_v4 = vmul.f32 %v5896_v28, %v12697_v54  ;;  %v5900_v27 = vsub.f32 1.0, %v5899_v51  ;;  %9312 = vrcp.f32 %v12984_v5 }
 0xb20   : > { %15760 = vst [vmem:[#allocation36_spill] sm:$0xff] %v13006_v25  ;;  %v13025_v13 = vpop.eup %9310  ;;  %v4962_v10 = vsel %vm13020_vm9, %v12809_v26, %v4958_v17  ;;  %v4964_v54 = vmul.f32 %v12995_v44, %v12901_v29  ;;  %9314 = vrcp.f32 %v12993_v20  ;;  %v5065_v53 = vpack.c.bf16 %v5054_v58, %v5053_v24 }
 0xb21   : > { %15761 = vst [vmem:[#allocation37_spill] sm:$0xff] %v13014_v4  ;;  %v13034_v46 = vmul.f32 %v5941_v6, %v12703_v39  ;;  %v5914_v38 = vmul.f32 %v13003_v57, %v12910_v33  ;;  %9316 = vpow2.f32 %v5643_v42  ;;  %v8485_v3 = vmul.f32 -1.702, %v13001_v47 }
 0xb22   : > { %v13040_v48 = vmul.f32 %v5866_v62, %v12694_v11  ;;  %v5907_v26 = vand.u32 2147483647, %v12866_v7  ;;  %v5909_v34 = vand.u32 2147483648, %v12866_v7  ;;  %v4813_v61 = vmul.f32 %v4794_v2, %v15717_v37  ;;  %5304 = vmatmul.bf16.gmra.mxu1 %v5065_v53  ;;  %5357 = vmatmul.bf16.gmra.mxu2 %v5065_v53 }
 0xb23   : > { %15764 = vst [vmem:[#allocation33_spill] sm:$0xff] %v13034_v46  ;;  %v13048_v50 = vmul.f32 %v4962_v10, %v12618_v52  ;;  %v5901_v63 = vmul.f32 %v12948_v49, %v5900_v27  ;;  %5410 = vmatmul.bf16.gmra.mxu3 %v5065_v53  ;;  %5463 = vmatmul.bf16.gmra.mxu0 %v5065_v53  ;;  %v13054_v18 = vadd.f32 1.0, %v9309_v32  ;;  %vm5903_vm10 = vweird.f32 %v12866_v7  ;;  %v5393_v53 = vpop.f32.mrf.mxu3 }
 0xb24   : > { %15765 = vst [vmem:[#allocation32_spill] sm:$0xff] %v13040_v48  ;;  %v5944_v11 = vmul.f32 %v13025_v13, %v12933_v55  ;;  %v4965_v21 = vmul.f32 %v12995_v44, %v4964_v54  ;;  %v13057_v60 = vadd.f32 %v5340_v1, %v12683_v35  ;;  %v5915_v45 = vsub.f32 1.0, %v5914_v38 }
 0xb25   : > { %v13059_v41 = vpop.eup %9312  ;;  %v5649_v56 = vmul.f32 1.442695, %v8485_v3  ;;  %vm13066_vm11 = vcmp.eq.f32.partialorder %v5907_v26, 8.507059e+37  ;;  %v5910_v19 = vor.u32 1.1754944e-38, %v5909_v34  ;;  %v5922_v28 = vand.u32 2147483647, %v12910_v33 }
 0xb26   : > { %v13064_v51 = vpop.eup %9314  ;;  %v13071_v0 = vadd.f32 1e-05, %v4813_v61  ;;  %v5902_v42 = vadd.f32 %v12948_v49, %v5901_v63  ;;  %vm5904_vm12 = vweird.f32 %v12948_v49  ;;  %v5924_v6 = vand.u32 2147483648, %v12910_v33 }
 0xb27   : > { %v9317_v17 = vpop.eup %9316  ;;  %v5954_v24 = vand.u32 2147483648, %v12933_v55  ;;  %v5945_v58 = vsub.f32 1.0, %v5944_v11  ;;  %v4966_v32 = vmul.f32 0.5, %v4965_v21  ;;  %9318 = vrcp.f32 %v13054_v18  ;;  %vm13093_vm15 = vmor %vm5903_vm10, %vm5904_vm12 }
 0xb28   : > { %v8483_v62 = vmul.f32 -1.702, %v13057_v60  ;;  %v5916_v22 = vmul.f32 %v13003_v57, %v5915_v45  ;;  %v5989_v27 = vmul.f32 %v13059_v41, %v12984_v5  ;;  %v5959_v2 = vmul.f32 %v13064_v51, %v12993_v20 }
 0xb29   : > { %9320 = vpow2.f32 %v5649_v56  ;;  %vm5918_vm13 = vweird.f32 %v12910_v33  ;;  %vm5948_vm14 = vweird.f32 %v12933_v55  ;;  %v5952_v10 = vand.u32 2147483647, %v12933_v55 }
 0xb2a   : > { %v13087_v54 = vadd.f32 1.0, %v9317_v17  ;;  %vm5919_vm0 = vweird.f32 %v13003_v57  ;;  %vm13098_vm1 = vcmp.eq.f32.partialorder %v5922_v28, 8.507059e+37  ;;  %v5925_v1 = vor.u32 1.1754944e-38, %v5924_v6  ;;  %v5290_v28 = vpop.f32.mrf.mxu1 }
 0xb2b   : > { %v13102_v26 = vor.u32 1.1754944e-38, %v5954_v24  ;;  %vm4969_vm2 = vweird.f32 %v12901_v29  ;;  %vm4970_vm3 = vweird.f32 %v12995_v44  ;;  %v5906_v7 = vsel %vm13093_vm15, %v12948_v49, %v5902_v42  ;;  %vm13134_vm7 = vmor %vm5918_vm13, %vm5919_vm0 }
 0xb2c   : > { %v5946_v34 = vmul.f32 %v13025_v13, %v5945_v58  ;;  %v4967_v61 = vsub.f32 1.5, %v4966_v32  ;;  %v5645_v63 = vmul.f32 1.442695, %v8483_v62  ;;  %v5917_v11 = vadd.f32 %v13003_v57, %v5916_v22  ;;  %v5449_v22 = vpop.f32.mrf.mxu0  ;;  %vm13184_vm12 = vmor %vm4969_vm2, %vm4970_vm3 }
 0xb2d   : > { %v5990_v21 = vsub.f32 1.0, %v5989_v27  ;;  %v5960_v45 = vsub.f32 1.0, %v5959_v2  ;;  %v13112_v56 = vadd.f32 %v5393_v53, %v12685_v31  ;;  %v13114_v17 = vpop.eup %9318  ;;  %vm5949_vm4 = vweird.f32 %v13025_v13 }
 0xb2e   : > { %vm13117_vm5 = vcmp.eq.f32.partialorder %v5952_v10, 8.507059e+37  ;;  %v5997_v49 = vand.u32 2147483647, %v12984_v5  ;;  %v5999_v42 = vand.u32 2147483648, %v12984_v5  ;;  %9322 = vrcp.f32 %v13087_v54  ;;  %vm13164_vm9 = vmor %vm5948_vm14, %vm5949_vm4 }
 0xb2f   : > { %v9321_v24 = vpop.eup %9320  ;;  %v5911_v58 = vsel %vm13066_vm11, %v5910_v19, %v5906_v7  ;;  %vm5993_vm6 = vweird.f32 %v12984_v5  ;;  %v5967_v32 = vand.u32 2147483647, %v12993_v20  ;;  %v5969_v62 = vand.u32 2147483648, %v12993_v20 }
 0xb30   : > { %9324 = vrsqrt.f32 %v13071_v0  ;;  %v5947_v40 = vadd.f32 %v13025_v13, %v5946_v34  ;;  %v4968_v19 = vmul.f32 %v12995_v44, %v4967_v61  ;;  %v13141_v2 = vadd.f32 %v5290_v28, %v12669_v30 }
 0xb31   : > { %9326 = vpow2.f32 %v5645_v63  ;;  %v5921_v10 = vsel %vm13134_vm7, %v13003_v57, %v5917_v11  ;;  %v5991_v53 = vmul.f32 %v13059_v41, %v5990_v21  ;;  %v5961_v33 = vmul.f32 %v13064_v51, %v5960_v45  ;;  %v5343_v45 = vpop.f32.mrf.mxu2 }
 0xb32   : > { %v8484_v38 = vmul.f32 -1.702, %v13112_v56  ;;  %vm5963_vm8 = vweird.f32 %v12993_v20  ;;  %v5974_v7 = vmul.f32 %v13114_v17, %v13054_v18  ;;  %v13152_v34 = vadd.f32 1.0, %v9321_v24 }
 0xb33   : > { %v13155_v61 = vadd.f32 %v5449_v22, %v12674_v23  ;;  %v13158_v63 = vmul.f32 %v5911_v58, %v12728_v12  ;;  %vm5994_vm10 = vweird.f32 %v13059_v41  ;;  %v6000_v11 = vor.u32 1.1754944e-38, %v5999_v42  ;;  %v5396_v22 = vpop.f32.mrf.mxu3 }
 0xb34   : > { %v5970_v21 = vor.u32 1.1754944e-38, %v5969_v62  ;;  %v13169_v28 = vpop.eup %9322  ;;  %v5926_v24 = vsel %vm13098_vm1, %v5925_v1, %v5921_v10  ;;  %v5951_v12 = vsel %vm13164_vm9, %v13025_v13, %v5947_v40  ;;  %vm13176_vm11 = vcmp.eq.f32.partialorder %v5997_v49, 8.507059e+37  ;;  %vm13220_vm15 = vmor %vm5993_vm6, %vm5994_vm10 }
 0xb35   : > { %15776 = vst [vmem:[#allocation9_spill] sm:$0xff] %v13158_v63  ;;  %vm5964_vm13 = vweird.f32 %v13064_v51  ;;  %vm13189_vm14 = vcmp.eq.f32.partialorder %v5967_v32, 8.507059e+37  ;;  %v8486_v13 = vmul.f32 -1.702, %v13141_v2  ;;  %v5992_v49 = vadd.f32 %v13059_v41, %v5991_v53 }
 0xb36   : > { %v13194_v1 = vpop.eup %9324  ;;  %v4972_v29 = vsel %vm13184_vm12, %v12995_v44, %v4968_v19  ;;  %v5962_v58 = vadd.f32 %v13064_v51, %v5961_v33  ;;  %v5647_v62 = vmul.f32 1.442695, %v8484_v38  ;;  %v5975_v40 = vsub.f32 1.0, %v5974_v7  ;;  %vm13239_vm1 = vmor %vm5963_vm8, %vm5964_vm13 }
 0xb37   : > { %v9327_v27 = vpop.eup %9326  ;;  %9328 = vrcp.f32 %v13152_v34  ;;  %v8489_v32 = vmul.f32 -1.702, %v13155_v61  ;;  %v13204_v10 = vadd.f32 %v5343_v45, %v12683_v35  ;;  %v13209_v57 = vmul.f32 %v5926_v24, %v12756_v59  ;;  %v15792_v45 = vld [vmem:[#allocation10_spill] sm:$0xff] }
 0xb38   : > { %v5956_v44 = vsel %vm13117_vm5, %v13102_v26, %v5951_v12  ;;  %v6004_v19 = vmul.f32 %v13169_v28, %v13087_v54  ;;  %vm5978_vm0 = vweird.f32 %v13054_v18  ;;  %v5982_v59 = vand.u32 2147483647, %v13054_v18 }
 0xb39   : > { %15785 = vst [vmem:[#allocation38_spill] sm:$0xff] %v13209_v57  ;;  %v4974_v38 = vmul.f32 %v13194_v1, %v13071_v0  ;;  %v5651_v6 = vmul.f32 1.442695, %v8486_v13  ;;  %v13229_v26 = vadd.f32 %v5396_v22, %v12685_v31  ;;  %v5996_v7 = vsel %vm13220_vm15, %v13059_v41, %v5992_v49  ;;  %v5292_v22 = vpop.f32.mrf.mxu1 }
 0xb3a   : > { %v5016_v5 = vmul.f32 %v4972_v29, %v12625_v8  ;;  %v13243_v24 = vadd.f32 1.0, %v9327_v27  ;;  %9330 = vpow2.f32 %v5647_v62  ;;  %v5966_v12 = vsel %vm13239_vm1, %v13064_v51, %v5962_v58 }
 0xb3b   : > { %v5976_v42 = vmul.f32 %v13114_v17, %v5975_v40  ;;  %v5657_v41 = vmul.f32 1.442695, %v8489_v32  ;;  %v8487_v8 = vmul.f32 -1.702, %v13204_v10  ;;  %v13253_v20 = vmul.f32 %v5956_v44, %v12766_v43 }
 0xb3c   : > { %v5984_v49 = vand.u32 2147483648, %v13054_v18  ;;  %v6005_v29 = vsub.f32 1.0, %v6004_v19  ;;  %vm13258_vm2 = vcmp.eq.f32.partialorder %v5982_v59, 8.507059e+37  ;;  %v4975_v51 = vmul.f32 %v13194_v1, %v4974_v38  ;;  %v13279_v38 = vld [vmem:[%s9780_s23] ss:$0 sm:$0xff] }
 0xb3d   : > { %v13256_v62 = vpop.eup %9328  ;;  %9332 = vpow2.f32 %v5651_v6  ;;  %v8488_v58 = vmul.f32 -1.702, %v13229_v26  ;;  %v6001_v43 = vsel %vm13176_vm11, %v6000_v11, %v5996_v7  ;;  %v5971_v40 = vsel %vm13189_vm14, %v5970_v21, %v5966_v12 }
 0xb3e   : > { %vm5979_vm3 = vweird.f32 %v13114_v17  ;;  %9334 = vrcp.f32 %v13243_v24  ;;  %v5977_v32 = vadd.f32 %v13114_v17, %v5976_v42  ;;  %v5653_v44 = vmul.f32 1.442695, %v8487_v8 }
 0xb3f   : > { %9336 = vpow2.f32 %v5657_v41  ;;  %v13272_v19 = vadd.f32 %v5292_v22, %v12669_v30  ;;  %v5985_v59 = vor.u32 1.1754944e-38, %v5984_v49  ;;  %v6006_v55 = vmul.f32 %v13169_v28, %v6005_v29  ;;  %vm13294_vm5 = vmor %vm5978_vm0, %vm5979_vm3 }
 0xb40   : > { %v9331_v33 = vpop.eup %9330  ;;  %vm6008_vm4 = vweird.f32 %v13087_v54  ;;  %v6049_v11 = vmul.f32 %v13256_v62, %v13152_v34  ;;  %v4976_v21 = vmul.f32 0.5, %v4975_v51  ;;  %v5655_v3 = vmul.f32 1.442695, %v8488_v58 }
 0xb41   : > { %v5035_v6 = vmul.f32 %v13279_v38, %v13048_v50  ;;  %v5036_v7 = vmul.f32 %v13279_v38, %v5016_v5  ;;  %v13285_v12 = vmul.f32 %v6001_v43, %v15792_v45  ;;  %v13288_v42 = vmul.f32 %v5971_v40, %v12807_v15  ;;  %v13312_v40 = vld [vmem:[%s9786_s27] ss:$0 sm:$0xff]  ;;  %s16065_s27 = scalar_lea.vmem %s15505_s17, %s9744_s26  ;;  %s16085_s26 = sld [smem:[#allocation60_spill]] (!%p8666_p5) }
 0xb42   : > { %v6012_v8 = vand.u32 2147483647, %v13087_v54  ;;  %v6014_v50 = vand.u32 2147483648, %v13087_v54  ;;  %v5981_v49 = vsel %vm13294_vm5, %v13114_v17, %v5977_v32  ;;  %v13303_v15 = vadd.f32 1.0, %v9331_v33 }
 0xb43   : > { %15793 = vst [vmem:[#allocation39_spill] sm:$0xff] %v13285_v12  ;;  %v9333_v5 = vpop.eup %9332  ;;  %9338 = vpow2.f32 %v5653_v44  ;;  %v8490_v29 = vmul.f32 -1.702, %v13272_v19  ;;  %v6007_v22 = vadd.f32 %v13169_v28, %v6006_v55  ;;  %vm6009_vm6 = vweird.f32 %v13169_v28 }
 0xb44   : > { %v13306_v18 = vpop.eup %9334  ;;  %v6050_v51 = vsub.f32 1.0, %v6049_v11  ;;  %vm4979_vm7 = vweird.f32 %v13071_v0  ;;  %v4977_v43 = vsub.f32 1.5, %v4976_v21  ;;  %9340 = vpow2.f32 %v5655_v3  ;;  %vm13326_vm9 = vmor %vm6008_vm4, %vm6009_vm6 }
 0xb45   : > { %v9337_v58 = vpop.eup %9336  ;;  %v5055_v17 = vadd.f32 %v13312_v40, %v5035_v6  ;;  %v5056_v32 = vadd.f32 %v13312_v40, %v5036_v7  ;;  %v5986_v44 = vsel %vm13258_vm2, %v5985_v59, %v5981_v49  ;;  %vm13318_vm8 = vcmp.eq.f32.partialorder %v6012_v8, 8.507059e+37 }
 0xb46   : > { %v6015_v55 = vor.u32 1.1754944e-38, %v6014_v50  ;;  %v13322_v11 = vadd.f32 1.0, %v9333_v5  ;;  %v6019_v3 = vmul.f32 %v13306_v18, %v13243_v24  ;;  %9342 = vrcp.f32 %v13303_v15 }
 0xb47   : > { %v5659_v27 = vmul.f32 1.442695, %v8490_v29  ;;  %v5066_v59 = vpack.c.bf16 %v5056_v32, %v5055_v17  ;;  %v6011_v7 = vsel %vm13326_vm9, %v13169_v28, %v6007_v22  ;;  %v6051_v45 = vmul.f32 %v13256_v62, %v6050_v51  ;;  %v5451_v29 = vpop.f32.mrf.mxu0  ;;  %v5345_v17 = vpop.f32.mrf.mxu2 }
 0xb48   : > { %v13337_v41 = vadd.f32 1.0, %v9337_v58  ;;  %v13341_v50 = vmul.f32 %v5986_v44, %v12862_v9  ;;  %vm6053_vm10 = vweird.f32 %v13152_v34  ;;  %v4978_v5 = vmul.f32 %v13194_v1, %v4977_v43 }
 0xb49   : > { %v9339_v8 = vpop.eup %9338  ;;  %vm4980_vm11 = vweird.f32 %v13194_v1  ;;  %5309 = vmatmul.bf16.gmra.mxu1 %v5066_v59  ;;  %5362 = vmatmul.bf16.gmra.mxu2 %v5066_v59  ;;  %v6057_v28 = vand.u32 2147483647, %v13152_v34  ;;  %v6059_v49 = vand.u32 2147483648, %v13152_v34  ;;  %9344 = vrcp.f32 %v13322_v11 }
 0xb4a   : > { %5415 = vmatmul.bf16.gmra.mxu3 %v5066_v59  ;;  %5468 = vmatmul.bf16.gmra.mxu0 %v5066_v59  ;;  %v9341_v9 = vpop.eup %9340  ;;  %v6016_v51 = vsel %vm13318_vm8, %v6015_v55, %v6011_v7  ;;  %v6020_v58 = vsub.f32 1.0, %v6019_v3  ;;  %v6029_v43 = vand.u32 2147483648, %v13243_v24  ;;  %9346 = vpow2.f32 %v5659_v27  ;;  %vm13360_vm13 = vmor %vm4979_vm7, %vm4980_vm11 }
 0xb4b   : > { %v6052_v32 = vadd.f32 %v13256_v62, %v6051_v45  ;;  %vm6054_vm12 = vweird.f32 %v13256_v62  ;;  %9348 = vrcp.f32 %v13337_v41  ;;  %v13365_v33 = vadd.f32 1.0, %v9339_v8 }
 0xb4c   : > { %v13367_v55 = vpop.eup %9342  ;;  %v4982_v21 = vsel %vm13360_vm13, %v13194_v1, %v4978_v5  ;;  %v6027_v3 = vand.u32 2147483647, %v13243_v24  ;;  %v13374_v27 = vadd.f32 %v5451_v29, %v12674_v23  ;;  %vm13377_vm14 = vcmp.eq.f32.partialorder %v6057_v28, 8.507059e+37  ;;  %vm13391_vm15 = vmor %vm6053_vm10, %vm6054_vm12  ;;  %v5398_v29 = vpop.f32.mrf.mxu3 }
 0xb4d   : > { %v6060_v59 = vor.u32 1.1754944e-38, %v6059_v49  ;;  %v13384_v7 = vadd.f32 %v5345_v17, %v12683_v35  ;;  %v13387_v45 = vmul.f32 %v6016_v51, %v12915_v14  ;;  %vm6023_vm0 = vweird.f32 %v13243_v24  ;;  %v15806_v49 = vld [vmem:[#allocation21_spill] sm:$0xff] }
 0xb4e   : > { %v4796_v6 = vpop.xlane.xlu2 %4795  ;;  %v6030_v8 = vor.u32 1.1754944e-38, %v6029_v43  ;;  %v6056_v28 = vsel %vm13391_vm15, %v13256_v62, %v6052_v32  ;;  %v13403_v14 = vmul.f32 %v4982_v21, %v15806_v49  ;;  %v6034_v34 = vmul.f32 %v13367_v55, %v13303_v15 }
 0xb4f   : > { %v4814_v54 = vmul.f32 %v4796_v6, %v15717_v37  ;;  %v13381_v6 = vadd.f32 1.0, %v9341_v9  ;;  %v13397_v5 = vpop.eup %9344  ;;  %vm13408_vm1 = vcmp.eq.f32.partialorder %v6027_v3, 8.507059e+37  ;;  %v6044_v43 = vand.u32 2147483648, %v13303_v15 }
 0xb50   : > { %v9347_v9 = vpop.eup %9346  ;;  %v6074_v62 = vand.u32 2147483648, %v13322_v11  ;;  %v8493_v17 = vmul.f32 -1.702, %v13374_v27  ;;  %vm6024_vm2 = vweird.f32 %v13306_v18  ;;  %v6072_v21 = vand.u32 2147483647, %v13322_v11 }
 0xb51   : > { %v13349_v22 = vadd.f32 1e-05, %v4814_v54  ;;  %v6021_v54 = vmul.f32 %v13306_v18, %v6020_v58  ;;  %v6042_v58 = vand.u32 2147483647, %v13303_v15  ;;  %v13416_v44 = vpop.eup %9348  ;;  %v8491_v3 = vmul.f32 -1.702, %v13384_v7  ;;  %vm13453_vm3 = vmor %vm6023_vm0, %vm6024_vm2 }
 0xb52   : > { %v6061_v49 = vsel %vm13377_vm14, %v6060_v59, %v6056_v28  ;;  %v6064_v13 = vmul.f32 %v13397_v5, %v13322_v11  ;;  %v13430_v53 = vadd.f32 %v5398_v29, %v12685_v31  ;;  %v6035_v39 = vsub.f32 1.0, %v6034_v34 }
 0xb53   : > { %9350 = vrsqrt.f32 %v13349_v22  ;;  %v6022_v52 = vadd.f32 %v13306_v18, %v6021_v54  ;;  %v13432_v36 = vadd.f32 1.0, %v9347_v9  ;;  %v13439_v57 = vor.u32 1.1754944e-38, %v6044_v43 }
 0xb54   : > { %9352 = vrcp.f32 %v13365_v33  ;;  %v13441_v0 = vor.u32 1.1754944e-38, %v6074_v62  ;;  %v5665_v54 = vmul.f32 1.442695, %v8493_v17  ;;  %v13447_v29 = vmul.f32 %v6061_v49, %v13001_v47 }
 0xb55   : > { %9354 = vrcp.f32 %v13381_v6  ;;  %v6109_v9 = vmul.f32 %v13416_v44, %v13337_v41  ;;  %v6119_v43 = vand.u32 2147483648, %v13337_v41  ;;  %v5661_v62 = vmul.f32 1.442695, %v8491_v3 }
 0xb56   : > { %15810 = vst [vmem:[#allocation25_spill] sm:$0xff] %v13447_v29  ;;  %v6026_v47 = vsel %vm13453_vm3, %v13306_v18, %v6022_v52  ;;  %vm6038_vm4 = vweird.f32 %v13303_v15  ;;  %v8492_v24 = vmul.f32 -1.702, %v13430_v53  ;;  %v6036_v25 = vmul.f32 %v13367_v55, %v6035_v39 }
 0xb57   : > { %vm6039_vm5 = vweird.f32 %v13367_v55  ;;  %9356 = vrcp.f32 %v13432_v36  ;;  %vm6068_vm6 = vweird.f32 %v13322_v11  ;;  %v6031_v39 = vsel %vm13408_vm1, %v6030_v8, %v6026_v47 }
 0xb58   : > { %9358 = vpow2.f32 %v5665_v54  ;;  %v4798_v18 = vpop.xlane.xlu0 %4797  ;;  %vm6069_vm7 = vweird.f32 %v13397_v5  ;;  %v6110_v34 = vsub.f32 1.0, %v6109_v9  ;;  %vm13481_vm8 = vcmp.eq.f32.partialorder %v6042_v58, 8.507059e+37  ;;  %vm13515_vm14 = vmor %vm6038_vm4, %vm6039_vm5 }
 0xb59   : > { %v13422_v1 = vpop.eup %9350  ;;  %9360 = vpow2.f32 %v5661_v62  ;;  %vm6113_vm9 = vweird.f32 %v13337_v41  ;;  %v6089_v8 = vand.u32 2147483648, %v13365_v33  ;;  %v4815_v51 = vmul.f32 %v4798_v18, %v15717_v37  ;;  %vm13546_vm2 = vmor %vm6068_vm6, %vm6069_vm7  ;;  %v8873_v62 = vld [vmem:[%s9803_s19 + $0x38] sm:$0xff] }
 0xb5a   : > { %v4984_v46 = vmul.f32 %v13422_v1, %v13349_v22  ;;  %v13444_v28 = vpop.eup %9352  ;;  %v6037_v58 = vadd.f32 %v13367_v55, %v6036_v25  ;;  %vm13494_vm10 = vcmp.eq.f32.partialorder %v6072_v21, 8.507059e+37  ;;  %vm4990_vm11 = vweird.f32 %v13422_v1  ;;  %7203 = vmatpush.bf16.msrb.mxu1 %v8873_v62 }
 0xb5b   : > { %v13466_v59 = vpop.eup %9354  ;;  %v6079_v52 = vmul.f32 %v13444_v28, %v13365_v33  ;;  %vm6114_vm12 = vweird.f32 %v13416_v44  ;;  %vm6083_vm13 = vweird.f32 %v13365_v33  ;;  %vm4989_vm15 = vweird.f32 %v13349_v22 }
 0xb5c   : > { %v4985_v49 = vmul.f32 %v13422_v1, %v4984_v46  ;;  %v6094_v54 = vmul.f32 %v13466_v59, %v13381_v6  ;;  %v6041_v18 = vsel %vm13515_vm14, %v13367_v55, %v6037_v58  ;;  %vm13538_vm1 = vmor %vm4989_vm15, %vm4990_vm11  ;;  %vm6098_vm3 = vweird.f32 %v13381_v6 }
 0xb5d   : > { %v6080_v47 = vsub.f32 1.0, %v6079_v52  ;;  %vm6084_vm4 = vweird.f32 %v13444_v28  ;;  %vm13578_vm6 = vmor %vm6113_vm9, %vm6114_vm12  ;;  %vm6099_vm7 = vweird.f32 %v13466_v59  ;;  %vm6128_vm11 = vweird.f32 %v13432_v36 }
 0xb5f   : > { %v6081_v15 = vmul.f32 %v13444_v28, %v6080_v47 }
 0xb60   : > { %v5295_v32 = vpop.f32.mrf.mxu1 }
 0xb61   : > { %v13437_v48 = vadd.f32 %v5295_v32, %v12669_v30  ;;  %v5454_v17 = vpop.f32.mrf.mxu0  ;;  %v6065_v32 = vsub.f32 1.0, %v6064_v13  ;;  %v4986_v13 = vmul.f32 0.5, %v4985_v49  ;;  %v5663_v49 = vmul.f32 1.442695, %v8492_v24 }
 0xb62   : > { %v13476_v46 = vadd.f32 %v5454_v17, %v12674_v23  ;;  %v13489_v17 = vor.u32 1.1754944e-38, %v6119_v43  ;;  %v13503_v43 = vmul.f32 %v6031_v39, %v13057_v60  ;;  %v15819_v39 = vand.u32 2147483647, %v13337_v41 }
 0xb63   : > { %15809 = vst [vmem:[#allocation24_spill] sm:$0xff] %v13437_v48  ;;  %v8494_v3 = vmul.f32 -1.702, %v13437_v48  ;;  %v6066_v16 = vmul.f32 %v13397_v5, %v6065_v32  ;;  %v4987_v4 = vsub.f32 1.5, %v4986_v13  ;;  %v6087_v32 = vand.u32 2147483647, %v13365_v33  ;;  %v13500_v13 = vpop.eup %9356 }
 0xb64   : > { %v8497_v24 = vmul.f32 -1.702, %v13476_v46  ;;  %v6111_v48 = vmul.f32 %v13416_v44, %v6110_v34  ;;  %v9359_v25 = vpop.eup %9358  ;;  %9362 = vpow2.f32 %v5663_v49  ;;  %vm13529_vm0 = vcmp.eq.f32.partialorder %v15819_v39, 8.507059e+37 }
 0xb65   : > { %v5667_v9 = vmul.f32 1.442695, %v8494_v3  ;;  %v4988_v37 = vmul.f32 %v13422_v1, %v4987_v4  ;;  %v6067_v21 = vadd.f32 %v13397_v5, %v6066_v16  ;;  %v6095_v3 = vsub.f32 1.0, %v6094_v54  ;;  %v9361_v52 = vpop.eup %9360 }
 0xb66   : > { %v13519_v4 = vor.u32 1.1754944e-38, %v6089_v8  ;;  %v13522_v16 = vadd.f32 1e-05, %v4815_v51  ;;  %v6124_v54 = vmul.f32 %v13500_v13, %v13432_v36  ;;  %v5673_v49 = vmul.f32 1.442695, %v8497_v24 }
 0xb67   : > { %9364 = vpow2.f32 %v5667_v9  ;;  %v6112_v8 = vadd.f32 %v13416_v44, %v6111_v48  ;;  %v13552_v51 = vadd.f32 1.0, %v9359_v25  ;;  %v4992_v9 = vsel %vm13538_vm1, %v13422_v1, %v4988_v37 }
 0xb68   : > { %v6071_v58 = vsel %vm13546_vm2, %v13397_v5, %v6067_v21  ;;  %vm13561_vm5 = vcmp.eq.f32.partialorder %v6087_v32, 8.507059e+37  ;;  %v6096_v48 = vmul.f32 %v13466_v59, %v6095_v3  ;;  %v13566_v47 = vadd.f32 1.0, %v9361_v52  ;;  %v5348_v5 = vpop.f32.mrf.mxu2 }
 0xb69   : > { %v6046_v24 = vsel %vm13481_vm8, %v13439_v57, %v6041_v18  ;;  %v6102_v1 = vand.u32 2147483647, %v13381_v6  ;;  %v6104_v37 = vand.u32 2147483648, %v13381_v6  ;;  %9366 = vrsqrt.f32 %v13522_v16  ;;  %v15830_v57 = vld [vmem:[#allocation30_spill] sm:$0xff]  ;;  %vm13606_vm8 = vmor %vm6083_vm13, %vm6084_vm4 }
 0xb6a   : > { %v9363_v25 = vpop.eup %9362  ;;  %v6082_v21 = vadd.f32 %v13444_v28, %v6081_v15  ;;  %v6125_v63 = vsub.f32 1.0, %v6124_v54  ;;  %v5018_v3 = vmul.f32 %v4992_v9, %v15830_v57  ;;  %9368 = vpow2.f32 %v5673_v49  ;;  %v5401_v49 = vpop.f32.mrf.mxu3 }
 0xb6b   : > { %v6076_v60 = vsel %vm13494_vm10, %v13441_v0, %v6071_v58  ;;  %v6116_v18 = vsel %vm13578_vm6, %v13416_v44, %v6112_v8  ;;  %9370 = vrcp.f32 %v13552_v51  ;;  %v6097_v41 = vadd.f32 %v13466_v59, %v6096_v48  ;;  %vm13635_vm10 = vmor %vm6098_vm3, %vm6099_vm7 }
 0xb6c   : > { %9372 = vrcp.f32 %v13566_v47  ;;  %v13595_v39 = vadd.f32 %v5348_v5, %v12683_v35  ;;  %v5037_v15 = vmul.f32 %v13279_v38, %v13403_v14  ;;  %v13600_v0 = vmul.f32 %v6046_v24, %v13112_v56 }
 0xb6d   : > { %v9365_v52 = vpop.eup %9364  ;;  %vm13610_vm9 = vcmp.eq.f32.partialorder %v6102_v1, 8.507059e+37  ;;  %v6105_v54 = vor.u32 1.1754944e-38, %v6104_v37  ;;  %v13614_v22 = vadd.f32 1.0, %v9363_v25  ;;  %v6086_v56 = vsel %vm13606_vm8, %v13444_v28, %v6082_v21 }
 0xb6e   : > { %v6126_v14 = vmul.f32 %v13500_v13, %v6125_v63  ;;  %v13620_v55 = vadd.f32 1.0, %v9365_v52  ;;  %v5038_v33 = vmul.f32 %v13279_v38, %v5018_v3  ;;  %v13626_v9 = vmul.f32 %v6076_v60, %v13141_v2 }
 0xb6f   : > { %v13623_v8 = vpop.eup %9366  ;;  %v6121_v58 = vsel %vm13529_vm0, %v13489_v17, %v6116_v18  ;;  %v6132_v48 = vand.u32 2147483647, %v13432_v36  ;;  %v6101_v2 = vsel %vm13635_vm10, %v13466_v59, %v6097_v41  ;;  %v8495_v34 = vmul.f32 -1.702, %v13595_v39 }
 0xb70   : > { %15835 = vst [vmem:[#allocation10_spill] sm:$0xff] %v13626_v9  ;;  %v9369_v24 = vpop.eup %9368  ;;  %v5057_v17 = vadd.f32 %v13312_v40, %v5037_v15  ;;  %v5058_v1 = vadd.f32 %v13312_v40, %v5038_v33  ;;  %v6091_v37 = vsel %vm13561_vm5, %v13519_v4, %v6086_v56  ;;  %vm6129_vm12 = vweird.f32 %v13500_v13  ;;  %v5456_v15 = vpop.f32.mrf.mxu0  ;;  %v15865_v56 = vld [vmem:[#allocation31_spill] sm:$0xff] }
 0xb71   : > { %v13647_v6 = vpop.eup %9370  ;;  %v6134_v5 = vand.u32 2147483648, %v13432_v36  ;;  %9374 = vrcp.f32 %v13614_v22  ;;  %v13658_v59 = vmul.f32 %v6121_v58, %v13155_v61  ;;  %v6127_v32 = vadd.f32 %v13500_v13, %v6126_v14  ;;  %v5297_v61 = vpop.f32.mrf.mxu1  ;;  %vm13676_vm13 = vmor %vm6128_vm11, %vm6129_vm12 }
 0xb72   : > { %v13655_v25 = vpop.eup %9372  ;;  %9376 = vrcp.f32 %v13620_v55  ;;  %v5067_v21 = vpack.c.bf16 %v5058_v1, %v5057_v17  ;;  %v6106_v11 = vsel %vm13610_vm9, %v6105_v54, %v6101_v2  ;;  %v4994_v4 = vmul.f32 %v13623_v8, %v13522_v16  ;;  %v5350_v44 = vpop.f32.mrf.mxu2  ;;  %v8881_v54 = vld [vmem:[%s9803_s19 + $0x78] sm:$0xff] }
 0xb73   : > { %15838 = vst [vmem:[#allocation21_spill] sm:$0xff] %v13658_v59  ;;  %v13666_v63 = vadd.f32 1.0, %v9369_v24  ;;  %v13669_v57 = vadd.f32 %v5401_v49, %v12685_v31  ;;  %v13672_v3 = vmul.f32 %v6091_v37, %v13204_v10  ;;  %vm13680_vm14 = vcmp.eq.f32.partialorder %v6132_v48, 8.507059e+37  ;;  %v8889_v49 = vld [vmem:[%s9803_s19 + $0xb8] sm:$0xff]  ;;  %v5403_v1 = vpop.f32.mrf.mxu3  ;;  %7256 = vmatpush.bf16.msrb.mxu2 %v8881_v54 }
 0xb74   : > { %v6169_v18 = vmul.f32 %v13647_v6, %v13552_v51  ;;  %v5669_v41 = vmul.f32 1.442695, %v8495_v34  ;;  %5314 = vmatmul.bf16.gmra.mxu1 %v5067_v21  ;;  %5367 = vmatmul.bf16.gmra.mxu2 %v5067_v21  ;;  %v6135_v10 = vor.u32 1.1754944e-38, %v6134_v5  ;;  %v6139_v36 = vmul.f32 %v13655_v25, %v13566_v47  ;;  %v8897_v24 = vld [vmem:[%s9803_s19 + $0xf8] sm:$0xff] }
 0xb75   : > { %15839 = vst [vmem:[#allocation30_spill] sm:$0xff] %v13672_v3  ;;  %5420 = vmatmul.bf16.gmra.mxu3 %v5067_v21  ;;  %5473 = vmatmul.bf16.gmra.mxu0 %v5067_v21  ;;  %v13696_v33 = vmul.f32 %v6106_v11, %v13229_v26  ;;  %v6131_v58 = vsel %vm13676_vm13, %v13500_v13, %v6127_v32  ;;  %v6179_v28 = vand.u32 2147483648, %v13552_v51  ;;  %9378 = vrcp.f32 %v13666_v63 }
 0xb76   : > { %v13703_v48 = vadd.f32 %v5297_v61, %v12669_v30  ;;  %v4995_v34 = vmul.f32 %v13623_v8, %v4994_v4  ;;  %v8496_v17 = vmul.f32 -1.702, %v13669_v57  ;;  %v13712_v26 = vadd.f32 %v5456_v15, %v12674_v23  ;;  %7309 = vmatpush.bf16.msra.mxu3 %v8889_v49  ;;  %7362 = vmatpush.bf16.msrb.mxu0 %v8897_v24 }
 0xb77   : > { %15844 = vst [vmem:[#allocation40_spill] sm:$0xff] %v13696_v33  ;;  %v13706_v2 = vpop.eup %9374  ;;  %v6170_v37 = vsub.f32 1.0, %v6169_v18  ;;  %9380 = vpow2.f32 %v5669_v41  ;;  %v13717_v5 = vadd.f32 %v5350_v44, %v12683_v35  ;;  %v6136_v21 = vsel %vm13680_vm14, %v6135_v10, %v6131_v58 }
 0xb78   : > { %v13714_v13 = vpop.eup %9376  ;;  %v6177_v11 = vand.u32 2147483647, %v13552_v51  ;;  %v6140_v4 = vsub.f32 1.0, %v6139_v36  ;;  %vm6173_vm15 = vweird.f32 %v13552_v51  ;;  %v13727_v52 = vor.u32 1.1754944e-38, %v6179_v28  ;;  %v8880_v51 = vld [vmem:[%s9803_s19 + $0x70] sm:$0xff] }
 0xb79   : > { %v6154_v18 = vmul.f32 %v13706_v2, %v13614_v22  ;;  %v8498_v41 = vmul.f32 -1.702, %v13703_v48  ;;  %v13733_v15 = vadd.f32 %v5403_v1, %v12685_v31  ;;  %v4996_v60 = vmul.f32 0.5, %v4995_v34  ;;  %7257 = vmatpush.bf16.msrb.mxu2 %v8880_v51  ;;  %v15872_v51 = vld [vmem:[#allocation24_spill] sm:$0xff] }
 0xb7a   : > { %v6184_v10 = vmul.f32 %v13714_v13, %v13620_v55  ;;  %v5671_v36 = vmul.f32 1.442695, %v8496_v17  ;;  %v8501_v44 = vmul.f32 -1.702, %v13712_v26  ;;  %v6171_v62 = vmul.f32 %v13647_v6, %v6170_v37 }
 0xb7b   : > { %v6147_v54 = vand.u32 2147483647, %v13566_v47  ;;  %v6149_v49 = vand.u32 2147483648, %v13566_v47  ;;  %v8499_v58 = vmul.f32 -1.702, %v13717_v5  ;;  %v13742_v28 = vpop.eup %9378  ;;  %v13745_v24 = vmul.f32 %v6136_v21, %v13272_v19 }
 0xb7c   : > { %v6141_v34 = vmul.f32 %v13655_v25, %v6140_v4  ;;  %vm6143_vm0 = vweird.f32 %v13566_v47  ;;  %vm4999_vm1 = vweird.f32 %v13522_v16  ;;  %vm5000_vm2 = vweird.f32 %v13623_v8 }
 0xb7d   : > { %15845 = vst [vmem:[#allocation41_spill] sm:$0xff] %v13745_v24  ;;  %v9381_v17 = vpop.eup %9380  ;;  %vm6174_vm3 = vweird.f32 %v13647_v6  ;;  %vm13752_vm4 = vcmp.eq.f32.partialorder %v6177_v11, 8.507059e+37  ;;  %v6155_v37 = vsub.f32 1.0, %v6154_v18  ;;  %v5675_v14 = vmul.f32 1.442695, %v8498_v41  ;;  %vm13803_vm11 = vmor %vm4999_vm1, %vm5000_vm2  ;;  %v8866_v24 = vld [vmem:[%s9803_s19] sm:$0xff] }
 0xb7e   : > { %v8500_v19 = vmul.f32 -1.702, %v13733_v15  ;;  %v4997_v21 = vsub.f32 1.5, %v4996_v60  ;;  %v6185_v61 = vsub.f32 1.0, %v6184_v10  ;;  %9382 = vpow2.f32 %v5671_v36  ;;  %vm13775_vm8 = vmor %vm6173_vm15, %vm6174_vm3 }
 0xb7f   : > { %v5681_v4 = vmul.f32 1.442695, %v8501_v44  ;;  %v6172_v32 = vadd.f32 %v13647_v6, %v6171_v62  ;;  %vm13758_vm5 = vcmp.eq.f32.partialorder %v6147_v54, 8.507059e+37  ;;  %v6150_v12 = vor.u32 1.1754944e-38, %v6149_v49  ;;  %v5459_v44 = vpop.f32.mrf.mxu0 }
 0xb80   : > { %vm6158_vm6 = vweird.f32 %v13614_v22  ;;  %v5677_v11 = vmul.f32 1.442695, %v8499_v58  ;;  %v6142_v29 = vadd.f32 %v13655_v25, %v6141_v34  ;;  %vm6144_vm7 = vweird.f32 %v13655_v25  ;;  %v5300_v58 = vpop.f32.mrf.mxu1 }
 0xb81   : > { %v6229_v18 = vmul.f32 %v13742_v28, %v13666_v63  ;;  %v13767_v41 = vadd.f32 1.0, %v9381_v17  ;;  %v6156_v60 = vmul.f32 %v13706_v2, %v6155_v37  ;;  %v6162_v10 = vand.u32 2147483647, %v13614_v22  ;;  %vm13787_vm9 = vmor %vm6143_vm0, %vm6144_vm7 }
 0xb82   : > { %9384 = vpow2.f32 %v5675_v14  ;;  %v5679_v36 = vmul.f32 1.442695, %v8500_v19  ;;  %v6164_v62 = vand.u32 2147483648, %v13614_v22  ;;  %v4998_v54 = vmul.f32 %v13623_v8, %v4997_v21 }
 0xb83   : > { %v6186_v49 = vmul.f32 %v13714_v13, %v6185_v61  ;;  %9386 = vpow2.f32 %v5681_v4  ;;  %v6176_v14 = vsel %vm13775_vm8, %v13647_v6, %v6172_v32  ;;  %v6192_v34 = vand.u32 2147483647, %v13620_v55  ;;  %v8871_v32 = vld [vmem:[%s9803_s19 + $0x28] sm:$0xff] }
 0xb84   : > { %v6194_v17 = vand.u32 2147483648, %v13620_v55  ;;  %9388 = vpow2.f32 %v5677_v11  ;;  %v9383_v37 = vpop.eup %9382  ;;  %v6146_v61 = vsel %vm13787_vm9, %v13655_v25, %v6142_v29  ;;  %vm6159_vm10 = vweird.f32 %v13706_v2  ;;  %v8886_v11 = vld [vmem:[%s9803_s19 + $0xa0] sm:$0xff] }
 0xb85   : > { %v6230_v19 = vsub.f32 1.0, %v6229_v18  ;;  %9390 = vrcp.f32 %v13767_v41  ;;  %v6157_v47 = vadd.f32 %v13706_v2, %v6156_v60  ;;  %vm6189_vm12 = vweird.f32 %v13714_v13  ;;  %vm13824_vm14 = vmor %vm6158_vm6, %vm6159_vm10 }
 0xb86   : > { %9392 = vpow2.f32 %v5679_v36  ;;  %v13809_v29 = vadd.f32 %v5300_v58, %v12669_v30  ;;  %v6181_v25 = vsel %vm13752_vm4, %v13727_v52, %v6176_v14  ;;  %vm13814_vm13 = vcmp.eq.f32.partialorder %v6162_v10, 8.507059e+37  ;;  %v8872_v14 = vld [vmem:[%s9803_s19 + $0x30] sm:$0xff]  ;;  %v5406_v52 = vpop.f32.mrf.mxu3 }
 0xb87   : > { %v5002_v16 = vsel %vm13803_vm11, %v13623_v8, %v4998_v54  ;;  %v6187_v21 = vadd.f32 %v13714_v13, %v6186_v49  ;;  %v6165_v18 = vor.u32 1.1754944e-38, %v6164_v62  ;;  %vm6188_vm15 = vweird.f32 %v13620_v55  ;;  %7204 = vmatpush.bf16.msrb.mxu1 %v8872_v14 }
 0xb88   : > { %v9385_v4 = vpop.eup %9384  ;;  %vm13829_vm0 = vcmp.eq.f32.partialorder %v6192_v34, 8.507059e+37  ;;  %v13833_v8 = vadd.f32 1.0, %v9383_v37  ;;  %v6151_v22 = vsel %vm13758_vm5, %v6150_v12, %v6146_v61  ;;  %vm13839_vm1 = vmor %vm6188_vm15, %vm6189_vm12  ;;  %v6195_v10 = vor.u32 1.1754944e-38, %v6194_v17  ;;  %v8888_v34 = vld [vmem:[%s9803_s19 + $0xb0] sm:$0xff] }
 0xb89   : > { %v9387_v1 = vpop.eup %9386  ;;  %v6231_v55 = vmul.f32 %v13742_v28, %v6230_v19  ;;  %v6237_v36 = vand.u32 2147483647, %v13666_v63  ;;  %v13846_v54 = vmul.f32 %v6181_v25, %v13374_v27  ;;  %v6161_v12 = vsel %vm13824_vm14, %v13706_v2, %v6157_v47  ;;  %v8896_v2 = vld [vmem:[%s9803_s19 + $0xf0] sm:$0xff]  ;;  %7310 = vmatpush.bf16.msra.mxu3 %v8888_v34 }
 0xb8a   : > { %v9389_v62 = vpop.eup %9388  ;;  %v5019_v49 = vmul.f32 %v5002_v16, %v15865_v56  ;;  %v8502_v58 = vmul.f32 -1.702, %v13809_v29  ;;  %v6191_v37 = vsel %vm13839_vm1, %v13714_v13, %v6187_v21  ;;  %vm6233_vm2 = vweird.f32 %v13666_v63  ;;  %v5353_v13 = vpop.f32.mrf.mxu2  ;;  %7363 = vmatpush.bf16.msrb.mxu0 %v8896_v2 }
 0xb8b   : > { %15864 = vst [vmem:[#allocation42_spill] sm:$0xff] %v13846_v54  ;;  %v13856_v17 = vpop.eup %9390  ;;  %v6239_v27 = vand.u32 2147483648, %v13666_v63  ;;  %v13863_v61 = vadd.f32 1.0, %v9385_v4  ;;  %v13867_v47 = vmul.f32 %v6151_v22, %v13384_v7  ;;  %9394 = vrcp.f32 %v13833_v8  ;;  %7205 = vmatpush.bf16.msrb.mxu1 %v8871_v32  ;;  %v5302_v63 = vpop.f32.mrf.mxu1 }
 0xb8c   : > { %v9393_v19 = vpop.eup %9392  ;;  %v13870_v6 = vadd.f32 1.0, %v9387_v1  ;;  %v13873_v25 = vadd.f32 %v5459_v44, %v12674_v23  ;;  %v6166_v16 = vsel %vm13814_vm13, %v6165_v18, %v6161_v12  ;;  %v6232_v21 = vadd.f32 %v13742_v28, %v6231_v55  ;;  %v8879_v18 = vld [vmem:[%s9803_s19 + $0x68] sm:$0xff] }
 0xb8d   : > { %15866 = vst [vmem:[#allocation31_spill] sm:$0xff] %v13867_v47  ;;  %vm6234_vm3 = vweird.f32 %v13742_v28  ;;  %v13879_v7 = vadd.f32 1.0, %v9389_v62  ;;  %v6196_v4 = vsel %vm13829_vm0, %v6195_v10, %v6191_v37  ;;  %vm13883_vm4 = vcmp.eq.f32.partialorder %v6237_v36, 8.507059e+37  ;;  %v8887_v10 = vld [vmem:[%s9803_s19 + $0xa8] sm:$0xff]  ;;  %7258 = vmatpush.bf16.msrb.mxu2 %v8879_v18 }
 0xb8e   : > { %v5683_v1 = vmul.f32 1.442695, %v8502_v58  ;;  %v5039_v22 = vmul.f32 %v13279_v38, %v5019_v49  ;;  %v6199_v60 = vmul.f32 %v13856_v17, %v13767_v41  ;;  %9396 = vrcp.f32 %v13863_v61  ;;  %v8895_v36 = vld [vmem:[%s9803_s19 + $0xe8] sm:$0xff]  ;;  %vm13907_vm5 = vmor %vm6233_vm2, %vm6234_vm3  ;;  %7311 = vmatpush.bf16.msra.mxu3 %v8887_v10 }
 0xb8f   : > { %v13893_v55 = vadd.f32 1.0, %v9393_v19  ;;  %v13896_v44 = vadd.f32 %v5353_v13, %v12683_v35  ;;  %v13901_v62 = vmul.f32 %v6166_v16, %v13430_v53  ;;  %v6240_v12 = vor.u32 1.1754944e-38, %v6239_v27  ;;  %7364 = vmatpush.bf16.msrb.mxu0 %v8895_v36 }
 0xb90   : > { %9398 = vrcp.f32 %v13870_v6  ;;  %v8505_v56 = vmul.f32 -1.702, %v13873_v25  ;;  %v6236_v53 = vsel %vm13907_vm5, %v13742_v28, %v6232_v21  ;;  %v13924_v34 = vmul.f32 %v6196_v4, %v15872_v51  ;;  %v8870_v51 = vld [vmem:[%s9803_s19 + $0x20] sm:$0xff] }
 0xb91   : > { %15869 = vst [vmem:[#allocation43_spill] sm:$0xff] %v13901_v62  ;;  %9400 = vrcp.f32 %v13879_v7  ;;  %v13921_v14 = vpop.eup %9394  ;;  %v13927_v37 = vadd.f32 %v5406_v52, %v12685_v31  ;;  %v5059_v28 = vadd.f32 %v13312_v40, %v5039_v22  ;;  %v6200_v27 = vsub.f32 1.0, %v6199_v60  ;;  %7206 = vmatpush.bf16.msrb.mxu1 %v8870_v51  ;;  %v8892_v62 = vld [vmem:[%s9803_s19 + $0xd0] sm:$0xff] }
 0xb92   : > { %15873 = vst [vmem:[#allocation24_spill] sm:$0xff] %v13924_v34  ;;  %9402 = vpow2.f32 %v5683_v1  ;;  %v6209_v2 = vand.u32 2147483648, %v13767_v41  ;;  %v8503_v19 = vmul.f32 -1.702, %v13896_v44  ;;  %v6241_v13 = vsel %vm13883_vm4, %v6240_v12, %v6236_v53  ;;  %7312 = vmatpush.bf16.msra.mxu3 %v8886_v11  ;;  %v8877_v34 = vld [vmem:[%s9803_s19 + $0x58] sm:$0xff]  ;;  %v5355_v33 = vpop.f32.mrf.mxu2 }
 0xb93   : > { %9404 = vrcp.f32 %v13893_v55  ;;  %v5689_v16 = vmul.f32 1.442695, %v8505_v56  ;;  %v13936_v21 = vadd.f32 %v5302_v63, %v12669_v30  ;;  %v6214_v40 = vmul.f32 %v13921_v14, %v13833_v8  ;;  %v5461_v63 = vpop.f32.mrf.mxu0  ;;  %v8885_v11 = vld [vmem:[%s9803_s19 + $0x98] sm:$0xff] }
 0xb94   : > { %v13940_v1 = vpop.eup %9396  ;;  %v6224_v32 = vand.u32 2147483648, %v13833_v8  ;;  %v5068_v18 = vpack.c.bf16 %v5059_v28, %v5059_v28  ;;  %vm6203_vm6 = vweird.f32 %v13767_v41  ;;  %v6207_v60 = vand.u32 2147483647, %v13767_v41  ;;  %v8878_v28 = vld [vmem:[%s9803_s19 + $0x60] sm:$0xff] }
 0xb95   : > { %15874 = vst [vmem:[#allocation44_spill] sm:$0xff] %v13936_v21  ;;  %v8504_v10 = vmul.f32 -1.702, %v13927_v37  ;;  %v13956_v38 = vmul.f32 %v6241_v13, %v13476_v46  ;;  %v6201_v12 = vmul.f32 %v13856_v17, %v6200_v27  ;;  %v13959_v56 = vor.u32 1.1754944e-38, %v6209_v2  ;;  %v8894_v13 = vld [vmem:[%s9803_s19 + $0xe0] sm:$0xff]  ;;  %7259 = vmatpush.bf16.msrb.mxu2 %v8878_v28  ;;  %v8869_v28 = vld [vmem:[%s9803_s19 + $0x18] sm:$0xff] }
 0xb96   : > { %v13947_v22 = vpop.eup %9398  ;;  %v5685_v53 = vmul.f32 1.442695, %v8503_v19  ;;  %5319 = vmatmul.bf16.gmra.mxu1 %v5068_v18  ;;  %5372 = vmatmul.bf16.gmra.mxu2 %v5068_v18  ;;  %v6244_v58 = vmul.f32 %v13940_v1, %v13863_v61  ;;  %v6254_v49 = vand.u32 2147483648, %v13863_v61  ;;  %9406 = vpow2.f32 %v5689_v16 }
 0xb97   : > { %v13953_v36 = vpop.eup %9400  ;;  %15875 = vst [vmem:[#allocation45_spill] sm:$0xff] %v13956_v38  ;;  %v8506_v46 = vmul.f32 -1.702, %v13936_v21  ;;  %5425 = vmatmul.bf16.gmra.mxu3 %v5068_v18  ;;  %5478 = vmatmul.bf16.gmra.mxu0 %v5068_v18  ;;  %v6215_v2 = vsub.f32 1.0, %v6214_v40  ;;  %v13971_v19 = vor.u32 1.1754944e-38, %v6224_v32  ;;  %v6299_v38 = vand.u32 2147483648, %v13870_v6 }
 0xb98   : > { %v9403_v4 = vpop.eup %9402  ;;  %vm13975_vm7 = vcmp.eq.f32.partialorder %v6207_v60, 8.507059e+37  ;;  %v6289_v18 = vmul.f32 %v13947_v22, %v13870_v6  ;;  %v6259_v40 = vmul.f32 %v13953_v36, %v13879_v7  ;;  %v5687_v32 = vmul.f32 1.442695, %v8504_v10  ;;  %7365 = vmatpush.bf16.msrb.mxu0 %v8894_v13  ;;  %v8893_v13 = vld [vmem:[%s9803_s19 + $0xd8] sm:$0xff]  ;;  %7207 = vmatpush.bf16.msrb.mxu1 %v8869_v28  ;;  %v8882_v21 = vld [vmem:[%s9803_s19 + $0x80] sm:$0xff] }
 0xb99   : > { %v13969_v27 = vpop.eup %9404  ;;  %v13984_v52 = vadd.f32 %v5461_v63, %v12674_v23  ;;  %v6202_v51 = vadd.f32 %v13856_v17, %v6201_v12  ;;  %vm6204_vm8 = vweird.f32 %v13856_v17  ;;  %vm6218_vm9 = vweird.f32 %v13833_v8  ;;  %7260 = vmatpush.bf16.msrb.mxu2 %v8877_v34  ;;  %7313 = vmatpush.bf16.msra.mxu3 %v8885_v11 }
 0xb9a   : > { %v13989_v60 = vadd.f32 1.0, %v9403_v4  ;;  %9408 = vpow2.f32 %v5685_v53  ;;  %v6245_v59 = vsub.f32 1.0, %v6244_v58  ;;  %v13993_v54 = vor.u32 1.1754944e-38, %v6254_v49  ;;  %vm14009_vm12 = vmor %vm6203_vm6, %vm6204_vm8  ;;  %v8884_v58 = vld [vmem:[%s9803_s19 + $0x90] sm:$0xff] }
 0xb9b   : > { %15878 = vst [vmem:[#allocation46_spill] sm:$0xff] %v13984_v52  ;;  %v6274_v10 = vmul.f32 %v13969_v27, %v13893_v55  ;;  %v5691_v63 = vmul.f32 1.442695, %v8506_v46  ;;  %v6216_v12 = vmul.f32 %v13921_v14, %v6215_v2  ;;  %vm6219_vm10 = vweird.f32 %v13921_v14 }
 0xb9c   : > { %vm6248_vm11 = vweird.f32 %v13863_v61  ;;  %v6297_v4 = vand.u32 2147483647, %v13870_v6  ;;  %v14003_v53 = vor.u32 1.1754944e-38, %v6299_v38  ;;  %v9407_v49 = vpop.eup %9406  ;;  %v6290_v46 = vsub.f32 1.0, %v6289_v18  ;;  %7366 = vmatpush.bf16.msrb.mxu0 %v8893_v13  ;;  %v5408_v18 = vpop.f32.mrf.mxu3  ;;  %vm14065_vm4 = vmor %vm6218_vm9, %vm6219_vm10 }
 0xb9d   : > { %v6260_v2 = vsub.f32 1.0, %v6259_v40  ;;  %9410 = vpow2.f32 %v5687_v32  ;;  %v8509_v38 = vmul.f32 -1.702, %v13984_v52  ;;  %v6206_v34 = vsel %vm14009_vm12, %v13856_v17, %v6202_v51  ;;  %v8868_v40 = vld [vmem:[%s9803_s19 + $0x10] sm:$0xff]  ;;  %7314 = vmatpush.bf16.msra.mxu3 %v8884_v58 }
 0xb9e   : > { %vm6293_vm13 = vweird.f32 %v13870_v6  ;;  %v6267_v41 = vand.u32 2147483647, %v13879_v7  ;;  %v6269_v28 = vand.u32 2147483648, %v13879_v7  ;;  %9412 = vrcp.f32 %v13989_v60  ;;  %v8876_v32 = vld [vmem:[%s9803_s19 + $0x50] sm:$0xff]  ;;  %7208 = vmatpush.bf16.msrb.mxu1 %v8868_v40  ;;  %v15912_v40 = vld [vmem:[#allocation32_spill] sm:$0xff] }
 0xb9f   : > { %v15881_v52 = vand.u32 2147483647, %v13833_v8  ;;  %v6246_v13 = vmul.f32 %v13940_v1, %v6245_v59  ;;  %v6275_v17 = vsub.f32 1.0, %v6274_v10  ;;  %9414 = vpow2.f32 %v5691_v63  ;;  %7261 = vmatpush.bf16.msrb.mxu2 %v8876_v32 }
 0xba0   : > { %v14031_v51 = vadd.f32 %v5355_v33, %v12683_v35  ;;  %v9409_v3 = vpop.eup %9408  ;;  %v6217_v47 = vadd.f32 %v13921_v14, %v6216_v12  ;;  %vm6249_vm15 = vweird.f32 %v13940_v1  ;;  %vm6263_vm0 = vweird.f32 %v13879_v7  ;;  %7367 = vmatpush.bf16.msrb.mxu0 %v8892_v62  ;;  %v8883_v62 = vld [vmem:[%s9803_s19 + $0x88] sm:$0xff] }
 0xba1   : > { %vm14025_vm14 = vcmp.eq.f32.partialorder %v15881_v52, 8.507059e+37  ;;  %v14038_v52 = vadd.f32 1.0, %v9407_v49  ;;  %v6291_v59 = vmul.f32 %v13947_v22, %v6290_v46  ;;  %v6261_v33 = vmul.f32 %v13953_v36, %v6260_v2  ;;  %v8867_v2 = vld [vmem:[%s9803_s19 + $0x8] sm:$0xff]  ;;  %vm14095_vm8 = vmor %vm6248_vm11, %vm6249_vm15  ;;  %7315 = vmatpush.bf16.msra.mxu3 %v8883_v62 }
 0xba2   : > { %15884 = vst [vmem:[#allocation47_spill] sm:$0xff] %v14031_v51  ;;  %v5697_v10 = vmul.f32 1.442695, %v8509_v38  ;;  %v14043_v63 = vadd.f32 %v5408_v18, %v12685_v31  ;;  %v6211_v12 = vsel %vm13975_vm7, %v13959_v56, %v6206_v34  ;;  %v15886_v49 = vand.u32 2147483647, %v13863_v61  ;;  %v8875_v38 = vld [vmem:[%s9803_s19 + $0x48] sm:$0xff]  ;;  %7209 = vmatpush.bf16.msrb.mxu1 %v8867_v2 }
 0xba3   : > { %vm6294_vm2 = vweird.f32 %v13947_v22  ;;  %v14055_v46 = vor.u32 1.1754944e-38, %v6269_v28  ;;  %vm6278_vm3 = vweird.f32 %v13893_v55  ;;  %v9411_v18 = vpop.eup %9410  ;;  %v6247_v16 = vadd.f32 %v13940_v1, %v6246_v13  ;;  %v5305_v13 = vpop.f32.mrf.mxu1  ;;  %7262 = vmatpush.bf16.msrb.mxu2 %v8875_v38 }
 0xba4   : > { %15885 = vst [vmem:[#allocation48_spill] sm:$0xff] %v14043_v63  ;;  %vm14050_vm1 = vcmp.eq.f32.partialorder %v15886_v49, 8.507059e+37  ;;  %vm14070_vm5 = vcmp.eq.f32.partialorder %v6297_v4, 8.507059e+37  ;;  %vm14074_vm6 = vcmp.eq.f32.partialorder %v6267_v41, 8.507059e+37  ;;  %v6276_v32 = vmul.f32 %v13969_v27, %v6275_v17  ;;  %v8891_v49 = vld [vmem:[%s9803_s19 + $0xc8] sm:$0xff]  ;;  %v14083_v9 = vpop.eup %9412  ;;  %vm14116_vm10 = vmor %vm6293_vm13, %vm6294_vm2  ;;  %v15908_v17 = vld [vmem:[#allocation9_spill] sm:$0xff] }
 0xba5   : > { %v14079_v58 = vadd.f32 1.0, %v9409_v3  ;;  %v8507_v8 = vmul.f32 -1.702, %v14031_v51  ;;  %v6221_v4 = vsel %vm14065_vm4, %v13921_v14, %v6217_v47  ;;  %vm6264_vm7 = vweird.f32 %v13953_v36  ;;  %v9415_v3 = vpop.eup %9414  ;;  %7368 = vmatpush.bf16.msrb.mxu0 %v8891_v49  ;;  %v5464_v51 = vpop.f32.mrf.mxu0  ;;  %v8890_v49 = vld [vmem:[%s9803_s19 + $0xc0] sm:$0xff]  ;;  %7316 = vmatpush.bf16.msra.mxu3 %v8882_v21 }
 0xba6   : > { %v6282_v41 = vand.u32 2147483647, %v13893_v55  ;;  %9416 = vrcp.f32 %v14038_v52  ;;  %v6292_v47 = vadd.f32 %v13947_v22, %v6291_v59  ;;  %v6262_v14 = vadd.f32 %v13953_v36, %v6261_v33  ;;  %v8874_v59 = vld [vmem:[%s9803_s19 + $0x40] sm:$0xff]  ;;  %vm14138_vm11 = vmor %vm6263_vm0, %vm6264_vm7  ;;  %7210 = vmatpush.bf16.msrb.mxu1 %v8866_v24  ;;  %v15915_v33 = vld [vmem:[#allocation35_spill] sm:$0xff] }
 0xba7   : > { %9418 = vpow2.f32 %v5697_v10  ;;  %v8508_v56 = vmul.f32 -1.702, %v14043_v63  ;;  %vm6279_vm9 = vweird.f32 %v13969_v27  ;;  %v6284_v2 = vand.u32 2147483648, %v13893_v55  ;;  %7263 = vmatpush.bf16.msrb.mxu2 %v8874_v59  ;;  %v15914_v59 = vld [vmem:[#allocation33_spill] sm:$0xff] }
 0xba8   : > { %v14104_v38 = vadd.f32 1.0, %v9411_v18  ;;  %v14107_v61 = vadd.f32 %v5305_v13, %v12669_v30  ;;  %v6277_v10 = vadd.f32 %v13969_v27, %v6276_v32  ;;  %v6304_v62 = vmul.f32 %v14083_v9, %v13989_v60  ;;  %vm14159_vm12 = vmor %vm6278_vm3, %vm6279_vm9 }
 0xba9   : > { %9420 = vrcp.f32 %v14079_v58  ;;  %v5693_v18 = vmul.f32 1.442695, %v8507_v8  ;;  %v14126_v13 = vmul.f32 %v6211_v12, %v13595_v39  ;;  %v6226_v6 = vsel %vm14025_vm14, %v13971_v19, %v6221_v4  ;;  %7369 = vmatpush.bf16.msrb.mxu0 %v8890_v49  ;;  %v15905_v4 = vld [vmem:[#allocation37_spill] sm:$0xff] }
 0xbaa   : > { %v6251_v63 = vsel %vm14095_vm8, %v13940_v1, %v6247_v16  ;;  %v14142_v8 = vadd.f32 1.0, %v9415_v3  ;;  %v6296_v39 = vsel %vm14116_vm10, %v13947_v22, %v6292_v47  ;;  %v6266_v1 = vsel %vm14138_vm11, %v13953_v36, %v6262_v14  ;;  %v15909_v47 = vld [vmem:[#allocation36_spill] sm:$0xff] }
 0xbab   : > { %v5695_v19 = vmul.f32 1.442695, %v8508_v56  ;;  %v14151_v11 = vadd.f32 %v5464_v51, %v12674_v23  ;;  %vm14163_vm13 = vcmp.eq.f32.partialorder %v6282_v41, 8.507059e+37  ;;  %v6285_v36 = vor.u32 1.1754944e-38, %v6284_v2  ;;  %v15906_v41 = vld [vmem:[#allocation34_spill] sm:$0xff] }
 0xbac   : > { %v14153_v7 = vpop.eup %9416  ;;  %9422 = vrcp.f32 %v14104_v38  ;;  %v8510_v21 = vmul.f32 -1.702, %v14107_v61  ;;  %v6256_v12 = vsel %vm14050_vm1, %v13993_v54, %v6251_v63  ;;  %v6281_v55 = vsel %vm14159_vm12, %v13969_v27, %v6277_v10  ;;  %v15911_v63 = vld [vmem:[#allocation38_spill] sm:$0xff] }
 0xbad   : > { %v9419_v51 = vpop.eup %9418  ;;  %v6305_v16 = vsub.f32 1.0, %v6304_v62  ;;  %9424 = vpow2.f32 %v5693_v18  ;;  %v15907_v3 = vpack.c.bf16 %v15905_v4, %v15906_v41  ;;  %v15910_v14 = vpack.c.bf16 %v15908_v17, %v15909_v47  ;;  %v5411_v47 = vpop.f32.mrf.mxu3 }
 0xbae   : > { %v6301_v56 = vsel %vm14070_vm5, %v14003_v53, %v6296_v39  ;;  %v6271_v54 = vsel %vm14074_vm6, %v14055_v46, %v6266_v1  ;;  %v6312_v27 = vand.u32 2147483647, %v13989_v60  ;;  %9426 = vrcp.f32 %v14142_v8 }
 0xbaf   : > { %7211 = vmatmul.bf16.vlgmr.msrb.gmra.mxu1 %v15907_v3  ;;  %7264 = vmatmul.bf16.vlgmr.msrb.gmra.mxu2 %v15910_v14  ;;  %v15913_v2 = vpack.c.bf16 %v15911_v63, %v15912_v40  ;;  %v15916_v10 = vpack.c.bf16 %v15914_v59, %v15915_v33  ;;  %v14195_v62 = vpop.eup %9420  ;;  %v6349_v53 = vmul.f32 %v14153_v7, %v14038_v52  ;;  %9428 = vpow2.f32 %v5695_v19 }
 0xbb0   : > { %v5699_v34 = vmul.f32 1.442695, %v8510_v21  ;;  %v8513_v46 = vmul.f32 -1.702, %v14151_v11  ;;  %v14201_v28 = vmul.f32 %v6226_v6, %v13669_v57  ;;  %v6286_v18 = vsel %vm14163_vm13, %v6285_v36, %v6281_v55  ;;  %v5358_v21 = vpop.f32.mrf.mxu2 }
 0xbb1   : > { %7317 = vmatmul.bf16.vlgmr.msra.gmra.mxu3 %v15913_v2  ;;  %7370 = vmatmul.bf16.vlgmr.msrb.gmra.mxu0 %v15916_v10  ;;  %v6314_v49 = vand.u32 2147483648, %v13989_v60  ;;  %v14206_v32 = vadd.f32 1.0, %v9419_v51  ;;  %v14209_v39 = vmul.f32 %v6256_v12, %v13703_v48  ;;  %v6306_v1 = vmul.f32 %v14083_v9, %v6305_v16 }
 0xbb2   : > { %v6359_v19 = vand.u32 2147483648, %v14038_v52  ;;  %9430 = vpow2.f32 %v5699_v34  ;;  %v14213_v24 = vpop.eup %9422  ;;  %v14216_v57 = vmul.f32 %v6301_v56, %v13712_v26  ;;  %v14219_v6 = vmul.f32 %v6271_v54, %v13717_v5 }
 0xbb3   : > { %v6319_v22 = vmul.f32 %v14195_v62, %v14079_v58  ;;  %v5705_v36 = vmul.f32 1.442695, %v8513_v46  ;;  %v9425_v48 = vpop.eup %9424  ;;  %v14224_v51 = vmul.f32 %v6286_v18, %v13733_v15  ;;  %vm6308_vm14 = vweird.f32 %v13989_v60 }
 0xbb4   : > { %vm14227_vm15 = vcmp.eq.f32.partialorder %v6312_v27, 8.507059e+37  ;;  %v6350_v26 = vsub.f32 1.0, %v6349_v53  ;;  %v14231_v55 = vpop.eup %9426  ;;  %v6315_v5 = vor.u32 1.1754944e-38, %v6314_v49  ;;  %v6357_v16 = vand.u32 2147483647, %v14038_v52  ;;  %v5307_v27 = vpop.f32.mrf.mxu1 }
 0xbb5   : > { %v6329_v4 = vand.u32 2147483648, %v14079_v58  ;;  %9432 = vrcp.f32 %v14206_v32  ;;  %v9429_v41 = vpop.eup %9428  ;;  %v6307_v15 = vadd.f32 %v14083_v9, %v6306_v1  ;;  %vm6309_vm0 = vweird.f32 %v14083_v9 }
 0xbb6   : > { %vm6353_vm1 = vweird.f32 %v14038_v52  ;;  %v14239_v3 = vor.u32 1.1754944e-38, %v6359_v19  ;;  %v6334_v17 = vmul.f32 %v14213_v24, %v14104_v38  ;;  %v6320_v14 = vsub.f32 1.0, %v6319_v22  ;;  %vm14257_vm2 = vmor %vm6308_vm14, %vm6309_vm0 }
 0xbb7   : > { %v14243_v56 = vadd.f32 1.0, %v9425_v48  ;;  %9434 = vpow2.f32 %v5705_v36  ;;  %v14246_v54 = vadd.f32 %v5358_v21, %v12683_v35  ;;  %v6351_v40 = vmul.f32 %v14153_v7, %v6350_v26 }
 0xbb8   : > { %v9431_v63 = vpop.eup %9430  ;;  %v6327_v2 = vand.u32 2147483647, %v14079_v58  ;;  %v6344_v59 = vand.u32 2147483648, %v14104_v38  ;;  %v6364_v33 = vmul.f32 %v14231_v55, %v14142_v8  ;;  %vm6323_vm3 = vweird.f32 %v14079_v58 }
 0xbb9   : > { %v14262_v53 = vor.u32 1.1754944e-38, %v6329_v4  ;;  %v6342_v34 = vand.u32 2147483647, %v14104_v38  ;;  %v14265_v46 = vadd.f32 1.0, %v9429_v41  ;;  %v14268_v18 = vadd.f32 %v5411_v47, %v12685_v31  ;;  %v5466_v41 = vpop.f32.mrf.mxu0 }
 0xbba   : > { %v6311_v49 = vsel %vm14257_vm2, %v14083_v9, %v6307_v15  ;;  %vm14273_vm4 = vcmp.eq.f32.partialorder %v6357_v16, 8.507059e+37  ;;  %v6335_v1 = vsub.f32 1.0, %v6334_v17  ;;  %v14277_v19 = vadd.f32 1.0, %v9431_v63  ;;  %v5360_v63 = vpop.f32.mrf.mxu2 }
 0xbbb   : > { %v14280_v22 = vadd.f32 %v5307_v27, %v12669_v30  ;;  %v14282_v36 = vpop.eup %9432  ;;  %vm6354_vm5 = vweird.f32 %v14153_v7  ;;  %v6321_v21 = vmul.f32 %v14195_v62, %v6320_v14  ;;  %9436 = vrcp.f32 %v14243_v56 }
 0xbbc   : > { %v8511_v9 = vmul.f32 -1.702, %v14246_v54  ;;  %v6352_v48 = vadd.f32 %v14153_v7, %v6351_v40  ;;  %vm6338_vm6 = vweird.f32 %v14104_v38  ;;  %v14290_v26 = vor.u32 1.1754944e-38, %v6344_v59  ;;  %vm14318_vm9 = vmor %vm6353_vm1, %vm6354_vm5 }
 0xbbd   : > { %v6365_v16 = vsub.f32 1.0, %v6364_v33  ;;  %v6372_v4 = vand.u32 2147483647, %v14142_v8  ;;  %v9435_v15 = vpop.eup %9434  ;;  %v6316_v17 = vsel %vm14227_vm15, %v6315_v5, %v6311_v49  ;;  %vm14295_vm7 = vcmp.eq.f32.partialorder %v6327_v2, 8.507059e+37 }
 0xbbe   : > { %v6374_v14 = vand.u32 2147483648, %v14142_v8  ;;  %9438 = vrcp.f32 %v14265_v46  ;;  %v8512_v27 = vmul.f32 -1.702, %v14268_v18  ;;  %v6336_v40 = vmul.f32 %v14213_v24, %v6335_v1 }
 0xbbf   : > { %vm6368_vm8 = vweird.f32 %v14142_v8  ;;  %v6409_v59 = vmul.f32 %v14282_v36, %v14206_v32  ;;  %9440 = vrcp.f32 %v14277_v19  ;;  %v8514_v12 = vmul.f32 -1.702, %v14280_v22 }
 0xbc0   : > { %v15925_v5 = vpack.c.bf16 %v13387_v45, %v13253_v20  ;;  %v15926_v2 = vpack.c.bf16 %v13503_v43, %v13288_v42  ;;  %v6322_v10 = vadd.f32 %v14195_v62, %v6321_v21  ;;  %vm6324_vm10 = vweird.f32 %v14195_v62  ;;  %v15930_v45 = vld [vmem:[#allocation25_spill] sm:$0xff]  ;;  %v15931_v43 = vld [vmem:[#allocation39_spill] sm:$0xff] }
 0xbc1   : > { %v5701_v49 = vmul.f32 1.442695, %v8511_v9  ;;  %v14325_v20 = vadd.f32 %v5466_v41, %v12674_v23  ;;  %v15929_v42 = vpack.c.bf16 %v13600_v0, %v13341_v50  ;;  %v15932_v1 = vpack.c.bf16 %v15930_v45, %v15931_v43  ;;  %v14346_v50 = vpop.eup %9436  ;;  %vm14356_vm13 = vmor %vm6323_vm3, %vm6324_vm10 }
 0xbc2   : > { %7216 = vmatmul.bf16.gmra.mxu1 %v15925_v5  ;;  %7269 = vmatmul.bf16.gmra.mxu2 %v15926_v2  ;;  %v6356_v52 = vsel %vm14318_vm9, %v14153_v7, %v6352_v48  ;;  %vm14336_vm11 = vcmp.eq.f32.partialorder %v6342_v34, 8.507059e+37  ;;  %v6366_v9 = vmul.f32 %v14231_v55, %v6365_v16  ;;  %v14341_v41 = vadd.f32 1.0, %v9435_v15 }
 0xbc3   : > { %7322 = vmatmul.bf16.gmra.mxu3 %v15929_v42  ;;  %7375 = vmatmul.bf16.gmra.mxu0 %v15932_v1  ;;  %v14344_v5 = vadd.f32 %v5360_v63, %v12683_v35  ;;  %v14349_v0 = vmul.f32 %v6316_v17, %v13809_v29  ;;  %vm6339_vm12 = vweird.f32 %v14213_v24  ;;  %v6375_v2 = vor.u32 1.1754944e-38, %v6374_v14 }
 0xbc4   : > { %v5703_v7 = vmul.f32 1.442695, %v8512_v27  ;;  %v6337_v48 = vadd.f32 %v14213_v24, %v6336_v40  ;;  %vm6369_vm14 = vweird.f32 %v14231_v55  ;;  %vm14362_vm15 = vcmp.eq.f32.partialorder %v6372_v4, 8.507059e+37  ;;  %v14366_v17 = vpop.eup %9438  ;;  %vm14386_vm0 = vmor %vm6338_vm6, %vm6339_vm12 }
 0xbc5   : > { %v6410_v29 = vsub.f32 1.0, %v6409_v59  ;;  %v5707_v15 = vmul.f32 1.442695, %v8514_v12  ;;  %v6361_v58 = vsel %vm14273_vm4, %v14239_v3, %v6356_v52  ;;  %v6326_v14 = vsel %vm14356_vm13, %v14195_v62, %v6322_v10  ;;  %v14375_v63 = vpop.eup %9440  ;;  %v5413_v12 = vpop.f32.mrf.mxu3  ;;  %vm14407_vm2 = vmor %vm6368_vm8, %vm6369_vm14 }
 0xbc6   : > { %9442 = vpow2.f32 %v5701_v49  ;;  %v8517_v27 = vmul.f32 -1.702, %v14325_v20  ;;  %v6367_v4 = vadd.f32 %v14231_v55, %v6366_v9  ;;  %v6379_v40 = vmul.f32 %v14346_v50, %v14243_v56 }
 0xbc7   : > { %9444 = vrcp.f32 %v14341_v41  ;;  %v8515_v59 = vmul.f32 -1.702, %v14344_v5  ;;  %vm6413_vm1 = vweird.f32 %v14206_v32  ;;  %v6417_v3 = vand.u32 2147483647, %v14206_v32 }
 0xbc8   : > { %v6419_v60 = vand.u32 2147483648, %v14206_v32  ;;  %9446 = vpow2.f32 %v5703_v7  ;;  %v6331_v33 = vsel %vm14295_vm7, %v14262_v53, %v6326_v14  ;;  %v6341_v38 = vsel %vm14386_vm0, %v14213_v24, %v6337_v48  ;;  %v5310_v7 = vpop.f32.mrf.mxu1 }
 0xbc9   : > { %v6411_v10 = vmul.f32 %v14282_v36, %v6410_v29  ;;  %9448 = vpow2.f32 %v5707_v15  ;;  %v14401_v49 = vmul.f32 %v6361_v58, %v13873_v25  ;;  %v6394_v53 = vmul.f32 %v14366_v17, %v14265_v46 }
 0xbca   : > { %v6424_v24 = vmul.f32 %v14375_v63, %v14277_v19  ;;  %v5713_v47 = vmul.f32 1.442695, %v8517_v27  ;;  %v6371_v25 = vsel %vm14407_vm2, %v14231_v55, %v6367_v4  ;;  %v6380_v45 = vsub.f32 1.0, %v6379_v40 }
 0xbcb   : > { %v5709_v43 = vmul.f32 1.442695, %v8515_v59  ;;  %v14419_v1 = vadd.f32 %v5413_v12, %v12685_v31  ;;  %v14422_v52 = vmul.f32 %v6331_v33, %v13896_v44  ;;  %v6346_v9 = vsel %vm14336_vm11, %v14290_v26, %v6341_v38  ;;  %v15950_v38 = vld [vmem:[#allocation41_spill] sm:$0xff] }
 0xbcc   : > { %v9443_v8 = vpop.eup %9442  ;;  %vm14427_vm3 = vcmp.eq.f32.partialorder %v6417_v3, 8.507059e+37  ;;  %v6389_v34 = vand.u32 2147483648, %v14243_v56  ;;  %v6412_v48 = vadd.f32 %v14282_v36, %v6411_v10  ;;  %vm6414_vm4 = vweird.f32 %v14282_v36  ;;  %v15951_v10 = vld [vmem:[#allocation10_spill] sm:$0xff] }
 0xbcd   : > { %v14432_v55 = vpop.eup %9444  ;;  %v6420_v29 = vor.u32 1.1754944e-38, %v6419_v60  ;;  %v6387_v44 = vand.u32 2147483647, %v14243_v56  ;;  %v6376_v21 = vsel %vm14362_vm15, %v6375_v2, %v6371_v25  ;;  %v6395_v26 = vsub.f32 1.0, %v6394_v53  ;;  %vm14446_vm5 = vmor %vm6413_vm1, %vm6414_vm4  ;;  %v15953_v53 = vld [vmem:[#allocation31_spill] sm:$0xff] }
 0xbce   : > { %v9447_v15 = vpop.eup %9446  ;;  %v6425_v58 = vsub.f32 1.0, %v6424_v24  ;;  %9450 = vpow2.f32 %v5713_v47  ;;  %v14440_v27 = vmul.f32 %v6346_v9, %v13927_v37  ;;  %v6381_v4 = vmul.f32 %v14346_v50, %v6380_v45  ;;  %v15947_v37 = vld [vmem:[#allocation44_spill] sm:$0xff]  ;;  %v15954_v24 = vld [vmem:[#allocation30_spill] sm:$0xff] }
 0xbcf   : > { %v9449_v14 = vpop.eup %9448  ;;  %9452 = vpow2.f32 %v5709_v43  ;;  %v8516_v40 = vmul.f32 -1.702, %v14419_v1  ;;  %vm6383_vm6 = vweird.f32 %v14243_v56  ;;  %v6390_v2 = vor.u32 1.1754944e-38, %v6389_v34  ;;  %v15957_v9 = vld [vmem:[#allocation40_spill] sm:$0xff] }
 0xbd0   : > { %v6404_v16 = vand.u32 2147483648, %v14265_v46  ;;  %v14452_v62 = vadd.f32 1.0, %v9443_v8  ;;  %v14455_v3 = vmul.f32 %v6376_v21, %v15947_v37  ;;  %v6416_v60 = vsel %vm14446_vm5, %v14282_v36, %v6412_v48  ;;  %v15956_v8 = vld [vmem:[#allocation43_spill] sm:$0xff]  ;;  %v15959_v48 = vld [vmem:[#allocation42_spill] sm:$0xff] }
 0xbd1   : > { %vm14460_vm7 = vcmp.eq.f32.partialorder %v6387_v44, 8.507059e+37  ;;  %v6402_v12 = vand.u32 2147483647, %v14265_v46  ;;  %v14465_v33 = vadd.f32 1.0, %v9447_v15  ;;  %v15952_v42 = vpack.c.bf16 %v15950_v38, %v15951_v10  ;;  %v15960_v44 = vld [vmem:[#allocation21_spill] sm:$0xff] }
 0xbd2   : > { %v15955_v47 = vpack.c.bf16 %v15953_v53, %v15954_v24  ;;  %v6396_v25 = vmul.f32 %v14366_v17, %v6395_v26  ;;  %v6426_v36 = vmul.f32 %v14375_v63, %v6425_v58  ;;  %v6469_v45 = vmul.f32 %v14432_v55, %v14341_v41 }
 0xbd3   : > { %7221 = vmatmul.bf16.gmra.mxu1 %v15952_v42  ;;  %v14477_v43 = vadd.f32 1.0, %v9449_v14  ;;  %v15958_v34 = vpack.c.bf16 %v15956_v8, %v15957_v9  ;;  %v15961_v15 = vpack.c.bf16 %v15959_v48, %v15960_v44  ;;  %v6382_v21 = vadd.f32 %v14346_v50, %v6381_v4 }
 0xbd4   : > { %7274 = vmatmul.bf16.gmra.mxu2 %v15955_v47  ;;  %vm6384_vm8 = vweird.f32 %v14346_v50  ;;  %vm6398_vm9 = vweird.f32 %v14265_v46  ;;  %v5711_v26 = vmul.f32 1.442695, %v8516_v40  ;;  %v9451_v58 = vpop.eup %9450  ;;  %v6421_v14 = vsel %vm14427_vm3, %v6420_v29, %v6416_v60  ;;  %v5469_v29 = vpop.f32.mrf.mxu0 }
 0xbd5   : > { %7327 = vmatmul.bf16.gmra.mxu3 %v15958_v34  ;;  %7380 = vmatmul.bf16.gmra.mxu0 %v15961_v15  ;;  %v6405_v59 = vor.u32 1.1754944e-38, %v6404_v16  ;;  %v6432_v37 = vand.u32 2147483647, %v14277_v19  ;;  %9454 = vrcp.f32 %v14452_v62  ;;  %v9453_v38 = vpop.eup %9452  ;;  %vm6399_vm10 = vweird.f32 %v14366_v17  ;;  %vm14504_vm13 = vmor %vm6383_vm6, %vm6384_vm8 }
 0xbd6   : > { %vm14493_vm11 = vcmp.eq.f32.partialorder %v6402_v12, 8.507059e+37  ;;  %vm6429_vm12 = vweird.f32 %v14375_v63  ;;  %v6434_v4 = vand.u32 2147483648, %v14277_v19  ;;  %9456 = vrcp.f32 %v14465_v33  ;;  %vm14521_vm15 = vmor %vm6398_vm9, %vm6399_vm10 }
 0xbd7   : > { %v6397_v16 = vadd.f32 %v14366_v17, %v6396_v25  ;;  %v6427_v60 = vadd.f32 %v14375_v63, %v6426_v36  ;;  %v6470_v12 = vsub.f32 1.0, %v6469_v45  ;;  %9458 = vrcp.f32 %v14477_v43  ;;  %v15969_v36 = vld [vmem:[#allocation46_spill] sm:$0xff] }
 0xbd8   : > { %v6386_v42 = vsel %vm14504_vm13, %v14346_v50, %v6382_v21  ;;  %vm6428_vm14 = vweird.f32 %v14277_v19  ;;  %v14515_v53 = vadd.f32 1.0, %v9451_v58  ;;  %9460 = vpow2.f32 %v5711_v26  ;;  %v5363_v50 = vpop.f32.mrf.mxu2 }
 0xbd9   : > { %v6479_v24 = vand.u32 2147483648, %v14341_v41  ;;  %v14526_v47 = vadd.f32 1.0, %v9453_v38  ;;  %v14529_v25 = vadd.f32 %v5310_v7, %v12669_v30  ;;  %v14532_v19 = vadd.f32 %v5469_v29, %v12674_v23  ;;  %vm14539_vm0 = vmor %vm6428_vm14, %vm6429_vm12 }
 0xbda   : > { %v14535_v45 = vmul.f32 %v6421_v14, %v15969_v36  ;;  %vm14543_vm1 = vcmp.eq.f32.partialorder %v6432_v37, 8.507059e+37  ;;  %v6435_v9 = vor.u32 1.1754944e-38, %v6434_v4  ;;  %v6477_v34 = vand.u32 2147483647, %v14341_v41  ;;  %v15976_v4 = vld [vmem:[#allocation45_spill] sm:$0xff] }
 0xbdb   : > { %15968 = vst [vmem:[#allocation37_spill] sm:$0xff] %v14532_v19  ;;  %v14548_v48 = vpop.eup %9454  ;;  %v6391_v44 = vsel %vm14460_vm7, %v6390_v2, %v6386_v42  ;;  %v6401_v15 = vsel %vm14521_vm15, %v14366_v17, %v6397_v16  ;;  %v6431_v21 = vsel %vm14539_vm0, %v14375_v63, %v6427_v60  ;;  %v6471_v26 = vmul.f32 %v14432_v55, %v6470_v12  ;;  %v15975_v63 = vld [vmem:[#allocation24_spill] sm:$0xff]  ;;  %v5416_v12 = vpop.f32.mrf.mxu3 }
 0xbdc   : > { %vm6473_vm2 = vweird.f32 %v14341_v41  ;;  %v14560_v58 = vpop.eup %9456  ;;  %9462 = vrcp.f32 %v14515_v53  ;;  %v8518_v14 = vmul.f32 -1.702, %v14529_v25  ;;  %v8521_v2 = vmul.f32 -1.702, %v14532_v19 }
 0xbdd   : > { %v14566_v32 = vadd.f32 %v5363_v50, %v12683_v35  ;;  %v14568_v17 = vpop.eup %9458  ;;  %v14570_v37 = vor.u32 1.1754944e-38, %v6479_v24  ;;  %9464 = vrcp.f32 %v14526_v47  ;;  %v6923_v38 = vpack.c.bf16 %v14209_v39, %v15975_v63 }
 0xbde   : > { %v6926_v7 = vpack.c.bf16 %v14216_v57, %v15976_v4  ;;  %v9461_v29 = vpop.eup %9460  ;;  %vm6474_vm3 = vweird.f32 %v14432_v55  ;;  %v6449_v40 = vand.u32 2147483648, %v14452_v62  ;;  %v5715_v16 = vmul.f32 1.442695, %v8518_v14 }
 0xbdf   : > { %15974 = vst [vmem:[#allocation34_spill] sm:$0xff] %v14566_v32  ;;  %v5721_v60 = vmul.f32 1.442695, %v8521_v2  ;;  %v6406_v42 = vsel %vm14493_vm11, %v6405_v59, %v6401_v15  ;;  %v6436_v56 = vsel %vm14543_vm1, %v6435_v9, %v6431_v21  ;;  %v6439_v39 = vmul.f32 %v14548_v48, %v14452_v62  ;;  %v15980_v9 = vld [vmem:[#allocation47_spill] sm:$0xff]  ;;  %v15981_v21 = vld [vmem:[#allocation48_spill] sm:$0xff]  ;;  %vm14625_vm5 = vmor %vm6473_vm2, %vm6474_vm3 }
 0xbe0   : > { %v6924_v57 = vpack.c.bf16 %v14219_v6, %v14126_v13  ;;  %v6472_v24 = vadd.f32 %v14432_v55, %v6471_v26  ;;  %v6454_v50 = vmul.f32 %v14560_v58, %v14465_v33  ;;  %9466 = vpow2.f32 %v5715_v16  ;;  %v5312_v6 = vpop.f32.mrf.mxu1 }
 0xbe1   : > { %v8519_v36 = vmul.f32 -1.702, %v14566_v32  ;;  %vm14591_vm4 = vcmp.eq.f32.partialorder %v6477_v34, 8.507059e+37  ;;  %v6484_v59 = vmul.f32 %v14568_v17, %v14477_v43  ;;  %v14597_v46 = vadd.f32 1.0, %v9461_v29 }
 0xbe2   : > { %9468 = vpow2.f32 %v5721_v60  ;;  %v14600_v13 = vadd.f32 %v5416_v12, %v12685_v31  ;;  %v14602_v8 = vpop.eup %9462  ;;  %v14605_v15 = vmul.f32 %v6391_v44, %v15980_v9  ;;  %v14608_v34 = vmul.f32 %v6406_v42, %v15981_v21  ;;  %v5471_v44 = vpop.f32.mrf.mxu0 }
 0xbe3   : > { %v6447_v26 = vand.u32 2147483647, %v14452_v62  ;;  %v14611_v14 = vor.u32 1.1754944e-38, %v6449_v40  ;;  %7226 = vmatmul.bf16.gmra.mxu1 %v6923_v38  ;;  %v14613_v2 = vpop.eup %9464  ;;  %v6440_v63 = vsub.f32 1.0, %v6439_v39  ;;  %v6462_v4 = vand.u32 2147483647, %v14465_v33 }
 0xbe4   : > { %15979 = vst [vmem:[#allocation9_spill] sm:$0xff] %v14600_v13  ;;  %7279 = vmatmul.bf16.gmra.mxu2 %v6924_v57  ;;  %v6464_v29 = vand.u32 2147483648, %v14465_v33  ;;  %v8520_v16 = vmul.f32 -1.702, %v14600_v13  ;;  %v14619_v60 = vmul.f32 %v6436_v56, %v14107_v61  ;;  %v6455_v40 = vsub.f32 1.0, %v6454_v50 }
 0xbe5   : > { %7385 = vmatmul.bf16.gmra.mxu0 %v6926_v7  ;;  %v5717_v12 = vmul.f32 1.442695, %v8519_v36  ;;  %v14630_v42 = vadd.f32 %v5312_v6, %v12669_v30  ;;  %v6476_v7 = vsel %vm14625_vm5, %v14432_v55, %v6472_v24  ;;  %v6485_v39 = vsub.f32 1.0, %v6484_v59  ;;  %v5365_v55 = vpop.f32.mrf.mxu2 }
 0xbe6   : > { %v6492_v61 = vand.u32 2147483647, %v14477_v43  ;;  %9470 = vrcp.f32 %v14597_v46  ;;  %v9467_v56 = vpop.eup %9466  ;;  %vm6443_vm6 = vweird.f32 %v14452_v62  ;;  %v6529_v41 = vmul.f32 %v14602_v8, %v14515_v53 }
 0xbe7   : > { %v6499_v57 = vmul.f32 %v14613_v2, %v14526_v47  ;;  %v8522_v50 = vmul.f32 -1.702, %v14630_v42  ;;  %v14644_v36 = vadd.f32 %v5471_v44, %v12674_v23  ;;  %v6441_v59 = vmul.f32 %v14548_v48, %v6440_v63 }
 0xbe8   : > { %v9469_v24 = vpop.eup %9468  ;;  %vm6444_vm7 = vweird.f32 %v14548_v48  ;;  %vm6458_vm8 = vweird.f32 %v14465_v33  ;;  %v14649_v6 = vor.u32 1.1754944e-38, %v6464_v29  ;;  %v5719_v9 = vmul.f32 1.442695, %v8520_v16 }
 0xbe9   : > { %v6456_v21 = vmul.f32 %v14560_v58, %v6455_v40  ;;  %vm6488_vm9 = vweird.f32 %v14477_v43  ;;  %9472 = vpow2.f32 %v5717_v12  ;;  %v5723_v38 = vmul.f32 1.442695, %v8522_v50  ;;  %vm14702_vm15 = vmor %vm6443_vm6, %vm6444_vm7 }
 0xbea   : > { %v6925_v44 = vpack.c.bf16 %v14224_v51, %v14201_v28  ;;  %v6486_v13 = vmul.f32 %v14568_v17, %v6485_v39  ;;  %v14656_v32 = vadd.f32 1.0, %v9467_v56  ;;  %v8525_v63 = vmul.f32 -1.702, %v14644_v36 }
 0xbeb   : > { %v14660_v19 = vadd.f32 %v5365_v55, %v12683_v35  ;;  %v6481_v29 = vsel %vm14591_vm4, %v14570_v37, %v6476_v7  ;;  %vm14665_vm10 = vcmp.eq.f32.partialorder %v6447_v26, 8.507059e+37  ;;  %v6530_v40 = vsub.f32 1.0, %v6529_v41 }
 0xbec   : > { %v6500_v12 = vsub.f32 1.0, %v6499_v57  ;;  %v14669_v28 = vadd.f32 1.0, %v9469_v24  ;;  %7332 = vmatmul.bf16.gmra.mxu3 %v6925_v44  ;;  %v14671_v51 = vpop.eup %9470  ;;  %vm6459_vm11 = vweird.f32 %v14560_v58  ;;  %v6494_v39 = vand.u32 2147483648, %v14477_v43 }
 0xbed   : > { %v6537_v56 = vand.u32 2147483647, %v14515_v53  ;;  %9474 = vpow2.f32 %v5719_v9  ;;  %v6442_v37 = vadd.f32 %v14548_v48, %v6441_v59  ;;  %v6457_v10 = vadd.f32 %v14560_v58, %v6456_v21  ;;  %vm14715_vm1 = vmor %vm6458_vm8, %vm6459_vm11 }
 0xbee   : > { %vm14678_vm12 = vcmp.eq.f32.partialorder %v6462_v4, 8.507059e+37  ;;  %vm6489_vm13 = vweird.f32 %v14568_v17  ;;  %vm14683_vm14 = vcmp.eq.f32.partialorder %v6492_v61, 8.507059e+37  ;;  %9476 = vpow2.f32 %v5723_v38 }
 0xbef   : > { %v6487_v41 = vadd.f32 %v14568_v17, %v6486_v13  ;;  %9478 = vrcp.f32 %v14656_v32  ;;  %v5729_v57 = vmul.f32 1.442695, %v8525_v63  ;;  %v8523_v50 = vmul.f32 -1.702, %v14660_v19  ;;  %v9473_v55 = vpop.eup %9472  ;;  %vm14732_vm4 = vmor %vm6488_vm9, %vm6489_vm13 }
 0xbf0   : > { %v6531_v4 = vmul.f32 %v14602_v8, %v6530_v40  ;;  %v6501_v24 = vmul.f32 %v14613_v2, %v6500_v12  ;;  %v6514_v59 = vmul.f32 %v14671_v51, %v14597_v46  ;;  %9480 = vrcp.f32 %v14669_v28  ;;  %v5418_v12 = vpop.f32.mrf.mxu3 }
 0xbf1   : > { %v14696_v61 = vmul.f32 %v6481_v29, %v14151_v11  ;;  %v6495_v9 = vor.u32 1.1754944e-38, %v6494_v39  ;;  %vm6533_vm0 = vweird.f32 %v14515_v53  ;;  %v6539_v21 = vand.u32 2147483648, %v14515_v53 }
 0xbf2   : > { %v6446_v38 = vsel %vm14702_vm15, %v14548_v48, %v6442_v37  ;;  %vm6534_vm2 = vweird.f32 %v14602_v8  ;;  %vm14720_vm3 = vcmp.eq.f32.partialorder %v6537_v56, 8.507059e+37  ;;  %v6507_v44 = vand.u32 2147483647, %v14526_v47 }
 0xbf3   : > { %v5725_v63 = vmul.f32 1.442695, %v8523_v50  ;;  %v9475_v29 = vpop.eup %9474  ;;  %v6461_v48 = vsel %vm14715_vm1, %v14560_v58, %v6457_v10  ;;  %vm6504_vm5 = vweird.f32 %v14613_v2  ;;  %v14737_v40 = vadd.f32 1.0, %v9473_v55  ;;  %vm14757_vm7 = vmor %vm6533_vm0, %vm6534_vm2 }
 0xbf4   : > { %9482 = vpow2.f32 %v5729_v57  ;;  %v9477_v39 = vpop.eup %9476  ;;  %v6491_v56 = vsel %vm14732_vm4, %v14568_v17, %v6487_v41  ;;  %v6532_v58 = vadd.f32 %v14602_v8, %v6531_v4  ;;  %v6502_v37 = vadd.f32 %v14613_v2, %v6501_v24 }
 0xbf5   : > { %v6515_v43 = vsub.f32 1.0, %v6514_v59  ;;  %v14744_v10 = vpop.eup %9478  ;;  %v6451_v50 = vsel %vm14665_vm10, %v14611_v14, %v6446_v38  ;;  %v6540_v55 = vor.u32 1.1754944e-38, %v6539_v21  ;;  %vm6503_vm6 = vweird.f32 %v14526_v47 }
 0xbf6   : > { %v6509_v57 = vand.u32 2147483648, %v14526_v47  ;;  %v14751_v13 = vpop.eup %9480  ;;  %vm14761_vm8 = vcmp.eq.f32.partialorder %v6507_v44, 8.507059e+37  ;;  %v14765_v14 = vadd.f32 1.0, %v9475_v29  ;;  %9484 = vpow2.f32 %v5725_v63  ;;  %vm14777_vm9 = vmor %vm6503_vm6, %vm6504_vm5 }
 0xbf7   : > { %v14768_v16 = vadd.f32 %v5418_v12, %v12685_v31  ;;  %v6466_v47 = vsel %vm14678_vm12, %v14649_v6, %v6461_v48  ;;  %v6496_v53 = vsel %vm14683_vm14, %v6495_v9, %v6491_v56  ;;  %9486 = vrcp.f32 %v14737_v40 }
 0xbf8   : > { %v14782_v24 = vadd.f32 1.0, %v9477_v39  ;;  %v6536_v59 = vsel %vm14757_vm7, %v14602_v8, %v6532_v58  ;;  %v6506_v6 = vsel %vm14777_vm9, %v14613_v2, %v6502_v37  ;;  %v6516_v26 = vmul.f32 %v14671_v51, %v6515_v43 }
 0xbf9   : > { %v6544_v7 = vmul.f32 %v14744_v10, %v14656_v32  ;;  %v6510_v21 = vor.u32 1.1754944e-38, %v6509_v57  ;;  %v6522_v38 = vand.u32 2147483647, %v14597_v46  ;;  %v6524_v11 = vand.u32 2147483648, %v14597_v46 }
 0xbfa   : > { %v9483_v9 = vpop.eup %9482  ;;  %v6589_v44 = vmul.f32 %v14751_v13, %v14669_v28  ;;  %v14798_v8 = vmul.f32 %v6451_v50, %v14246_v54  ;;  %v14801_v63 = vmul.f32 %v6466_v47, %v14268_v18  ;;  %9488 = vrcp.f32 %v14765_v14 }
 0xbfb   : > { %v8524_v2 = vmul.f32 -1.702, %v14768_v16  ;;  %v14806_v29 = vmul.f32 %v6496_v53, %v14280_v22  ;;  %v6541_v48 = vsel %vm14720_vm3, %v6540_v55, %v6536_v59  ;;  %v6511_v33 = vsel %vm14761_vm8, %v6510_v21, %v6506_v6  ;;  %v5421_v22 = vpop.f32.mrf.mxu3 }
 0xbfc   : > { %9490 = vrcp.f32 %v14782_v24  ;;  %v9485_v54 = vpop.eup %9484  ;;  %v6517_v12 = vadd.f32 %v14671_v51, %v6516_v26  ;;  %vm6519_vm10 = vweird.f32 %v14671_v51  ;;  %v6545_v18 = vsub.f32 1.0, %v6544_v7 }
 0xbfd   : > { %v14815_v39 = vadd.f32 1.0, %v9483_v9  ;;  %v14817_v56 = vpop.eup %9486  ;;  %vm6518_vm11 = vweird.f32 %v14597_v46  ;;  %vm14820_vm12 = vcmp.eq.f32.partialorder %v6522_v38, 8.507059e+37  ;;  %v6525_v62 = vor.u32 1.1754944e-38, %v6524_v11 }
 0xbfe   : > { %v6590_v58 = vsub.f32 1.0, %v6589_v44  ;;  %v6552_v37 = vand.u32 2147483647, %v14656_v32  ;;  %v6554_v43 = vand.u32 2147483648, %v14656_v32  ;;  %v14826_v50 = vadd.f32 1.0, %v9485_v54  ;;  %vm14834_vm13 = vmor %vm6518_vm11, %vm6519_vm10 }
 0xbff   : > { %v5727_v55 = vmul.f32 1.442695, %v8524_v2  ;;  %v14829_v57 = vmul.f32 %v6541_v48, %v14325_v20  ;;  %v14832_v17 = vmul.f32 %v6511_v33, %v14344_v5  ;;  %vm6548_vm14 = vweird.f32 %v14656_v32 }
 0xc00   : > { %vm6593_vm15 = vweird.f32 %v14669_v28  ;;  %v14840_v41 = vpop.eup %9488  ;;  %v6521_v47 = vsel %vm14834_vm13, %v14671_v51, %v6517_v12  ;;  %v6546_v20 = vmul.f32 %v14744_v10, %v6545_v18  ;;  %v6559_v5 = vmul.f32 %v14817_v56, %v14737_v40  ;;  %v5315_v12 = vpop.f32.mrf.mxu1 }
 0xc01   : > { %9492 = vrcp.f32 %v14815_v39  ;;  %v6591_v4 = vmul.f32 %v14751_v13, %v6590_v58  ;;  %v6597_v59 = vand.u32 2147483647, %v14669_v28  ;;  %v6599_v6 = vand.u32 2147483648, %v14669_v28 }
 0xc02   : > { %v14849_v53 = vpop.eup %9490  ;;  %9494 = vrcp.f32 %v14826_v50  ;;  %vm14855_vm0 = vcmp.eq.f32.partialorder %v6552_v37, 8.507059e+37  ;;  %v6555_v51 = vor.u32 1.1754944e-38, %v6554_v43  ;;  %v6569_v7 = vand.u32 2147483648, %v14737_v40 }
 0xc03   : > { %9496 = vpow2.f32 %v5727_v55  ;;  %v6927_v9 = vpack.c.bf16 %v14455_v3, %v14349_v0  ;;  %v6526_v21 = vsel %vm14820_vm12, %v6525_v62, %v6521_v47  ;;  %vm6549_vm1 = vweird.f32 %v14744_v10 }
 0xc04   : > { %vm6594_vm2 = vweird.f32 %v14751_v13  ;;  %v6574_v38 = vmul.f32 %v14840_v41, %v14765_v14  ;;  %v6547_v11 = vadd.f32 %v14744_v10, %v6546_v20  ;;  %v6560_v44 = vsub.f32 1.0, %v6559_v5  ;;  %vm14897_vm4 = vmor %vm6548_vm14, %vm6549_vm1  ;;  %v5474_v20 = vpop.f32.mrf.mxu0 }
 0xc05   : > { %v6604_v2 = vmul.f32 %v14849_v53, %v14782_v24  ;;  %7231 = vmatmul.bf16.gmra.mxu1 %v6927_v9  ;;  %v6928_v0 = vpack.c.bf16 %v14605_v15, %v14422_v52  ;;  %v6592_v3 = vadd.f32 %v14751_v13, %v6591_v4  ;;  %v6584_v48 = vand.u32 2147483648, %v14765_v14  ;;  %vm14910_vm5 = vmor %vm6593_vm15, %vm6594_vm2 }
 0xc06   : > { %v6929_v33 = vpack.c.bf16 %v14608_v34, %v14440_v27  ;;  %v6930_v54 = vpack.c.bf16 %v14535_v45, %v14401_v49  ;;  %vm14881_vm3 = vcmp.eq.f32.partialorder %v6597_v59, 8.507059e+37  ;;  %v6600_v62 = vor.u32 1.1754944e-38, %v6599_v6 }
 0xc07   : > { %v14879_v18 = vpop.eup %9492  ;;  %v6567_v52 = vand.u32 2147483647, %v14737_v40  ;;  %v14886_v15 = vor.u32 1.1754944e-38, %v6569_v7  ;;  %7284 = vmatmul.bf16.gmra.mxu2 %v6928_v0  ;;  %v14891_v27 = vmul.f32 %v6526_v21, %v14419_v1  ;;  %v6575_v45 = vsub.f32 1.0, %v6574_v38 }
 0xc08   : > { %v14888_v58 = vpop.eup %9494  ;;  %v6582_v34 = vand.u32 2147483647, %v14765_v14  ;;  %v6614_v37 = vand.u32 2147483648, %v14782_v24  ;;  %7337 = vmatmul.bf16.gmra.mxu3 %v6929_v33  ;;  %7390 = vmatmul.bf16.gmra.mxu0 %v6930_v54  ;;  %v6551_v1 = vsel %vm14897_vm4, %v14744_v10, %v6547_v11  ;;  %v6561_v55 = vmul.f32 %v14817_v56, %v6560_v44  ;;  %v5368_v11 = vpop.f32.mrf.mxu2 }
 0xc09   : > { %v9497_v43 = vpop.eup %9496  ;;  %v6605_v46 = vsub.f32 1.0, %v6604_v2  ;;  %v14916_v47 = vadd.f32 %v5315_v12, %v12669_v30  ;;  %v6596_v5 = vsel %vm14910_vm5, %v14751_v13, %v6592_v3  ;;  %v14921_v10 = vor.u32 1.1754944e-38, %v6584_v48 }
 0xc0a   : > { %v6649_v28 = vmul.f32 %v14879_v18, %v14815_v39  ;;  %v14925_v4 = vadd.f32 1.0, %v9497_v43  ;;  %v6612_v59 = vand.u32 2147483647, %v14782_v24  ;;  %v6619_v6 = vmul.f32 %v14888_v58, %v14826_v50 }
 0xc0b   : > { %v8526_v7 = vmul.f32 -1.702, %v14916_v47  ;;  %v14932_v9 = vadd.f32 %v5474_v20, %v12674_v23  ;;  %v14936_v13 = vsel %vm14855_vm0, %v6555_v51, %v6551_v1  ;;  %v6576_v21 = vmul.f32 %v14840_v41, %v6575_v45 }
 0xc0c   : > { %v14939_v38 = vor.u32 1.1754944e-38, %v6614_v37  ;;  %9498 = vrcp.f32 %v14925_v4  ;;  %v14944_v44 = vsel %vm14881_vm3, %v6600_v62, %v6596_v5  ;;  %v14947_v2 = vadd.f32 %v14817_v56, %v6561_v55  ;;  %v5317_v55 = vpop.f32.mrf.mxu1 }
 0xc0d   : > { %v6606_v0 = vmul.f32 %v14849_v53, %v6605_v46  ;;  %v5731_v3 = vmul.f32 1.442695, %v8526_v7  ;;  %vm6608_vm6 = vweird.f32 %v14782_v24  ;;  %v6650_v26 = vsub.f32 1.0, %v6649_v28 }
 0xc0e   : > { %v6657_v51 = vand.u32 2147483647, %v14815_v39  ;;  %v6659_v48 = vand.u32 2147483648, %v14815_v39  ;;  %v8529_v33 = vmul.f32 -1.702, %v14932_v9  ;;  %vm6609_vm7 = vweird.f32 %v14849_v53 }
 0xc0f   : > { %v6620_v54 = vsub.f32 1.0, %v6619_v6  ;;  %9500 = vpow2.f32 %v5731_v3  ;;  %v14956_v12 = vadd.f32 %v5368_v11, %v12683_v35  ;;  %v14959_v62 = vadd.f32 %v14840_v41, %v6576_v21  ;;  %vm15021_vm3 = vmor %vm6608_vm6, %vm6609_vm7 }
 0xc10   : > { %vm6653_vm8 = vweird.f32 %v14815_v39  ;;  %v6627_v49 = vand.u32 2147483647, %v14826_v50  ;;  %v5737_v45 = vmul.f32 1.442695, %v8529_v33  ;;  %v14964_v37 = vadd.f32 %v5421_v22, %v12685_v31  ;;  %v5476_v22 = vpop.f32.mrf.mxu0  ;;  %v5423_v39 = vpop.f32.mrf.mxu3 }
 0xc11   : > { %vm6564_vm9 = vweird.f32 %v14817_v56  ;;  %v14968_v43 = vadd.f32 %v14849_v53, %v6606_v0  ;;  %vm6654_vm10 = vweird.f32 %v14879_v18  ;;  %vm6623_vm11 = vweird.f32 %v14826_v50 }
 0xc12   : > { %v6629_v1 = vand.u32 2147483648, %v14826_v50  ;;  %v8527_v32 = vmul.f32 -1.702, %v14956_v12  ;;  %v14974_v46 = vpop.eup %9498  ;;  %vm6579_vm12 = vweird.f32 %v14840_v41  ;;  %v6651_v20 = vmul.f32 %v14879_v18, %v6650_v26  ;;  %vm15039_vm5 = vmor %vm6653_vm8, %vm6654_vm10 }
 0xc13   : > { %9502 = vpow2.f32 %v5737_v45  ;;  %v8528_v5 = vmul.f32 -1.702, %v14964_v37  ;;  %v14980_v28 = vadd.f32 %v5317_v55, %v12669_v30  ;;  %vm6563_vm13 = vweird.f32 %v14737_v40 }
 0xc14   : > { %vm14983_vm14 = vcmp.eq.f32.partialorder %v6612_v59, 8.507059e+37  ;;  %v6621_v7 = vmul.f32 %v14888_v58, %v6620_v54  ;;  %v6634_v21 = vmul.f32 %v14974_v46, %v14925_v4  ;;  %v6931_v11 = vpack.c.bf16 %v14806_v29, %v14619_v60  ;;  %vm15078_vm10 = vmor %vm6563_vm13, %vm6564_vm9 }
 0xc15   : > { %v5733_v0 = vmul.f32 1.442695, %v8527_v32  ;;  %vm6578_vm15 = vweird.f32 %v14765_v14  ;;  %vm14993_vm0 = vcmp.eq.f32.partialorder %v6657_v51, 8.507059e+37  ;;  %v6932_v59 = vpack.c.bf16 %v14832_v17, %v14798_v8  ;;  %v9501_v45 = vpop.eup %9500 }
 0xc16   : > { %v6933_v26 = vpack.c.bf16 %v14891_v27, %v14801_v63  ;;  %v5735_v33 = vmul.f32 1.442695, %v8528_v5  ;;  %v8530_v54 = vmul.f32 -1.702, %v14980_v28  ;;  %v6635_v55 = vsub.f32 1.0, %v6634_v21  ;;  %7236 = vmatmul.bf16.gmra.mxu1 %v6931_v11  ;;  %vm15098_vm9 = vmor %vm6578_vm15, %vm6579_vm12 }
 0xc17   : > { %v6934_v60 = vpack.c.bf16 %v14829_v57, %v14696_v61  ;;  %9504 = vpow2.f32 %v5733_v0  ;;  %v15005_v29 = vadd.f32 %v5476_v22, %v12674_v23  ;;  %v6652_v51 = vadd.f32 %v14879_v18, %v6651_v20  ;;  %7289 = vmatmul.bf16.gmra.mxu2 %v6932_v59 }
 0xc18   : > { %vm6624_vm1 = vweird.f32 %v14888_v58  ;;  %v15009_v8 = vadd.f32 1.0, %v9501_v45  ;;  %v5739_v63 = vmul.f32 1.442695, %v8530_v54  ;;  %vm15013_vm2 = vcmp.eq.f32.partialorder %v6567_v52, 8.507059e+37  ;;  %v5370_v52 = vpop.f32.mrf.mxu2  ;;  %7342 = vmatmul.bf16.gmra.mxu3 %v6933_v26 }
 0xc19   : > { %v6622_v57 = vadd.f32 %v14888_v58, %v6621_v7  ;;  %v6636_v27 = vmul.f32 %v14974_v46, %v6635_v55  ;;  %9506 = vpow2.f32 %v5735_v33  ;;  %v8533_v32 = vmul.f32 -1.702, %v15005_v29  ;;  %v9503_v20 = vpop.eup %9502  ;;  %7395 = vmatmul.bf16.gmra.mxu0 %v6934_v60  ;;  %vm15053_vm6 = vmor %vm6623_vm11, %vm6624_vm1 }
 0xc1a   : > { %v6611_v5 = vsel %vm15021_vm3, %v14849_v53, %v14968_v43  ;;  %vm6639_vm4 = vweird.f32 %v14974_v46  ;;  %v6644_v24 = vand.u32 2147483648, %v14925_v4  ;;  %9508 = vrcp.f32 %v15009_v8 }
 0xc1b   : > { %v6637_v21 = vadd.f32 %v14974_v46, %v6636_v27  ;;  %v15044_v11 = vadd.f32 1.0, %v9503_v20  ;;  %9510 = vpow2.f32 %v5739_v63  ;;  %v5745_v53 = vmul.f32 1.442695, %v8533_v32 }
 0xc1c   : > { %v6656_v43 = vsel %vm15039_vm5, %v14879_v18, %v6652_v51  ;;  %vm6638_vm7 = vweird.f32 %v14925_v4  ;;  %v6642_v59 = vand.u32 2147483647, %v14925_v4  ;;  %v15060_v26 = vadd.f32 %v5370_v52, %v12683_v35  ;;  %v16035_v52 = vld [vmem:[#allocation34_spill] sm:$0xff] }
 0xc1d   : > { %v9505_v33 = vpop.eup %9504  ;;  %v6660_v54 = vor.u32 1.1754944e-38, %v6659_v48  ;;  %v6626_v18 = vsel %vm15053_vm6, %v14888_v58, %v6622_v57  ;;  %v6630_v22 = vor.u32 1.1754944e-38, %v6629_v1  ;;  %vm15069_vm8 = vmor %vm6638_vm7, %vm6639_vm4  ;;  %9512 = vrcp.f32 %v15044_v11 }
 0xc1e   : > { %v6616_v58 = vsel %vm14983_vm14, %v14939_v38, %v6611_v5  ;;  %v6641_v4 = vsel %vm15069_vm8, %v14974_v46, %v6637_v21  ;;  %v15088_v48 = vadd.f32 1.0, %v9505_v33  ;;  %9514 = vpow2.f32 %v5745_v53 }
 0xc1f   : > { %v9507_v1 = vpop.eup %9506  ;;  %v6566_v40 = vsel %vm15078_vm10, %v14817_v56, %v14947_v2  ;;  %v6661_v38 = vsel %vm14993_vm0, %v6660_v54, %v6656_v43  ;;  %vm6628_vm11 = vcmp.eq.f32.partialorder %v6627_v49, 8.507059e+37  ;;  %v6645_v46 = vor.u32 1.1754944e-38, %v6644_v24 }
 0xc20   : > { %v15106_v55 = vpop.eup %9508  ;;  %v6581_v56 = vsel %vm15098_vm9, %v14840_v41, %v14959_v62  ;;  %v6631_v2 = vsel %vm6628_vm11, %v6630_v22, %v6626_v18  ;;  %vm6643_vm13 = vcmp.eq.f32.partialorder %v6642_v59, 8.507059e+37  ;;  %v8531_v60 = vmul.f32 -1.702, %v15060_v26 }
 0xc21   : > { %v9511_v51 = vpop.eup %9510  ;;  %v6895_v63 = vmul.f32 %v6616_v58, %v14630_v42  ;;  %v6646_v3 = vsel %vm6643_vm13, %v6645_v46, %v6641_v4  ;;  %v6664_v50 = vmul.f32 %v15106_v55, %v15009_v8  ;;  %9516 = vrcp.f32 %v15088_v48 }
 0xc22   : > { %v6571_v49 = vsel %vm15013_vm2, %v14886_v15, %v6566_v40  ;;  %vm6583_vm12 = vcmp.eq.f32.partialorder %v6582_v34, 8.507059e+37  ;;  %v6898_v41 = vmul.f32 %v6661_v38, %v14644_v36  ;;  %v15123_v62 = vadd.f32 1.0, %v9507_v1  ;;  %v16034_v15 = vld [vmem:[#allocation37_spill] sm:$0xff] }
 0xc23   : > { %v15125_v61 = vpop.eup %9512  ;;  %v6891_v42 = vmul.f32 %v14936_v13, %v14529_v25  ;;  %v6586_v57 = vsel %vm6583_vm12, %v14921_v10, %v6581_v56  ;;  %v6896_v27 = vmul.f32 %v6631_v2, %v14660_v19  ;;  %v15131_v32 = vadd.f32 1.0, %v9511_v51  ;;  %v16036_v25 = vld [vmem:[#allocation9_spill] sm:$0xff] }
 0xc24   : > { %v9515_v17 = vpop.eup %9514  ;;  %v6894_v14 = vmul.f32 %v14944_v44, %v16034_v15  ;;  %v6897_v34 = vmul.f32 %v6646_v3, %v14768_v16  ;;  %v5741_v36 = vmul.f32 1.442695, %v8531_v60  ;;  %v6892_v20 = vmul.f32 %v6571_v49, %v16035_v52 }
 0xc25   : > { %v6665_v5 = vsub.f32 1.0, %v6664_v50  ;;  %v6935_v24 = vpack.c.bf16 %v6895_v63, %v6891_v42  ;;  %9518 = vrcp.f32 %v15131_v32  ;;  %v6893_v13 = vmul.f32 %v6586_v57, %v16036_v25 }
 0xc26   : > { %v6938_v10 = vpack.c.bf16 %v6898_v41, %v6894_v14  ;;  %9520 = vrcp.f32 %v15123_v62  ;;  %v15140_v19 = vadd.f32 1.0, %v9515_v17  ;;  %v6674_v44 = vand.u32 2147483648, %v15009_v8 }
 0xc27   : > { %v15142_v7 = vpop.eup %9516  ;;  %v6709_v16 = vmul.f32 %v15125_v61, %v15044_v11  ;;  %7241 = vmatmul.bf16.gmra.mxu1 %v6935_v24  ;;  %v6936_v21 = vpack.c.bf16 %v6896_v27, %v6892_v20  ;;  %9522 = vpow2.f32 %v5741_v36  ;;  %v6672_v53 = vand.u32 2147483647, %v15009_v8 }
 0xc28   : > { %v6719_v43 = vand.u32 2147483648, %v15044_v11  ;;  %v6937_v0 = vpack.c.bf16 %v6897_v34, %v6893_v13  ;;  %9524 = vrcp.f32 %v15140_v19  ;;  %v6666_v59 = vmul.f32 %v15106_v55, %v6665_v5  ;;  %v5320_v34 = vpop.f32.mrf.mxu1 }
 0xc29   : > { %7294 = vmatmul.bf16.gmra.mxu2 %v6936_v21  ;;  %7400 = vmatmul.bf16.gmra.mxu0 %v6938_v10  ;;  %v6679_v33 = vmul.f32 %v15142_v7, %v15088_v48  ;;  %vm6668_vm14 = vweird.f32 %v15009_v8  ;;  %v6675_v18 = vor.u32 1.1754944e-38, %v6674_v44  ;;  %v6710_v22 = vsub.f32 1.0, %v6709_v16 }
 0xc2a   : > { %7347 = vmatmul.bf16.gmra.mxu3 %v6937_v0  ;;  %v6689_v45 = vand.u32 2147483648, %v15088_v48  ;;  %vm15159_vm15 = vcmp.eq.f32.partialorder %v6672_v53, 8.507059e+37  ;;  %v6717_v1 = vand.u32 2147483647, %v15044_v11  ;;  %v15164_v40 = vor.u32 1.1754944e-38, %v6719_v43 }
 0xc2b   : > { %v15153_v54 = vpop.eup %9518  ;;  %v6687_v6 = vand.u32 2147483647, %v15088_v48  ;;  %v6667_v56 = vadd.f32 %v15106_v55, %v6666_v59  ;;  %vm6669_vm0 = vweird.f32 %v15106_v55  ;;  %vm6713_vm1 = vweird.f32 %v15044_v11 }
 0xc2c   : > { %v15157_v58 = vpop.eup %9520  ;;  %v6724_v38 = vmul.f32 %v15153_v54, %v15131_v32  ;;  %v6702_v2 = vand.u32 2147483647, %v15123_v62  ;;  %v6734_v60 = vand.u32 2147483648, %v15131_v32  ;;  %v6680_v63 = vsub.f32 1.0, %v6679_v33  ;;  %vm15197_vm3 = vmor %vm6668_vm14, %vm6669_vm0 }
 0xc2d   : > { %v9523_v46 = vpop.eup %9522  ;;  %v15179_v49 = vadd.f32 %v5423_v39, %v12685_v31  ;;  %v6711_v41 = vmul.f32 %v15125_v61, %v6710_v22  ;;  %v15182_v42 = vor.u32 1.1754944e-38, %v6689_v45  ;;  %v6732_v57 = vand.u32 2147483647, %v15131_v32  ;;  %v5479_v22 = vpop.f32.mrf.mxu0 }
 0xc2e   : > { %v15174_v51 = vpop.eup %9524  ;;  %v6725_v3 = vsub.f32 1.0, %v6724_v38  ;;  %v15176_v50 = vadd.f32 1.0, %v9523_v46  ;;  %vm6683_vm2 = vweird.f32 %v15088_v48  ;;  %v6694_v17 = vmul.f32 %v15157_v58, %v15123_v62 }
 0xc2f   : > { %v6769_v27 = vmul.f32 %v15174_v51, %v15140_v19  ;;  %v6704_v15 = vand.u32 2147483648, %v15123_v62  ;;  %vm6714_vm4 = vweird.f32 %v15125_v61  ;;  %vm6684_vm5 = vweird.f32 %v15142_v7 }
 0xc30   : > { %v6726_v14 = vmul.f32 %v15153_v54, %v6725_v3  ;;  %9526 = vrcp.f32 %v15176_v50  ;;  %vm6728_vm6 = vweird.f32 %v15131_v32  ;;  %v6671_v20 = vsel %vm15197_vm3, %v15106_v55, %v6667_v56  ;;  %vm15240_vm13 = vmor %vm6713_vm1, %vm6714_vm4 }
 0xc31   : > { %v6770_v52 = vsub.f32 1.0, %v6769_v27  ;;  %v6681_v5 = vmul.f32 %v15142_v7, %v6680_v63  ;;  %v6735_v24 = vor.u32 1.1754944e-38, %v6734_v60  ;;  %v8532_v8 = vmul.f32 -1.702, %v15179_v49  ;;  %v5373_v60 = vpop.f32.mrf.mxu2  ;;  %v5322_v63 = vpop.f32.mrf.mxu1  ;;  %vm15283_vm4 = vmor %vm6683_vm2, %vm6684_vm5 }
 0xc32   : > { %v6712_v25 = vadd.f32 %v15125_v61, %v6711_v41  ;;  %vm15210_vm7 = vcmp.eq.f32.partialorder %v6732_v57, 8.507059e+37  ;;  %v6777_v44 = vand.u32 2147483647, %v15140_v19  ;;  %v15217_v16 = vadd.f32 %v5320_v34, %v12669_v30 }
 0xc33   : > { %v6771_v10 = vmul.f32 %v15174_v51, %v6770_v52  ;;  %v6695_v21 = vsub.f32 1.0, %v6694_v17  ;;  %v6727_v55 = vadd.f32 %v15153_v54, %v6726_v14  ;;  %vm6729_vm8 = vweird.f32 %v15153_v54 }
 0xc34   : > { %v5743_v53 = vmul.f32 1.442695, %v8532_v8  ;;  %v15223_v43 = vsel %vm15159_vm15, %v6675_v18, %v6671_v20  ;;  %vm15225_vm10 = vcmp.eq.f32.partialorder %v6717_v1, 8.507059e+37  ;;  %vm15229_vm9 = vcmp.eq.f32.partialorder %v6687_v6, 8.507059e+37  ;;  %vm15257_vm14 = vmor %vm6728_vm6, %vm6729_vm8 }
 0xc35   : > { %v6772_v30 = vadd.f32 %v15174_v51, %v6771_v10  ;;  %vm6774_vm11 = vweird.f32 %v15174_v51  ;;  %v8534_v33 = vmul.f32 -1.702, %v15217_v16  ;;  %v6682_v39 = vadd.f32 %v15142_v7, %v6681_v5 }
 0xc36   : > { %v9527_v45 = vpop.eup %9526  ;;  %vm6699_vm12 = vweird.f32 %v15157_v58  ;;  %v6779_v4 = vand.u32 2147483648, %v15140_v19  ;;  %9528 = vpow2.f32 %v5743_v53  ;;  %v15248_v1 = vadd.f32 %v5479_v22, %v12674_v23 }
 0xc37   : > { %v6716_v6 = vsel %vm15240_vm13, %v15125_v61, %v6712_v25  ;;  %vm6773_vm15 = vweird.f32 %v15140_v19  ;;  %v6739_v38 = vmul.f32 %v9527_v45, %v15176_v50  ;;  %v5747_v46 = vmul.f32 1.442695, %v8534_v33 }
 0xc38   : > { %v6696_v23 = vmul.f32 %v15157_v58, %v6695_v21  ;;  %vm6698_vm0 = vweird.f32 %v15123_v62  ;;  %v6731_v61 = vsel %vm15257_vm14, %v15153_v54, %v6727_v55  ;;  %vm15270_vm1 = vmor %vm6773_vm15, %vm6774_vm11  ;;  %vm15274_vm3 = vcmp.eq.f32.partialorder %v6777_v44, 8.507059e+37  ;;  %v5481_v44 = vpop.f32.mrf.mxu0 }
 0xc39   : > { %v8537_v19 = vmul.f32 -1.702, %v15248_v1  ;;  %v6776_v3 = vsel %vm15270_vm1, %v15174_v51, %v6772_v30  ;;  %v6740_v41 = vsub.f32 1.0, %v6739_v38  ;;  %9530 = vpow2.f32 %v5747_v46  ;;  %v5375_v59 = vpop.f32.mrf.mxu2  ;;  %vm15328_vm8 = vmor %vm6698_vm0, %vm6699_vm12 }
 0xc3a   : > { %v15291_v57 = vadd.f32 %v5373_v60, %v12683_v35  ;;  %v6686_v27 = vsel %vm15283_vm4, %v15142_v7, %v6682_v39  ;;  %v6780_v17 = vor.u32 1.1754944e-38, %v6779_v4  ;;  %v6749_v48 = vand.u32 2147483648, %v15176_v50  ;;  %v5426_v7 = vpop.f32.mrf.mxu3 }
 0xc3b   : > { %v5753_v14 = vmul.f32 1.442695, %v8537_v19  ;;  %v6741_v34 = vmul.f32 %v9527_v45, %v6740_v41  ;;  %vm6744_vm2 = vweird.f32 %v9527_v45  ;;  %v6747_v36 = vand.u32 2147483647, %v15176_v50 }
 0xc3c   : > { %v8535_v52 = vmul.f32 -1.702, %v15291_v57  ;;  %v9529_v51 = vpop.eup %9528  ;;  %v6736_v20 = vsel %vm15210_vm7, %v6735_v24, %v6731_v61  ;;  %v6781_v35 = vsel %vm15274_vm3, %v6780_v17, %v6776_v3  ;;  %vm6743_vm5 = vweird.f32 %v15176_v50 }
 0xc3d   : > { %9532 = vpow2.f32 %v5753_v14  ;;  %v6742_v5 = vadd.f32 %v9527_v45, %v6741_v34  ;;  %v15304_v8 = vadd.f32 1.0, %v9529_v51  ;;  %v15307_v10 = vadd.f32 %v5426_v7, %v12685_v31  ;;  %vm6745_vm6 = vmor %vm6743_vm5, %vm6744_vm2 }
 0xc3e   : > { %v5749_v25 = vmul.f32 1.442695, %v8535_v52  ;;  %v6721_v13 = vsel %vm15225_vm10, %v15164_v40, %v6716_v6  ;;  %v6691_v24 = vsel %vm15229_vm9, %v15182_v42, %v6686_v27  ;;  %v6697_v50 = vadd.f32 %v15157_v58, %v6696_v23 }
 0xc3f   : > { %v6750_v21 = vor.u32 1.1754944e-38, %v6749_v48  ;;  %v9531_v55 = vpop.eup %9530  ;;  %v6903_v53 = vmul.f32 %v6736_v20, %v14980_v28  ;;  %v6746_v30 = vsel %vm6745_vm6, %v9527_v45, %v6742_v5  ;;  %vm6748_vm7 = vcmp.eq.f32.partialorder %v6747_v36, 8.507059e+37 }
 0xc40   : > { %9534 = vrcp.f32 %v15304_v8  ;;  %v6906_v31 = vmul.f32 %v6781_v35, %v15005_v29  ;;  %v15320_v40 = vadd.f32 1.0, %v9531_v55  ;;  %v6899_v42 = vmul.f32 %v15223_v43, %v14916_v47  ;;  %v7212_v43 = vpop.f32.mrf.mxu1 }
 0xc41   : > { %v6751_v0 = vsel %vm6748_vm7, %v6750_v21, %v6746_v30  ;;  %9536 = vpow2.f32 %v5749_v25  ;;  %v8536_v29 = vmul.f32 -1.702, %v15307_v10  ;;  %v6902_v45 = vmul.f32 %v6721_v13, %v14932_v9  ;;  %v7265_v60 = vpop.f32.mrf.mxu2 }
 0xc42   : > { %v6904_v33 = vmul.f32 %v6751_v0, %v15060_v26  ;;  %v6900_v18 = vmul.f32 %v6691_v24, %v14956_v12  ;;  %v6701_v47 = vsel %vm15328_vm8, %v15157_v58, %v6697_v50  ;;  %9538 = vrcp.f32 %v15320_v40  ;;  %v5428_v9 = vpop.f32.mrf.mxu3  ;;  %v7371_v58 = vpop.f32.mrf.mxu0 }
 0xc43   : > { %v9533_v22 = vpop.eup %9532  ;;  %v6705_v39 = vor.u32 1.1754944e-38, %v6704_v15  ;;  %v5751_v26 = vmul.f32 1.442695, %v8536_v29  ;;  %v6939_v6 = vpack.c.bf16 %v6903_v53, %v6899_v42  ;;  %vm6703_vm10 = vcmp.eq.f32.partialorder %v6702_v2, 8.507059e+37  ;;  %v16066_v9 = vld [vmem:[#allocation8_spill] sm:$0xff] }
 0xc44   : > { %v15342_v4 = vadd.f32 1.0, %v9533_v22  ;;  %v6942_v11 = vpack.c.bf16 %v6906_v31, %v6902_v45  ;;  %v6940_v12 = vpack.c.bf16 %v6904_v33, %v6900_v18  ;;  %v6762_v15 = vand.u32 2147483647, %v15304_v8 }
 0xc45   : > { %v6706_v46 = vsel %vm6703_vm10, %v6705_v39, %v6701_v47  ;;  %7246 = vmatmul.bf16.gmra.mxu1 %v6939_v6  ;;  %v6764_v62 = vand.u32 2147483648, %v15304_v8  ;;  %vm6758_vm9 = vweird.f32 %v15304_v8  ;;  %v6792_v54 = vand.u32 2147483647, %v15320_v40 }
 0xc46   : > { %v9535_v38 = vpop.eup %9534  ;;  %9540 = vrcp.f32 %v15342_v4  ;;  %7405 = vmatmul.bf16.gmra.mxu0 %v6942_v11  ;;  %7299 = vmatmul.bf16.gmra.mxu2 %v6940_v12  ;;  %v15353_v56 = vmul.f32 %v6706_v46, %v14964_v37  ;;  %v6794_v41 = vand.u32 2147483648, %v15320_v40  ;;  %v7266_v27 = vadd.f32 %v7265_v60, %v7212_v43 }
 0xc47   : > { %v9537_v23 = vpop.eup %9536  ;;  %v6754_v61 = vmul.f32 %v9535_v38, %v15304_v8  ;;  %9542 = vpow2.f32 %v5751_v26  ;;  %vm6759_vm11 = vweird.f32 %v9535_v38  ;;  %vm15360_vm13 = vcmp.eq.f32.partialorder %v6762_v15, 8.507059e+37 }
 0xc48   : > { %v15350_v2 = vadd.f32 1.0, %v9537_v23  ;;  %v9539_v32 = vpop.eup %9538  ;;  %v7214_v17 = vpop.f32.mrf.mxu1  ;;  %v6765_v14 = vor.u32 1.1754944e-38, %v6764_v62  ;;  %vm6788_vm12 = vweird.f32 %v15320_v40  ;;  %v6837_v20 = vand.u32 2147483647, %v15342_v4  ;;  %vm6760_vm14 = vmor %vm6758_vm9, %vm6759_vm11 }
 0xc49   : > { %v6755_v19 = vsub.f32 1.0, %v6754_v61  ;;  %v6784_v63 = vmul.f32 %v9539_v32, %v15320_v40  ;;  %v6839_v35 = vand.u32 2147483648, %v15342_v4  ;;  %vm6789_vm15 = vweird.f32 %v9539_v32  ;;  %v7267_v42 = vpop.f32.mrf.mxu2 }
 0xc4a   : > { %9544 = vrcp.f32 %v15350_v2  ;;  %v7318_v7 = vpop.f32.mrf.mxu3  ;;  %v7373_v13 = vpop.f32.mrf.mxu0  ;;  %vm15373_vm0 = vcmp.eq.f32.partialorder %v6792_v54, 8.507059e+37  ;;  %v6795_v21 = vor.u32 1.1754944e-38, %v6794_v41  ;;  %vm6833_vm1 = vweird.f32 %v15342_v4  ;;  %vm6790_vm3 = vmor %vm6788_vm12, %vm6789_vm15 }
 0xc4b   : > { %v6756_v3 = vmul.f32 %v9535_v38, %v6755_v19  ;;  %v6785_v34 = vsub.f32 1.0, %v6784_v63  ;;  %v7319_v44 = vadd.f32 %v7318_v7, %v7266_v27  ;;  %vm15385_vm2 = vcmp.eq.f32.partialorder %v6837_v20, 8.507059e+37 }
 0xc4c   : > { %v9541_v48 = vpop.eup %9540  ;;  %v6840_v29 = vor.u32 1.1754944e-38, %v6839_v35  ;;  %v7268_v47 = vadd.f32 %v7267_v42, %v7214_v17  ;;  %v6807_v26 = vand.u32 2147483647, %v15350_v2  ;;  %v6809_v6 = vand.u32 2147483648, %v15350_v2 }
 0xc4d   : > { %v9543_v36 = vpop.eup %9542  ;;  %v6757_v52 = vadd.f32 %v9535_v38, %v6756_v3  ;;  %v6829_v51 = vmul.f32 %v9541_v48, %v15342_v4  ;;  %v6786_v5 = vmul.f32 %v9539_v32, %v6785_v34  ;;  %vm6834_vm4 = vweird.f32 %v9541_v48 }
 0xc4e   : > { %v15371_v25 = vadd.f32 1.0, %v9543_v36  ;;  %v7372_v22 = vadd.f32 %v7371_v58, %v7319_v44  ;;  %vm6835_vm5 = vmor %vm6833_vm1, %vm6834_vm4  ;;  %vm6803_vm7 = vweird.f32 %v15350_v2  ;;  %v6810_v63 = vor.u32 1.1754944e-38, %v6809_v6 }
 0xc4f   : > { %v6761_v24 = vsel %vm6760_vm14, %v9535_v38, %v6757_v52  ;;  %v6830_v55 = vsub.f32 1.0, %v6829_v51  ;;  %v6787_v8 = vadd.f32 %v9539_v32, %v6786_v5  ;;  %vm6808_vm10 = vcmp.eq.f32.partialorder %v6807_v26, 8.507059e+37 }
 0xc50   : > { %v9545_v53 = vpop.eup %9544  ;;  %v6766_v30 = vsel %vm15360_vm13, %v6765_v14, %v6761_v24  ;;  %9546 = vrcp.f32 %v15371_v25  ;;  %v7217_v43 = vpop.f32.mrf.mxu1  ;;  %v7415_v11 = vadd.f32 %v7372_v22, %v16066_v9  ;;  %v6822_v36 = vand.u32 2147483647, %v15371_v25  ;;  %v16069_v22 = vld [vmem:[#allocation13_spill] sm:$0xff]  ;;  %v16070_v9 = vld [vmem:[#allocation14_spill] sm:$0xff] }
 0xc51   : > { %v6905_v31 = vmul.f32 %v6766_v30, %v15179_v49  ;;  %v6831_v0 = vmul.f32 %v9541_v48, %v6830_v55  ;;  %v6799_v59 = vmul.f32 %v9545_v53, %v15350_v2  ;;  %v6791_v28 = vsel %vm6790_vm3, %v9539_v32, %v6787_v8  ;;  %v15394_v49 = vld [vmem:[%s16065_s27] ss:$0 sm:$0xff]  ;;  %v7270_v27 = vpop.f32.mrf.mxu2 }
 0xc52   : > { %v6796_v40 = vsel %vm15373_vm0, %v6795_v21, %v6791_v28  ;;  %vm6804_vm6 = vweird.f32 %v9545_v53  ;;  %v7320_v46 = vpop.f32.mrf.mxu3  ;;  %v7436_v4 = vadd.f32 %v15394_v49, %v7415_v11  ;;  %v7376_v62 = vpop.f32.mrf.mxu0  ;;  %v7271_v14 = vadd.f32 %v7270_v27, %v7217_v43  ;;  %v16072_v27 = vld [vmem:[#allocation20_spill] sm:$0xff] }
 0xc53   : > { %v6832_v45 = vadd.f32 %v9541_v48, %v6831_v0  ;;  %v6800_v18 = vsub.f32 1.0, %v6799_v59  ;;  %v6907_v39 = vmul.f32 %v6796_v40, %v15217_v16  ;;  %v6941_v58 = vpack.c.bf16 %v6905_v31, %v15353_v56  ;;  %vm6805_vm8 = vmor %vm6803_vm7, %vm6804_vm6 }
 0xc54   : > { %v7321_v15 = vadd.f32 %v7320_v46, %v7268_v47  ;;  %7453 = vst [vmem:[#allocation2] sm:$0xff] %v7436_v4  ;;  %vm6818_vm11 = vweird.f32 %v15371_v25  ;;  %vm6823_vm12 = vcmp.eq.f32.partialorder %v6822_v36, 8.507059e+37 }
 0xc55   : > { %v6836_v12 = vsel %vm6835_vm5, %v9541_v48, %v6832_v45  ;;  %v6801_v38 = vmul.f32 %v9545_v53, %v6800_v18  ;;  %v6943_v61 = vpack.c.bf16 %v6907_v39, %v6907_v39  ;;  %7352 = vmatmul.bf16.gmra.mxu3 %v6941_v58  ;;  %v6824_v48 = vand.u32 2147483648, %v15371_v25 }
 0xc56   : > { %v9547_v23 = vpop.eup %9546  ;;  %v6841_v16 = vsel %vm15385_vm2, %v6840_v29, %v6836_v12  ;;  %v7374_v56 = vadd.f32 %v7373_v13, %v7321_v15  ;;  %v16071_v15 = vld [vmem:[#allocation19_spill] sm:$0xff] }
 0xc57   : > { %v6910_v32 = vmul.f32 %v6841_v16, %v15248_v1  ;;  %v6802_v19 = vadd.f32 %v9545_v53, %v6801_v38  ;;  %v6814_v60 = vmul.f32 %v9547_v23, %v15371_v25  ;;  %7251 = vmatmul.bf16.gmra.mxu1 %v6943_v61  ;;  %v16067_v1 = vld [vmem:[#allocation11_spill] sm:$0xff]  ;;  %vm6819_vm9 = vweird.f32 %v9547_v23 }
 0xc58   : > { %v7416_v37 = vadd.f32 %v7374_v56, %v16067_v1  ;;  %v7219_v52 = vpop.f32.mrf.mxu1  ;;  %vm6820_vm13 = vmor %vm6818_vm11, %vm6819_vm9  ;;  %v6825_v5 = vor.u32 1.1754944e-38, %v6824_v48 }
 0xc59   : > { %v6946_v54 = vpack.c.bf16 %v6910_v32, %v6910_v32  ;;  %v6806_v3 = vsel %vm6805_vm8, %v9545_v53, %v6802_v19  ;;  %v6815_v41 = vsub.f32 1.0, %v6814_v60  ;;  %v7272_v55 = vpop.f32.mrf.mxu2  ;;  %v16068_v53 = vld [vmem:[#allocation26_spill] sm:$0xff] }
 0xc5a   : > { %v6811_v17 = vsel %vm6808_vm10, %v6810_v63, %v6806_v3  ;;  %v7437_v51 = vadd.f32 %v15394_v49, %v7416_v37  ;;  %v7323_v7 = vpop.f32.mrf.mxu3  ;;  %v7378_v13 = vpop.f32.mrf.mxu0  ;;  %v7273_v8 = vadd.f32 %v7272_v55, %v7219_v52  ;;  %v16073_v52 = vld [vmem:[#allocation22_spill] sm:$0xff] }
 0xc5b   : > { %v6908_v2 = vmul.f32 %v6811_v17, %v15291_v57  ;;  %v6816_v34 = vmul.f32 %v9547_v23, %v6815_v41  ;;  %7410 = vmatmul.bf16.gmra.mxu0 %v6946_v54  ;;  %v7324_v44 = vadd.f32 %v7323_v7, %v7271_v14 }
 0xc5c   : > { %7454 = vst [vmem:[#allocation2 + $0x38] sm:$0xff] %v7437_v51 }
 0xc5d   : > { %v6944_v20 = vpack.c.bf16 %v6908_v2, %v6908_v2  ;;  %v6817_v35 = vadd.f32 %v9547_v23, %v6816_v34  ;;  %v7377_v50 = vadd.f32 %v7376_v62, %v7324_v44 }
 0xc5f   : > { %v6821_v24 = vsel %vm6820_vm13, %v9547_v23, %v6817_v35  ;;  %7304 = vmatmul.bf16.gmra.mxu2 %v6944_v20  ;;  %v7417_v30 = vadd.f32 %v7377_v50, %v16068_v53  ;;  %v16074_v50 = vld [vmem:[#allocation15_spill] sm:$0xff] }
 0xc60   : > { %v6826_v57 = vsel %vm6823_vm12, %v6825_v5, %v6821_v24  ;;  %v7222_v31 = vpop.f32.mrf.mxu1 }
 0xc61   : > { %v6909_v21 = vmul.f32 %v6826_v57, %v15307_v10  ;;  %v7438_v25 = vadd.f32 %v15394_v49, %v7417_v30  ;;  %v7275_v29 = vpop.f32.mrf.mxu2 }
 0xc62   : > { %v7325_v59 = vpop.f32.mrf.mxu3  ;;  %v7381_v28 = vpop.f32.mrf.mxu0  ;;  %v7276_v45 = vadd.f32 %v7275_v29, %v7222_v31 }
 0xc63   : > { %v6945_v0 = vpack.c.bf16 %v6909_v21, %v6909_v21  ;;  %7455 = vst [vmem:[#allocation2 + $0x78] sm:$0xff] %v7438_v25  ;;  %v7326_v42 = vadd.f32 %v7325_v59, %v7273_v8 }
 0xc65   : > { %7357 = vmatmul.bf16.gmra.mxu3 %v6945_v0  ;;  %v7379_v33 = vadd.f32 %v7378_v13, %v7326_v42  ;;  %v16075_v42 = vld [vmem:[#allocation23_spill] sm:$0xff] }
 0xc67   : > { %v7418_v40 = vadd.f32 %v7379_v33, %v16069_v22 }
 0xc68   : > { %v7224_v18 = vpop.f32.mrf.mxu1 }
 0xc69   : > { %v7439_v10 = vadd.f32 %v15394_v49, %v7418_v40  ;;  %v7277_v6 = vpop.f32.mrf.mxu2 }
 0xc6a   : > { %v7328_v47 = vpop.f32.mrf.mxu3  ;;  %v7383_v39 = vpop.f32.mrf.mxu0  ;;  %v7278_v12 = vadd.f32 %v7277_v6, %v7224_v18 }
 0xc6b   : > { %7456 = vst [vmem:[#allocation2 + $0x58] sm:$0xff] %v7439_v10  ;;  %v7329_v43 = vadd.f32 %v7328_v47, %v7276_v45  ;;  %v16076_v47 = vld [vmem:[#allocation16_spill] sm:$0xff] }
 0xc6d   : > { %v7382_v26 = vadd.f32 %v7381_v28, %v7329_v43 }
 0xc6f   : > { %v7419_v11 = vadd.f32 %v7382_v26, %v16070_v9 }
 0xc70   : > { %v7227_v38 = vpop.f32.mrf.mxu1 }
 0xc71   : > { %v7440_v46 = vadd.f32 %v15394_v49, %v7419_v11  ;;  %v7280_v4 = vpop.f32.mrf.mxu2 }
 0xc72   : > { %v7330_v58 = vpop.f32.mrf.mxu3  ;;  %v7386_v61 = vpop.f32.mrf.mxu0  ;;  %v7281_v32 = vadd.f32 %v7280_v4, %v7227_v38 }
 0xc73   : > { %7457 = vst [vmem:[#allocation2 + $0x20] sm:$0xff] %v7440_v46  ;;  %v7331_v23 = vadd.f32 %v7330_v58, %v7278_v12  ;;  %v16077_v58 = vld [vmem:[#allocation27_spill] sm:$0xff] }
 0xc75   : > { %v7384_v16 = vadd.f32 %v7383_v39, %v7331_v23 }
 0xc77   : > { %v7420_v62 = vadd.f32 %v7384_v16, %v16071_v15 }
 0xc78   : > { %v7229_v19 = vpop.f32.mrf.mxu1 }
 0xc79   : > { %v7441_v60 = vadd.f32 %v15394_v49, %v7420_v62  ;;  %v7282_v41 = vpop.f32.mrf.mxu2 }
 0xc7a   : > { %v7333_v63 = vpop.f32.mrf.mxu3  ;;  %v7388_v54 = vpop.f32.mrf.mxu0  ;;  %v7283_v48 = vadd.f32 %v7282_v41, %v7229_v19 }
 0xc7b   : > { %7458 = vst [vmem:[#allocation2 + $0x8] sm:$0xff] %v7441_v60  ;;  %v7334_v56 = vadd.f32 %v7333_v63, %v7281_v32  ;;  %v16078_v60 = vld [vmem:[#allocation17_spill] sm:$0xff] }
 0xc7d   : > { %v7387_v3 = vadd.f32 %v7386_v61, %v7334_v56 }
 0xc7f   : > { %v7421_v17 = vadd.f32 %v7387_v3, %v16072_v27 }
 0xc81   : > { %v7442_v1 = vadd.f32 %v15394_v49, %v7421_v17 }
 0xc82   : > { %v7335_v37 = vpop.f32.mrf.mxu3  ;;  %v7232_v14 = vpop.f32.mrf.mxu1 }
 0xc83   : > { %7459 = vst [vmem:[#allocation2 + $0x70] sm:$0xff] %v7442_v1  ;;  %v7336_v2 = vadd.f32 %v7335_v37, %v7283_v48  ;;  %v16079_v37 = vld [vmem:[#allocation29_spill] sm:$0xff] }
 0xc85   : > { %v7389_v34 = vadd.f32 %v7388_v54, %v7336_v2  ;;  %v7391_v36 = vpop.f32.mrf.mxu0 }
 0xc87   : > { %v7422_v51 = vadd.f32 %v7389_v34, %v16073_v52 }
 0xc89   : > { %v7443_v20 = vadd.f32 %v15394_v49, %v7422_v51 }
 0xc8a   : > { %v7285_v35 = vpop.f32.mrf.mxu2  ;;  %v7234_v7 = vpop.f32.mrf.mxu1 }
 0xc8b   : > { %7460 = vst [vmem:[#allocation2 + $0x80] sm:$0xff] %v7443_v20  ;;  %v7286_v5 = vadd.f32 %v7285_v35, %v7232_v14  ;;  %v7338_v44 = vpop.f32.mrf.mxu3 }
 0xc8d   : > { %v7339_v13 = vadd.f32 %v7338_v44, %v7286_v5  ;;  %v7393_v24 = vpop.f32.mrf.mxu0 }
 0xc8f   : > { %v7392_v57 = vadd.f32 %v7391_v36, %v7339_v13 }
 0xc91   : > { %v7423_v21 = vadd.f32 %v7392_v57, %v16074_v50 }
 0xc92   : > { %v7287_v55 = vpop.f32.mrf.mxu2 }
 0xc93   : > { %v7444_v53 = vadd.f32 %v15394_v49, %v7423_v21  ;;  %v7288_v30 = vadd.f32 %v7287_v55, %v7234_v7  ;;  %v7340_v8 = vpop.f32.mrf.mxu3  ;;  %v7237_v31 = vpop.f32.mrf.mxu1  ;;  %v16080_v21 = vld [vmem:[#allocation28_spill] sm:$0xff] }
 0xc95   : > { %7461 = vst [vmem:[#allocation2 + $0x28] sm:$0xff] %v7444_v53  ;;  %v7341_v25 = vadd.f32 %v7340_v8, %v7288_v30 }
 0xc96   : > { %v7396_v59 = vpop.f32.mrf.mxu0 }
 0xc97   : > { %v7394_v0 = vadd.f32 %v7393_v24, %v7341_v25 }
 0xc99   : > { %v7424_v28 = vadd.f32 %v7394_v0, %v16075_v42  ;;  %v16081_v42 = vld [vmem:[#allocation12_spill] sm:$0xff] }
 0xc9a   : > { %v7290_v33 = vpop.f32.mrf.mxu2 }
 0xc9b   : > { %v7445_v29 = vadd.f32 %v15394_v49, %v7424_v28  ;;  %v7291_v22 = vadd.f32 %v7290_v33, %v7237_v31  ;;  %v7343_v40 = vpop.f32.mrf.mxu3  ;;  %v7239_v18 = vpop.f32.mrf.mxu1 }
 0xc9d   : > { %7462 = vst [vmem:[#allocation2 + $0x48] sm:$0xff] %v7445_v29  ;;  %v7344_v45 = vadd.f32 %v7343_v40, %v7291_v22 }
 0xc9e   : > { %v7398_v39 = vpop.f32.mrf.mxu0 }
 0xc9f   : > { %v7397_v10 = vadd.f32 %v7396_v59, %v7344_v45 }
 0xca1   : > { %v7425_v43 = vadd.f32 %v7397_v10, %v16076_v47  ;;  %v16082_v10 = vld [vmem:[#allocation18_spill] sm:$0xff] }
 0xca2   : > { %v7292_v26 = vpop.f32.mrf.mxu2 }
 0xca3   : > { %v7446_v6 = vadd.f32 %v15394_v49, %v7425_v43  ;;  %v7293_v9 = vadd.f32 %v7292_v26, %v7239_v18  ;;  %v7345_v11 = vpop.f32.mrf.mxu3 }
 0xca4   : > { %v7242_v46 = vpop.f32.mrf.mxu1 }
 0xca5   : > { %7463 = vst [vmem:[#allocation2 + $0x10] sm:$0xff] %v7446_v6  ;;  %v7346_v12 = vadd.f32 %v7345_v11, %v7293_v9 }
 0xca6   : > { %v7401_v62 = vpop.f32.mrf.mxu0 }
 0xca7   : > { %v7399_v38 = vadd.f32 %v7398_v39, %v7346_v12 }
 0xca9   : > { %v7426_v23 = vadd.f32 %v7399_v38, %v16077_v58 }
 0xcab   : > { %v7447_v16 = vadd.f32 %v15394_v49, %v7426_v23 }
 0xcac   : > { %v7295_v61 = vpop.f32.mrf.mxu2  ;;  %v7244_v56 = vpop.f32.mrf.mxu1 }
 0xcad   : > { %v7296_v4 = vadd.f32 %v7295_v61, %v7242_v46  ;;  %v7348_v15 = vpop.f32.mrf.mxu3  ;;  %7464 = vst [vmem:[#allocation2 + $0x30] sm:$0xff] %v7447_v16 }
 0xcae   : > { %v7403_v48 = vpop.f32.mrf.mxu0 }
 0xcaf   : > { %v7349_v32 = vadd.f32 %v7348_v15, %v7296_v4 }
 0xcb1   : > { %v7402_v19 = vadd.f32 %v7401_v62, %v7349_v32 }
 0xcb3   : > { %v7427_v63 = vadd.f32 %v7402_v19, %v16078_v60 }
 0xcb4   : > { %v7297_v54 = vpop.f32.mrf.mxu2 }
 0xcb5   : > { %v7448_v3 = vadd.f32 %v15394_v49, %v7427_v63  ;;  %v7298_v41 = vadd.f32 %v7297_v54, %v7244_v56  ;;  %v7350_v27 = vpop.f32.mrf.mxu3 }
 0xcb7   : > { %7465 = vst [vmem:[#allocation2 + $0x40] sm:$0xff] %v7448_v3  ;;  %v7351_v17 = vadd.f32 %v7350_v27, %v7298_v41 }
 0xcb9   : > { %v7404_v1 = vadd.f32 %v7403_v48, %v7351_v17 }
 0xcbb   : > { %v7428_v14 = vadd.f32 %v7404_v1, %v16079_v37 }
 0xcbd   : > { %v7449_v2 = vadd.f32 %v15394_v49, %v7428_v14 }
 0xcbf   : > { %7466 = vst [vmem:[#allocation2 + $0x68] sm:$0xff] %v7449_v2 }
 0xcc2   : > { %v7247_v34 = vpop.f32.mrf.mxu1 }
 0xcc3   : > { %v7406_v36 = vpop.f32.mrf.mxu0 }
 0xcc9   : > { %v7300_v20 = vpop.f32.mrf.mxu2 }
 0xcca   : > { %v7249_v52 = vpop.f32.mrf.mxu1  ;;  %v7301_v7 = vadd.f32 %v7300_v20, %v7247_v34 }
 0xccb   : > { %v7408_v51 = vpop.f32.mrf.mxu0 }
 0xcd1   : > { %v7302_v44 = vpop.f32.mrf.mxu2 }
 0xcd2   : > { %v7303_v53 = vadd.f32 %v7302_v44, %v7249_v52 }
 0xcd4   : > { %v7252_v35 = vpop.f32.mrf.mxu1 }
 0xcd8   : > { %v7411_v5 = vpop.f32.mrf.mxu0  ;;  %v7353_v13 = vpop.f32.mrf.mxu3 }
 0xcd9   : > { %v7354_v24 = vadd.f32 %v7353_v13, %v7301_v7 }
 0xcdb   : > { %v7407_v57 = vadd.f32 %v7406_v36, %v7354_v24 }
 0xcdc   : > { %v7254_v50 = vpop.f32.mrf.mxu1 }
 0xcdd   : > { %v7429_v55 = vadd.f32 %v7407_v57, %v16080_v21 }
 0xcdf   : > { %v7450_v8 = vadd.f32 %v15394_v49, %v7429_v55 }
 0xce0   : > { %v7413_v30 = vpop.f32.mrf.mxu0  ;;  %v7355_v31 = vpop.f32.mrf.mxu3 }
 0xce1   : > { %7467 = vst [vmem:[#allocation2 + $0x50] sm:$0xff] %v7450_v8  ;;  %v7356_v0 = vadd.f32 %v7355_v31, %v7303_v53 }
 0xce2   : > { %v7305_v25 = vpop.f32.mrf.mxu2 }
 0xce3   : > { %v7409_v59 = vadd.f32 %v7408_v51, %v7356_v0  ;;  %v7306_v33 = vadd.f32 %v7305_v25, %v7252_v35 }
 0xce5   : > { %v7430_v28 = vadd.f32 %v7409_v59, %v16081_v42 }
 0xce7   : > { %v7451_v29 = vadd.f32 %v15394_v49, %v7430_v28 }
 0xce8   : > { %v7358_v22 = vpop.f32.mrf.mxu3 }
 0xce9   : > { %7468 = vst [vmem:[#allocation2 + $0x60] sm:$0xff] %v7451_v29  ;;  %v7359_v45 = vadd.f32 %v7358_v22, %v7306_v33 }
 0xcea   : > { %v7307_v40 = vpop.f32.mrf.mxu2 }
 0xceb   : > { %v7412_v18 = vadd.f32 %v7411_v5, %v7359_v45 }
 0xced   : > { %v7431_v47 = vadd.f32 %v7412_v18, %v16082_v10  ;;  %7473 = sbr.rel (%p8666_p5) target bundleno = 3716 (0xe84), region = 112 }
 0xcef   : > { %v7452_v43 = vadd.f32 %v15394_v49, %v7431_v47 }
 0xcf0   : > { %v7360_v39 = vpop.f32.mrf.mxu3 }
 0xcf1   : > { %7469 = vst [vmem:[#allocation2 + $0x18] sm:$0xff] %v7452_v43 }
 0xcf2   : > { %7476 = vadd.xlane.f32.xlu0 %v7452_v43  ;;  %v16083_v6 = vld [vmem:[#allocation7_spill] sm:$0xff]  ;;  %v8905_v38 = vld [vmem:[%s16084_s0 + $0x38] sm:$0xff]  ;;  %v8903_v46 = vld [vmem:[%s16084_s0 + $0x28] sm:$0xff] }
 0xcf3   : > { %7569 = vmatpush.bf16.msra.mxu0 %v8905_v38  ;;  %v8904_v49 = vld [vmem:[%s16084_s0 + $0x30] sm:$0xff]  ;;  %v8902_v58 = vld [vmem:[%s16084_s0 + $0x20] sm:$0xff]  ;;  %v8901_v23 = vld [vmem:[%s16084_s0 + $0x18] sm:$0xff] }
 0xcf4   : > { %v8900_v61 = vld [vmem:[%s16084_s0 + $0x10] sm:$0xff]  ;;  %v8899_v16 = vld [vmem:[%s16084_s0 + $0x8] sm:$0xff]  ;;  %v8898_v4 = vld [vmem:[%s16084_s0] sm:$0xff] }
 0xcf5   : > { %v9574_v41 = vld [vmem:[%s16085_s26] ss:$0 sm:$0xff] }
 0xcf6   : > { %v9575_v48 = vld [vmem:[%s16086_s5] ss:$0 sm:$0xff] }
 0xcf7   : > { %7570 = vmatpush.bf16.msra.mxu0 %v8904_v49 }
 0xcfb   : > { %7571 = vmatpush.bf16.msra.mxu0 %v8903_v46 }
 0xcff   : > { %7572 = vmatpush.bf16.msra.mxu0 %v8902_v58 }
 0xd03   : > { %7573 = vmatpush.bf16.msra.mxu0 %v8901_v23 }
 0xd07   : > { %7574 = vmatpush.bf16.msra.mxu0 %v8900_v61 }
 0xd0b   : > { %7575 = vmatpush.bf16.msra.mxu0 %v8899_v16 }
 0xd0f   : > { %7576 = vmatpush.bf16.msra.mxu0 %v8898_v4 }
 0xd65   : > { %v7477_v26 = vpop.xlane.xlu0 %7476 }
 0xd66   : > { %v7478_v9 = vmul.f32 %v7477_v26, %v16083_v6 }
 0xd68   : > { %v7479_v11 = vsub.f32 %v7452_v43, %v7478_v9 }
 0xd6a   : > { %v7480_v12 = vmul.f32 %v7479_v11, %v7479_v11 }
 0xd6c   : > { %7481 = vadd.xlane.f32.xlu0 %v7480_v12 }
 0xddf   : > { %v7482_v15 = vpop.xlane.xlu0 %7481 }
 0xde0   : > { %v7483_v62 = vmul.f32 %v7482_v15, %v16083_v6 }
 0xde2   : > { %v7484_v32 = vadd.f32 1e-05, %v7483_v62 }
 0xde4   : > { %9576 = vrsqrt.f32 %v7484_v32  ;;  %vm7491_vm15 = vweird.f32 %v7484_v32 }
 0xdea   : > { %v9577_v19 = vpop.eup %9576 }
 0xdeb   : > { %v7486_v60 = vmul.f32 %v9577_v19, %v7484_v32  ;;  %vm7492_vm14 = vweird.f32 %v9577_v19 }
 0xdec   : > { %vm7493_vm0 = vmor %vm7491_vm15, %vm7492_vm14 }
 0xded   : > { %v7487_v63 = vmul.f32 %v9577_v19, %v7486_v60 }
 0xdef   : > { %v7488_v56 = vmul.f32 0.5, %v7487_v63 }
 0xdf1   : > { %v7489_v54 = vsub.f32 1.5, %v7488_v56 }
 0xdf3   : > { %v7490_v3 = vmul.f32 %v9577_v19, %v7489_v54 }
 0xdf5   : > { %v7494_v27 = vsel %vm7493_vm0, %v9577_v19, %v7490_v3 }
 0xdf6   : > { %v7495_v17 = vmul.f32 %v7494_v27, %v7479_v11 }
 0xdf8   : > { %v7499_v1 = vmul.f32 %v9574_v41, %v7495_v17 }
 0xdfa   : > { %v7503_v37 = vadd.f32 %v9575_v48, %v7499_v1 }
 0xdfc   : > { %v7504_v14 = vpack.c.bf16 %v7503_v37, %v7503_v37 }
 0xdfe   : > { %7577 = vmatmul.bf16.vlgmr.msra.gmra.mxu0 %v7504_v14 }
 0xe7b   : > { %v7578_v2 = vpop.f32.mrf.mxu0 }
 0xe7c   : > { %7582 = vst [vmem:[#allocation3] sm:$0xff] %v7578_v2 }
 0xe83   : > { %v7580_v34 = vpop.f32.mrf.mxu0 }
 0xe84 PF: > { %p8944_p6 = scmp.eq.s32.totalorder %s9738_s25, 1  ;;  %s9621_s9 = smov [#allocation3]  }
 0xe85   : > { %s7589_s13 = sshll.u32 %s9621_s9, 4  ;;  %s16087_s2 = sld [smem:[#allocation63_spill]]  ;;  %s7590_s13 = int_to_ptr.vmem [resolvable:$true] %s7589_s13 }
 0xe8b   : > { %s7591_s4 = sshll.u32 %s16087_s2, 4  ;;  %s7592_s4 = int_to_ptr.hbm [resolvable:$true] %s7591_s4 }
 0xe8c   : > { %8941 = dma.vmem_to_hbm [thread:$0]  (%p8944_p6), %s7590_s13, 128, %s7592_s4, [#allocation4]  }
 0xe8d   : > { %9611 = dma.done.wait (%p8944_p6), [#allocation4], 128  }
 0xe8e   : > { %9613 = vsyncadd (%p8944_p6), [#allocation4], 4294967168 }
 0xe8f PF: > { %s16088_s29 = sld [smem:[#allocation6_spill]] }
 0xe95   : > { %s32_s2 = sadd.s32 1, %s16088_s29  }
 0xe96   : > { %p29_p7 = scmp.ge.s32.totalorder %s32_s2, 4  }
 0xe98   :  { %31 = sbr.rel (!%p29_p7) target bundleno = 17 (0x11), region = 172 }
 0xe9d   :  { %7605 = vsyncpa [#allocation4], 1 }
 0xe9e   :  { %7607 = vsyncpa [#allocation4 + $0x1], 1 }

</bundles_post_ra>
